<compile_context>
chip_gen: v7x
topology: tpu7x:2x2x1
jax: 0.10.0
libtpu: 0.0.40
codegen_flags: <defaults>
</compile_context>

<pallas_src>
import functools

import jax
import jax.numpy as jnp
from jax.experimental import pallas as pl
from jax.experimental.pallas import tpu as pltpu


def _round_up(v, m):
    return (v + m - 1) // m * m


# -----------------------------------------------------------------------------
# Fused ResBlock kernel
#   x_ref   : (N, Hp, Wp_pad, Cp) f32   spatially halo-padded, channel-padded
#   xres_ref: (M, Cp)             f32   pre-flattened residual (un-padded x)
#   w3_ref  : (9*Cp, Cm)          bf16  3x3 conv as im2col GEMM operand
#   g_ref   : (1, Cm)             f32   BN gamma
#   bt_ref  : (1, Cm)             f32   BN beta
#   w1_ref  : (Cm, Cp)            bf16  1x1 conv GEMM operand
#   b1_ref  : (1, Cp)             f32   1x1 conv bias
#   o_ref   : (M, Cp)             f32
#   xr_ref  : VMEM scratch (N, Hp, Wp_pad, Cp) bf16   relu(x), cast once
#   col_ref : VMEM scratch (M, 9*Cp)           bf16   im2col panel
# -----------------------------------------------------------------------------
def _resblock_kernel(x_ref, xres_ref, w3_ref, g_ref, bt_ref, w1_ref, b1_ref,
                     o_ref, xr_ref, col_ref, *, eps, H, W):
    N, Hp, Wp, Cp = x_ref.shape
    M, _ = col_ref.shape

    # ---- 1) Leading ReLU + bf16 cast, once (hoisted out of the tap loop) ----
    xr_ref[...] = jnp.maximum(x_ref[...], 0.0).astype(jnp.bfloat16)

    # ---- 2) Build im2col panel: 9 lane-aligned bf16 writes ----
    k = 0
    for i in range(3):
        for j in range(3):
            tap = xr_ref[:, pl.ds(i, H), pl.ds(j, W), :].reshape(M, Cp)
            col_ref[:, pl.ds(k * Cp, Cp)] = tap
            k += 1

    # ---- 3) Conv3x3 as ONE GEMM (K = 9*Cp), f32 accumulation in the MXU ----
    h = jnp.dot(col_ref[...], w3_ref[...], preferred_element_type=jnp.float32)

    # ---- 4) BN batch stats, one sweep: var = E[h^2] - E[h]^2 ----
    # NOTE: the conv3x3 bias cancels exactly under training-mode BN -> dropped.
    inv_m = 1.0 / M
    mean = jnp.sum(h, axis=0, keepdims=True) * inv_m
    meansq = jnp.sum(h * h, axis=0, keepdims=True) * inv_m
    var = meansq - mean * mean
    s = g_ref[...] * jax.lax.rsqrt(var + eps)       # (1, Cm)
    t = bt_ref[...] - mean * s                      # (1, Cm)

    # ---- 5) BN apply + ReLU + bf16 cast, single pass over h ----
    a = jnp.maximum(h * s + t, 0.0).astype(jnp.bfloat16)

    # ---- 6) Conv1x1 GEMM + bias + residual add ----
    out = jnp.dot(a, w1_ref[...], preferred_element_type=jnp.float32)
    o_ref[...] = (xres_ref[...] + out + b1_ref[...]).astype(o_ref.dtype)


# -----------------------------------------------------------------------------
# Wrapper: NCHW in/out, parameter padding / GEMM-layout prep (tiny XLA glue)
# -----------------------------------------------------------------------------
@jax.jit
def resblock_forward(x_nchw, params):
    N, C, H, W = x_nchw.shape
    w3 = params["w3"]                              # (Cmid, Cin, 3, 3)
    gamma, beta = params["bn_g"], params["bn_b"]   # (Cmid,)
    w1, b1 = params["w1"], params["b1"]            # (Cout, Cmid, 1, 1), (Cout,)
    Cmid, Cout = w3.shape[0], w1.shape[0]
    assert Cout == C, "residual add requires in_channels == out_channels"

    LANE, SUB = 128, 8
    Cp = _round_up(C, LANE)        # padded in/out channels (lane dim)
    Cm = _round_up(Cmid, LANE)     # padded mid channels
    M = N * H * W                  # GEMM rows (512 here; multiple of 8)

    x = jnp.transpose(x_nchw, (0, 2, 3, 1)).astype(jnp.float32)   # NHWC

    # Residual: pre-flattened + channel-padded (no in-kernel halo strip).
    xres = jnp.pad(x.reshape(M, C), ((0, 0), (0, Cp - C)))

    # Conv input: halo-pad by 1 each side; round padded width up to sublanes.
    Wp = W + 2
    Wp_pad = _round_up(Wp, SUB)
    Hp = H + 2
    xpad = jnp.pad(x, ((0, 0), (1, 1), (1, 1 + (Wp_pad - Wp)), (0, Cp - C)))

    # 3x3 conv weight: torch (Cmid, Cin, 3, 3) -> (9*Cp, Cm) bf16 im2col GEMM.
    w3m = jnp.transpose(w3, (2, 3, 1, 0))                          # (3,3,Cin,Cmid)
    w3m = jnp.pad(w3m, ((0, 0), (0, 0), (0, Cp - C), (0, Cm - Cmid)))
    w3m = w3m.reshape(9 * Cp, Cm).astype(jnp.bfloat16)
    # b3 intentionally not passed: cancels exactly under training-mode BN.
    gp = jnp.pad(gamma.astype(jnp.float32), (0, Cm - Cmid)).reshape(1, Cm)
    bp = jnp.pad(beta.astype(jnp.float32), (0, Cm - Cmid)).reshape(1, Cm)

    # 1x1 conv weight: torch (Cout, Cmid, 1, 1) -> (Cm, Cp) bf16 GEMM operand.
    w1m = jnp.transpose(w1[:, :, 0, 0], (1, 0))
    w1m = jnp.pad(w1m, ((0, Cm - Cmid), (0, Cp - Cout))).astype(jnp.bfloat16)
    b1p = jnp.pad(b1.astype(jnp.float32), (0, Cp - Cout)).reshape(1, Cp)

    out = pl.pallas_call(
        functools.partial(_resblock_kernel, eps=1e-5, H=H, W=W),
        out_shape=jax.ShapeDtypeStruct((M, Cp), jnp.float32),
        grid=(1,),
        in_specs=[
            pl.BlockSpec((N, Hp, Wp_pad, Cp), lambda i: (0, 0, 0, 0)),
            pl.BlockSpec((M, Cp), lambda i: (0, 0)),
            pl.BlockSpec((9 * Cp, Cm), lambda i: (0, 0)),
            pl.BlockSpec((1, Cm), lambda i: (0, 0)),
            pl.BlockSpec((1, Cm), lambda i: (0, 0)),
            pl.BlockSpec((Cm, Cp), lambda i: (0, 0)),
            pl.BlockSpec((1, Cp), lambda i: (0, 0)),
        ],
        out_specs=pl.BlockSpec((M, Cp), lambda i: (0, 0)),
        scratch_shapes=[
            pltpu.VMEM((N, Hp, Wp_pad, Cp), jnp.bfloat16),   # relu(x) bf16
            pltpu.VMEM((M, 9 * Cp), jnp.bfloat16),           # im2col panel
        ],
        compiler_params=pltpu.CompilerParams(
            dimension_semantics=("arbitrary",),
            vmem_limit_bytes=32 * 1024 * 1024,
        ),
    )(xpad, xres, w3m, gp, bp, w1m, b1p)

    out = out.reshape(N, H, W, Cp)[:, :, :, :C]   # drop lane padding
    return jnp.transpose(out, (0, 3, 1, 2))       # NHWC -> NCHW


# -----------------------------------------------------------------------------
# Pure-JAX reference (f32) for a correctness check
# -----------------------------------------------------------------------------
def _resblock_ref(x_nchw, p, eps=1e-5):
    x = jnp.transpose(x_nchw, (0, 2, 3, 1))
    h = jax.nn.relu(x)
    h = jax.lax.conv_general_dilated(
        h, jnp.transpose(p["w3"], (2, 3, 1, 0)), (1, 1), ((1, 1), (1, 1)),
        dimension_numbers=("NHWC", "HWIO", "NHWC")) + p["b3"]
    mean = h.mean(axis=(0, 1, 2))
    var = h.var(axis=(0, 1, 2))
    h = (h - mean) * jax.lax.rsqrt(var + eps) * p["bn_g"] + p["bn_b"]
    h = jax.nn.relu(h)
    h = jax.lax.conv_general_dilated(
        h, jnp.transpose(p["w1"], (2, 3, 1, 0)), (1, 1), "VALID",
        dimension_numbers=("NHWC", "HWIO", "NHWC")) + p["b1"]
    return jnp.transpose(x + h, (0, 3, 1, 2))


if __name__ == "__main__":
    key = jax.random.PRNGKey(0)
    kx, k3, kb3, k1, kb1 = jax.random.split(key, 5)

    N, C, H, W = 2, 4, 16, 16   # in_channels == mid_channels == out_channels
    x = jax.random.normal(kx, (N, C, H, W), jnp.float32)

    params = {
        "w3": jax.random.normal(k3, (C, C, 3, 3), jnp.float32) * 0.1,
        "b3": jax.random.normal(kb3, (C,), jnp.float32) * 0.1,
        "bn_g": jnp.ones((C,), jnp.float32),    # freshly-constructed BatchNorm2d
        "bn_b": jnp.zeros((C,), jnp.float32),
        "w1": jax.random.normal(k1, (C, C, 1, 1), jnp.float32) * 0.1,
        "b1": jax.random.normal(kb1, (C,), jnp.float32) * 0.1,
    }

    out = resblock_forward(x, params)
    out = jax.block_until_ready(out)

    assert out.shape == (N, C, H, W), out.shape
    assert bool(jnp.all(jnp.isfinite(out)))

    ref = jax.block_until_ready(_resblock_ref(x, params))
    max_err = float(jnp.max(jnp.abs(out - ref)))
    assert max_err < 5e-2, f"mismatch vs reference: max abs err {max_err}"

    print("KERNEL_OK")
</pallas_src>

<mosaic_0001>
module attributes {stable_mosaic.version = 11 : i64} {
  func.func @_resblock_kernel(%arg0: i32, %arg1: memref<2x18x24x128xf32, #tpu.memory_space<vmem>>, %arg2: memref<512x128xf32, #tpu.memory_space<vmem>>, %arg3: memref<1152x128xbf16, #tpu.memory_space<vmem>>, %arg4: memref<1x128xf32, #tpu.memory_space<vmem>>, %arg5: memref<1x128xf32, #tpu.memory_space<vmem>>, %arg6: memref<128x128xbf16, #tpu.memory_space<vmem>>, %arg7: memref<1x128xf32, #tpu.memory_space<vmem>>, %arg8: memref<512x128xf32, #tpu.memory_space<vmem>>, %arg9: memref<2x18x24x128xbf16, #tpu.memory_space<vmem>>, %arg10: memref<512x1152xbf16, #tpu.memory_space<vmem>>) attributes {dimension_semantics = [#tpu.dimension_semantics<arbitrary>], iteration_bounds = array<i64: 1>, scalar_prefetch = 0 : i64, scratch_operands = 2 : i64, tpu.core_type = #tpu.core_type<tc>, window_params = [{pipeline_mode = #tpu.pipeline_mode<synchronous>, transform_indices = @transform_0, window_bounds = array<i64: 2, 18, 24, 128>}, {pipeline_mode = #tpu.pipeline_mode<synchronous>, transform_indices = @transform_1, window_bounds = array<i64: 512, 128>}, {pipeline_mode = #tpu.pipeline_mode<synchronous>, transform_indices = @transform_2, window_bounds = array<i64: 1152, 128>}, {pipeline_mode = #tpu.pipeline_mode<synchronous>, transform_indices = @transform_3, window_bounds = array<i64: 1, 128>}, {pipeline_mode = #tpu.pipeline_mode<synchronous>, transform_indices = @transform_4, window_bounds = array<i64: 1, 128>}, {pipeline_mode = #tpu.pipeline_mode<synchronous>, transform_indices = @transform_5, window_bounds = array<i64: 128, 128>}, {pipeline_mode = #tpu.pipeline_mode<synchronous>, transform_indices = @transform_6, window_bounds = array<i64: 1, 128>}, {pipeline_mode = #tpu.pipeline_mode<synchronous>, transform_indices = @transform_7, window_bounds = array<i64: 512, 128>}]} {
    %c0 = arith.constant 0 : index
    %c0_0 = arith.constant 0 : index
    %c0_1 = arith.constant 0 : index
    %c0_2 = arith.constant 0 : index
    %0 = vector.load %arg1[%c0, %c0_0, %c0_1, %c0_2] : memref<2x18x24x128xf32, #tpu.memory_space<vmem>>, vector<2x18x24x128xf32>
    %cst = arith.constant 0.000000e+00 : f32
    %1 = vector.broadcast %cst : f32 to vector<2x18x24x128xf32>
    %2 = arith.maximumf %0, %1 : vector<2x18x24x128xf32>
    %3 = arith.truncf %2 : vector<2x18x24x128xf32> to vector<2x18x24x128xbf16>
    %c0_3 = arith.constant 0 : index
    %c0_4 = arith.constant 0 : index
    %c0_5 = arith.constant 0 : index
    %c0_6 = arith.constant 0 : index
    %4 = vector.load %arg9[%c0_3, %c0_4, %c0_5, %c0_6] : memref<2x18x24x128xbf16, #tpu.memory_space<vmem>>, vector<2x18x24x128xbf16>
    tpu.vector_store %arg9[%c0_3, %c0_4, %c0_5, %c0_6], %3 {strides = array<i32>} : memref<2x18x24x128xbf16, #tpu.memory_space<vmem>>, vector<2x18x24x128xbf16>,
    %c0_7 = arith.constant 0 : index
    %c0_8 = arith.constant 0 : index
    %c0_9 = arith.constant 0 : index
    %c0_10 = arith.constant 0 : index
    %5 = vector.load %arg9[%c0_7, %c0_8, %c0_9, %c0_10] : memref<2x18x24x128xbf16, #tpu.memory_space<vmem>>, vector<2x16x16x128xbf16>
    %6 = vector.shape_cast %5 : vector<2x16x16x128xbf16> to vector<512x128xbf16>
    %c0_11 = arith.constant 0 : index
    %c0_12 = arith.constant 0 : index
    %7 = vector.load %arg10[%c0_11, %c0_12] : memref<512x1152xbf16, #tpu.memory_space<vmem>>, vector<512x128xbf16>
    tpu.vector_store %arg10[%c0_11, %c0_12], %6 {strides = array<i32>} : memref<512x1152xbf16, #tpu.memory_space<vmem>>, vector<512x128xbf16>,
    %c0_13 = arith.constant 0 : index
    %c0_14 = arith.constant 0 : index
    %c1 = arith.constant 1 : index
    %c0_15 = arith.constant 0 : index
    %8 = vector.load %arg9[%c0_13, %c0_14, %c1, %c0_15] : memref<2x18x24x128xbf16, #tpu.memory_space<vmem>>, vector<2x16x16x128xbf16>
    %9 = vector.shape_cast %8 : vector<2x16x16x128xbf16> to vector<512x128xbf16>
    %c0_16 = arith.constant 0 : index
    %c128 = arith.constant 128 : index
    %10 = vector.load %arg10[%c0_16, %c128] : memref<512x1152xbf16, #tpu.memory_space<vmem>>, vector<512x128xbf16>
    tpu.vector_store %arg10[%c0_16, %c128], %9 {strides = array<i32>} : memref<512x1152xbf16, #tpu.memory_space<vmem>>, vector<512x128xbf16>,
    %c0_17 = arith.constant 0 : index
    %c0_18 = arith.constant 0 : index
    %c2 = arith.constant 2 : index
    %c0_19 = arith.constant 0 : index
    %11 = vector.load %arg9[%c0_17, %c0_18, %c2, %c0_19] : memref<2x18x24x128xbf16, #tpu.memory_space<vmem>>, vector<2x16x16x128xbf16>
    %12 = vector.shape_cast %11 : vector<2x16x16x128xbf16> to vector<512x128xbf16>
    %c0_20 = arith.constant 0 : index
    %c256 = arith.constant 256 : index
    %13 = vector.load %arg10[%c0_20, %c256] : memref<512x1152xbf16, #tpu.memory_space<vmem>>, vector<512x128xbf16>
    tpu.vector_store %arg10[%c0_20, %c256], %12 {strides = array<i32>} : memref<512x1152xbf16, #tpu.memory_space<vmem>>, vector<512x128xbf16>,
    %c0_21 = arith.constant 0 : index
    %c1_22 = arith.constant 1 : index
    %c0_23 = arith.constant 0 : index
    %c0_24 = arith.constant 0 : index
    %14 = vector.load %arg9[%c0_21, %c1_22, %c0_23, %c0_24] : memref<2x18x24x128xbf16, #tpu.memory_space<vmem>>, vector<2x16x16x128xbf16>
    %15 = vector.shape_cast %14 : vector<2x16x16x128xbf16> to vector<512x128xbf16>
    %c0_25 = arith.constant 0 : index
    %c384 = arith.constant 384 : index
    %16 = vector.load %arg10[%c0_25, %c384] : memref<512x1152xbf16, #tpu.memory_space<vmem>>, vector<512x128xbf16>
    tpu.vector_store %arg10[%c0_25, %c384], %15 {strides = array<i32>} : memref<512x1152xbf16, #tpu.memory_space<vmem>>, vector<512x128xbf16>,
    %c0_26 = arith.constant 0 : index
    %c1_27 = arith.constant 1 : index
    %c1_28 = arith.constant 1 : index
    %c0_29 = arith.constant 0 : index
    %17 = vector.load %arg9[%c0_26, %c1_27, %c1_28, %c0_29] : memref<2x18x24x128xbf16, #tpu.memory_space<vmem>>, vector<2x16x16x128xbf16>
    %18 = vector.shape_cast %17 : vector<2x16x16x128xbf16> to vector<512x128xbf16>
    %c0_30 = arith.constant 0 : index
    %c512 = arith.constant 512 : index
    %19 = vector.load %arg10[%c0_30, %c512] : memref<512x1152xbf16, #tpu.memory_space<vmem>>, vector<512x128xbf16>
    tpu.vector_store %arg10[%c0_30, %c512], %18 {strides = array<i32>} : memref<512x1152xbf16, #tpu.memory_space<vmem>>, vector<512x128xbf16>,
    %c0_31 = arith.constant 0 : index
    %c1_32 = arith.constant 1 : index
    %c2_33 = arith.constant 2 : index
    %c0_34 = arith.constant 0 : index
    %20 = vector.load %arg9[%c0_31, %c1_32, %c2_33, %c0_34] : memref<2x18x24x128xbf16, #tpu.memory_space<vmem>>, vector<2x16x16x128xbf16>
    %21 = vector.shape_cast %20 : vector<2x16x16x128xbf16> to vector<512x128xbf16>
    %c0_35 = arith.constant 0 : index
    %c640 = arith.constant 640 : index
    %22 = vector.load %arg10[%c0_35, %c640] : memref<512x1152xbf16, #tpu.memory_space<vmem>>, vector<512x128xbf16>
    tpu.vector_store %arg10[%c0_35, %c640], %21 {strides = array<i32>} : memref<512x1152xbf16, #tpu.memory_space<vmem>>, vector<512x128xbf16>,
    %c0_36 = arith.constant 0 : index
    %c2_37 = arith.constant 2 : index
    %c0_38 = arith.constant 0 : index
    %c0_39 = arith.constant 0 : index
    %23 = vector.load %arg9[%c0_36, %c2_37, %c0_38, %c0_39] : memref<2x18x24x128xbf16, #tpu.memory_space<vmem>>, vector<2x16x16x128xbf16>
    %24 = vector.shape_cast %23 : vector<2x16x16x128xbf16> to vector<512x128xbf16>
    %c0_40 = arith.constant 0 : index
    %c768 = arith.constant 768 : index
    %25 = vector.load %arg10[%c0_40, %c768] : memref<512x1152xbf16, #tpu.memory_space<vmem>>, vector<512x128xbf16>
    tpu.vector_store %arg10[%c0_40, %c768], %24 {strides = array<i32>} : memref<512x1152xbf16, #tpu.memory_space<vmem>>, vector<512x128xbf16>,
    %c0_41 = arith.constant 0 : index
    %c2_42 = arith.constant 2 : index
    %c1_43 = arith.constant 1 : index
    %c0_44 = arith.constant 0 : index
    %26 = vector.load %arg9[%c0_41, %c2_42, %c1_43, %c0_44] : memref<2x18x24x128xbf16, #tpu.memory_space<vmem>>, vector<2x16x16x128xbf16>
    %27 = vector.shape_cast %26 : vector<2x16x16x128xbf16> to vector<512x128xbf16>
    %c0_45 = arith.constant 0 : index
    %c896 = arith.constant 896 : index
    %28 = vector.load %arg10[%c0_45, %c896] : memref<512x1152xbf16, #tpu.memory_space<vmem>>, vector<512x128xbf16>
    tpu.vector_store %arg10[%c0_45, %c896], %27 {strides = array<i32>} : memref<512x1152xbf16, #tpu.memory_space<vmem>>, vector<512x128xbf16>,
    %c0_46 = arith.constant 0 : index
    %c2_47 = arith.constant 2 : index
    %c2_48 = arith.constant 2 : index
    %c0_49 = arith.constant 0 : index
    %29 = vector.load %arg9[%c0_46, %c2_47, %c2_48, %c0_49] : memref<2x18x24x128xbf16, #tpu.memory_space<vmem>>, vector<2x16x16x128xbf16>
    %30 = vector.shape_cast %29 : vector<2x16x16x128xbf16> to vector<512x128xbf16>
    %c0_50 = arith.constant 0 : index
    %c1024 = arith.constant 1024 : index
    %31 = vector.load %arg10[%c0_50, %c1024] : memref<512x1152xbf16, #tpu.memory_space<vmem>>, vector<512x128xbf16>
    tpu.vector_store %arg10[%c0_50, %c1024], %30 {strides = array<i32>} : memref<512x1152xbf16, #tpu.memory_space<vmem>>, vector<512x128xbf16>,
    %c0_51 = arith.constant 0 : index
    %c0_52 = arith.constant 0 : index
    %32 = vector.load %arg10[%c0_51, %c0_52] : memref<512x1152xbf16, #tpu.memory_space<vmem>>, vector<512x1152xbf16>
    %c0_53 = arith.constant 0 : index
    %c0_54 = arith.constant 0 : index
    %33 = vector.load %arg3[%c0_53, %c0_54] : memref<1152x128xbf16, #tpu.memory_space<vmem>>, vector<1152x128xbf16>
    %cst_55 = arith.constant dense<0.000000e+00> : vector<512x128xf32>
    %34 = tpu.matmul %32, %33, %cst_55 {dimension_numbers = #tpu.dot_dimension_numbers<[1], [0], [0], [1], [0, 0, 1, 1], [], []>} : vector<512x1152xbf16>, vector<1152x128xbf16>, vector<512x128xf32> -> vector<512x128xf32>
    %cst_56 = arith.constant dense<0.000000e+00> : vector<128xf32>
    %35 = vector.multi_reduction <add>, %34, %cst_56 [0] : vector<512x128xf32> to vector<128xf32>
    %36 = vector.shape_cast %35 : vector<128xf32> to vector<1x128xf32>
    %cst_57 = arith.constant 0.001953125 : f32
    %37 = vector.broadcast %cst_57 : f32 to vector<1x128xf32>
    %38 = arith.mulf %36, %37 : vector<1x128xf32>
    %39 = arith.mulf %34, %34 : vector<512x128xf32>
    %cst_58 = arith.constant dense<0.000000e+00> : vector<128xf32>
    %40 = vector.multi_reduction <add>, %39, %cst_58 [0] : vector<512x128xf32> to vector<128xf32>
    %41 = vector.shape_cast %40 : vector<128xf32> to vector<1x128xf32>
    %cst_59 = arith.constant 0.001953125 : f32
    %42 = vector.broadcast %cst_59 : f32 to vector<1x128xf32>
    %43 = arith.mulf %41, %42 : vector<1x128xf32>
    %44 = arith.mulf %38, %38 : vector<1x128xf32>
    %45 = arith.subf %43, %44 : vector<1x128xf32>
    %c0_60 = arith.constant 0 : index
    %c0_61 = arith.constant 0 : index
    %46 = vector.load %arg4[%c0_60, %c0_61] : memref<1x128xf32, #tpu.memory_space<vmem>>, vector<1x128xf32>
    %cst_62 = arith.constant 9.99999974E-6 : f32
    %47 = vector.broadcast %cst_62 : f32 to vector<1x128xf32>
    %48 = arith.addf %45, %47 : vector<1x128xf32>
    %49 = math.rsqrt %48 : vector<1x128xf32>
    %50 = arith.mulf %46, %49 : vector<1x128xf32>
    %c0_63 = arith.constant 0 : index
    %c0_64 = arith.constant 0 : index
    %51 = vector.load %arg5[%c0_63, %c0_64] : memref<1x128xf32, #tpu.memory_space<vmem>>, vector<1x128xf32>
    %52 = arith.mulf %38, %50 : vector<1x128xf32>
    %53 = arith.subf %51, %52 : vector<1x128xf32>
    %54 = vector.broadcast %50 : vector<1x128xf32> to vector<512x128xf32>
    %55 = arith.mulf %34, %54 : vector<512x128xf32>
    %56 = vector.broadcast %53 : vector<1x128xf32> to vector<512x128xf32>
    %57 = arith.addf %55, %56 : vector<512x128xf32>
    %cst_65 = arith.constant 0.000000e+00 : f32
    %58 = vector.broadcast %cst_65 : f32 to vector<512x128xf32>
    %59 = arith.maximumf %57, %58 : vector<512x128xf32>
    %60 = arith.truncf %59 : vector<512x128xf32> to vector<512x128xbf16>
    %c0_66 = arith.constant 0 : index
    %c0_67 = arith.constant 0 : index
    %61 = vector.load %arg6[%c0_66, %c0_67] : memref<128x128xbf16, #tpu.memory_space<vmem>>, vector<128x128xbf16>
    %cst_68 = arith.constant dense<0.000000e+00> : vector<512x128xf32>
    %62 = tpu.matmul %60, %61, %cst_68 {dimension_numbers = #tpu.dot_dimension_numbers<[1], [0], [0], [1], [0, 0, 1, 1], [], []>} : vector<512x128xbf16>, vector<128x128xbf16>, vector<512x128xf32> -> vector<512x128xf32>
    %c0_69 = arith.constant 0 : index
    %c0_70 = arith.constant 0 : index
    %63 = vector.load %arg2[%c0_69, %c0_70] : memref<512x128xf32, #tpu.memory_space<vmem>>, vector<512x128xf32>
    %64 = arith.addf %63, %62 : vector<512x128xf32>
    %c0_71 = arith.constant 0 : index
    %c0_72 = arith.constant 0 : index
    %65 = vector.load %arg7[%c0_71, %c0_72] : memref<1x128xf32, #tpu.memory_space<vmem>>, vector<1x128xf32>
    %66 = vector.broadcast %65 : vector<1x128xf32> to vector<512x128xf32>
    %67 = arith.addf %64, %66 : vector<512x128xf32>
    %c0_73 = arith.constant 0 : index
    %c0_74 = arith.constant 0 : index
    %68 = vector.load %arg8[%c0_73, %c0_74] : memref<512x128xf32, #tpu.memory_space<vmem>>, vector<512x128xf32>
    tpu.vector_store %arg8[%c0_73, %c0_74], %67 {strides = array<i32>} : memref<512x128xf32, #tpu.memory_space<vmem>>, vector<512x128xf32>,
    return
  }
  func.func @transform_0(%arg0: i32) -> (i32, i32, i32, i32) {
    %c0_i32 = arith.constant 0 : i32
    %c0_i32_0 = arith.constant 0 : i32
    %c0_i32_1 = arith.constant 0 : i32
    %c0_i32_2 = arith.constant 0 : i32
    %c0_i32_3 = arith.constant 0 : i32
    return %c0_i32, %c0_i32_0, %c0_i32_1, %c0_i32_2 : i32, i32, i32, i32
  }
  func.func @transform_1(%arg0: i32) -> (i32, i32) {
    %c0_i32 = arith.constant 0 : i32
    %c0_i32_0 = arith.constant 0 : i32
    %c0_i32_1 = arith.constant 0 : i32
    return %c0_i32, %c0_i32_0 : i32, i32
  }
  func.func @transform_2(%arg0: i32) -> (i32, i32) {
    %c0_i32 = arith.constant 0 : i32
    %c0_i32_0 = arith.constant 0 : i32
    %c0_i32_1 = arith.constant 0 : i32
    return %c0_i32, %c0_i32_0 : i32, i32
  }
  func.func @transform_3(%arg0: i32) -> (i32, i32) {
    %c0_i32 = arith.constant 0 : i32
    %c0_i32_0 = arith.constant 0 : i32
    %c0_i32_1 = arith.constant 0 : i32
    return %c0_i32, %c0_i32_0 : i32, i32
  }
  func.func @transform_4(%arg0: i32) -> (i32, i32) {
    %c0_i32 = arith.constant 0 : i32
    %c0_i32_0 = arith.constant 0 : i32
    %c0_i32_1 = arith.constant 0 : i32
    return %c0_i32, %c0_i32_0 : i32, i32
  }
  func.func @transform_5(%arg0: i32) -> (i32, i32) {
    %c0_i32 = arith.constant 0 : i32
    %c0_i32_0 = arith.constant 0 : i32
    %c0_i32_1 = arith.constant 0 : i32
    return %c0_i32, %c0_i32_0 : i32, i32
  }
  func.func @transform_6(%arg0: i32) -> (i32, i32) {
    %c0_i32 = arith.constant 0 : i32
    %c0_i32_0 = arith.constant 0 : i32
    %c0_i32_1 = arith.constant 0 : i32
    return %c0_i32, %c0_i32_0 : i32, i32
  }
  func.func @transform_7(%arg0: i32) -> (i32, i32) {
    %c0_i32 = arith.constant 0 : i32
    %c0_i32_0 = arith.constant 0 : i32
    %c0_i32_1 = arith.constant 0 : i32
    return %c0_i32, %c0_i32_0 : i32, i32
  }
}

</mosaic_0001>

<bundles_post_ra>
// kernel: resblock_forward.1
= control target key start
LH: loop header
LB: loop body
LE: loop exit
PB: predicated region body
PF: predicated region fallthrough
CT: control target
= control target key end

     0   :  { %v11645_v0 = vmov 0   ;;  %vm1203_vm0 = vsmask.f32 3328  ;;  %vm1204_vm1 = vsmask.f32 7440  ;;  %vm2326_vm2 = vcmask 1042432   ;;  %s15166_s2 = inlined_call_operand.vmem [shape: bf16[1152,128], index: 2, kind: input, shape index: {}]   ;;  %s15167_s0 = inlined_call_operand.vmem [shape: f32[2,18,24,128], index: 0, kind: input, shape index: {}]   ;;  %s15168_s5 = inlined_call_operand.vmem [shape: bf16[128,128], index: 5, kind: input, shape index: {}]   ;;  %s15169_s3 = inlined_call_operand.vmem [shape: f32[1,128], index: 3, kind: input, shape index: {}]   ;;  %s15170_s4 = inlined_call_operand.vmem [shape: f32[1,128], index: 4, kind: input, shape index: {}]   ;;  %s15171_s1 = inlined_call_operand.vmem [shape: f32[512,128], index: 1, kind: input, shape index: {}]   ;;  %s15172_s6 = inlined_call_operand.vmem [shape: f32[1,128], index: 6, kind: input, shape index: {}]   ;;  %s15173_s7 = inlined_call_operand.vmem [shape: f32[512,128], index: 7, kind: output, shape index: {}]  }
   0x1   :  { %7355 = vmatprep.subr.bf16.mxu1 %v11645_v0  ;;  %7644 = vmatprep.subr.bf16.mxu0 %v11645_v0  ;;  %v11466_v1 = vld [vmem:[%s15166_s2] sm:$0xff]   ;;  %v11468_v3 = vld [vmem:[%s15166_s2 + $0x8] sm:$0xff]   ;;  %v11470_v5 = vld [vmem:[%s15166_s2 + $0x10] sm:$0xff]   ;;  %vm2327_vm4 = vcmask 1046532  }
   0x2   :  { %v11694_v2 = vld [vmem:[%s15166_s2 + $0x80] sm:$0xff]   ;;  %7356 = vmatpush1.bf16.msra.mxu1 %v11466_v1  ;;  %v11704_v4 = vld [vmem:[%s15166_s2 + $0x88] sm:$0xff]   ;;  %v11715_v6 = vld [vmem:[%s15166_s2 + $0x90] sm:$0xff]  }
   0x3   :  { %7645 = vmatpush1.bf16.msra.mxu0 %v11694_v2  ;;  %7357 = vmatprep.subr.bf16.mxu1 %v11645_v0  ;;  %v11472_v7 = vld [vmem:[%s15166_s2 + $0x18] sm:$0xff]   ;;  %v11474_v9 = vld [vmem:[%s15166_s2 + $0x20] sm:$0xff]   ;;  %v11476_v11 = vld [vmem:[%s15166_s2 + $0x28] sm:$0xff]  }
   0x4   :  { %7646 = vmatprep.subr.bf16.mxu0 %v11645_v0  ;;  %v11726_v8 = vld [vmem:[%s15166_s2 + $0x98] sm:$0xff]   ;;  %v11737_v10 = vld [vmem:[%s15166_s2 + $0xa0] sm:$0xff]   ;;  %v11748_v12 = vld [vmem:[%s15166_s2 + $0xa8] sm:$0xff]  }
   0x5   :  { %v11478_v13 = vld [vmem:[%s15166_s2 + $0x30] sm:$0xff]   ;;  %v11480_v15 = vld [vmem:[%s15166_s2 + $0x38] sm:$0xff]   ;;  %v11482_v17 = vld [vmem:[%s15166_s2 + $0x40] sm:$0xff]  }
   0x6   :  { %7358 = vmatpush1.bf16.msra.mxu1 %v11468_v3  ;;  %v11759_v14 = vld [vmem:[%s15166_s2 + $0xb0] sm:$0xff]   ;;  %v11770_v16 = vld [vmem:[%s15166_s2 + $0xb8] sm:$0xff]   ;;  %v11781_v18 = vld [vmem:[%s15166_s2 + $0xc0] sm:$0xff]  }
   0x7   :  { %7647 = vmatpush1.bf16.msra.mxu0 %v11704_v4  ;;  %7359 = vmatprep.subr.bf16.mxu1 %v11645_v0  ;;  %v27_v19 = vld [vmem:[%s15167_s0] sm:$0xff]  ;;  %v28_v20 = vld [vmem:[%s15167_s0 + $0x8] sm:$0xff]  ;;  %v29_v21 = vld [vmem:[%s15167_s0 + $0x10] sm:$0xff] }
   0x8   :  { %7648 = vmatprep.subr.bf16.mxu0 %v11645_v0  ;;  %v30_v22 = vld [vmem:[%s15167_s0 + $0x18] sm:$0xff]  ;;  %v135_v23 = vmax.f32 %v27_v19, 0.0  ;;  %v136_v24 = vmax.f32 %v28_v20, 0.0  ;;  %v137_v25 = vmax.f32 %v29_v21, 0.0  ;;  %v31_v26 = vld [vmem:[%s15167_s0 + $0x20] sm:$0xff]  ;;  %v11484_v27 = vld [vmem:[%s15166_s2 + $0x48] sm:$0xff]  }
   0x9   :  { %v138_v28 = vmax.f32 %v30_v22, 0.0  ;;  %v32_v29 = vld [vmem:[%s15167_s0 + $0x28] sm:$0xff]  ;;  %v139_v30 = vmax.f32 %v31_v26, 0.0  ;;  %v33_v34 = vld [vmem:[%s15167_s0 + $0x30] sm:$0xff]  ;;  %v34_v36 = vld [vmem:[%s15167_s0 + $0x38] sm:$0xff] }
   0xa   :  { %7360 = vmatpush1.bf16.msra.mxu1 %v11470_v5  ;;  %v11810_v31 = vld [vmem:[%s15166_s2 + $0xc8] sm:$0xff]   ;;  %v10553_v32 = vpack.c.bf16 %v136_v24, %v135_v23  ;;  %v140_v33 = vmax.f32 %v32_v29, 0.0  ;;  %v141_v37 = vmax.f32 %v33_v34, 0.0  ;;  %v11486_v38 = vld [vmem:[%s15166_s2 + $0x50] sm:$0xff]   ;;  %v142_v40 = vmax.f32 %v34_v36, 0.0  ;;  %v35_v41 = vld [vmem:[%s15167_s0 + $0x40] sm:$0xff] }
   0xb   :  { %7649 = vmatpush1.bf16.msra.mxu0 %v11715_v6  ;;  %7361 = vmatprep.subr.bf16.mxu1 %v11645_v0  ;;  %v10558_v35 = vpack.c.bf16 %v138_v28, %v137_v25  ;;  %v36_v42 = vld [vmem:[%s15167_s0 + $0x48] sm:$0xff]  ;;  %v143_v43 = vmax.f32 %v35_v41, 0.0  ;;  %v37_v45 = vld [vmem:[%s15167_s0 + $0x50] sm:$0xff]  ;;  %v38_v46 = vld [vmem:[%s15167_s0 + $0x58] sm:$0xff] }
   0xc   :  { %7650 = vmatprep.subr.bf16.mxu0 %v11645_v0  ;;  %10554 = vst [vmem:[#allocation2] sm:$0xff] %v10553_v32   ;;  %v10563_v39 = vpack.c.bf16 %v140_v33, %v139_v30  ;;  %v144_v44 = vmax.f32 %v36_v42, 0.0  ;;  %v11839_v47 = vld [vmem:[%s15166_s2 + $0xd0] sm:$0xff]   ;;  %v10568_v48 = vpack.c.bf16 %v142_v40, %v141_v37  ;;  %v145_v49 = vmax.f32 %v37_v45, 0.0  ;;  %v39_v51 = vld [vmem:[%s15167_s0 + $0x60] sm:$0xff]  ;;  %v40_v53 = vld [vmem:[%s15167_s0 + $0x68] sm:$0xff] }
   0xd   :  { %10820 = vst [vmem:[#allocation2 + $0x8] sm:$0xff] %v10558_v35   ;;  %v146_v50 = vmax.f32 %v38_v46, 0.0  ;;  %v147_v54 = vmax.f32 %v39_v51, 0.0  ;;  %v11488_v55 = vld [vmem:[%s15166_s2 + $0x58] sm:$0xff]   ;;  %v148_v57 = vmax.f32 %v40_v53, 0.0  ;;  %v41_v58 = vld [vmem:[%s15167_s0 + $0x70] sm:$0xff]  ;;  %vm11892_vm3 = vmor %vm1203_vm0, %vm1204_vm1 }
   0xe   :  { %7362 = vmatpush1.bf16.msra.mxu1 %v11472_v7  ;;  %10821 = vst [vmem:[#allocation2 + $0x10] sm:$0xff] %v10563_v39   ;;  %v10573_v52 = vpack.c.bf16 %v144_v44, %v143_v43  ;;  %10822 = vst [vmem:[#allocation2 + $0x18] sm:$0xff] %v10568_v48   ;;  %v42_v59 = vld [vmem:[%s15167_s0 + $0x78] sm:$0xff]  ;;  %v149_v60 = vmax.f32 %v41_v58, 0.0  ;;  %v43_v62 = vld [vmem:[%s15167_s0 + $0x80] sm:$0xff] }
   0xf   :  { %7651 = vmatpush1.bf16.msra.mxu0 %v11726_v8  ;;  %7363 = vmatprep.subr.bf16.mxu1 %v11645_v0  ;;  %v10578_v56 = vpack.c.bf16 %v146_v50, %v145_v49  ;;  %v150_v61 = vmax.f32 %v42_v59, 0.0  ;;  %v44_v63 = vld [vmem:[%s15167_s0 + $0x88] sm:$0xff]  ;;  %v11868_v1 = vld [vmem:[%s15166_s2 + $0xd8] sm:$0xff]   ;;  %v10583_v3 = vpack.c.bf16 %v148_v57, %v147_v54  ;;  %v151_v5 = vmax.f32 %v43_v62, 0.0  ;;  %v11494_v51 = vld [vmem:[%s15166_s2 + $0x70] sm:$0xff]  }
  0x10   :  { %7652 = vmatprep.subr.bf16.mxu0 %v11645_v0  ;;  %10823 = vst [vmem:[#allocation2 + $0x20] sm:$0xff] %v10573_v52   ;;  %v152_v7 = vmax.f32 %v44_v63, 0.0  ;;  %v11492_v32 = vld [vmem:[%s15166_s2 + $0x68] sm:$0xff]   ;;  %vm11908_vm5 = vmor %vm2326_vm2, %vm2327_vm4 }
  0x11   :  { %10824 = vst [vmem:[#allocation2 + $0x28] sm:$0xff] %v10578_v56   ;;  %10825 = vst [vmem:[#allocation2 + $0x30] sm:$0xff] %v10583_v3   ;;  %v11888_v35 = vld [vmem:[%s15166_s2 + $0xe8] sm:$0xff]  }
  0x12   :  { %7364 = vmatpush1.bf16.msra.mxu1 %v11474_v9  ;;  %v11490_v9 = vld [vmem:[%s15166_s2 + $0x60] sm:$0xff]   ;;  %v10593_v26 = vpack.c.bf16 %v152_v7, %v151_v5  ;;  %v11917_v7 = vld [vmem:[%s15166_s2 + $0xf0] sm:$0xff]  }
  0x13   :  { %7653 = vmatpush1.bf16.msra.mxu0 %v11737_v10  ;;  %7365 = vmatprep.subr.bf16.mxu1 %v11645_v0  ;;  %v2134_v33 = vld [vmem:[#allocation2] sm:$0xe]  ;;  %v2135_v34 = vld [vmem:[#allocation2 + $0x4] sm:$0xf] }
  0x14   :  { %7654 = vmatprep.subr.bf16.mxu0 %v11645_v0  ;;  %v1109_v19 = vld [vmem:[#allocation2 + $0x8] sm:$0x1]  ;;  %10827 = vst [vmem:[#allocation2 + $0x40] sm:$0xff] %v10593_v26   ;;  %v2331_v40 = vrot.slane %v2135_v34, 5  ;;  %v1110_v41 = vld [vmem:[#allocation2 + $0xc] sm:$0xf] }
  0x15   :  { %v1226_v24 = vshll.u32 %v1109_v19, 16  ;;  %v11498_v25 = vld [vmem:[#allocation2 + $0xc] sm:$0xff]   ;;  %v2136_v39 = vld [vmem:[#allocation2 + $0x8] sm:$0x1]  ;;  %v1112_v44 = vld [vmem:[#allocation2 + $0x14] sm:$0x1] }
  0x16   :  { %7366 = vmatpush1.bf16.msra.mxu1 %v11476_v11  ;;  %v1107_v11 = vld [vmem:[#allocation2] sm:$0xf]  ;;  %7676 = vmatprep.mubr.bf16.mxu0 %v11498_v25  ;;  %v1111_v43 = vld [vmem:[#allocation2 + $0x10] sm:$0xf]  ;;  %v1231_v45 = vshrl.u32 %v1110_v41, 16  ;;  %v10041_v49 = vrot.slane %v2134_v33, 9 }
  0x17   :  { %7655 = vmatpush1.bf16.msra.mxu0 %v11748_v12  ;;  %7367 = vmatprep.subr.bf16.mxu1 %v11645_v0  ;;  %v1207_v20 = vshrl.u32 %v1107_v11, 16  ;;  %v1210_v21 = vshll.u32 %v1107_v11, 16  ;;  %v2334_v50 = vrot.slane %v2136_v39, 5  ;;  %v1234_v53 = vshll.u32 %v1110_v41, 16  ;;  %v2137_v3 = vld [vmem:[#allocation2 + $0xc] sm:$0xe] }
  0x18   :  { %7656 = vmatprep.subr.bf16.mxu0 %v11645_v0  ;;  %v1233_v52 = vrot.slane %v1231_v45, 4  ;;  %v1240_v54 = vshll.u32 %v1111_v43, 16  ;;  %v2333_v59 = vrot.slane %v2331_v40, 4  ;;  %v2138_v5 = vld [vmem:[#allocation2 + $0x10] sm:$0xf]  ;;  %v11499_v45 = vld [vmem:[#allocation2] sm:$0xff]  }
  0x19   :  { %v1212_v28 = vrot.slane %v1210_v21, 5  ;;  %v1236_v62 = vrot.slane %v1234_v53, 5  ;;  %v2139_v11 = vld [vmem:[#allocation2 + $0x14] sm:$0x1]  ;;  %v2338_v21 = vrot.slane %v2138_v5, 5  ;;  %v11501_v53 = vld [vmem:[#allocation2 + $0x18] sm:$0xff]  }
  0x1a   :  { %7368 = vmatpush1.bf16.msra.mxu1 %v11478_v13  ;;  %v1108_v13 = vld [vmem:[#allocation2 + $0x4] sm:$0xf]  ;;  %v1242_v63 = vrot.slane %v1240_v54, 5  ;;  %v2335_v25 = vsel %vm11908_vm5, %v2333_v59, %v2334_v50  ;;  %v11940_v50 = vld [vmem:[#allocation2 + $0x1c] sm:$0xf] }
  0x1b   :  { %7657 = vmatpush1.bf16.msra.mxu0 %v11759_v14  ;;  %7369 = vmatprep.subr.bf16.mxu1 %v11645_v0  ;;  %v1216_v22 = vshll.u32 %v1108_v13, 16  ;;  %v1220_v23 = vshrl.u32 %v1108_v13, 16  ;;  %v11496_v13 = vld [vmem:[%s15166_s2 + $0x78] sm:$0xff]   ;;  %v1237_v19 = vor.u32 %v1236_v62, %v1233_v52  ;;  %v2340_v41 = vrot.slane %v2338_v21, 4  ;;  %v11948_v62 = vld [vmem:[#allocation2 + $0x20] sm:$0x1] }
  0x1c   :  { %7658 = vmatprep.subr.bf16.mxu0 %v11645_v0 }
  0x1d   :  { %v1218_v29 = vrot.slane %v1216_v22, 5  ;;  %v1222_v30 = vrot.slane %v1220_v23, 4  ;;  %v1113_v22 = vld [vmem:[#allocation2 + $0x18] sm:$0xf]  ;;  %v1114_v23 = vld [vmem:[#allocation2 + $0x1c] sm:$0xf] }
  0x1e   :  { %7370 = vmatpush1.bf16.msra.mxu1 %v11480_v15  ;;  %v10588_v15 = vpack.c.bf16 %v150_v61, %v149_v60  ;;  %v1250_v60 = vshll.u32 %v1112_v44, 16  ;;  %v1264_v33 = vshll.u32 %v1114_v23, 16  ;;  %v1268_v34 = vshrl.u32 %v1114_v23, 16 }
  0x1f   :  { %7659 = vmatpush1.bf16.msra.mxu0 %v11770_v16  ;;  %7371 = vmatprep.subr.bf16.mxu1 %v11645_v0  ;;  %v1223_v37 = vor.u32 %v1222_v30, %v1218_v29  ;;  %v1238_v30 = vrot.slane %v1237_v19, 4 }
  0x20   :  { %7660 = vmatprep.subr.bf16.mxu0 %v11645_v0  ;;  %10826 = vst [vmem:[#allocation2 + $0x38] sm:$0xff] %v10588_v15   ;;  %v2332_v15 = vsel %vm11908_vm5, %v10041_v49, %v2331_v40  ;;  %v1266_v44 = vrot.slane %v1264_v33, 5  ;;  %v1270_v49 = vrot.slane %v1268_v34, 4  ;;  %v11502_v33 = vld [vmem:[#allocation2 + $0xc] sm:$0xff]  }
  0x21   :  { %v1224_v48 = vrot.slane %v1223_v37, 4  ;;  %v2341_v37 = vrot.slane %v2139_v11, 5  ;;  %v1243_v40 = vsel %vm11892_vm3, %v1238_v30, %v1242_v63  ;;  %v2143_v30 = vld [vmem:[#allocation2 + $0x24] sm:$0xe] }
  0x22   :  { %7372 = vmatpush1.bf16.msra.mxu1 %v11482_v17  ;;  %v11877_v17 = vld [vmem:[%s15166_s2 + $0xe0] sm:$0xff]  }
  0x23   :  { %7661 = vmatpush1.bf16.msra.mxu0 %v11781_v18  ;;  %7373 = vmatprep.subr.bf16.mxu1 %v11645_v0 }
  0x24   :  { %7662 = vmatprep.subr.bf16.mxu0 %v11645_v0 }
  0x26   :  { %7374 = vmatpush1.bf16.msra.mxu1 %v11484_v27  ;;  %v1209_v27 = vrot.slane %v1207_v20, 4  ;;  %v1252_v20 = vrot.slane %v1250_v60, 5  ;;  %v1271_v60 = vor.u32 %v1270_v49, %v1266_v44  ;;  %v1120_v49 = vld [vmem:[#allocation2 + $0x34] sm:$0xf] }
  0x27   :  { %7663 = vmatpush1.bf16.msra.mxu0 %v11810_v31  ;;  %7375 = vmatprep.subr.bf16.mxu1 %v11645_v0 }
  0x28   :  { %7664 = vmatprep.subr.bf16.mxu0 %v11645_v0  ;;  %v1213_v36 = vor.u32 %v1212_v28, %v1209_v27  ;;  %v10042_v27 = vrot.slane %v2137_v3, 9  ;;  %v1115_v28 = vld [vmem:[#allocation2 + $0x20] sm:$0x1]  ;;  %v1272_v19 = vrot.slane %v1271_v60, 4 }
  0x29   :  { %v1274_v39 = vshll.u32 %v1115_v28, 16 }
  0x2a   :  { %7376 = vmatpush1.bf16.msra.mxu1 %v11486_v38  ;;  %v1228_v38 = vrot.slane %v1226_v24, 5  ;;  %v1214_v46 = vrot.slane %v1213_v36, 4  ;;  %v11497_v24 = vld [vmem:[%s15166_s2 + $0xf8] sm:$0xff]   ;;  %v11944_v59 = vsel %vm11908_vm5, %v10042_v27, %v2338_v21 }
  0x2b   :  { %7665 = vmatpush1.bf16.msra.mxu0 %v11839_v47  ;;  %7377 = vmatprep.subr.bf16.mxu1 %v11645_v0 }
  0x2c   :  { %7666 = vmatprep.subr.bf16.mxu0 %v11645_v0  ;;  %v1219_v56 = vsel %vm11892_vm3, %v1214_v46, %v1218_v29  ;;  %v1229_v57 = vsel %vm11892_vm3, %v1224_v48, %v1228_v38  ;;  %v1255_v29 = vshrl.u32 %v1113_v22, 16  ;;  %v11500_v46 = vld [vmem:[%s15166_s2 + $0x100] sm:$0xff]  }
  0x2d   :  { %v10009_v61 = vcombine.low %v1219_v56, %v1229_v57  ;;  %v1116_v56 = vld [vmem:[#allocation2 + $0x24] sm:$0xf]  ;;  %v1117_v57 = vld [vmem:[#allocation2 + $0x28] sm:$0xf] }
  0x2e   :  { %7378 = vmatpush1.bf16.msra.mxu1 %v11488_v55  ;;  %v1244_v55 = vshrl.u32 %v1111_v43, 16  ;;  %v1257_v38 = vrot.slane %v1255_v29, 4  ;;  %v1279_v3 = vshrl.u32 %v1116_v56, 16  ;;  %v1282_v5 = vshll.u32 %v1116_v56, 16 }
  0x2f   :  { %7667 = vmatpush1.bf16.msra.mxu0 %v11868_v1  ;;  %7379 = vmatprep.subr.bf16.mxu1 %v11645_v0  ;;  %v1312_v56 = vshll.u32 %v1120_v49, 16 }
  0x30   :  { %7668 = vmatprep.subr.bf16.mxu0 %v11645_v0  ;;  %7387 = vmatprep.mubr.bf16.mxu1 %v10009_v61  ;;  %v11946_v61 = vld [vmem:[#allocation2 + $0x18] sm:$0xe]  ;;  %v1284_v21 = vrot.slane %v1282_v5, 5 }
  0x32   :  { %7380 = vmatpush1.bf16.msra.mxu1 %v11490_v9  ;;  %v1246_v9 = vrot.slane %v1244_v55, 4  ;;  %v1276_v55 = vrot.slane %v1274_v39, 5 }
  0x33   :  { %7669 = vmatpush1.bf16.msra.mxu0 %v11877_v17  ;;  %7381 = vmatprep.subr.bf16.mxu1 %v11645_v0 }
  0x34   :  { %7670 = vmatprep.subr.bf16.mxu0 %v11645_v0  ;;  %v1247_v26 = vor.u32 %v1246_v9, %v1242_v63  ;;  %v1118_v63 = vld [vmem:[#allocation2 + $0x2c] sm:$0x1]  ;;  %v2342_v9 = vsel %vm11908_vm5, %v2340_v41, %v2341_v37  ;;  %v1277_v27 = vsel %vm11892_vm3, %v1272_v19, %v1276_v55  ;;  %v2348_v37 = vrot.slane %v11948_v62, 5  ;;  %v11504_v41 = vld [vmem:[#allocation2 + $0x24] sm:$0xff]  }
  0x35   :  { %v10074_v34 = vcombine.low %v11944_v59, %v2342_v9  ;;  %v11977_v59 = vld [vmem:[%s15167_s0 + $0x90] sm:$0xff]  ;;  %v11985_v9 = vrot.slane %v1312_v56, 5 }
  0x36   :  { %7382 = vmatpush1.bf16.msra.mxu1 %v11492_v32  ;;  %v1258_v32 = vshll.u32 %v1113_v22, 16  ;;  %v1248_v36 = vrot.slane %v1247_v26, 4  ;;  %v1292_v22 = vshrl.u32 %v1117_v57, 16  ;;  %v11503_v26 = vld [vmem:[%s15166_s2 + $0x108] sm:$0xff]  }
  0x37   :  { %7671 = vmatpush1.bf16.msra.mxu0 %v11888_v35  ;;  %7383 = vmatprep.subr.bf16.mxu1 %v11645_v0 }
  0x38   :  { %7672 = vmatprep.subr.bf16.mxu0 %v11645_v0  ;;  %v1260_v43 = vrot.slane %v1258_v32, 5  ;;  %v1253_v48 = vsel %vm11892_vm3, %v1248_v36, %v1252_v20  ;;  %v1281_v20 = vrot.slane %v1279_v3, 4  ;;  %v1294_v29 = vrot.slane %v1292_v22, 4  ;;  %v2144_v32 = vld [vmem:[#allocation2 + $0x28] sm:$0xf] }
  0x39   :  { %v10010_v52 = vcombine.low %v1243_v40, %v1253_v48  ;;  %v10043_v36 = vrot.slane %v11946_v61, 9  ;;  %v2352_v39 = vrot.slane %v2144_v32, 5  ;;  %v1119_v48 = vld [vmem:[#allocation2 + $0x30] sm:$0xf]  ;;  %v153_v32 = vmax.f32 %v11977_v59, 0.0 }
  0x3a   :  { %7384 = vmatpush1.bf16.msra.mxu1 %v11494_v51  ;;  %v10073_v51 = vcombine.low %v2332_v15, %v2335_v25  ;;  %v1261_v54 = vor.u32 %v1260_v43, %v1257_v38  ;;  %v1288_v15 = vshll.u32 %v1117_v57, 16  ;;  %v1298_v25 = vshll.u32 %v1118_v63, 16  ;;  %v2145_v38 = vld [vmem:[#allocation2 + $0x2c] sm:$0x1]  ;;  %v11997_v22 = vld [vmem:[#allocation2 + $0x30] sm:$0xe] }
  0x3b   :  { %7673 = vmatpush1.bf16.msra.mxu0 %v11917_v7  ;;  %7385 = vmatprep.subr.bf16.mxu1 %v11645_v0  ;;  %v1285_v28 = vor.u32 %v1284_v21, %v1281_v20  ;;  %v2355_v55 = vrot.slane %v2145_v38, 5  ;;  %v1316_v57 = vshrl.u32 %v1120_v49, 16  ;;  %v2354_v60 = vrot.slane %v2352_v39, 4  ;;  %v11505_v20 = vld [vmem:[#allocation2 + $0x18] sm:$0xff]   ;;  %v1124_v38 = vld [vmem:[#allocation2 + $0x44] sm:$0x1] }
  0x3c   :  { %7674 = vmatprep.subr.bf16.mxu0 %v11645_v0  ;;  %v1262_v11 = vrot.slane %v1261_v54, 4  ;;  %v1306_v54 = vshll.u32 %v1119_v48, 16 }
  0x3e   :  { %7386 = vmatpush1.bf16.msra.mxu1 %v11496_v13  ;;  %v2345_v13 = vrot.slane %v11940_v50, 5  ;;  %v1267_v23 = vsel %vm11892_vm3, %v1262_v11, %v1266_v44  ;;  %v11506_v44 = vld [vmem:[%s15166_s2 + $0x110] sm:$0xff]   ;;  %v1286_v50 = vrot.slane %v1285_v28, 4  ;;  %v1308_v62 = vrot.slane %v1306_v54, 5  ;;  %v12008_v28 = vld [vmem:[#allocation2 + $0x38] sm:$0x1] }
  0x3f   :  { %7675 = vmatpush1.bf16.msra.mxu0 %v11497_v24  ;;  %11113 = vmatprep.subr.bf16.mxu1 %v11645_v0  ;;  %v11957_v24 = vrot.slane %v1288_v15, 5  ;;  %v10011_v40 = vcombine.low %v1267_v23, %v1277_v27  ;;  %v1318_v11 = vrot.slane %v1316_v57, 4  ;;  %v11999_v23 = vld [vmem:[#allocation2 + $0x34] sm:$0xf]  ;;  %v48_v54 = vld [vmem:[%s15167_s0 + $0xa8] sm:$0xff] }
  0x40   :  { %7933 = vmatprep.subr.bf16.mxu0 %v11645_v0  ;;  %v2347_v43 = vrot.slane %v2345_v13, 4  ;;  %v2346_v3 = vsel %vm11908_vm5, %v10043_v36, %v2345_v13  ;;  %v11509_v13 = vld [vmem:[%s15166_s2 + $0x118] sm:$0xff]   ;;  %v12040_v57 = vld [vmem:[#allocation2 + $0x40] sm:$0xf] }
  0x41   :  { %7388 = vmatmul.mubr.bf16.vlgmr.msra.gmra.mrb[0].mxu1 %v11499_v45  ;;  %v1295_v45 = vor.u32 %v1294_v29, %v11957_v24  ;;  %v1291_v15 = vsel %vm11892_vm3, %v1286_v50, %v11957_v24  ;;  %v1319_v21 = vor.u32 %v1318_v11, %v11985_v9  ;;  %v1123_v29 = vld [vmem:[#allocation2 + $0x40] sm:$0xf] }
  0x42   :  { %7677 = vmatmul.mubr.bf16.vlgmr.msra.gmra.mrb[0].mxu0 %v10073_v51  ;;  %7395 = vmatprep.mubr.bf16.mxu1 %v10010_v52  ;;  %v10044_v51 = vrot.slane %v2143_v30, 9  ;;  %v1121_v52 = vld [vmem:[#allocation2 + $0x38] sm:$0x1]  ;;  %v2349_v5 = vsel %vm11908_vm5, %v2347_v43, %v2348_v37  ;;  %v11512_v37 = vld [vmem:[%s15166_s2 + $0x120] sm:$0xff]   ;;  %v1336_v43 = vshll.u32 %v1123_v29, 16 }
  0x43   :  { %7934 = vmatpush1.bf16.msra.mxu0 %v11500_v46  ;;  %7684 = vmatprep.mubr.bf16.mxu0 %v11501_v53  ;;  %v1300_v46 = vrot.slane %v1298_v25, 5  ;;  %v1303_v53 = vshrl.u32 %v1119_v48, 16  ;;  %v1322_v63 = vshll.u32 %v1121_v52, 16  ;;  %v1122_v25 = vld [vmem:[#allocation2 + $0x3c] sm:$0xf]  ;;  %v2362_v48 = vrot.slane %v12008_v28, 5 }
  0x44   :  { %7935 = vmatprep.subr.bf16.mxu0 %v11645_v0  ;;  %11129 = vmatpush1.bf16.msra.mxu1 %v11694_v2  ;;  %v1296_v2 = vrot.slane %v1295_v45, 4  ;;  %v12003_v24 = vsel %vm11908_vm5, %v10044_v51, %v2352_v39  ;;  %v46_v30 = vld [vmem:[%s15167_s0 + $0x98] sm:$0xff]  ;;  %v1327_v39 = vshrl.u32 %v1122_v25, 16  ;;  %v10045_v45 = vrot.slane %v11997_v22, 9  ;;  %v47_v50 = vld [vmem:[%s15167_s0 + $0xa0] sm:$0xff] }
  0x45   :  { %11114 = vmatprep.subr.bf16.mxu1 %v11645_v0  ;;  %v1305_v61 = vrot.slane %v1303_v53, 4  ;;  %v12006_v27 = vrot.slane %v1322_v63, 5  ;;  %v12032_v52 = vrot.slane %v1336_v43, 5  ;;  %v1346_v53 = vshll.u32 %v1124_v38, 16  ;;  %v49_v63 = vld [vmem:[%s15167_s0 + $0xb0] sm:$0xff]  ;;  %v54_v43 = vld [vmem:[%s15167_s0 + $0xd8] sm:$0xff] }
  0x46   :  { %v1329_v49 = vrot.slane %v1327_v39, 4  ;;  %v154_v56 = vmax.f32 %v46_v30, 0.0  ;;  %v53_v39 = vld [vmem:[%s15167_s0 + $0xd0] sm:$0xff] }
  0x47   :  { %7936 = vmatpush1.bf16.msra.mxu0 %v11503_v26  ;;  %v1309_v19 = vor.u32 %v1308_v62, %v1305_v61  ;;  %v10075_v26 = vcombine.low %v2346_v3, %v2349_v5  ;;  %v11515_v61 = vld [vmem:[%s15166_s2 + $0x128] sm:$0xff]   ;;  %v155_v62 = vmax.f32 %v47_v50, 0.0  ;;  %v50_v3 = vld [vmem:[%s15167_s0 + $0xb8] sm:$0xff]  ;;  %v162_v50 = vmax.f32 %v54_v43, 0.0 }
  0x48   :  { %7937 = vmatprep.subr.bf16.mxu0 %v11645_v0  ;;  %11130 = vmatpush1.bf16.msra.mxu1 %v11704_v4  ;;  %v1301_v4 = vsel %vm11892_vm3, %v1296_v2, %v1300_v46  ;;  %v2359_v46 = vrot.slane %v11999_v23, 5  ;;  %v11508_v5 = vld [vmem:[#allocation2 + $0x24] sm:$0xff]   ;;  %v10598_v11 = vpack.c.bf16 %v154_v56, %v153_v32  ;;  %v58_v23 = vld [vmem:[%s15167_s0 + $0xf8] sm:$0xff] }
  0x49   :  { %7396 = vmatmul.mubr.bf16.gmra.mrb[4].mxu1 %v11502_v33  ;;  %11115 = vmatprep.subr.bf16.mxu1 %v11645_v0  ;;  %v10012_v33 = vcombine.low %v1291_v15, %v1301_v4  ;;  %v12019_v36 = vrot.slane %v1309_v19, 4  ;;  %v12060_v15 = vld [vmem:[#allocation2 + $0x3c] sm:$0xe]  ;;  %v156_v4 = vmax.f32 %v48_v54, 0.0  ;;  %v12075_v32 = vld [vmem:[#allocation2 + $0x44] sm:$0x1] }
  0x4a   :  { %7685 = vmatmul.mubr.bf16.gmra.mrb[4].mxu0 %v10074_v34  ;;  %7403 = vmatprep.mubr.bf16.mxu1 %v10011_v40  ;;  %v12017_v34 = vsel %vm11908_vm5, %v2354_v60, %v2355_v55  ;;  %v1320_v40 = vrot.slane %v1319_v21, 4  ;;  %v2361_v19 = vrot.slane %v2359_v46, 4  ;;  %v2366_v21 = vrot.slane %v12040_v57, 5  ;;  %10828 = vst [vmem:[#allocation2 + $0x48] sm:$0xff] %v10598_v11  }
  0x4b   :  { %7692 = vmatprep.mubr.bf16.mxu0 %v11504_v41  ;;  %7938 = vmatpush1.bf16.msra.mxu0 %v11506_v44  ;;  %v1330_v41 = vshll.u32 %v1122_v25, 16  ;;  %v1340_v44 = vshrl.u32 %v1123_v29, 16  ;;  %v10076_v2 = vcombine.low %v12003_v24, %v12017_v34  ;;  %v1315_v59 = vsel %vm11892_vm3, %v12019_v36, %v11985_v9  ;;  %v11510_v29 = vld [vmem:[#allocation2 + $0x3c] sm:$0xff]   ;;  %v11518_v36 = vld [vmem:[%s15166_s2 + $0x130] sm:$0xff]   ;;  %v60_v24 = vld [vmem:[%s15167_s0 + $0x108] sm:$0xff] }
  0x4c   :  { %7939 = vmatprep.subr.bf16.mxu0 %v11645_v0  ;;  %11131 = vmatpush1.bf16.msra.mxu1 %v11715_v6  ;;  %v11507_v6 = vld [vmem:[#allocation2 + $0x30] sm:$0xff]   ;;  %v158_v25 = vmax.f32 %v50_v3, 0.0  ;;  %v10046_v54 = vrot.slane %v12060_v15, 9  ;;  %v2363_v22 = vsel %vm11908_vm5, %v2361_v19, %v2362_v48  ;;  %v2369_v48 = vrot.slane %v12075_v32, 5 }
  0x4d   :  { %11116 = vmatprep.subr.bf16.mxu1 %v11645_v0  ;;  %v1332_v51 = vrot.slane %v1330_v41, 5  ;;  %v1342_v55 = vrot.slane %v1340_v44, 4  ;;  %v161_v44 = vmax.f32 %v53_v39, 0.0  ;;  %v2368_v34 = vrot.slane %v2366_v21, 4  ;;  %v11511_v3 = vld [vmem:[#allocation2 + $0x30] sm:$0xff]  }
  0x4f   :  { %7940 = vmatpush1.bf16.msra.mxu0 %v11509_v13  ;;  %v1333_v60 = vor.u32 %v1332_v51, %v1329_v49  ;;  %v1343_v9 = vor.u32 %v1342_v55, %v12032_v52  ;;  %v157_v13 = vmax.f32 %v49_v63, 0.0  ;;  %v56_v51 = vld [vmem:[%s15167_s0 + $0xe8] sm:$0xff]  ;;  %v168_v63 = vmax.f32 %v60_v24, 0.0 }
  0x50   :  { %7941 = vmatprep.subr.bf16.mxu0 %v11645_v0  ;;  %11132 = vmatpush1.bf16.msra.mxu1 %v11726_v8  ;;  %v1325_v8 = vsel %vm11892_vm3, %v1320_v40, %v12006_v27  ;;  %v52_v27 = vld [vmem:[%s15167_s0 + $0xc8] sm:$0xff]  ;;  %v164_v56 = vmax.f32 %v56_v51, 0.0 }
  0x51   :  { %7404 = vmatmul.mubr.bf16.gmra.mrb[8].mxu1 %v11505_v20  ;;  %11117 = vmatprep.subr.bf16.mxu1 %v11645_v0  ;;  %v12064_v20 = vrot.slane %v1346_v53, 5  ;;  %v1334_v30 = vrot.slane %v1333_v60, 4  ;;  %v160_v38 = vmax.f32 %v52_v27, 0.0  ;;  %v10013_v40 = vcombine.low %v1315_v59, %v1325_v8  ;;  %v57_v59 = vld [vmem:[%s15167_s0 + $0xf0] sm:$0xff]  ;;  %v1125_v11 = vld [vmem:[#allocation2 + $0x48] sm:$0xf] }
  0x52   :  { %7693 = vmatmul.mubr.bf16.gmra.mrb[8].mxu0 %v10075_v26  ;;  %7411 = vmatprep.mubr.bf16.mxu1 %v10012_v33  ;;  %v51_v26 = vld [vmem:[%s15167_s0 + $0xc0] sm:$0xff]  ;;  %v10603_v33 = vpack.c.bf16 %v156_v4, %v155_v62  ;;  %v10608_v41 = vpack.c.bf16 %v158_v25, %v157_v13  ;;  %v12099_v53 = vsel %vm11908_vm5, %v10045_v45, %v2359_v46  ;;  %v165_v46 = vmax.f32 %v57_v59, 0.0  ;;  %v1126_v15 = vld [vmem:[#allocation2 + $0x4c] sm:$0xf]  ;;  %v2152_v57 = vld [vmem:[#allocation2 + $0x48] sm:$0xe] }
  0x53   :  { %7700 = vmatprep.mubr.bf16.mxu0 %v11507_v6  ;;  %7942 = vmatpush1.bf16.msra.mxu0 %v11512_v37  ;;  %v159_v37 = vmax.f32 %v51_v26, 0.0  ;;  %v55_v6 = vld [vmem:[%s15167_s0 + $0xe0] sm:$0xff]  ;;  %v10618_v45 = vpack.c.bf16 %v162_v50, %v161_v44  ;;  %v166_v8 = vmax.f32 %v58_v23, 0.0  ;;  %v1354_v25 = vshll.u32 %v1125_v11, 16  ;;  %v2153_v39 = vld [vmem:[#allocation2 + $0x4c] sm:$0xf] }
  0x54   :  { %7943 = vmatprep.subr.bf16.mxu0 %v11645_v0  ;;  %11133 = vmatpush1.bf16.msra.mxu1 %v11737_v10  ;;  %v1344_v10 = vrot.slane %v1343_v9, 4  ;;  %10829 = vst [vmem:[#allocation2 + $0x50] sm:$0xff] %v10603_v33   ;;  %10830 = vst [vmem:[#allocation2 + $0x58] sm:$0xff] %v10608_v41   ;;  %v163_v55 = vmax.f32 %v55_v6, 0.0  ;;  %v11524_v4 = vld [vmem:[%s15166_s2 + $0x140] sm:$0xff]   ;;  %v1360_v26 = vshll.u32 %v1126_v15, 16 }
  0x55   :  { %11118 = vmatprep.subr.bf16.mxu1 %v11645_v0  ;;  %v10613_v49 = vpack.c.bf16 %v160_v38, %v159_v37  ;;  %10832 = vst [vmem:[#allocation2 + $0x68] sm:$0xff] %v10618_v45   ;;  %v1364_v27 = vshrl.u32 %v1126_v15, 16  ;;  %v2373_v43 = vrot.slane %v2153_v39, 5  ;;  %v11514_v6 = vld [vmem:[#allocation2 + $0x3c] sm:$0xff]  }
  0x56   :  { %v1349_v28 = vsel %vm11892_vm3, %v1344_v10, %v12064_v20  ;;  %v10623_v60 = vpack.c.bf16 %v164_v56, %v163_v55  ;;  %v1351_v20 = vshrl.u32 %v1125_v11, 16  ;;  %v1362_v37 = vrot.slane %v1360_v26, 5 }
  0x57   :  { %7944 = vmatpush1.bf16.msra.mxu0 %v11515_v61  ;;  %10831 = vst [vmem:[#allocation2 + $0x60] sm:$0xff] %v10613_v49   ;;  %v59_v61 = vld [vmem:[%s15167_s0 + $0x100] sm:$0xff]  ;;  %v1366_v38 = vrot.slane %v1364_v27, 4  ;;  %v10047_v56 = vrot.slane %v2152_v57, 9 }
  0x58   :  { %7945 = vmatprep.subr.bf16.mxu0 %v11645_v0  ;;  %11134 = vmatpush1.bf16.msra.mxu1 %v11748_v12  ;;  %v1339_v12 = vsel %vm11892_vm3, %v1334_v30, %v12032_v52  ;;  %v11521_v52 = vld [vmem:[%s15166_s2 + $0x138] sm:$0xff]   ;;  %v167_v62 = vmax.f32 %v59_v61, 0.0  ;;  %10833 = vst [vmem:[#allocation2 + $0x70] sm:$0xff] %v10623_v60   ;;  %v12151_v30 = vsel %vm11908_vm5, %v2368_v34, %v2369_v48  ;;  %v1353_v33 = vrot.slane %v1351_v20, 4 }
  0x59   :  { %7412 = vmatmul.mubr.bf16.gmra.mrb[12].mxu1 %v11508_v5  ;;  %11119 = vmatprep.subr.bf16.mxu1 %v11645_v0  ;;  %v10077_v5 = vcombine.low %v12099_v53, %v2363_v22  ;;  %v10014_v9 = vcombine.low %v1339_v12, %v1349_v28  ;;  %v11527_v53 = vld [vmem:[%s15166_s2 + $0x148] sm:$0xff]   ;;  %v2375_v48 = vrot.slane %v2373_v43, 4 }
  0x5a   :  { %7701 = vmatmul.mubr.bf16.gmra.mrb[12].mxu0 %v10076_v2  ;;  %7419 = vmatprep.mubr.bf16.mxu1 %v10013_v40  ;;  %v10628_v2 = vpack.c.bf16 %v166_v8, %v165_v46  ;;  %v10633_v13 = vpack.c.bf16 %v168_v63, %v167_v62  ;;  %v1367_v40 = vor.u32 %v1366_v38, %v1362_v37 }
  0x5b   :  { %7708 = vmatprep.mubr.bf16.mxu0 %v11510_v29  ;;  %7946 = vmatpush1.bf16.msra.mxu0 %v11518_v36  ;;  %v1127_v19 = vld [vmem:[#allocation2 + $0x50] sm:$0x1]  ;;  %v11513_v29 = vld [vmem:[#allocation2 + $0x48] sm:$0xff]   ;;  %v1356_v36 = vrot.slane %v1354_v25, 5  ;;  %v1128_v44 = vld [vmem:[#allocation2 + $0x54] sm:$0xf]  ;;  %v2374_v63 = vsel %vm11908_vm5, %v10047_v56, %v2373_v43 }
  0x5c   :  { %7947 = vmatprep.subr.bf16.mxu0 %v11645_v0  ;;  %11135 = vmatpush1.bf16.msra.mxu1 %v11759_v14  ;;  %10834 = vst [vmem:[#allocation2 + $0x78] sm:$0xff] %v10628_v2   ;;  %v12147_v14 = vsel %vm11908_vm5, %v10046_v54, %v2366_v21  ;;  %v1370_v32 = vshll.u32 %v1127_v19, 16  ;;  %10835 = vst [vmem:[#allocation2 + $0x80] sm:$0xff] %v10633_v13   ;;  %v2154_v41 = vld [vmem:[#allocation2 + $0x50] sm:$0x1]  ;;  %v1375_v51 = vshrl.u32 %v1128_v44, 16 }
  0x5d   :  { %11120 = vmatprep.subr.bf16.mxu1 %v11645_v0  ;;  %v1357_v21 = vor.u32 %v1356_v36, %v1353_v33  ;;  %v10078_v49 = vcombine.low %v12147_v14, %v12151_v30  ;;  %v1129_v50 = vld [vmem:[#allocation2 + $0x58] sm:$0xf]  ;;  %v1368_v55 = vrot.slane %v1367_v40, 4  ;;  %v2376_v59 = vrot.slane %v2154_v41, 5  ;;  %v2157_v62 = vld [vmem:[#allocation2 + $0x5c] sm:$0x1] }
  0x5e   :  { %v1372_v10 = vrot.slane %v1370_v32, 5  ;;  %v11516_v23 = vld [vmem:[#allocation2 + $0x54] sm:$0xff]   ;;  %v1377_v22 = vrot.slane %v1375_v51, 4  ;;  %v1378_v45 = vshll.u32 %v1128_v44, 16  ;;  %v1384_v46 = vshll.u32 %v1129_v50, 16 }
  0x5f   :  { %7948 = vmatpush1.bf16.msra.mxu0 %v11521_v52  ;;  %v1358_v54 = vrot.slane %v1357_v21, 4  ;;  %v1388_v8 = vshrl.u32 %v1129_v50, 16  ;;  %v2155_v52 = vld [vmem:[#allocation2 + $0x54] sm:$0xe]  ;;  %v1131_v11 = vld [vmem:[#allocation2 + $0x60] sm:$0xf] }
  0x60   :  { %7949 = vmatprep.subr.bf16.mxu0 %v11645_v0  ;;  %11136 = vmatpush1.bf16.msra.mxu1 %v11770_v16  ;;  %v1130_v16 = vld [vmem:[#allocation2 + $0x5c] sm:$0x1]  ;;  %v1373_v28 = vsel %vm11892_vm3, %v1368_v55, %v1372_v10  ;;  %v1380_v24 = vrot.slane %v1378_v45, 5  ;;  %v1386_v34 = vrot.slane %v1384_v46, 5  ;;  %v1132_v15 = vld [vmem:[#allocation2 + $0x64] sm:$0xf] }
  0x61   :  { %7420 = vmatmul.mubr.bf16.gmra.mrb[16].mxu1 %v11511_v3  ;;  %11121 = vmatprep.subr.bf16.mxu1 %v11645_v0  ;;  %v1363_v12 = vsel %vm11892_vm3, %v1358_v54, %v1362_v37  ;;  %v1394_v60 = vshll.u32 %v1130_v16, 16  ;;  %v1390_v2 = vrot.slane %v1388_v8, 4  ;;  %v10048_v19 = vrot.slane %v2155_v52, 9  ;;  %v1133_v20 = vld [vmem:[#allocation2 + $0x68] sm:$0x1] }
  0x62   :  { %7709 = vmatmul.mubr.bf16.gmra.mrb[16].mxu0 %v10077_v5  ;;  %7427 = vmatprep.mubr.bf16.mxu1 %v10014_v9  ;;  %v10015_v61 = vcombine.low %v1363_v12, %v1373_v28  ;;  %v1381_v3 = vor.u32 %v1380_v24, %v1377_v22  ;;  %v1399_v25 = vshrl.u32 %v1131_v11, 16  ;;  %v1402_v27 = vshll.u32 %v1131_v11, 16  ;;  %v11517_v37 = vld [vmem:[#allocation2 + $0x48] sm:$0xff]   ;;  %v12186_v43 = vld [vmem:[#allocation2 + $0x64] sm:$0xf]  ;;  %v11520_v24 = vld [vmem:[#allocation2 + $0x54] sm:$0xff]  }
  0x63   :  { %7716 = vmatprep.mubr.bf16.mxu0 %v11513_v29  ;;  %7950 = vmatpush1.bf16.msra.mxu0 %v11524_v4  ;;  %v1396_v5 = vrot.slane %v1394_v60, 5  ;;  %v12175_v4 = vld [vmem:[%s15167_s0 + $0x110] sm:$0xff]  ;;  %v1391_v13 = vor.u32 %v1390_v2, %v1386_v34  ;;  %v1408_v29 = vshll.u32 %v1132_v15, 16  ;;  %v1412_v14 = vshrl.u32 %v1132_v15, 16  ;;  %v12189_v16 = vld [vmem:[#allocation2 + $0x60] sm:$0xe] }
  0x64   :  { %7951 = vmatprep.subr.bf16.mxu0 %v11645_v0  ;;  %11137 = vmatpush1.bf16.msra.mxu1 %v11781_v18  ;;  %v2156_v18 = vld [vmem:[#allocation2 + $0x58] sm:$0xf]  ;;  %v1382_v26 = vrot.slane %v1381_v3, 4  ;;  %v2383_v32 = vrot.slane %v2157_v62, 5  ;;  %v1401_v33 = vrot.slane %v1399_v25, 4  ;;  %v1418_v36 = vshll.u32 %v1133_v20, 16 }
  0x65   :  { %11122 = vmatprep.subr.bf16.mxu1 %v11645_v0  ;;  %v2380_v9 = vrot.slane %v2156_v18, 5  ;;  %v1392_v30 = vrot.slane %v1391_v13, 4  ;;  %v1404_v39 = vrot.slane %v1402_v27, 5  ;;  %v1410_v21 = vrot.slane %v1408_v29, 5  ;;  %v1134_v51 = vld [vmem:[#allocation2 + $0x6c] sm:$0xf] }
  0x66   :  { %v1387_v38 = vsel %vm11892_vm3, %v1382_v26, %v1386_v34  ;;  %v1414_v41 = vrot.slane %v1412_v14, 4  ;;  %v169_v44 = vmax.f32 %v12175_v4, 0.0  ;;  %v1420_v50 = vrot.slane %v1418_v36, 5  ;;  %v12195_v56 = vld [vmem:[#allocation2 + $0x68] sm:$0x1]  ;;  %v11522_v11 = vld [vmem:[#allocation2 + $0x6c] sm:$0xff]  }
  0x67   :  { %7952 = vmatpush1.bf16.msra.mxu0 %v11527_v53  ;;  %v2382_v57 = vrot.slane %v2380_v9, 4  ;;  %v1397_v10 = vsel %vm11892_vm3, %v1392_v30, %v1396_v5  ;;  %v1135_v53 = vld [vmem:[#allocation2 + $0x70] sm:$0xf]  ;;  %v12193_v54 = vsel %vm11908_vm5, %v10048_v19, %v2380_v9  ;;  %v1426_v22 = vshll.u32 %v1134_v51, 16  ;;  %v12209_v3 = vld [vmem:[#allocation2 + $0x6c] sm:$0xe] }
  0x68   :  { %7953 = vmatprep.subr.bf16.mxu0 %v11645_v0  ;;  %11138 = vmatpush1.bf16.msra.mxu1 %v11810_v31  ;;  %v2377_v31 = vsel %vm11908_vm5, %v2375_v48, %v2376_v59  ;;  %v1415_v55 = vor.u32 %v1414_v41, %v1410_v21  ;;  %v1136_v59 = vld [vmem:[#allocation2 + $0x74] sm:$0x1]  ;;  %v2387_v8 = vrot.slane %v12186_v43, 5  ;;  %v1432_v12 = vshll.u32 %v1135_v53, 16  ;;  %v12211_v5 = vld [vmem:[#allocation2 + $0x70] sm:$0xf] }
  0x69   :  { %7428 = vmatmul.mubr.bf16.gmra.mrb[20].mxu1 %v11514_v6  ;;  %11123 = vmatprep.subr.bf16.mxu1 %v11645_v0  ;;  %v10079_v40 = vcombine.low %v2374_v63, %v2377_v31  ;;  %v10016_v6 = vcombine.low %v1387_v38, %v1397_v10  ;;  %v2384_v45 = vsel %vm11908_vm5, %v2382_v57, %v2383_v32  ;;  %v1428_v60 = vrot.slane %v1426_v22, 5  ;;  %v12216_v13 = vld [vmem:[#allocation2 + $0x74] sm:$0x1]  ;;  %v1137_v29 = vld [vmem:[#allocation2 + $0x78] sm:$0xf] }
  0x6a   :  { %7717 = vmatmul.mubr.bf16.gmra.mrb[20].mxu0 %v10078_v49  ;;  %7435 = vmatprep.mubr.bf16.mxu1 %v10015_v61  ;;  %v1405_v49 = vor.u32 %v1404_v39, %v1401_v33  ;;  %v1416_v28 = vrot.slane %v1415_v55, 4  ;;  %v1436_v61 = vshrl.u32 %v1135_v53, 16  ;;  %v12204_v34 = vrot.slane %v1432_v12, 5  ;;  %v11530_v20 = vld [vmem:[%s15166_s2 + $0x150] sm:$0xff]   ;;  %v1138_v14 = vld [vmem:[#allocation2 + $0x7c] sm:$0xf] }
  0x6b   :  { %7724 = vmatprep.mubr.bf16.mxu0 %v11516_v23  ;;  %v1423_v23 = vshrl.u32 %v1134_v51, 16  ;;  %v1442_v52 = vshll.u32 %v1136_v59, 16  ;;  %v10049_v2 = vrot.slane %v12189_v16, 9  ;;  %v10080_v9 = vcombine.low %v12193_v54, %v2384_v45  ;;  %v62_v30 = vld [vmem:[%s15167_s0 + $0x118] sm:$0xff]  ;;  %v1139_v36 = vld [vmem:[#allocation2 + $0x80] sm:$0x1]  ;;  %7954 = vmatpush1.bf16.msra.mxu0 %v11530_v20 }
  0x6c   :  { %11139 = vmatpush1.bf16.msra.mxu1 %v11839_v47  ;;  %v11519_v47 = vld [vmem:[#allocation2 + $0x60] sm:$0xff]   ;;  %v1406_v46 = vrot.slane %v1405_v49, 4  ;;  %v1421_v18 = vsel %vm11892_vm3, %v1416_v28, %v1420_v50  ;;  %v1438_v63 = vrot.slane %v1436_v61, 4  ;;  %v2389_v15 = vrot.slane %v2387_v8, 4  ;;  %7955 = vmatprep.subr.bf16.mxu0 %v11645_v0  ;;  %v64_v51 = vld [vmem:[%s15167_s0 + $0x128] sm:$0xff]  ;;  %v11525_v12 = vld [vmem:[#allocation2 + $0x78] sm:$0xff]  }
  0x6d   :  { %11124 = vmatprep.subr.bf16.mxu1 %v11645_v0  ;;  %v1425_v48 = vrot.slane %v1423_v23, 4  ;;  %v2390_v31 = vrot.slane %v12195_v56, 5  ;;  %v2394_v19 = vrot.slane %v12211_v5, 5  ;;  %v10050_v27 = vrot.slane %v12209_v3, 9  ;;  %v63_v16 = vld [vmem:[%s15167_s0 + $0x120] sm:$0xff] }
  0x6e   :  { %v1439_v26 = vor.u32 %v1438_v63, %v12204_v34  ;;  %v2397_v33 = vrot.slane %v12216_v13, 5  ;;  %v1450_v38 = vshll.u32 %v1137_v29, 16  ;;  %v1466_v43 = vshll.u32 %v1139_v36, 16  ;;  %v11523_v53 = vld [vmem:[#allocation2 + $0x60] sm:$0xff]   ;;  %v12257_v45 = vld [vmem:[#allocation2 + $0x78] sm:$0xe] }
  0x6f   :  { %v1429_v62 = vor.u32 %v1428_v60, %v1425_v48  ;;  %v2396_v39 = vrot.slane %v2394_v19, 4  ;;  %v2391_v49 = vsel %vm11908_vm5, %v2389_v15, %v2390_v31  ;;  %v170_v59 = vmax.f32 %v62_v30, 0.0  ;;  %v12266_v48 = vld [vmem:[#allocation2 + $0x7c] sm:$0xf]  ;;  %v1140_v60 = vld [vmem:[#allocation2 + $0x84] sm:$0xf] }
  0x70   :  { %11140 = vmatpush1.bf16.msra.mxu1 %v11868_v1  ;;  %v1411_v1 = vsel %vm11892_vm3, %v1406_v46, %v1410_v21  ;;  %v1440_v57 = vrot.slane %v1439_v26, 4  ;;  %v1456_v21 = vshll.u32 %v1138_v14, 16  ;;  %v1452_v41 = vrot.slane %v1450_v38, 5  ;;  %v65_v46 = vld [vmem:[%s15167_s0 + $0x130] sm:$0xff]  ;;  %v68_v31 = vld [vmem:[%s15167_s0 + $0x148] sm:$0xff]  ;;  %v11536_v20 = vld [vmem:[%s15166_s2 + $0x160] sm:$0xff]  }
  0x71   :  { %7436 = vmatmul.mubr.bf16.gmra.mrb[24].mxu1 %v11517_v37  ;;  %11125 = vmatprep.subr.bf16.mxu1 %v11645_v0  ;;  %v10017_v25 = vcombine.low %v1411_v1, %v1421_v18  ;;  %v1430_v32 = vrot.slane %v1429_v62, 4  ;;  %v1447_v37 = vshrl.u32 %v1137_v29, 16  ;;  %v12255_v22 = vrot.slane %v1466_v43, 5  ;;  %v69_v13 = vld [vmem:[%s15167_s0 + $0x150] sm:$0xff] }
  0x72   :  { %7725 = vmatmul.mubr.bf16.gmra.mrb[24].mxu0 %v10079_v40  ;;  %7443 = vmatprep.mubr.bf16.mxu1 %v10016_v6  ;;  %v1460_v40 = vshrl.u32 %v1138_v14, 16  ;;  %v11533_v6 = vld [vmem:[%s15166_s2 + $0x158] sm:$0xff]   ;;  %v12241_v50 = vrot.slane %v1456_v21, 5  ;;  %v10638_v28 = vpack.c.bf16 %v170_v59, %v169_v44  ;;  %v171_v61 = vmax.f32 %v63_v16, 0.0 }
  0x73   :  { %7732 = vmatprep.mubr.bf16.mxu0 %v11519_v47  ;;  %v1449_v10 = vrot.slane %v1447_v37, 4  ;;  %v2388_v47 = vsel %vm11908_vm5, %v10049_v2, %v2387_v8  ;;  %v1435_v54 = vsel %vm11892_vm3, %v1430_v32, %v12204_v34  ;;  %7956 = vmatpush1.bf16.msra.mxu0 %v11533_v6  ;;  %v1471_v18 = vshrl.u32 %v1140_v60, 16  ;;  %v12272_v2 = vld [vmem:[#allocation2 + $0x80] sm:$0x1]  ;;  %v11526_v32 = vld [vmem:[#allocation2 + $0x6c] sm:$0xff]  }
  0x74   :  { %11141 = vmatpush1.bf16.msra.mxu1 %v11877_v17  ;;  %v1444_v17 = vrot.slane %v1442_v52, 5  ;;  %7957 = vmatprep.subr.bf16.mxu0 %v11645_v0  ;;  %v10081_v8 = vcombine.low %v2388_v47, %v2391_v49  ;;  %10836 = vst [vmem:[#allocation2 + $0x88] sm:$0xff] %v10638_v28   ;;  %v10051_v4 = vrot.slane %v12257_v45, 9  ;;  %v1474_v44 = vshll.u32 %v1140_v60, 16  ;;  %v73_v6 = vld [vmem:[%s15167_s0 + $0x170] sm:$0xff]  ;;  %v74_v47 = vld [vmem:[%s15167_s0 + $0x178] sm:$0xff] }
  0x75   :  { %11126 = vmatprep.subr.bf16.mxu1 %v11645_v0  ;;  %v1453_v56 = vor.u32 %v1452_v41, %v1449_v10  ;;  %v173_v63 = vmax.f32 %v65_v46, 0.0  ;;  %v1473_v15 = vrot.slane %v1471_v18, 4  ;;  %v2395_v26 = vsel %vm11908_vm5, %v10050_v27, %v2394_v19  ;;  %v70_v27 = vld [vmem:[%s15167_s0 + $0x158] sm:$0xff]  ;;  %v72_v41 = vld [vmem:[%s15167_s0 + $0x168] sm:$0xff] }
  0x76   :  { %v1445_v55 = vsel %vm11892_vm3, %v1440_v57, %v1444_v17  ;;  %v2398_v17 = vsel %vm11908_vm5, %v2396_v39, %v2397_v33  ;;  %v1476_v29 = vrot.slane %v1474_v44, 5  ;;  %v176_v19 = vmax.f32 %v68_v31, 0.0  ;;  %v11539_v57 = vld [vmem:[%s15166_s2 + $0x168] sm:$0xff]   ;;  %v71_v39 = vld [vmem:[%s15167_s0 + $0x160] sm:$0xff] }
  0x77   :  { %v10018_v1 = vcombine.low %v1435_v54, %v1445_v55  ;;  %v1454_v34 = vrot.slane %v1453_v56, 4  ;;  %7958 = vmatpush1.bf16.msra.mxu0 %v11536_v20  ;;  %v177_v37 = vmax.f32 %v69_v13, 0.0  ;;  %v178_v38 = vmax.f32 %v70_v27, 0.0 }
  0x78   :  { %11142 = vmatpush1.bf16.msra.mxu1 %v11888_v35  ;;  %v1462_v35 = vrot.slane %v1460_v40, 4  ;;  %v1477_v33 = vor.u32 %v1476_v29, %v1473_v15  ;;  %v2404_v40 = vrot.slane %v12272_v2, 5  ;;  %7959 = vmatprep.subr.bf16.mxu0 %v11645_v0  ;;  %v179_v43 = vmax.f32 %v71_v39, 0.0 }
  0x79   :  { %7444 = vmatmul.mubr.bf16.gmra.mrb[28].mxu1 %v11520_v24  ;;  %11127 = vmatprep.subr.bf16.mxu1 %v11645_v0  ;;  %v172_v24 = vmax.f32 %v64_v51, 0.0  ;;  %v1459_v30 = vsel %vm11892_vm3, %v1454_v34, %v12241_v50  ;;  %v180_v16 = vmax.f32 %v72_v41, 0.0  ;;  %v181_v51 = vmax.f32 %v73_v6, 0.0 }
  0x7a   :  { %7733 = vmatmul.mubr.bf16.gmra.mrb[28].mxu0 %v10080_v9  ;;  %7451 = vmatprep.mubr.bf16.mxu1 %v10017_v25  ;;  %v1463_v23 = vor.u32 %v1462_v35, %v12241_v50  ;;  %v67_v9 = vld [vmem:[%s15167_s0 + $0x140] sm:$0xff]  ;;  %v11644_v25 = vld [vmem:[%s15166_s2 + $0xf8] sm:$0xff]   ;;  %v1478_v49 = vrot.slane %v1477_v33, 4  ;;  %v10658_v35 = vpack.c.bf16 %v178_v38, %v177_v37  ;;  %v10082_v54 = vcombine.low %v2395_v26, %v2398_v17 }
  0x7b   :  { %7740 = vmatprep.mubr.bf16.mxu0 %v11522_v11  ;;  %v10643_v62 = vpack.c.bf16 %v172_v24, %v171_v61  ;;  %v2401_v11 = vrot.slane %v12266_v48, 5  ;;  %v175_v5 = vmax.f32 %v67_v9, 0.0  ;;  %v12329_v50 = vld [vmem:[#allocation2 + $0x84] sm:$0xe]  ;;  %v1141_v59 = vld [vmem:[#allocation2 + $0x88] sm:$0xf]  ;;  %7960 = vmatpush1.bf16.msra.mxu0 %v11539_v57 }
  0x7c   :  { %11143 = vmatpush1.bf16.msra.mxu1 %v11917_v7  ;;  %v1464_v52 = vrot.slane %v1463_v23, 4  ;;  %v66_v7 = vld [vmem:[%s15167_s0 + $0x138] sm:$0xff]  ;;  %v11528_v56 = vld [vmem:[#allocation2 + $0x84] sm:$0xff]   ;;  %v182_v23 = vmax.f32 %v74_v47, 0.0  ;;  %v1480_v46 = vshll.u32 %v1141_v59, 16  ;;  %10840 = vst [vmem:[#allocation2 + $0xa8] sm:$0xff] %v10658_v35   ;;  %7961 = vmatprep.subr.bf16.mxu0 %v11645_v0 }
  0x7d   :  { %11128 = vmatprep.subr.bf16.mxu1 %v11645_v0  ;;  %10837 = vst [vmem:[#allocation2 + $0x90] sm:$0xff] %v10643_v62   ;;  %v174_v14 = vmax.f32 %v66_v7, 0.0  ;;  %v2403_v21 = vrot.slane %v2401_v11, 4  ;;  %v10653_v10 = vpack.c.bf16 %v176_v19, %v175_v5  ;;  %v2402_v34 = vsel %vm11908_vm5, %v10051_v4, %v2401_v11  ;;  %v2169_v18 = vld [vmem:[#allocation2 + $0x8c] sm:$0x1]  ;;  %v11529_v62 = vld [vmem:[#allocation2 + $0x78] sm:$0xff]  }
  0x7e   :  { %v1469_v3 = vsel %vm11892_vm3, %v1464_v52, %v12255_v22  ;;  %v1142_v22 = vld [vmem:[#allocation2 + $0x8c] sm:$0x1]  ;;  %v10668_v60 = vpack.c.bf16 %v182_v23, %v181_v51  ;;  %v1482_v61 = vrot.slane %v1480_v46, 5  ;;  %v10052_v7 = vrot.slane %v12329_v50, 9 }
  0x7f   :  { %v10648_v36 = vpack.c.bf16 %v174_v14, %v173_v63  ;;  %v10019_v55 = vcombine.low %v1459_v30, %v1469_v3  ;;  %10839 = vst [vmem:[#allocation2 + $0xa0] sm:$0xff] %v10653_v10   ;;  %v1490_v28 = vshll.u32 %v1142_v22, 16  ;;  %v2405_v52 = vsel %vm11908_vm5, %v2403_v21, %v2404_v40 }
  0x80   :  { %11144 = vmatpush1.bf16.msra.mxu1 %v11644_v25  ;;  %10842 = vst [vmem:[#allocation2 + $0xb8] sm:$0xff] %v10668_v60   ;;  %v1483_v63 = vsel %vm11892_vm3, %v1478_v49, %v1482_v61  ;;  %v2411_v11 = vrot.slane %v2169_v18, 5  ;;  %v10083_v30 = vcombine.low %v2402_v34, %v2405_v52 }
  0x81   :  { %7452 = vmatmul.mubr.bf16.gmra.mrb[32].mxu1 %v11523_v53  ;;  %10838 = vst [vmem:[#allocation2 + $0x98] sm:$0xff] %v10648_v36   ;;  %v11542_v53 = vld [vmem:[%s15166_s2 + $0x170] sm:$0xff]   ;;  %v1492_v9 = vrot.slane %v1490_v28, 5 }
  0x82   :  { %7741 = vmatmul.mubr.bf16.gmra.mrb[32].mxu0 %v10081_v8  ;;  %7459 = vmatprep.mubr.bf16.mxu1 %v10018_v1  ;;  %v1484_v8 = vshrl.u32 %v1141_v59, 16  ;;  %v2168_v1 = vld [vmem:[#allocation2 + $0x88] sm:$0xf] }
  0x83   :  { %7748 = vmatprep.mubr.bf16.mxu0 %v11525_v12  ;;  %v10663_v12 = vpack.c.bf16 %v180_v16, %v179_v43  ;;  %v2408_v2 = vrot.slane %v2168_v1, 5  ;;  %7962 = vmatpush1.bf16.msra.mxu0 %v11542_v53 }
  0x84   :  { %v1486_v24 = vrot.slane %v1484_v8, 4  ;;  %v1143_v44 = vld [vmem:[#allocation2 + $0x90] sm:$0xf]  ;;  %v1144_v45 = vld [vmem:[#allocation2 + $0x94] sm:$0xf]  ;;  %7963 = vmatprep.subr.bf16.mxu0 %v11645_v0 }
  0x85   :  { %10841 = vst [vmem:[#allocation2 + $0xb0] sm:$0xff] %v10663_v12   ;;  %v1495_v15 = vshrl.u32 %v1143_v44, 16  ;;  %v2410_v4 = vrot.slane %v2408_v2, 4  ;;  %v1498_v20 = vshll.u32 %v1143_v44, 16  ;;  %v1504_v25 = vshll.u32 %v1144_v45, 16  ;;  %v11531_v13 = vld [vmem:[#allocation2 + $0x90] sm:$0xff]  }
  0x86   :  { %v1487_v48 = vor.u32 %v1486_v24, %v1482_v61  ;;  %v1508_v29 = vshrl.u32 %v1144_v45, 16  ;;  %v2409_v36 = vsel %vm11908_vm5, %v10052_v7, %v2408_v2  ;;  %v2171_v57 = vld [vmem:[#allocation2 + $0x94] sm:$0xf]  ;;  %v1147_v6 = vld [vmem:[#allocation2 + $0xa0] sm:$0xf] }
  0x87   :  { %v1497_v17 = vrot.slane %v1495_v15, 4  ;;  %v1500_v3 = vrot.slane %v1498_v20, 5  ;;  %v1506_v5 = vrot.slane %v1504_v25, 5  ;;  %v2412_v21 = vsel %vm11908_vm5, %v2410_v4, %v2411_v11  ;;  %v1148_v49 = vld [vmem:[#allocation2 + $0xa4] sm:$0x1] }
  0x88   :  { %v1145_v31 = vld [vmem:[#allocation2 + $0x98] sm:$0x1]  ;;  %v1488_v26 = vrot.slane %v1487_v48, 4  ;;  %v1510_v27 = vrot.slane %v1508_v29, 4  ;;  %v2415_v41 = vrot.slane %v2171_v57, 5  ;;  %v1528_v16 = vshll.u32 %v1147_v6, 16 }
  0x89   :  { %7460 = vmatmul.mubr.bf16.gmra.mrb[36].mxu1 %v11526_v32  ;;  %v1514_v14 = vshll.u32 %v1145_v31, 16  ;;  %v2170_v32 = vld [vmem:[#allocation2 + $0x90] sm:$0xe]  ;;  %v1501_v37 = vor.u32 %v1500_v3, %v1497_v17  ;;  %v2172_v39 = vld [vmem:[#allocation2 + $0x98] sm:$0x1]  ;;  %v1538_v28 = vshll.u32 %v1148_v49, 16  ;;  %v10084_v60 = vcombine.low %v2409_v36, %v2412_v21 }
  0x8a   :  { %7749 = vmatmul.mubr.bf16.gmra.mrb[36].mxu0 %v10082_v54  ;;  %7467 = vmatprep.mubr.bf16.mxu1 %v10019_v55  ;;  %v1493_v19 = vsel %vm11892_vm3, %v1488_v26, %v1492_v9  ;;  %v1511_v40 = vor.u32 %v1510_v27, %v1506_v5  ;;  %v10053_v10 = vrot.slane %v2170_v32, 9  ;;  %v1146_v43 = vld [vmem:[#allocation2 + $0x9c] sm:$0xf]  ;;  %v2417_v53 = vrot.slane %v2415_v41, 4  ;;  %v2174_v34 = vld [vmem:[#allocation2 + $0xa0] sm:$0xf] }
  0x8b   :  { %7756 = vmatprep.mubr.bf16.mxu0 %v11528_v56  ;;  %v10020_v33 = vcombine.low %v1483_v63, %v1493_v19  ;;  %v1516_v38 = vrot.slane %v1514_v14, 5  ;;  %v1502_v47 = vrot.slane %v1501_v37, 4  ;;  %v1519_v50 = vshrl.u32 %v1146_v43, 16  ;;  %v11532_v56 = vld [vmem:[#allocation2 + $0x84] sm:$0xff]   ;;  %v2173_v1 = vld [vmem:[#allocation2 + $0x9c] sm:$0xe] }
  0x8c   :  { %v1522_v35 = vshll.u32 %v1146_v43, 16  ;;  %v1512_v51 = vrot.slane %v1511_v40, 4  ;;  %v2418_v54 = vrot.slane %v2172_v39, 5  ;;  %v1532_v55 = vshrl.u32 %v1147_v6, 16  ;;  %v2175_v52 = vld [vmem:[#allocation2 + $0xa4] sm:$0x1] }
  0x8d   :  { %v1507_v59 = vsel %vm11892_vm3, %v1502_v47, %v1506_v5  ;;  %v1521_v23 = vrot.slane %v1519_v50, 4  ;;  %v1530_v46 = vrot.slane %v1528_v16, 5  ;;  %v11534_v18 = vld [vmem:[#allocation2 + $0x9c] sm:$0xff]   ;;  %v1540_v2 = vrot.slane %v1538_v28, 5  ;;  %v1150_v15 = vld [vmem:[#allocation2 + $0xac] sm:$0xf] }
  0x8e   :  { %v1524_v22 = vrot.slane %v1522_v35, 5  ;;  %v1517_v8 = vsel %vm11892_vm3, %v1512_v51, %v1516_v38  ;;  %v1534_v12 = vrot.slane %v1532_v55, 4  ;;  %v2422_v44 = vrot.slane %v2174_v34, 5  ;;  %v1151_v4 = vld [vmem:[#allocation2 + $0xb0] sm:$0x1]  ;;  %v12364_v26 = vld [vmem:[%s15167_s0 + $0x180] sm:$0xff] }
  0x8f   :  { %v10021_v61 = vcombine.low %v1507_v59, %v1517_v8  ;;  %v2416_v63 = vsel %vm11908_vm5, %v10053_v10, %v2415_v41  ;;  %v2419_v48 = vsel %vm11908_vm5, %v2417_v53, %v2418_v54  ;;  %v10054_v45 = vrot.slane %v2173_v1, 9  ;;  %v11535_v3 = vld [vmem:[#allocation2 + $0x90] sm:$0xff]   ;;  %v2176_v38 = vld [vmem:[#allocation2 + $0xa8] sm:$0xe]  ;;  %v2177_v57 = vld [vmem:[#allocation2 + $0xac] sm:$0xf] }
  0x90   :  { %v1525_v24 = vor.u32 %v1524_v22, %v1521_v23  ;;  %v1535_v7 = vor.u32 %v1534_v12, %v1530_v46  ;;  %v2424_v31 = vrot.slane %v2422_v44, 4  ;;  %v2425_v20 = vrot.slane %v2175_v52, 5  ;;  %v11537_v39 = vld [vmem:[#allocation2 + $0xa8] sm:$0xff]   ;;  %v2178_v10 = vld [vmem:[#allocation2 + $0xb0] sm:$0x1] }
  0x91   :  { %7468 = vmatmul.mubr.bf16.gmra.mrb[40].mxu1 %v11529_v62  ;;  %v1149_v62 = vld [vmem:[#allocation2 + $0xa8] sm:$0xf]  ;;  %v1552_v29 = vshll.u32 %v1150_v15, 16  ;;  %v1556_v14 = vshrl.u32 %v1150_v15, 16  ;;  %v1562_v27 = vshll.u32 %v1151_v4, 16  ;;  %v10085_v32 = vcombine.low %v2416_v63, %v2419_v48 }
  0x92   :  { %7757 = vmatmul.mubr.bf16.gmra.mrb[40].mxu0 %v10083_v30  ;;  %7475 = vmatprep.mubr.bf16.mxu1 %v10020_v33  ;;  %v1526_v9 = vrot.slane %v1525_v24, 4  ;;  %v1536_v11 = vrot.slane %v1535_v7, 4  ;;  %v1543_v25 = vshrl.u32 %v1149_v62, 16  ;;  %v1546_v17 = vshll.u32 %v1149_v62, 16  ;;  %v11545_v30 = vld [vmem:[%s15166_s2 + $0x178] sm:$0xff]   ;;  %v76_v35 = vld [vmem:[%s15167_s0 + $0x188] sm:$0xff] }
  0x93   :  { %7764 = vmatprep.mubr.bf16.mxu0 %v11531_v13  ;;  %v12375_v33 = vsel %vm11908_vm5, %v10054_v45, %v2422_v44  ;;  %v1554_v37 = vrot.slane %v1552_v29, 5  ;;  %7964 = vmatpush1.bf16.msra.mxu0 %v11545_v30  ;;  %v1558_v21 = vrot.slane %v1556_v14, 4  ;;  %v1564_v40 = vrot.slane %v1562_v27, 5  ;;  %v1152_v50 = vld [vmem:[#allocation2 + $0xb4] sm:$0xf]  ;;  %v82_v45 = vld [vmem:[%s15167_s0 + $0x1b8] sm:$0xff] }
  0x94   :  { %v1531_v5 = vsel %vm11892_vm3, %v1526_v9, %v1530_v46  ;;  %v1541_v19 = vsel %vm11892_vm3, %v1536_v11, %v1540_v2  ;;  %v1545_v13 = vrot.slane %v1543_v25, 4  ;;  %v1548_v36 = vrot.slane %v1546_v17, 5  ;;  %8222 = vmatprep.subr.bf16.mxu0 %v11645_v0  ;;  %v1153_v55 = vld [vmem:[#allocation2 + $0xb8] sm:$0xf]  ;;  %v11538_v2 = vld [vmem:[#allocation2 + $0x9c] sm:$0xff]   ;;  %v84_v14 = vld [vmem:[%s15167_s0 + $0x1c8] sm:$0xff] }
  0x95   :  { %v10055_v41 = vrot.slane %v2176_v38, 9  ;;  %v2429_v43 = vrot.slane %v2177_v57, 5  ;;  %v10022_v6 = vcombine.low %v1531_v5, %v1541_v19  ;;  %v2432_v49 = vrot.slane %v2178_v10, 5  ;;  %v2180_v7 = vld [vmem:[#allocation2 + $0xb8] sm:$0xf]  ;;  %v83_v29 = vld [vmem:[%s15167_s0 + $0x1c0] sm:$0xff] }
  0x96   :  { %v1549_v47 = vor.u32 %v1548_v36, %v1545_v13  ;;  %v183_v16 = vmax.f32 %v12364_v26, 0.0  ;;  %v12384_v51 = vsel %vm11908_vm5, %v2424_v31, %v2425_v20  ;;  %v1559_v53 = vor.u32 %v1558_v21, %v1554_v37  ;;  %v2181_v9 = vld [vmem:[#allocation2 + $0xbc] sm:$0x1]  ;;  %v11540_v20 = vld [vmem:[#allocation2 + $0xb4] sm:$0xff]   ;;  %v4026_v27 = vld [vmem:[#allocation2 + $0xc] sm:$0xe] }
  0x97   :  { %v2431_v54 = vrot.slane %v2429_v43, 4  ;;  %v1567_v59 = vshrl.u32 %v1152_v50, 16  ;;  %v1570_v22 = vshll.u32 %v1152_v50, 16  ;;  %v1576_v46 = vshll.u32 %v1153_v55, 16  ;;  %v4028_v57 = vld [vmem:[#allocation2 + $0x14] sm:$0x1] }
  0x98   :  { %v1550_v23 = vrot.slane %v1549_v47, 4  ;;  %v1580_v8 = vshrl.u32 %v1153_v55, 16  ;;  %v1560_v12 = vrot.slane %v1559_v53, 4  ;;  %v10086_v24 = vcombine.low %v12375_v33, %v12384_v51  ;;  %v3003_v10 = vld [vmem:[#allocation2 + $0x10] sm:$0xf] }
  0x99   :  { %7476 = vmatmul.mubr.bf16.gmra.mrb[44].mxu1 %v11532_v56  ;;  %v1154_v56 = vld [vmem:[#allocation2 + $0xbc] sm:$0x1]  ;;  %v1569_v28 = vrot.slane %v1567_v59, 4  ;;  %v1572_v34 = vrot.slane %v1570_v22, 5  ;;  %v12393_v52 = vrot.slane %v1576_v46, 5  ;;  %v184_v48 = vmax.f32 %v76_v35, 0.0 }
  0x9a   :  { %7765 = vmatmul.mubr.bf16.gmra.mrb[44].mxu0 %v10084_v60  ;;  %7483 = vmatprep.mubr.bf16.mxu1 %v10021_v61  ;;  %v1586_v60 = vshll.u32 %v1154_v56, 16  ;;  %v81_v61 = vld [vmem:[%s15167_s0 + $0x1b0] sm:$0xff]  ;;  %v1555_v1 = vsel %vm11892_vm3, %v1550_v23, %v1554_v37  ;;  %v1565_v44 = vsel %vm11892_vm3, %v1560_v12, %v1564_v40  ;;  %v1582_v62 = vrot.slane %v1580_v8, 4  ;;  %v3002_v40 = vld [vmem:[#allocation2 + $0xc] sm:$0xf]  ;;  %v86_v35 = vld [vmem:[%s15167_s0 + $0x1d8] sm:$0xff] }
  0x9b   :  { %7772 = vmatprep.mubr.bf16.mxu0 %v11534_v18  ;;  %v2179_v18 = vld [vmem:[#allocation2 + $0xb4] sm:$0xe]  ;;  %v12404_v15 = vsel %vm11908_vm5, %v10055_v41, %v2429_v43  ;;  %v1573_v4 = vor.u32 %v1572_v34, %v1569_v28  ;;  %v2436_v31 = vrot.slane %v2180_v7, 5  ;;  %v10673_v26 = vpack.c.bf16 %v184_v48, %v183_v16  ;;  %v3004_v50 = vld [vmem:[#allocation2 + $0x14] sm:$0x1] }
  0x9c   :  { %v12397_v63 = vrot.slane %v1586_v60, 5  ;;  %v10056_v11 = vrot.slane %v2179_v18, 9  ;;  %v1583_v25 = vor.u32 %v1582_v62, %v12393_v52  ;;  %v2439_v17 = vrot.slane %v2181_v9, 5  ;;  %v85_v41 = vld [vmem:[%s15167_s0 + $0x1d0] sm:$0xff]  ;;  %v12431_v22 = vld [vmem:[#allocation2 + $0x18] sm:$0xe] }
  0x9d   :  { %v189_v30 = vmax.f32 %v81_v61, 0.0  ;;  %v12415_v5 = vsel %vm11908_vm5, %v2431_v54, %v2432_v49  ;;  %v1574_v19 = vrot.slane %v1573_v4, 4  ;;  %v190_v13 = vmax.f32 %v82_v45, 0.0  ;;  %10843 = vst [vmem:[#allocation2 + $0xc0] sm:$0xff] %v10673_v26   ;;  %v12433_v46 = vld [vmem:[#allocation2 + $0x1c] sm:$0xf] }
  0x9e   :  { %v1584_v33 = vrot.slane %v1583_v25, 4  ;;  %v2438_v36 = vrot.slane %v2436_v31, 4  ;;  %v191_v37 = vmax.f32 %v83_v29, 0.0  ;;  %v192_v38 = vmax.f32 %v84_v14, 0.0  ;;  %v12439_v61 = vld [vmem:[#allocation2 + $0x20] sm:$0x1] }
  0x9f   :  { %v10087_v43 = vcombine.low %v12404_v15, %v12415_v5  ;;  %v10169_v49 = vrot.slane %v4026_v27, 9  ;;  %v4223_v53 = vrot.slane %v4028_v57, 5  ;;  %v3099_v54 = vshrl.u32 %v3002_v40, 16  ;;  %v12445_v7 = vld [vmem:[#allocation2 + $0x18] sm:$0xf] }
  0xa0   :  { %v10693_v47 = vpack.c.bf16 %v192_v38, %v191_v37  ;;  %v1589_v16 = vsel %vm11892_vm3, %v1584_v33, %v12397_v63  ;;  %v3102_v55 = vshll.u32 %v3002_v40, 16  ;;  %v3108_v56 = vshll.u32 %v3003_v10, 16  ;;  %v11544_v40 = vld [vmem:[#allocation2 + $0xb4] sm:$0xff]  }
  0xa1   :  { %7484 = vmatmul.mubr.bf16.gmra.mrb[48].mxu1 %v11535_v3  ;;  %v10023_v3 = vcombine.low %v1555_v1, %v1565_v44  ;;  %v3112_v59 = vshrl.u32 %v3003_v10, 16  ;;  %v3118_v23 = vshll.u32 %v3004_v50, 16  ;;  %v12437_v8 = vsel %vm11908_vm5, %v10056_v11, %v2436_v31 }
  0xa2   :  { %7773 = vmatmul.mubr.bf16.gmra.mrb[48].mxu0 %v10085_v32  ;;  %7491 = vmatprep.mubr.bf16.mxu1 %v10022_v6  ;;  %v4027_v32 = vld [vmem:[#allocation2 + $0x10] sm:$0xf]  ;;  %v1579_v6 = vsel %vm11892_vm3, %v1574_v19, %v12393_v52  ;;  %10847 = vst [vmem:[#allocation2 + $0xe0] sm:$0xff] %v10693_v47   ;;  %v3101_v12 = vrot.slane %v3099_v54, 4  ;;  %v193_v28 = vmax.f32 %v85_v41, 0.0  ;;  %v194_v60 = vmax.f32 %v86_v35, 0.0 }
  0xa3   :  { %7780 = vmatprep.mubr.bf16.mxu0 %v11537_v39  ;;  %v10688_v39 = vpack.c.bf16 %v190_v13, %v189_v30  ;;  %v4220_v21 = vrot.slane %v4027_v32, 5  ;;  %v12443_v1 = vsel %vm11908_vm5, %v2438_v36, %v2439_v17  ;;  %v3104_v34 = vrot.slane %v3102_v55, 5 }
  0xa4   :  { %v3110_v52 = vrot.slane %v3108_v56, 5  ;;  %v3114_v18 = vrot.slane %v3112_v59, 4  ;;  %v10698_v63 = vpack.c.bf16 %v194_v60, %v193_v28  ;;  %v11543_v48 = vld [vmem:[#allocation2 + $0xc0] sm:$0xff]   ;;  %v3120_v15 = vrot.slane %v3118_v23, 5 }
  0xa5   :  { %10846 = vst [vmem:[#allocation2 + $0xd8] sm:$0xff] %v10688_v39   ;;  %v4222_v51 = vrot.slane %v4220_v21, 4  ;;  %v12449_v44 = vsel %vm11908_vm5, %v10169_v49, %v4220_v21  ;;  %v3105_v9 = vor.u32 %v3104_v34, %v3101_v12  ;;  %v10170_v4 = vrot.slane %v12431_v22, 9 }
  0xa6   :  { %v3115_v45 = vor.u32 %v3114_v18, %v3110_v52  ;;  %10848 = vst [vmem:[#allocation2 + $0xe8] sm:$0xff] %v10698_v63   ;;  %v4227_v11 = vrot.slane %v12433_v46, 5  ;;  %v4230_v31 = vrot.slane %v12439_v61, 5  ;;  %v3123_v25 = vshrl.u32 %v12445_v7, 16  ;;  %v87_v61 = vld [vmem:[%s15167_s0 + $0x1e0] sm:$0xff] }
  0xa7   :  { %v12453_v62 = vsel %vm11908_vm5, %v4222_v51, %v4223_v53  ;;  %v10088_v26 = vcombine.low %v12437_v8, %v12443_v1  ;;  %v3106_v32 = vrot.slane %v3105_v9, 4  ;;  %v3126_v36 = vshll.u32 %v12445_v7, 16  ;;  %v3007_v7 = vld [vmem:[#allocation2 + $0x20] sm:$0x1] }
  0xa8   :  { %v10201_v14 = vcombine.low %v12449_v44, %v12453_v62  ;;  %v3116_v33 = vrot.slane %v3115_v45, 4  ;;  %v12475_v55 = vsel %vm11908_vm5, %v10170_v4, %v4227_v11  ;;  %v4229_v56 = vrot.slane %v4227_v11, 4  ;;  %v90_v44 = vld [vmem:[%s15167_s0 + $0x1f8] sm:$0xff] }
  0xa9   :  { %7492 = vmatmul.mubr.bf16.gmra.mrb[52].mxu1 %v11538_v2  ;;  %v10024_v2 = vcombine.low %v1579_v6, %v1589_v16  ;;  %v1157_v30 = vld [vmem:[#allocation2 + $0xe0] sm:$0x1]  ;;  %v1158_v21 = vld [vmem:[#allocation2 + $0xe4] sm:$0xf]  ;;  %v3111_v10 = vsel %vm11892_vm3, %v3106_v32, %v3110_v52  ;;  %v3125_v60 = vrot.slane %v3123_v25, 4 }
  0xaa   :  { %7781 = vmatmul.mubr.bf16.gmra.mrb[52].mxu0 %v10086_v24  ;;  %7499 = vmatprep.mubr.bf16.mxu1 %v10023_v3  ;;  %v11541_v24 = vld [vmem:[#allocation2 + $0xa8] sm:$0xff]   ;;  %v1610_v27 = vshll.u32 %v1157_v30, 16  ;;  %v3121_v41 = vsel %vm11892_vm3, %v3116_v33, %v3120_v15  ;;  %v1618_v35 = vshll.u32 %v1158_v21, 16  ;;  %v4231_v28 = vsel %vm11908_vm5, %v4229_v56, %v4230_v31  ;;  %v4032_v31 = vld [vmem:[#allocation2 + $0x24] sm:$0xe] }
  0xab   :  { %7788 = vmatprep.mubr.bf16.mxu0 %v11540_v20  ;;  %v12458_v20 = vld [vmem:[#allocation2 + $0x1c] sm:$0xf]  ;;  %v12471_v16 = vcombine.low %v3111_v10, %v3121_v41  ;;  %v10202_v9 = vcombine.low %v12475_v55, %v4231_v28  ;;  %v3128_v15 = vrot.slane %v3126_v36, 5  ;;  %v3008_v32 = vld [vmem:[#allocation2 + $0x24] sm:$0xf]  ;;  %v11550_v55 = vld [vmem:[%s15166_s2 + $0x188] sm:$0xff]  }
  0xac   :  { %v1155_v17 = vld [vmem:[#allocation2 + $0xd8] sm:$0xf]  ;;  %v1156_v29 = vld [vmem:[#allocation2 + $0xdc] sm:$0xf]  ;;  %v3132_v6 = vshll.u32 %v12458_v20, 16  ;;  %v1612_v50 = vrot.slane %v1610_v27, 5 }
  0xad   :  { %v1591_v3 = vshrl.u32 %v1155_v17, 16  ;;  %v1594_v5 = vshll.u32 %v1155_v17, 16  ;;  %v1600_v19 = vshll.u32 %v1156_v29, 16  ;;  %v1604_v13 = vshrl.u32 %v1156_v29, 16  ;;  %v1159_v51 = vld [vmem:[#allocation2 + $0xe8] sm:$0xf] }
  0xae   :  { %v1160_v53 = vld [vmem:[#allocation2 + $0xec] sm:$0x1]  ;;  %v1620_v22 = vrot.slane %v1618_v35, 5  ;;  %v1624_v46 = vshll.u32 %v1159_v51, 16  ;;  %v1628_v8 = vshrl.u32 %v1159_v51, 16  ;;  %v3134_v4 = vrot.slane %v3132_v6, 5 }
  0xaf   :  { %v1593_v37 = vrot.slane %v1591_v3, 4  ;;  %v1596_v38 = vrot.slane %v1594_v5, 5  ;;  %v1602_v57 = vrot.slane %v1600_v19, 5  ;;  %v1606_v39 = vrot.slane %v1604_v13, 4  ;;  %v11546_v25 = vld [vmem:[#allocation2 + $0xd8] sm:$0xff]   ;;  %v92_v56 = vld [vmem:[%s15167_s0 + $0x208] sm:$0xff] }
  0xb0   :  { %v1634_v12 = vshll.u32 %v1160_v53, 16  ;;  %v1626_v18 = vrot.slane %v1624_v46, 5  ;;  %v1630_v63 = vrot.slane %v1628_v8, 4  ;;  %v3136_v11 = vshrl.u32 %v12458_v20, 16  ;;  %v4033_v3 = vld [vmem:[#allocation2 + $0x28] sm:$0xf] }
  0xb1   :  { %7500 = vmatmul.mubr.bf16.gmra.mrb[56].mxu1 %v11541_v24  ;;  %v1597_v47 = vor.u32 %v1596_v38, %v1593_v37  ;;  %v1607_v49 = vor.u32 %v1606_v39, %v1602_v57  ;;  %v88_v24 = vld [vmem:[%s15167_s0 + $0x1e8] sm:$0xff]  ;;  %v3142_v17 = vshll.u32 %v3007_v7, 16  ;;  %v195_v29 = vmax.f32 %v87_v61, 0.0  ;;  %v11547_v20 = vld [vmem:[%s15166_s2 + $0x180] sm:$0xff]   ;;  %v4036_v8 = vld [vmem:[#allocation2 + $0x34] sm:$0xf] }
  0xb2   :  { %7789 = vmatmul.mubr.bf16.gmra.mrb[56].mxu0 %v10087_v43  ;;  %7507 = vmatprep.mubr.bf16.mxu1 %v10024_v2  ;;  %v1615_v43 = vshrl.u32 %v1158_v21, 16  ;;  %v89_v2 = vld [vmem:[%s15167_s0 + $0x1f0] sm:$0xff]  ;;  %v196_v30 = vmax.f32 %v88_v24, 0.0  ;;  %v3129_v5 = vor.u32 %v3128_v15, %v3125_v60  ;;  %v3138_v19 = vrot.slane %v3136_v11, 4  ;;  %v4034_v27 = vld [vmem:[#allocation2 + $0x2c] sm:$0x1] }
  0xb3   :  { %7796 = vmatprep.mubr.bf16.mxu0 %v11543_v48  ;;  %v1598_v59 = vrot.slane %v1597_v47, 4  ;;  %v1608_v23 = vrot.slane %v1607_v49, 4  ;;  %v1636_v48 = vrot.slane %v1634_v12, 5  ;;  %v197_v13 = vmax.f32 %v89_v2, 0.0  ;;  %v3009_v10 = vld [vmem:[#allocation2 + $0x28] sm:$0xf] }
  0xb4   :  { %v1617_v54 = vrot.slane %v1615_v43, 4  ;;  %v3144_v36 = vrot.slane %v3142_v17, 5  ;;  %v198_v37 = vmax.f32 %v90_v44, 0.0  ;;  %v10703_v38 = vpack.c.bf16 %v196_v30, %v195_v29  ;;  %v3010_v47 = vld [vmem:[#allocation2 + $0x2c] sm:$0x1] }
  0xb5   :  { %v1603_v1 = vsel %vm11892_vm3, %v1598_v59, %v1602_v57  ;;  %v1613_v34 = vsel %vm11892_vm3, %v1608_v23, %v1612_v50  ;;  %v3130_v57 = vrot.slane %v3129_v5, 4  ;;  %v3139_v39 = vor.u32 %v3138_v19, %v3134_v4  ;;  %v91_v50 = vld [vmem:[%s15167_s0 + $0x200] sm:$0xff]  ;;  %v4035_v59 = vld [vmem:[#allocation2 + $0x30] sm:$0xe]  ;;  %v4037_v24 = vld [vmem:[#allocation2 + $0x38] sm:$0x1] }
  0xb6   :  { %v1621_v52 = vor.u32 %v1620_v22, %v1617_v54  ;;  %v10025_v62 = vcombine.low %v1603_v1, %v1613_v34  ;;  %v10171_v21 = vrot.slane %v4032_v31, 9  ;;  %10849 = vst [vmem:[#allocation2 + $0xf0] sm:$0xff] %v10703_v38   ;;  %v10708_v43 = vpack.c.bf16 %v198_v37, %v197_v13  ;;  %v11548_v1 = vld [vmem:[#allocation2 + $0xe4] sm:$0xff]  }
  0xb7   :  { %v4237_v6 = vrot.slane %v4034_v27, 5  ;;  %v3147_v49 = vshrl.u32 %v3008_v32, 16  ;;  %v3135_v51 = vsel %vm11892_vm3, %v3130_v57, %v3134_v4  ;;  %v3140_v53 = vrot.slane %v3139_v39, 4  ;;  %v11553_v4 = vld [vmem:[%s15166_s2 + $0x190] sm:$0xff]  }
  0xb8   :  { %v1622_v45 = vrot.slane %v1621_v52, 4  ;;  %10850 = vst [vmem:[#allocation2 + $0xf8] sm:$0xff] %v10708_v43   ;;  %v3150_v22 = vshll.u32 %v3008_v32, 16  ;;  %v3156_v46 = vshll.u32 %v3009_v10, 16  ;;  %v3160_v28 = vshrl.u32 %v3009_v10, 16 }
  0xb9   :  { %7508 = vmatmul.mubr.bf16.gmra.mrb[60].mxu1 %v11544_v40  ;;  %v4234_v40 = vrot.slane %v4033_v3, 5  ;;  %v3149_v23 = vrot.slane %v3147_v49, 4  ;;  %v3145_v12 = vsel %vm11892_vm3, %v3140_v53, %v3144_v36  ;;  %v3166_v60 = vshll.u32 %v3010_v47, 16  ;;  %v3012_v47 = vld [vmem:[#allocation2 + $0x34] sm:$0xf] }
  0xba   :  { %7797 = vmatmul.mubr.bf16.gmra.mrb[60].mxu0 %v10088_v26  ;;  %7515 = vmatprep.mubr.bf16.mxu1 %v10025_v62  ;;  %v1631_v26 = vor.u32 %v1630_v63, %v1626_v18  ;;  %v199_v61 = vmax.f32 %v91_v50, 0.0  ;;  %v10138_v34 = vcombine.low %v3135_v51, %v3145_v12  ;;  %v3158_v7 = vrot.slane %v3156_v46, 5  ;;  %v93_v12 = vld [vmem:[%s15167_s0 + $0x210] sm:$0xff] }
  0xbb   :  { %7965 = vmatprep.mubr.bf16.mxu0 %v10201_v14  ;;  %v1627_v14 = vsel %vm11892_vm3, %v1622_v45, %v1626_v18  ;;  %v4235_v54 = vsel %vm11908_vm5, %v10171_v21, %v4234_v40  ;;  %v3152_v18 = vrot.slane %v3150_v22, 5  ;;  %v3162_v44 = vrot.slane %v3160_v28, 4 }
  0xbc   :  { %v1632_v33 = vrot.slane %v1631_v26, 4  ;;  %v3168_v62 = vrot.slane %v3166_v60, 5  ;;  %v200_v63 = vmax.f32 %v92_v56, 0.0  ;;  %v4241_v45 = vrot.slane %v4036_v8, 5 }
  0xbd   :  { %v4244_v15 = vrot.slane %v4037_v24, 5  ;;  %v1161_v11 = vld [vmem:[#allocation2 + $0xf0] sm:$0xf]  ;;  %v1162_v31 = vld [vmem:[#allocation2 + $0xf4] sm:$0xf]  ;;  %v3180_v46 = vshll.u32 %v3012_v47, 16 }
  0xbe   :  { %v1637_v41 = vsel %vm11892_vm3, %v1632_v33, %v1636_v48  ;;  %v3153_v48 = vor.u32 %v3152_v18, %v3149_v23  ;;  %v10713_v26 = vpack.c.bf16 %v200_v63, %v199_v61  ;;  %v1639_v17 = vshrl.u32 %v1161_v11, 16 }
  0xbf   :  { %v10026_v35 = vcombine.low %v1627_v14, %v1637_v41  ;;  %v1642_v29 = vshll.u32 %v1161_v11, 16  ;;  %v1648_v30 = vshll.u32 %v1162_v31, 16  ;;  %v1652_v3 = vshrl.u32 %v1162_v31, 16  ;;  %v3011_v14 = vld [vmem:[#allocation2 + $0x30] sm:$0xf] }
  0xc0   :  { %v1163_v5 = vld [vmem:[#allocation2 + $0xf8] sm:$0x1]  ;;  %v3154_v19 = vrot.slane %v3153_v48, 4  ;;  %10851 = vst [vmem:[#allocation2 + $0x100] sm:$0xff] %v10713_v26   ;;  %v4243_v32 = vrot.slane %v4241_v45, 4  ;;  %v3171_v51 = vshrl.u32 %v3011_v14, 16 }
  0xc1   :  { %7516 = vmatmul.mubr.bf16.gmra.mrb[64].mxu1 %v11546_v25  ;;  %v3163_v25 = vor.u32 %v3162_v44, %v3158_v7  ;;  %v1644_v33 = vrot.slane %v1642_v29, 5  ;;  %v1650_v36 = vrot.slane %v1648_v30, 5  ;;  %v1654_v37 = vrot.slane %v1652_v3, 4  ;;  %v1164_v38 = vld [vmem:[#allocation2 + $0xfc] sm:$0xf]  ;;  %v95_v44 = vld [vmem:[%s15167_s0 + $0x220] sm:$0xff] }
  0xc2   :  { %7966 = vmatmul.mubr.bf16.vlgmr.msra.gmra.mrb[0].mxu0 %v12471_v16  ;;  %v4236_v16 = vrot.slane %v4234_v40, 4  ;;  %7523 = vmatprep.mubr.bf16.mxu1 %v10026_v35  ;;  %v1658_v57 = vshll.u32 %v1163_v5, 16  ;;  %v3159_v39 = vsel %vm11892_vm3, %v3154_v19, %v3158_v7  ;;  %v1663_v40 = vshrl.u32 %v1164_v38, 16  ;;  %v4039_v26 = vld [vmem:[#allocation2 + $0x40] sm:$0xf] }
  0xc3   :  { %8223 = vmatpush1.bf16.msra.mxu0 %v11547_v20  ;;  %7973 = vmatprep.mubr.bf16.mxu0 %v10202_v9  ;;  %v10172_v9 = vrot.slane %v4035_v59, 9  ;;  %v3164_v13 = vrot.slane %v3163_v25, 4  ;;  %v1641_v20 = vrot.slane %v1639_v17, 4  ;;  %v1655_v41 = vor.u32 %v1654_v37, %v1650_v36  ;;  %v3013_v59 = vld [vmem:[#allocation2 + $0x38] sm:$0x1] }
  0xc4   :  { %8224 = vmatprep.subr.bf16.mxu0 %v11645_v0  ;;  %v4238_v52 = vsel %vm11908_vm5, %v4236_v16, %v4237_v6  ;;  %v1666_v6 = vshll.u32 %v1164_v38, 16  ;;  %v1660_v49 = vrot.slane %v1658_v57, 5  ;;  %v1665_v50 = vrot.slane %v1663_v40, 4  ;;  %v11549_v16 = vld [vmem:[#allocation2 + $0xf0] sm:$0xff]   ;;  %v3014_v5 = vld [vmem:[#allocation2 + $0x3c] sm:$0xf] }
  0xc5   :  { %v10203_v2 = vcombine.low %v4235_v54, %v4238_v52  ;;  %v4242_v27 = vsel %vm11908_vm5, %v10172_v9, %v4241_v45  ;;  %v3169_v21 = vsel %vm11892_vm3, %v3164_v13, %v3168_v62  ;;  %v1645_v10 = vor.u32 %v1644_v33, %v1641_v20  ;;  %v96_v62 = vld [vmem:[%s15167_s0 + $0x228] sm:$0xff]  ;;  %v11556_v38 = vld [vmem:[%s15166_s2 + $0x198] sm:$0xff]  }
  0xc6   :  { %v10139_v43 = vcombine.low %v3159_v39, %v3169_v21  ;;  %v4245_v35 = vsel %vm11908_vm5, %v4243_v32, %v4244_v15  ;;  %v1656_v54 = vrot.slane %v1655_v41, 4  ;;  %v3173_v23 = vrot.slane %v3171_v51, 4  ;;  %v4038_v15 = vld [vmem:[#allocation2 + $0x3c] sm:$0xe] }
  0xc7   :  { %8225 = vmatpush1.bf16.msra.mxu0 %v11550_v55  ;;  %v1646_v53 = vrot.slane %v1645_v10, 4  ;;  %v1668_v55 = vrot.slane %v1666_v6, 5  ;;  %v10204_v56 = vcombine.low %v4242_v27, %v4245_v35  ;;  %v3174_v22 = vshll.u32 %v3011_v14, 16  ;;  %v1165_v61 = vld [vmem:[#allocation2 + $0x100] sm:$0xf]  ;;  %v98_v35 = vld [vmem:[%s15167_s0 + $0x238] sm:$0xff] }
  0xc8   :  { %8226 = vmatprep.subr.bf16.mxu0 %v11645_v0  ;;  %v3184_v8 = vshrl.u32 %v3012_v47, 16  ;;  %v1661_v60 = vsel %vm11892_vm3, %v1656_v54, %v1660_v49  ;;  %v1166_v24 = vld [vmem:[#allocation2 + $0x104] sm:$0x1]  ;;  %v1672_v52 = vshll.u32 %v1165_v61, 16  ;;  %v1676_v18 = vshrl.u32 %v1165_v61, 16 }
  0xc9   :  { %7524 = vmatmul.mubr.bf16.gmra.mrb[68].mxu1 %v11548_v1  ;;  %v1651_v28 = vsel %vm11892_vm3, %v1646_v53, %v1650_v36  ;;  %v1669_v1 = vor.u32 %v1668_v55, %v1665_v50  ;;  %v1682_v7 = vshll.u32 %v1166_v24, 16  ;;  %v3176_v48 = vrot.slane %v3174_v22, 5  ;;  %v4040_v14 = vld [vmem:[#allocation2 + $0x44] sm:$0x1]  ;;  %v3015_v10 = vld [vmem:[#allocation2 + $0x40] sm:$0xf] }
  0xca   :  { %7974 = vmatmul.mubr.bf16.gmra.mrb[4].mxu0 %v10138_v34  ;;  %v10027_v34 = vcombine.low %v1651_v28, %v1661_v60  ;;  %v3182_v9 = vrot.slane %v3180_v46, 5  ;;  %v3186_v45 = vrot.slane %v3184_v8, 4  ;;  %v1678_v11 = vrot.slane %v1676_v18, 4  ;;  %v3016_v47 = vld [vmem:[#allocation2 + $0x44] sm:$0x1]  ;;  %v97_v50 = vld [vmem:[%s15167_s0 + $0x230] sm:$0xff] }
  0xcb   :  { %7981 = vmatprep.mubr.bf16.mxu0 %v10203_v2  ;;  %8227 = vmatpush1.bf16.msra.mxu0 %v11553_v4  ;;  %v94_v2 = vld [vmem:[%s15167_s0 + $0x218] sm:$0xff]  ;;  %v1670_v63 = vrot.slane %v1669_v1, 4  ;;  %v1674_v4 = vrot.slane %v1672_v52, 5  ;;  %v1684_v31 = vrot.slane %v1682_v7, 5  ;;  %v3190_v25 = vshll.u32 %v3013_v59, 16 }
  0xcc   :  { %8228 = vmatprep.subr.bf16.mxu0 %v11645_v0  ;;  %7531 = vmatprep.mubr.bf16.mxu1 %v10027_v34  ;;  %v3177_v17 = vor.u32 %v3176_v48, %v3173_v23  ;;  %v3187_v29 = vor.u32 %v3186_v45, %v3182_v9  ;;  %v201_v30 = vmax.f32 %v93_v12, 0.0  ;;  %v202_v3 = vmax.f32 %v94_v2, 0.0  ;;  %v11551_v53 = vld [vmem:[#allocation2 + $0xfc] sm:$0xff]   ;;  %v4041_v59 = vld [vmem:[#allocation2 + $0x48] sm:$0xe] }
  0xcd   :  { %v1675_v19 = vsel %vm11892_vm3, %v1670_v63, %v1674_v4  ;;  %v1679_v13 = vor.u32 %v1678_v11, %v1674_v4  ;;  %v3192_v27 = vrot.slane %v3190_v25, 5  ;;  %v203_v32 = vmax.f32 %v95_v44, 0.0  ;;  %v4043_v12 = vld [vmem:[#allocation2 + $0x50] sm:$0x1]  ;;  %v12574_v1 = vld [vmem:[#allocation2 + $0x48] sm:$0xf] }
  0xce   :  { %v3178_v20 = vrot.slane %v3177_v17, 4  ;;  %v3188_v33 = vrot.slane %v3187_v29, 4  ;;  %v204_v36 = vmax.f32 %v96_v62, 0.0  ;;  %v10718_v37 = vpack.c.bf16 %v202_v3, %v201_v30  ;;  %v11559_v2 = vld [vmem:[%s15166_s2 + $0x1a0] sm:$0xff]  }
  0xcf   :  { %v1680_v57 = vrot.slane %v1679_v13, 4  ;;  %v10173_v39 = vrot.slane %v4038_v15, 9  ;;  %v4248_v21 = vrot.slane %v4039_v26, 5  ;;  %v4251_v40 = vrot.slane %v4040_v14, 5  ;;  %8229 = vmatpush1.bf16.msra.mxu0 %v11556_v38 }
  0xd0   :  { %v3183_v41 = vsel %vm11892_vm3, %v3178_v20, %v3182_v9  ;;  %10852 = vst [vmem:[#allocation2 + $0x108] sm:$0xff] %v10718_v37   ;;  %v10723_v6 = vpack.c.bf16 %v204_v36, %v203_v32  ;;  %v3195_v49 = vshrl.u32 %v3014_v5, 16  ;;  %8230 = vmatprep.subr.bf16.mxu0 %v11645_v0  ;;  %v3198_v46 = vshll.u32 %v3014_v5, 16 }
  0xd1   :  { %7532 = vmatmul.mubr.bf16.gmra.mrb[72].mxu1 %v11549_v16  ;;  %v1685_v51 = vsel %vm11892_vm3, %v1680_v57, %v1684_v31  ;;  %v4249_v55 = vsel %vm11908_vm5, %v10173_v39, %v4248_v21  ;;  %v4042_v16 = vld [vmem:[#allocation2 + $0x4c] sm:$0xf]  ;;  %v3204_v8 = vshll.u32 %v3015_v10, 16  ;;  %v3208_v60 = vshrl.u32 %v3015_v10, 16 }
  0xd2   :  { %7982 = vmatmul.mubr.bf16.gmra.mrb[8].mxu0 %v10139_v43  ;;  %v3193_v43 = vsel %vm11892_vm3, %v3188_v33, %v3192_v27  ;;  %v10028_v23 = vcombine.low %v1675_v19, %v1685_v51  ;;  %10853 = vst [vmem:[#allocation2 + $0x110] sm:$0xff] %v10723_v6   ;;  %v3197_v22 = vrot.slane %v3195_v49, 4  ;;  %v3214_v61 = vshll.u32 %v3016_v47, 16 }
  0xd3   :  { %7989 = vmatprep.mubr.bf16.mxu0 %v10204_v56  ;;  %v10140_v54 = vcombine.low %v3183_v41, %v3193_v43  ;;  %v4250_v56 = vrot.slane %v4248_v21, 4  ;;  %v205_v24 = vmax.f32 %v97_v50, 0.0  ;;  %v3200_v52 = vrot.slane %v3198_v46, 5  ;;  %8231 = vmatpush1.bf16.msra.mxu0 %v11559_v2 }
  0xd4   :  { %7539 = vmatprep.mubr.bf16.mxu1 %v10028_v23  ;;  %v3206_v18 = vrot.slane %v3204_v8, 5  ;;  %v206_v7 = vmax.f32 %v98_v35, 0.0  ;;  %v3210_v44 = vrot.slane %v3208_v60, 4  ;;  %v3216_v62 = vrot.slane %v3214_v61, 5  ;;  %8232 = vmatprep.subr.bf16.mxu0 %v11645_v0  ;;  %v3019_v8 = vld [vmem:[#allocation2 + $0x50] sm:$0x1] }
  0xd5   :  { %v4252_v28 = vsel %vm11908_vm5, %v4250_v56, %v4251_v40  ;;  %v10174_v63 = vrot.slane %v4041_v59, 9  ;;  %v4255_v48 = vrot.slane %v4042_v16, 5  ;;  %v3201_v9 = vor.u32 %v3200_v52, %v3197_v22 }
  0xd6   :  { %v10205_v34 = vcombine.low %v4249_v55, %v4252_v28  ;;  %v10728_v45 = vpack.c.bf16 %v206_v7, %v205_v24  ;;  %v4258_v15 = vrot.slane %v4043_v12, 5  ;;  %v3219_v4 = vshrl.u32 %v12574_v1, 16  ;;  %v99_v24 = vld [vmem:[%s15167_s0 + $0x240] sm:$0xff] }
  0xd7   :  { %v1167_v11 = vld [vmem:[#allocation2 + $0x108] sm:$0xf]  ;;  %v1168_v31 = vld [vmem:[#allocation2 + $0x10c] sm:$0xf]  ;;  %v3211_v25 = vor.u32 %v3210_v44, %v3206_v18  ;;  %v3202_v14 = vrot.slane %v3201_v9, 4  ;;  %v4256_v19 = vsel %vm11908_vm5, %v10174_v63, %v4255_v48  ;;  %v4257_v13 = vrot.slane %v4255_v48, 4 }
  0xd8   :  { %v1687_v26 = vshrl.u32 %v1167_v11, 16  ;;  %v1690_v17 = vshll.u32 %v1167_v11, 16  ;;  %v1696_v29 = vshll.u32 %v1168_v31, 16  ;;  %v1700_v30 = vshrl.u32 %v1168_v31, 16  ;;  %10854 = vst [vmem:[#allocation2 + $0x118] sm:$0xff] %v10728_v45   ;;  %v11552_v23 = vld [vmem:[#allocation2 + $0x108] sm:$0xff]  }
  0xd9   :  { %7540 = vmatmul.mubr.bf16.gmra.mrb[76].mxu1 %v11551_v53  ;;  %v1169_v3 = vld [vmem:[#allocation2 + $0x110] sm:$0x1]  ;;  %v3212_v5 = vrot.slane %v3211_v25, 4  ;;  %v1170_v36 = vld [vmem:[#allocation2 + $0x114] sm:$0xf]  ;;  %v3207_v38 = vsel %vm11892_vm3, %v3202_v14, %v3206_v18  ;;  %v4259_v47 = vsel %vm11908_vm5, %v4257_v13, %v4258_v15  ;;  %v3221_v49 = vrot.slane %v3219_v4, 4 }
  0xda   :  { %7990 = vmatmul.mubr.bf16.gmra.mrb[12].mxu0 %v10140_v54  ;;  %v1689_v27 = vrot.slane %v1687_v26, 4  ;;  %v1692_v32 = vrot.slane %v1690_v17, 5  ;;  %v1698_v20 = vrot.slane %v1696_v29, 5  ;;  %v1702_v33 = vrot.slane %v1700_v30, 4  ;;  %v3018_v54 = vld [vmem:[#allocation2 + $0x4c] sm:$0xf] }
  0xdb   :  { %7997 = vmatprep.mubr.bf16.mxu0 %v10205_v34  ;;  %v1706_v37 = vshll.u32 %v1169_v3, 16  ;;  %v3217_v57 = vsel %vm11892_vm3, %v3212_v5, %v3216_v62  ;;  %v1711_v39 = vshrl.u32 %v1170_v36, 16  ;;  %v1714_v41 = vshll.u32 %v1170_v36, 16  ;;  %v100_v34 = vld [vmem:[%s15167_s0 + $0x248] sm:$0xff]  ;;  %v101_v44 = vld [vmem:[%s15167_s0 + $0x250] sm:$0xff] }
  0xdc   :  { %v1693_v21 = vor.u32 %v1692_v32, %v1689_v27  ;;  %v1703_v40 = vor.u32 %v1702_v33, %v1698_v20  ;;  %v10141_v10 = vcombine.low %v3207_v38, %v3217_v57  ;;  %v10206_v53 = vcombine.low %v4256_v19, %v4259_v47  ;;  %v4044_v45 = vld [vmem:[#allocation2 + $0x54] sm:$0xe]  ;;  %v4045_v25 = vld [vmem:[#allocation2 + $0x58] sm:$0xf]  ;;  %v11562_v26 = vld [vmem:[%s15166_s2 + $0x1a8] sm:$0xff]  }
  0xdd   :  { %v1708_v43 = vrot.slane %v1706_v37, 5  ;;  %v1713_v6 = vrot.slane %v1711_v39, 4  ;;  %v1716_v51 = vrot.slane %v1714_v41, 5  ;;  %v3222_v61 = vshll.u32 %v12574_v1, 16  ;;  %v102_v1 = vld [vmem:[%s15167_s0 + $0x258] sm:$0xff]  ;;  %8233 = vmatpush1.bf16.msra.mxu0 %v11562_v26  ;;  %v103_v41 = vld [vmem:[%s15167_s0 + $0x260] sm:$0xff] }
  0xde   :  { %v1694_v50 = vrot.slane %v1693_v21, 4  ;;  %v1704_v35 = vrot.slane %v1703_v40, 4  ;;  %v3228_v7 = vshll.u32 %v3018_v54, 16  ;;  %v3232_v2 = vshrl.u32 %v3018_v54, 16  ;;  %v4046_v14 = vld [vmem:[#allocation2 + $0x5c] sm:$0x1]  ;;  %8234 = vmatprep.subr.bf16.mxu0 %v11645_v0 }
  0xdf   :  { %v1171_v55 = vld [vmem:[#allocation2 + $0x118] sm:$0xf]  ;;  %v1172_v56 = vld [vmem:[#allocation2 + $0x11c] sm:$0x1]  ;;  %v1717_v22 = vor.u32 %v1716_v51, %v1713_v6  ;;  %v3224_v48 = vrot.slane %v3222_v61, 5  ;;  %v3238_v9 = vshll.u32 %v3019_v8, 16 }
  0xe0   :  { %v1699_v59 = vsel %vm11892_vm3, %v1694_v50, %v1698_v20  ;;  %v1709_v16 = vsel %vm11892_vm3, %v1704_v35, %v1708_v43  ;;  %v1720_v46 = vshll.u32 %v1171_v55, 16  ;;  %v1724_v28 = vshrl.u32 %v1171_v55, 16  ;;  %v3020_v5 = vld [vmem:[#allocation2 + $0x54] sm:$0xf]  ;;  %v3021_v38 = vld [vmem:[#allocation2 + $0x58] sm:$0xf] }
  0xe1   :  { %v10029_v12 = vcombine.low %v1699_v59, %v1709_v16  ;;  %v1730_v60 = vshll.u32 %v1172_v56, 16  ;;  %v1718_v52 = vrot.slane %v1717_v22, 4  ;;  %v3230_v4 = vrot.slane %v3228_v7, 5  ;;  %v3022_v40 = vld [vmem:[#allocation2 + $0x5c] sm:$0x1]  ;;  %v11554_v6 = vld [vmem:[#allocation2 + $0x114] sm:$0xff]  }
  0xe2   :  { %7998 = vmatmul.mubr.bf16.gmra.mrb[16].mxu0 %v10141_v10  ;;  %v1722_v18 = vrot.slane %v1720_v46, 5  ;;  %v1726_v62 = vrot.slane %v1724_v28, 4  ;;  %v3234_v11 = vrot.slane %v3232_v2, 4  ;;  %v207_v31 = vmax.f32 %v99_v24, 0.0  ;;  %v104_v55 = vld [vmem:[%s15167_s0 + $0x268] sm:$0xff] }
  0xe3   :  { %8005 = vmatprep.mubr.bf16.mxu0 %v10206_v53  ;;  %7547 = vmatprep.mubr.bf16.mxu1 %v10029_v12  ;;  %v1732_v63 = vrot.slane %v1730_v60, 5  ;;  %v3225_v29 = vor.u32 %v3224_v48, %v3221_v49  ;;  %v3240_v30 = vrot.slane %v3238_v9, 5  ;;  %v208_v3 = vmax.f32 %v100_v34, 0.0  ;;  %v4047_v56 = vld [vmem:[#allocation2 + $0x60] sm:$0xe] }
  0xe4   :  { %7548 = vmatmul.mubr.bf16.gmra.mrb[80].mxu1 %v11552_v23  ;;  %v1723_v15 = vsel %vm11892_vm3, %v1718_v52, %v1722_v18  ;;  %v1727_v17 = vor.u32 %v1726_v62, %v1722_v18  ;;  %v3235_v19 = vor.u32 %v3234_v11, %v3230_v4  ;;  %v209_v13 = vmax.f32 %v101_v44, 0.0  ;;  %v4048_v46 = vld [vmem:[#allocation2 + $0x64] sm:$0xf]  ;;  %v4049_v8 = vld [vmem:[#allocation2 + $0x68] sm:$0x1] }
  0xe5   :  { %v210_v27 = vmax.f32 %v102_v1, 0.0  ;;  %v10175_v32 = vrot.slane %v4044_v45, 9  ;;  %v3226_v33 = vrot.slane %v3225_v29, 4  ;;  %v10733_v36 = vpack.c.bf16 %v208_v3, %v207_v31  ;;  %v3023_v24 = vld [vmem:[#allocation2 + $0x60] sm:$0xf] }
  0xe6   :  { %v1728_v20 = vrot.slane %v1727_v17, 4  ;;  %v4262_v37 = vrot.slane %v4045_v25, 5  ;;  %v3236_v57 = vrot.slane %v3235_v19, 4  ;;  %v4265_v21 = vrot.slane %v4046_v14, 5 }
  0xe7   :  { %v10738_v39 = vpack.c.bf16 %v210_v27, %v209_v13  ;;  %v3243_v10 = vshrl.u32 %v3020_v5, 16  ;;  %v3231_v47 = vsel %vm11892_vm3, %v3226_v33, %v3230_v4  ;;  %10855 = vst [vmem:[#allocation2 + $0x120] sm:$0xff] %v10733_v36   ;;  %v3246_v54 = vshll.u32 %v3020_v5, 16 }
  0xe8   :  { %v1733_v43 = vsel %vm11892_vm3, %v1728_v20, %v1732_v63  ;;  %v4263_v49 = vsel %vm11908_vm5, %v10175_v32, %v4262_v37  ;;  %v4264_v50 = vrot.slane %v4262_v37, 4  ;;  %v3241_v51 = vsel %vm11892_vm3, %v3236_v57, %v3240_v30 }
  0xe9   :  { %v10030_v35 = vcombine.low %v1723_v15, %v1733_v43  ;;  %10856 = vst [vmem:[#allocation2 + $0x128] sm:$0xff] %v10738_v39   ;;  %v3245_v53 = vrot.slane %v3243_v10, 4  ;;  %v10142_v59 = vcombine.low %v3231_v47, %v3241_v51  ;;  %v3252_v23 = vshll.u32 %v3021_v38, 16  ;;  %v11565_v10 = vld [vmem:[%s15166_s2 + $0x1b0] sm:$0xff]  }
  0xea   :  { %v4266_v16 = vsel %vm11908_vm5, %v4264_v50, %v4265_v21  ;;  %v3256_v22 = vshrl.u32 %v3021_v38, 16  ;;  %v3248_v28 = vrot.slane %v3246_v54, 5  ;;  %v3262_v60 = vshll.u32 %v3022_v40, 16  ;;  %v3024_v38 = vld [vmem:[#allocation2 + $0x64] sm:$0xf]  ;;  %8235 = vmatpush1.bf16.msra.mxu0 %v11565_v10 }
  0xeb   :  { %7555 = vmatprep.mubr.bf16.mxu1 %v10030_v35  ;;  %v10207_v12 = vcombine.low %v4263_v49, %v4266_v16  ;;  %v211_v61 = vmax.f32 %v103_v41, 0.0  ;;  %8006 = vmatmul.mubr.bf16.gmra.mrb[20].mxu0 %v10142_v59  ;;  %v3254_v34 = vrot.slane %v3252_v23, 5  ;;  %v212_v18 = vmax.f32 %v104_v55, 0.0 }
  0xec   :  { %7556 = vmatmul.mubr.bf16.gmra.mrb[84].mxu1 %v11554_v6  ;;  %v3258_v52 = vrot.slane %v3256_v22, 4  ;;  %v10176_v7 = vrot.slane %v4047_v56, 9  ;;  %v3249_v2 = vor.u32 %v3248_v28, %v3245_v53  ;;  %v3264_v44 = vrot.slane %v3262_v60, 5  ;;  %8236 = vmatprep.subr.bf16.mxu0 %v11645_v0 }
  0xed   :  { %8013 = vmatprep.mubr.bf16.mxu0 %v10207_v12  ;;  %v4269_v1 = vrot.slane %v4048_v46, 5  ;;  %v4272_v62 = vrot.slane %v4049_v8, 5  ;;  %v10743_v48 = vpack.c.bf16 %v212_v18, %v211_v61  ;;  %v3267_v9 = vshrl.u32 %v3023_v24, 16  ;;  %v3025_v8 = vld [vmem:[#allocation2 + $0x68] sm:$0x1]  ;;  %v105_v12 = vld [vmem:[%s15167_s0 + $0x270] sm:$0xff] }
  0xee   :  { %v3259_v63 = vor.u32 %v3258_v52, %v3254_v34  ;;  %v3270_v45 = vshll.u32 %v3023_v24, 16  ;;  %v1173_v15 = vld [vmem:[#allocation2 + $0x120] sm:$0xf]  ;;  %v1174_v4 = vld [vmem:[#allocation2 + $0x124] sm:$0xf]  ;;  %v3250_v30 = vrot.slane %v3249_v2, 4 }
  0xef   :  { %v1735_v31 = vshrl.u32 %v1173_v15, 16  ;;  %v1738_v25 = vshll.u32 %v1173_v15, 16  ;;  %v1744_v26 = vshll.u32 %v1174_v4, 16  ;;  %v1748_v17 = vshrl.u32 %v1174_v4, 16  ;;  %10857 = vst [vmem:[#allocation2 + $0x130] sm:$0xff] %v10743_v48   ;;  %v11555_v23 = vld [vmem:[#allocation2 + $0x120] sm:$0xff]  }
  0xf0   :  { %v1175_v11 = vld [vmem:[#allocation2 + $0x128] sm:$0x1]  ;;  %v3260_v3 = vrot.slane %v3259_v63, 4  ;;  %v4270_v14 = vsel %vm11908_vm5, %v10176_v7, %v4269_v1  ;;  %v1176_v32 = vld [vmem:[#allocation2 + $0x12c] sm:$0xf]  ;;  %v3255_v33 = vsel %vm11892_vm3, %v3250_v30, %v3254_v34  ;;  %v4271_v43 = vrot.slane %v4269_v1, 4 }
  0xf1   :  { %v1754_v29 = vshll.u32 %v1175_v11, 16  ;;  %v1737_v5 = vrot.slane %v1735_v31, 4  ;;  %v1740_v19 = vrot.slane %v1738_v25, 5  ;;  %v1746_v13 = vrot.slane %v1744_v26, 5  ;;  %v106_v34 = vld [vmem:[%s15167_s0 + $0x278] sm:$0xff]  ;;  %v107_v52 = vld [vmem:[%s15167_s0 + $0x280] sm:$0xff] }
  0xf2   :  { %v1750_v27 = vrot.slane %v1748_v17, 4  ;;  %v3265_v36 = vsel %vm11892_vm3, %v3260_v3, %v3264_v44  ;;  %v1759_v37 = vshrl.u32 %v1176_v32, 16  ;;  %v1762_v40 = vshll.u32 %v1176_v32, 16  ;;  %v108_v18 = vld [vmem:[%s15167_s0 + $0x288] sm:$0xff]  ;;  %v4051_v15 = vld [vmem:[#allocation2 + $0x70] sm:$0xf] }
  0xf3   :  { %v1756_v20 = vrot.slane %v1754_v29, 5  ;;  %v1741_v57 = vor.u32 %v1740_v19, %v1737_v5  ;;  %v10143_v21 = vcombine.low %v3255_v33, %v3265_v36  ;;  %v3269_v6 = vrot.slane %v3267_v9, 4  ;;  %v4052_v26 = vld [vmem:[#allocation2 + $0x74] sm:$0x1]  ;;  %v3026_v17 = vld [vmem:[#allocation2 + $0x6c] sm:$0xf] }
  0xf4   :  { %v1751_v39 = vor.u32 %v1750_v27, %v1746_v13  ;;  %v1761_v41 = vrot.slane %v1759_v37, 4  ;;  %v3272_v47 = vrot.slane %v3270_v45, 5  ;;  %v1764_v35 = vrot.slane %v1762_v40, 5  ;;  %v3027_v32 = vld [vmem:[#allocation2 + $0x70] sm:$0xf] }
  0xf5   :  { %v1742_v49 = vrot.slane %v1741_v57, 4  ;;  %8014 = vmatmul.mubr.bf16.gmra.mrb[24].mxu0 %v10143_v21  ;;  %v3276_v51 = vshll.u32 %v3024_v38, 16  ;;  %v4273_v55 = vsel %vm11908_vm5, %v4271_v43, %v4272_v62  ;;  %v4050_v62 = vld [vmem:[#allocation2 + $0x6c] sm:$0xe]  ;;  %v3280_v9 = vshrl.u32 %v3024_v38, 16  ;;  %v11568_v38 = vld [vmem:[%s15166_s2 + $0x1b8] sm:$0xff]  }
  0xf6   :  { %v1752_v50 = vrot.slane %v1751_v39, 4  ;;  %v1177_v53 = vld [vmem:[#allocation2 + $0x130] sm:$0xf]  ;;  %v1178_v54 = vld [vmem:[#allocation2 + $0x134] sm:$0x1]  ;;  %v3273_v56 = vor.u32 %v3272_v47, %v3269_v6  ;;  %v1765_v22 = vor.u32 %v1764_v35, %v1761_v41  ;;  %v10208_v24 = vcombine.low %v4270_v14, %v4273_v55  ;;  %v110_v43 = vld [vmem:[%s15167_s0 + $0x298] sm:$0xff]  ;;  %8237 = vmatpush1.bf16.msra.mxu0 %v11568_v38 }
  0xf7   :  { %v1747_v59 = vsel %vm11892_vm3, %v1742_v49, %v1746_v13  ;;  %v1768_v46 = vshll.u32 %v1177_v53, 16  ;;  %v1772_v60 = vshrl.u32 %v1177_v53, 16  ;;  %v1778_v61 = vshll.u32 %v1178_v54, 16  ;;  %v3028_v40 = vld [vmem:[#allocation2 + $0x74] sm:$0x1]  ;;  %v11557_v47 = vld [vmem:[#allocation2 + $0x12c] sm:$0xff]   ;;  %8238 = vmatprep.subr.bf16.mxu0 %v11645_v0 }
  0xf8   :  { %v1757_v16 = vsel %vm11892_vm3, %v1752_v50, %v1756_v20  ;;  %v1766_v7 = vrot.slane %v1765_v22, 4  ;;  %v3274_v44 = vrot.slane %v3273_v56, 4  ;;  %v3278_v1 = vrot.slane %v3276_v51, 5  ;;  %8021 = vmatprep.mubr.bf16.mxu0 %v10208_v24  ;;  %v109_v41 = vld [vmem:[%s15167_s0 + $0x290] sm:$0xff]  ;;  %v4053_v51 = vld [vmem:[#allocation2 + $0x78] sm:$0xe] }
  0xf9   :  { %v10031_v28 = vcombine.low %v1747_v59, %v1757_v16  ;;  %v1770_v2 = vrot.slane %v1768_v46, 5  ;;  %v1774_v63 = vrot.slane %v1772_v60, 4  ;;  %v1780_v48 = vrot.slane %v1778_v61, 5  ;;  %v4054_v59 = vld [vmem:[#allocation2 + $0x7c] sm:$0xf] }
  0xfa   :  { %v3286_v45 = vshll.u32 %v3025_v8, 16  ;;  %v3279_v11 = vsel %vm11892_vm3, %v3274_v44, %v3278_v1  ;;  %v213_v31 = vmax.f32 %v105_v12, 0.0  ;;  %v214_v25 = vmax.f32 %v106_v34, 0.0  ;;  %v4055_v8 = vld [vmem:[#allocation2 + $0x80] sm:$0x1] }
  0xfb   :  { %7563 = vmatprep.mubr.bf16.mxu1 %v10031_v28  ;;  %v1771_v4 = vsel %vm11892_vm3, %v1766_v7, %v1770_v2  ;;  %v1775_v29 = vor.u32 %v1774_v63, %v1770_v2  ;;  %v3282_v30 = vrot.slane %v3280_v9, 4  ;;  %v215_v14 = vmax.f32 %v107_v52, 0.0 }
  0xfc   :  { %7564 = vmatmul.mubr.bf16.gmra.mrb[88].mxu1 %v11555_v23  ;;  %v3288_v3 = vrot.slane %v3286_v45, 5  ;;  %v216_v5 = vmax.f32 %v108_v18, 0.0  ;;  %v10748_v19 = vpack.c.bf16 %v214_v25, %v213_v31  ;;  %v10177_v13 = vrot.slane %v4050_v62, 9  ;;  %v11571_v62 = vld [vmem:[%s15166_s2 + $0x1c0] sm:$0xff]  }
  0xfd   :  { %v4276_v27 = vrot.slane %v4051_v15, 5  ;;  %v1776_v20 = vrot.slane %v1775_v29, 4  ;;  %v3283_v33 = vor.u32 %v3282_v30, %v3278_v1  ;;  %v4279_v36 = vrot.slane %v4052_v26, 5  ;;  %v12678_v1 = vld [vmem:[#allocation2 + $0x78] sm:$0xf]  ;;  %8239 = vmatpush1.bf16.msra.mxu0 %v11571_v62 }
  0xfe   :  { %v3291_v37 = vshrl.u32 %v3026_v17, 16  ;;  %10858 = vst [vmem:[#allocation2 + $0x138] sm:$0xff] %v10748_v19   ;;  %v10753_v57 = vpack.c.bf16 %v216_v5, %v215_v14  ;;  %v3294_v10 = vshll.u32 %v3026_v17, 16  ;;  %v3300_v35 = vshll.u32 %v3027_v32, 16  ;;  %8240 = vmatprep.subr.bf16.mxu0 %v11645_v0 }
  0xff   :  { %v4277_v39 = vsel %vm11908_vm5, %v10177_v13, %v4276_v27  ;;  %v4278_v21 = vrot.slane %v4276_v27, 4  ;;  %v1781_v6 = vsel %vm11892_vm3, %v1776_v20, %v1780_v48  ;;  %v3284_v49 = vrot.slane %v3283_v33, 4  ;;  %v3030_v33 = vld [vmem:[#allocation2 + $0x7c] sm:$0xf] }
 0x100   :  { %v3293_v50 = vrot.slane %v3291_v37, 4  ;;  %v10032_v53 = vcombine.low %v1771_v4, %v1781_v6  ;;  %10859 = vst [vmem:[#allocation2 + $0x140] sm:$0xff] %v10753_v57   ;;  %v3296_v55 = vrot.slane %v3294_v10, 5  ;;  %v3304_v56 = vshrl.u32 %v3027_v32, 16 }
 0x101   :  { %v4280_v54 = vsel %vm11908_vm5, %v4278_v21, %v4279_v36  ;;  %v3289_v16 = vsel %vm11892_vm3, %v3284_v49, %v3288_v3  ;;  %v3302_v22 = vrot.slane %v3300_v35, 5  ;;  %v3310_v46 = vshll.u32 %v3028_v40, 16  ;;  %v11574_v49 = vld [vmem:[%s15166_s2 + $0x1c8] sm:$0xff]  }
 0x102   :  { %v10209_v23 = vcombine.low %v4277_v39, %v4280_v54  ;;  %7571 = vmatprep.mubr.bf16.mxu1 %v10032_v53  ;;  %v10144_v12 = vcombine.low %v3279_v11, %v3289_v16  ;;  %v3297_v28 = vor.u32 %v3296_v55, %v3293_v50  ;;  %v3306_v60 = vrot.slane %v3304_v56, 4  ;;  %v3031_v53 = vld [vmem:[#allocation2 + $0x80] sm:$0x1]  ;;  %8241 = vmatpush1.bf16.msra.mxu0 %v11574_v49  ;;  %v4060_v49 = vld [vmem:[#allocation2 + $0x94] sm:$0xf] }
 0x103   :  { %v217_v61 = vmax.f32 %v109_v41, 0.0  ;;  %v3312_v24 = vrot.slane %v3310_v46, 5  ;;  %v218_v34 = vmax.f32 %v110_v43, 0.0  ;;  %v10178_v52 = vrot.slane %v4053_v51, 9  ;;  %v111_v56 = vld [vmem:[%s15167_s0 + $0x2a0] sm:$0xff]  ;;  %8242 = vmatprep.subr.bf16.mxu0 %v11645_v0 }
 0x104   :  { %7572 = vmatmul.mubr.bf16.gmra.mrb[92].mxu1 %v11557_v47  ;;  %8022 = vmatmul.mubr.bf16.gmra.mrb[28].mxu0 %v10144_v12  ;;  %v3298_v18 = vrot.slane %v3297_v28, 4  ;;  %v3307_v7 = vor.u32 %v3306_v60, %v3302_v22  ;;  %v4283_v2 = vrot.slane %v4054_v59, 5  ;;  %v4286_v44 = vrot.slane %v4055_v8, 5  ;;  %v112_v60 = vld [vmem:[%s15167_s0 + $0x2a8] sm:$0xff] }
 0x105   :  { %v1179_v63 = vld [vmem:[#allocation2 + $0x138] sm:$0xf]  ;;  %v1180_v48 = vld [vmem:[#allocation2 + $0x13c] sm:$0xf]  ;;  %8029 = vmatprep.mubr.bf16.mxu0 %v10209_v23  ;;  %v10758_v9 = vpack.c.bf16 %v218_v34, %v217_v61  ;;  %v3315_v30 = vshrl.u32 %v12678_v1, 16  ;;  %v3318_v47 = vshll.u32 %v12678_v1, 16 }
 0x106   :  { %v1783_v45 = vshrl.u32 %v1179_v63, 16  ;;  %v1786_v15 = vshll.u32 %v1179_v63, 16  ;;  %v1792_v4 = vshll.u32 %v1180_v48, 16  ;;  %v1796_v11 = vshrl.u32 %v1180_v48, 16  ;;  %v11558_v50 = vld [vmem:[#allocation2 + $0x138] sm:$0xff]   ;;  %v113_v61 = vld [vmem:[%s15167_s0 + $0x2b0] sm:$0xff] }
 0x107   :  { %v1181_v31 = vld [vmem:[#allocation2 + $0x140] sm:$0x1]  ;;  %v3303_v25 = vsel %vm11892_vm3, %v3298_v18, %v3302_v22  ;;  %v3308_v26 = vrot.slane %v3307_v7, 4  ;;  %10860 = vst [vmem:[#allocation2 + $0x148] sm:$0xff] %v10758_v9   ;;  %v1182_v17 = vld [vmem:[#allocation2 + $0x144] sm:$0xf]  ;;  %v4284_v29 = vsel %vm11908_vm5, %v10178_v52, %v4283_v2 }
 0x108   :  { %v1785_v3 = vrot.slane %v1783_v45, 4  ;;  %v1788_v14 = vrot.slane %v1786_v15, 5  ;;  %v1794_v5 = vrot.slane %v1792_v4, 5  ;;  %v1798_v19 = vrot.slane %v1796_v11, 4  ;;  %v4057_v48 = vld [vmem:[#allocation2 + $0x88] sm:$0xf] }
 0x109   :  { %v1802_v13 = vshll.u32 %v1181_v31, 16  ;;  %v3313_v27 = vsel %vm11892_vm3, %v3308_v26, %v3312_v24  ;;  %v1807_v32 = vshrl.u32 %v1182_v17, 16  ;;  %v1810_v20 = vshll.u32 %v1182_v17, 16  ;;  %v114_v24 = vld [vmem:[%s15167_s0 + $0x2b8] sm:$0xff]  ;;  %v4058_v11 = vld [vmem:[#allocation2 + $0x8c] sm:$0x1] }
 0x10a   :  { %v1789_v36 = vor.u32 %v1788_v14, %v1785_v3  ;;  %v1799_v37 = vor.u32 %v1798_v19, %v1794_v5  ;;  %v10145_v38 = vcombine.low %v3303_v25, %v3313_v27  ;;  %v4285_v57 = vrot.slane %v4283_v2, 4  ;;  %v4056_v2 = vld [vmem:[#allocation2 + $0x84] sm:$0xe] }
 0x10b   :  { %v1804_v39 = vrot.slane %v1802_v13, 5  ;;  %v1809_v21 = vrot.slane %v1807_v32, 4  ;;  %v1812_v40 = vrot.slane %v1810_v20, 5  ;;  %v3317_v10 = vrot.slane %v3315_v30, 4  ;;  %v3032_v31 = vld [vmem:[#allocation2 + $0x84] sm:$0xf] }
 0x10c   :  { %v1790_v41 = vrot.slane %v1789_v36, 4  ;;  %v1800_v43 = vrot.slane %v1799_v37, 4  ;;  %8030 = vmatmul.mubr.bf16.gmra.mrb[32].mxu0 %v10145_v38  ;;  %v4287_v6 = vsel %vm11908_vm5, %v4285_v57, %v4286_v44  ;;  %v3324_v54 = vshll.u32 %v3030_v33, 16  ;;  %v3033_v30 = vld [vmem:[#allocation2 + $0x88] sm:$0xf]  ;;  %v115_v13 = vld [vmem:[%s15167_s0 + $0x2c0] sm:$0xff] }
 0x10d   :  { %v1813_v35 = vor.u32 %v1812_v40, %v1809_v21  ;;  %v10210_v51 = vcombine.low %v4284_v29, %v4287_v6  ;;  %v3328_v55 = vshrl.u32 %v3030_v33, 16  ;;  %v3320_v52 = vrot.slane %v3318_v47, 5  ;;  %v3034_v57 = vld [vmem:[#allocation2 + $0x8c] sm:$0x1]  ;;  %v4059_v40 = vld [vmem:[#allocation2 + $0x90] sm:$0xe] }
 0x10e   :  { %v1795_v59 = vsel %vm11892_vm3, %v1790_v41, %v1794_v5  ;;  %v1805_v16 = vsel %vm11892_vm3, %v1800_v43, %v1804_v39  ;;  %v1183_v23 = vld [vmem:[#allocation2 + $0x148] sm:$0xf]  ;;  %v1184_v22 = vld [vmem:[#allocation2 + $0x14c] sm:$0x1]  ;;  %v3326_v18 = vrot.slane %v3324_v54, 5  ;;  %v3334_v62 = vshll.u32 %v3031_v53, 16 }
 0x10f   :  { %v10033_v46 = vcombine.low %v1795_v59, %v1805_v16  ;;  %v1814_v8 = vrot.slane %v1813_v35, 4  ;;  %v1816_v12 = vshll.u32 %v1183_v23, 16  ;;  %v1820_v28 = vshrl.u32 %v1183_v23, 16  ;;  %8037 = vmatprep.mubr.bf16.mxu0 %v10210_v51  ;;  %v116_v21 = vld [vmem:[%s15167_s0 + $0x2c8] sm:$0xff] }
 0x110   :  { %v1826_v34 = vshll.u32 %v1184_v22, 16  ;;  %v3330_v7 = vrot.slane %v3328_v55, 4  ;;  %v219_v63 = vmax.f32 %v111_v56, 0.0  ;;  %v3321_v45 = vor.u32 %v3320_v52, %v3317_v10  ;;  %v11560_v41 = vld [vmem:[#allocation2 + $0x144] sm:$0xff]   ;;  %v4061_v55 = vld [vmem:[#allocation2 + $0x98] sm:$0x1] }
 0x111   :  { %7579 = vmatprep.mubr.bf16.mxu1 %v10033_v46  ;;  %v1818_v44 = vrot.slane %v1816_v12, 5  ;;  %v1822_v1 = vrot.slane %v1820_v28, 4  ;;  %v220_v4 = vmax.f32 %v112_v60, 0.0  ;;  %v3336_v17 = vrot.slane %v3334_v62, 5  ;;  %v12735_v22 = vld [vmem:[#allocation2 + $0x90] sm:$0xf] }
 0x112   :  { %7580 = vmatmul.mubr.bf16.gmra.mrb[96].mxu1 %v11558_v50  ;;  %v1828_v9 = vrot.slane %v1826_v34, 5  ;;  %v3331_v15 = vor.u32 %v3330_v7, %v3326_v18  ;;  %v221_v29 = vmax.f32 %v113_v61, 0.0  ;;  %v3322_v3 = vrot.slane %v3321_v45, 4  ;;  %v11577_v50 = vld [vmem:[%s15166_s2 + $0x1d0] sm:$0xff]  }
 0x113   :  { %v1819_v25 = vsel %vm11892_vm3, %v1814_v8, %v1818_v44  ;;  %v1823_v26 = vor.u32 %v1822_v1, %v1818_v44  ;;  %v222_v5 = vmax.f32 %v114_v24, 0.0  ;;  %v10763_v19 = vpack.c.bf16 %v220_v4, %v219_v63  ;;  %8243 = vmatpush1.bf16.msra.mxu0 %v11577_v50 }
 0x114   :  { %v3332_v14 = vrot.slane %v3331_v15, 4  ;;  %v10179_v32 = vrot.slane %v4056_v2, 9  ;;  %v4290_v20 = vrot.slane %v4057_v48, 5  ;;  %v4293_v33 = vrot.slane %v4058_v11, 5  ;;  %8244 = vmatprep.subr.bf16.mxu0 %v11645_v0 }
 0x115   :  { %v1824_v27 = vrot.slane %v1823_v26, 4  ;;  %v3327_v36 = vsel %vm11892_vm3, %v3322_v3, %v3326_v18  ;;  %10861 = vst [vmem:[#allocation2 + $0x150] sm:$0xff] %v10763_v19   ;;  %v10768_v38 = vpack.c.bf16 %v222_v5, %v221_v29  ;;  %v3339_v39 = vshrl.u32 %v3032_v31, 16 }
 0x116   :  { %v3337_v37 = vsel %vm11892_vm3, %v3332_v14, %v3336_v17  ;;  %v4291_v6 = vsel %vm11908_vm5, %v10179_v32, %v4290_v20  ;;  %v4292_v47 = vrot.slane %v4290_v20, 4  ;;  %v3342_v53 = vshll.u32 %v3032_v31, 16 }
 0x117   :  { %v1829_v10 = vsel %vm11892_vm3, %v1824_v27, %v1828_v9  ;;  %v10146_v43 = vcombine.low %v3327_v36, %v3337_v37  ;;  %10862 = vst [vmem:[#allocation2 + $0x158] sm:$0xff] %v10768_v38   ;;  %v3341_v51 = vrot.slane %v3339_v39, 4  ;;  %v3348_v54 = vshll.u32 %v3033_v30, 16  ;;  %v11580_v36 = vld [vmem:[%s15166_s2 + $0x1d8] sm:$0xff]  }
 0x118   :  { %v10034_v35 = vcombine.low %v1819_v25, %v1829_v10  ;;  %v4294_v56 = vsel %vm11908_vm5, %v4292_v47, %v4293_v33  ;;  %v3352_v59 = vshrl.u32 %v3033_v30, 16  ;;  %v3358_v16 = vshll.u32 %v3034_v57, 16  ;;  %8245 = vmatpush1.bf16.msra.mxu0 %v11580_v36 }
 0x119   :  { %8038 = vmatmul.mubr.bf16.gmra.mrb[36].mxu0 %v10146_v43  ;;  %v223_v23 = vmax.f32 %v115_v13, 0.0  ;;  %v10211_v46 = vcombine.low %v4291_v6, %v4294_v56  ;;  %v3344_v8 = vrot.slane %v3342_v53, 5  ;;  %v3350_v12 = vrot.slane %v3348_v54, 5  ;;  %v3036_v43 = vld [vmem:[#allocation2 + $0x94] sm:$0xf]  ;;  %v118_v56 = vld [vmem:[%s15167_s0 + $0x2d8] sm:$0xff]  ;;  %8246 = vmatprep.subr.bf16.mxu0 %v11645_v0 }
 0x11a   :  { %7587 = vmatprep.mubr.bf16.mxu1 %v10034_v35  ;;  %v224_v28 = vmax.f32 %v116_v21, 0.0  ;;  %v3354_v60 = vrot.slane %v3352_v59, 4  ;;  %v3360_v61 = vrot.slane %v3358_v16, 5  ;;  %v10180_v24 = vrot.slane %v4059_v40, 9 }
 0x11b   :  { %7588 = vmatmul.mubr.bf16.gmra.mrb[100].mxu1 %v11560_v41  ;;  %v4297_v34 = vrot.slane %v4060_v49, 5  ;;  %8045 = vmatprep.mubr.bf16.mxu0 %v10211_v46  ;;  %v3345_v52 = vor.u32 %v3344_v8, %v3341_v51  ;;  %v4300_v7 = vrot.slane %v4061_v55, 5  ;;  %v3363_v2 = vshrl.u32 %v12735_v22, 16  ;;  %v117_v49 = vld [vmem:[%s15167_s0 + $0x2d0] sm:$0xff]  ;;  %v3037_v55 = vld [vmem:[#allocation2 + $0x98] sm:$0x1] }
 0x11c   :  { %v10773_v18 = vpack.c.bf16 %v224_v28, %v223_v23  ;;  %v1185_v44 = vld [vmem:[#allocation2 + $0x150] sm:$0xf]  ;;  %v1186_v1 = vld [vmem:[#allocation2 + $0x154] sm:$0xf]  ;;  %v3355_v62 = vor.u32 %v3354_v60, %v3350_v12  ;;  %v3366_v46 = vshll.u32 %v12735_v22, 16  ;;  %v119_v8 = vld [vmem:[%s15167_s0 + $0x2e0] sm:$0xff] }
 0x11d   :  { %v1831_v63 = vshrl.u32 %v1185_v44, 16  ;;  %v1834_v48 = vshll.u32 %v1185_v44, 16  ;;  %v1840_v9 = vshll.u32 %v1186_v1, 16  ;;  %v1844_v45 = vshrl.u32 %v1186_v1, 16  ;;  %v11561_v51 = vld [vmem:[#allocation2 + $0x150] sm:$0xff]  }
 0x11e   :  { %10863 = vst [vmem:[#allocation2 + $0x160] sm:$0xff] %v10773_v18   ;;  %v1187_v15 = vld [vmem:[#allocation2 + $0x158] sm:$0x1]  ;;  %v3346_v4 = vrot.slane %v3345_v52, 4  ;;  %v3356_v11 = vrot.slane %v3355_v62, 4  ;;  %v4298_v31 = vsel %vm11908_vm5, %v10180_v24, %v4297_v34  ;;  %v4299_v25 = vrot.slane %v4297_v34, 4 }
 0x11f   :  { %v1833_v26 = vrot.slane %v1831_v63, 4  ;;  %v1836_v17 = vrot.slane %v1834_v48, 5  ;;  %v1842_v29 = vrot.slane %v1840_v9, 5  ;;  %v1846_v30 = vrot.slane %v1844_v45, 4  ;;  %v1188_v3 = vld [vmem:[#allocation2 + $0x15c] sm:$0xf] }
 0x120   :  { %v1850_v14 = vshll.u32 %v1187_v15, 16  ;;  %v3351_v5 = vsel %vm11892_vm3, %v3346_v4, %v3350_v12  ;;  %v3361_v19 = vsel %vm11892_vm3, %v3356_v11, %v3360_v61  ;;  %v1855_v13 = vshrl.u32 %v1188_v3, 16  ;;  %v120_v12 = vld [vmem:[%s15167_s0 + $0x2e8] sm:$0xff]  ;;  %v4062_v28 = vld [vmem:[#allocation2 + $0x9c] sm:$0xe] }
 0x121   :  { %v1837_v27 = vor.u32 %v1836_v17, %v1833_v26  ;;  %v1847_v32 = vor.u32 %v1846_v30, %v1842_v29  ;;  %v10147_v20 = vcombine.low %v3351_v5, %v3361_v19  ;;  %v1858_v33 = vshll.u32 %v1188_v3, 16  ;;  %v4063_v52 = vld [vmem:[#allocation2 + $0xa0] sm:$0xf]  ;;  %v4064_v22 = vld [vmem:[#allocation2 + $0xa4] sm:$0x1] }
 0x122   :  { %v1852_v37 = vrot.slane %v1850_v14, 5  ;;  %v1857_v38 = vrot.slane %v1855_v13, 4  ;;  %v4301_v57 = vsel %vm11908_vm5, %v4299_v25, %v4300_v7  ;;  %v3365_v39 = vrot.slane %v3363_v2, 4  ;;  %v3038_v1 = vld [vmem:[#allocation2 + $0x9c] sm:$0xf] }
 0x123   :  { %v1838_v21 = vrot.slane %v1837_v27, 4  ;;  %v1848_v40 = vrot.slane %v1847_v32, 4  ;;  %8046 = vmatmul.mubr.bf16.gmra.mrb[40].mxu0 %v10147_v20  ;;  %v1860_v10 = vrot.slane %v1858_v33, 5  ;;  %v10212_v41 = vcombine.low %v4298_v31, %v4301_v57  ;;  %v3039_v27 = vld [vmem:[#allocation2 + $0xa0] sm:$0xf] }
 0x124   :  { %v3372_v24 = vshll.u32 %v3036_v43, 16  ;;  %v3376_v34 = vshrl.u32 %v3036_v43, 16  ;;  %v3368_v2 = vrot.slane %v3366_v46, 5  ;;  %v3382_v44 = vshll.u32 %v3037_v55, 16  ;;  %v11583_v20 = vld [vmem:[%s15166_s2 + $0x1e0] sm:$0xff]  }
 0x125   :  { %v1189_v6 = vld [vmem:[#allocation2 + $0x160] sm:$0xf]  ;;  %v1190_v47 = vld [vmem:[#allocation2 + $0x164] sm:$0x1]  ;;  %v1843_v50 = vsel %vm11892_vm3, %v1838_v21, %v1842_v29  ;;  %v1853_v35 = vsel %vm11892_vm3, %v1848_v40, %v1852_v37  ;;  %v1861_v53 = vor.u32 %v1860_v10, %v1857_v38  ;;  %8053 = vmatprep.mubr.bf16.mxu0 %v10212_v41  ;;  %v225_v9 = vmax.f32 %v117_v49, 0.0  ;;  %v121_v21 = vld [vmem:[%s15167_s0 + $0x2f0] sm:$0xff]  ;;  %8247 = vmatpush1.bf16.msra.mxu0 %v11583_v20 }
 0x126   :  { %v1864_v54 = vshll.u32 %v1189_v6, 16  ;;  %v10035_v59 = vcombine.low %v1843_v50, %v1853_v35  ;;  %v1868_v16 = vshrl.u32 %v1189_v6, 16  ;;  %v1874_v23 = vshll.u32 %v1190_v47, 16  ;;  %v11563_v36 = vld [vmem:[#allocation2 + $0x15c] sm:$0xff]   ;;  %v4065_v47 = vld [vmem:[#allocation2 + $0xa8] sm:$0xe]  ;;  %8248 = vmatprep.subr.bf16.mxu0 %v11645_v0 }
 0x127   :  { %v1862_v60 = vrot.slane %v1861_v53, 4  ;;  %v3374_v63 = vrot.slane %v3372_v24, 5  ;;  %v3378_v48 = vrot.slane %v3376_v34, 4  ;;  %v3369_v15 = vor.u32 %v3368_v2, %v3365_v39  ;;  %v3040_v39 = vld [vmem:[#allocation2 + $0xa4] sm:$0x1]  ;;  %v122_v6 = vld [vmem:[%s15167_s0 + $0x2f8] sm:$0xff] }
 0x128   :  { %v1866_v61 = vrot.slane %v1864_v54, 5  ;;  %7595 = vmatprep.mubr.bf16.mxu1 %v10035_v59  ;;  %v1870_v18 = vrot.slane %v1868_v16, 4  ;;  %v1876_v7 = vrot.slane %v1874_v23, 5  ;;  %v3384_v4 = vrot.slane %v3382_v44, 5  ;;  %v4066_v53 = vld [vmem:[#allocation2 + $0xac] sm:$0xf] }
 0x129   :  { %7596 = vmatmul.mubr.bf16.gmra.mrb[104].mxu1 %v11561_v51  ;;  %v226_v11 = vmax.f32 %v118_v56, 0.0  ;;  %v3379_v31 = vor.u32 %v3378_v48, %v3374_v63  ;;  %v227_v25 = vmax.f32 %v119_v8, 0.0  ;;  %v228_v26 = vmax.f32 %v120_v12, 0.0  ;;  %v12789_v54 = vld [vmem:[#allocation2 + $0xb0] sm:$0x1] }
 0x12a   :  { %v1867_v62 = vsel %vm11892_vm3, %v1862_v60, %v1866_v61  ;;  %v1871_v45 = vor.u32 %v1870_v18, %v1866_v61  ;;  %v10181_v17 = vrot.slane %v4062_v28, 9  ;;  %v3370_v30 = vrot.slane %v3369_v15, 4  ;;  %v3041_v23 = vld [vmem:[#allocation2 + $0xa8] sm:$0xf] }
 0x12b   :  { %v10778_v3 = vpack.c.bf16 %v226_v11, %v225_v9  ;;  %v4304_v14 = vrot.slane %v4063_v52, 5  ;;  %v3380_v5 = vrot.slane %v3379_v31, 4  ;;  %v10783_v19 = vpack.c.bf16 %v228_v26, %v227_v25 }
 0x12c   :  { %v1872_v29 = vrot.slane %v1871_v45, 4  ;;  %v4307_v13 = vrot.slane %v4064_v22, 5  ;;  %v3387_v32 = vshrl.u32 %v3038_v1, 16  ;;  %v3375_v37 = vsel %vm11892_vm3, %v3370_v30, %v3374_v63 }
 0x12d   :  { %10864 = vst [vmem:[#allocation2 + $0x168] sm:$0xff] %v10778_v3   ;;  %v4305_v38 = vsel %vm11908_vm5, %v10181_v17, %v4304_v14  ;;  %v4306_v57 = vrot.slane %v4304_v14, 4  ;;  %v3385_v10 = vsel %vm11892_vm3, %v3380_v5, %v3384_v4  ;;  %10865 = vst [vmem:[#allocation2 + $0x170] sm:$0xff] %v10783_v19   ;;  %v3390_v43 = vshll.u32 %v3038_v1, 16  ;;  %v3042_v19 = vld [vmem:[#allocation2 + $0xac] sm:$0xf] }
 0x12e   :  { %v1877_v33 = vsel %vm11892_vm3, %v1872_v29, %v1876_v7  ;;  %v3389_v41 = vrot.slane %v3387_v32, 4  ;;  %v10148_v49 = vcombine.low %v3375_v37, %v3385_v10  ;;  %v3396_v35 = vshll.u32 %v3039_v27, 16  ;;  %v3043_v10 = vld [vmem:[#allocation2 + $0xb0] sm:$0x1] }
 0x12f   :  { %v10036_v40 = vcombine.low %v1867_v62, %v1877_v33  ;;  %v4308_v50 = vsel %vm11908_vm5, %v4306_v57, %v4307_v13  ;;  %v3400_v51 = vshrl.u32 %v3039_v27, 16  ;;  %v3392_v56 = vrot.slane %v3390_v43, 5  ;;  %v12799_v33 = vpop.f32.mrb[0].mxu1 }
 0x130   :  { %v10213_v55 = vcombine.low %v4305_v38, %v4308_v50  ;;  %v3406_v59 = vshll.u32 %v3040_v39, 16  ;;  %v229_v16 = vmax.f32 %v121_v21, 0.0  ;;  %8054 = vmatmul.mubr.bf16.gmra.mrb[44].mxu0 %v10148_v49  ;;  %v3398_v46 = vrot.slane %v3396_v35, 5  ;;  %v123_v50 = vld [vmem:[%s15167_s0 + $0x300] sm:$0xff] }
 0x131   :  { %7603 = vmatprep.mubr.bf16.mxu1 %v10036_v40  ;;  %v3402_v8 = vrot.slane %v3400_v51, 4  ;;  %v230_v12 = vmax.f32 %v122_v6, 0.0  ;;  %v10182_v28 = vrot.slane %v4065_v47, 9  ;;  %v3393_v60 = vor.u32 %v3392_v56, %v3389_v41  ;;  %v124_v56 = vld [vmem:[%s15167_s0 + $0x308] sm:$0xff] }
 0x132   :  { %7604 = vmatmul.mubr.bf16.gmra.mrb[108].mxu1 %v11563_v36  ;;  %8061 = vmatprep.mubr.bf16.mxu0 %v10213_v55  ;;  %v3408_v61 = vrot.slane %v3406_v59, 5  ;;  %v4311_v24 = vrot.slane %v4066_v53, 5  ;;  %v4314_v34 = vrot.slane %v12789_v54, 5  ;;  %v3411_v7 = vshrl.u32 %v3041_v23, 16  ;;  %v125_v59 = vld [vmem:[%s15167_s0 + $0x310] sm:$0xff] }
 0x133   :  { %v3403_v52 = vor.u32 %v3402_v8, %v3398_v46  ;;  %v10788_v18 = vpack.c.bf16 %v230_v12, %v229_v16  ;;  %v3414_v2 = vshll.u32 %v3041_v23, 16  ;;  %v3394_v15 = vrot.slane %v3393_v60, 4  ;;  %v126_v12 = vld [vmem:[%s15167_s0 + $0x318] sm:$0xff] }
 0x134   :  { %v1191_v44 = vld [vmem:[#allocation2 + $0x168] sm:$0xf]  ;;  %v1192_v22 = vld [vmem:[#allocation2 + $0x16c] sm:$0xf]  ;;  %v1193_v1 = vld [vmem:[#allocation2 + $0x170] sm:$0x1]  ;;  %v4312_v11 = vsel %vm11908_vm5, %v10182_v28, %v4311_v24 }
 0x135   :  { %v1879_v62 = vshrl.u32 %v1191_v44, 16  ;;  %v1882_v63 = vshll.u32 %v1191_v44, 16  ;;  %v1888_v48 = vshll.u32 %v1192_v22, 16  ;;  %v1892_v9 = vshrl.u32 %v1192_v22, 16  ;;  %10866 = vst [vmem:[#allocation2 + $0x178] sm:$0xff] %v10788_v18   ;;  %v11564_v53 = vld [vmem:[#allocation2 + $0x168] sm:$0xff]  }
 0x136   :  { %v1898_v45 = vshll.u32 %v1193_v1, 16  ;;  %v3404_v4 = vrot.slane %v3403_v52, 4  ;;  %v1194_v29 = vld [vmem:[#allocation2 + $0x174] sm:$0xf]  ;;  %v3399_v3 = vsel %vm11892_vm3, %v3394_v15, %v3398_v46  ;;  %v4313_v37 = vrot.slane %v4311_v24, 4 }
 0x137   :  { %v1881_v31 = vrot.slane %v1879_v62, 4  ;;  %v1884_v25 = vrot.slane %v1882_v63, 5  ;;  %v1890_v26 = vrot.slane %v1888_v48, 5  ;;  %v1894_v17 = vrot.slane %v1892_v9, 4  ;;  %v4068_v28 = vld [vmem:[#allocation2 + $0xb4] sm:$0xe] }
 0x138   :  { %v1900_v30 = vrot.slane %v1898_v45, 5  ;;  %v3409_v14 = vsel %vm11892_vm3, %v3404_v4, %v3408_v61  ;;  %v1903_v5 = vshrl.u32 %v1194_v29, 16  ;;  %v1906_v20 = vshll.u32 %v1194_v29, 16  ;;  %v4069_v60 = vld [vmem:[#allocation2 + $0xb8] sm:$0xf] }
 0x139   :  { %v1885_v13 = vor.u32 %v1884_v25, %v1881_v31  ;;  %v1895_v27 = vor.u32 %v1894_v17, %v1890_v26  ;;  %v10149_v32 = vcombine.low %v3399_v3, %v3409_v14  ;;  %v3413_v38 = vrot.slane %v3411_v7, 4  ;;  %v4070_v48 = vld [vmem:[#allocation2 + $0xbc] sm:$0x1]  ;;  %v3044_v9 = vld [vmem:[#allocation2 + $0xb4] sm:$0xf]  ;;  %v7391_v31 = vpop.f32.mrb[1].mxu1 }
 0x13a   :  { %v1905_v36 = vrot.slane %v1903_v5, 4  ;;  %v3416_v57 = vrot.slane %v3414_v2, 5  ;;  %v1908_v40 = vrot.slane %v1906_v20, 5  ;;  %v3420_v41 = vshll.u32 %v3042_v19, 16 }
 0x13b   :  { %v1886_v39 = vrot.slane %v1885_v13, 4  ;;  %v1896_v21 = vrot.slane %v1895_v27, 4  ;;  %8062 = vmatmul.mubr.bf16.gmra.mrb[48].mxu0 %v10149_v32  ;;  %v4315_v47 = vsel %vm11908_vm5, %v4313_v37, %v4314_v34  ;;  %v3424_v2 = vshrl.u32 %v3042_v19, 16  ;;  %v12823_v13 = vpop.f32.mrb[2].mxu1 }
 0x13c   :  { %v1195_v43 = vld [vmem:[#allocation2 + $0x178] sm:$0xf]  ;;  %v1196_v6 = vld [vmem:[#allocation2 + $0x17c] sm:$0x1]  ;;  %v3417_v49 = vor.u32 %v3416_v57, %v3413_v38  ;;  %v1909_v54 = vor.u32 %v1908_v40, %v1905_v36  ;;  %v10214_v8 = vcombine.low %v4312_v11, %v4315_v47  ;;  %v3422_v52 = vrot.slane %v3420_v41, 5  ;;  %v127_v38 = vld [vmem:[%s15167_s0 + $0x320] sm:$0xff] }
 0x13d   :  { %v1891_v35 = vsel %vm11892_vm3, %v1886_v39, %v1890_v26  ;;  %v1901_v51 = vsel %vm11892_vm3, %v1896_v21, %v1900_v30  ;;  %v1912_v55 = vshll.u32 %v1195_v43, 16  ;;  %v1916_v23 = vshrl.u32 %v1195_v43, 16  ;;  %v3045_v30 = vld [vmem:[#allocation2 + $0xb8] sm:$0xf]  ;;  %v3046_v36 = vld [vmem:[#allocation2 + $0xbc] sm:$0x1] }
 0x13e   :  { %v10037_v16 = vcombine.low %v1891_v35, %v1901_v51  ;;  %v1922_v46 = vshll.u32 %v1196_v6, 16  ;;  %v1910_v61 = vrot.slane %v1909_v54, 4  ;;  %v3418_v34 = vrot.slane %v3417_v49, 4  ;;  %8069 = vmatprep.mubr.bf16.mxu0 %v10214_v8  ;;  %v11566_v39 = vld [vmem:[#allocation2 + $0x174] sm:$0xff]   ;;  %v128_v41 = vld [vmem:[%s15167_s0 + $0x328] sm:$0xff]  ;;  %v7394_v43 = vpop.f32.mrb[3].mxu1 }
 0x13f   :  { %v1914_v24 = vrot.slane %v1912_v55, 5  ;;  %v1918_v18 = vrot.slane %v1916_v23, 4  ;;  %v3430_v44 = vshll.u32 %v3043_v10, 16  ;;  %v231_v62 = vmax.f32 %v123_v50, 0.0  ;;  %v77_v35 = vld [vmem:[%s15167_s0 + $0x190] sm:$0xff]  ;;  %v78_v51 = vld [vmem:[%s15167_s0 + $0x198] sm:$0xff] }
 0x140   :  { %7611 = vmatprep.mubr.bf16.mxu1 %v10037_v16  ;;  %v1924_v7 = vrot.slane %v1922_v46, 5  ;;  %v3423_v1 = vsel %vm11892_vm3, %v3418_v34, %v3422_v52  ;;  %v232_v63 = vmax.f32 %v124_v56, 0.0  ;;  %v3426_v15 = vrot.slane %v3424_v2, 4 }
 0x141   :  { %7612 = vmatmul.mubr.bf16.gmra.mrb[112].mxu1 %v11564_v53  ;;  %v1915_v22 = vsel %vm11892_vm3, %v1910_v61, %v1914_v24  ;;  %v1919_v45 = vor.u32 %v1918_v18, %v1914_v24  ;;  %v3432_v4 = vrot.slane %v3430_v44, 5  ;;  %v233_v11 = vmax.f32 %v125_v59, 0.0  ;;  %v12845_v59 = vld [vmem:[#allocation2 + $0xc4] sm:$0xf] }
 0x142   :  { %v234_v25 = vmax.f32 %v126_v12, 0.0  ;;  %v10793_v26 = vpack.c.bf16 %v232_v63, %v231_v62  ;;  %v10183_v17 = vrot.slane %v4068_v28, 9  ;;  %v4318_v29 = vrot.slane %v4069_v60, 5 }
 0x143   :  { %v1920_v3 = vrot.slane %v1919_v45, 4  ;;  %v3427_v14 = vor.u32 %v3426_v15, %v3422_v52  ;;  %v4321_v5 = vrot.slane %v4070_v48, 5  ;;  %v3435_v19 = vshrl.u32 %v3044_v9, 16  ;;  %v4071_v52 = vld [vmem:[#allocation2 + $0xc0] sm:$0xe] }
 0x144   :  { %10867 = vst [vmem:[#allocation2 + $0x180] sm:$0xff] %v10793_v26   ;;  %v10798_v27 = vpack.c.bf16 %v234_v25, %v233_v11  ;;  %v4319_v32 = vsel %vm11908_vm5, %v10183_v17, %v4318_v29  ;;  %v4320_v20 = vrot.slane %v4318_v29, 4  ;;  %v3438_v37 = vshll.u32 %v3044_v9, 16  ;;  %v3047_v45 = vld [vmem:[#allocation2 + $0xc0] sm:$0xf] }
 0x145   :  { %v1925_v57 = vsel %vm11892_vm3, %v1920_v3, %v1924_v7  ;;  %v3428_v21 = vrot.slane %v3427_v14, 4  ;;  %v3437_v40 = vrot.slane %v3435_v19, 4  ;;  %v3444_v10 = vshll.u32 %v3045_v30, 16  ;;  %v11586_v7 = vld [vmem:[%s15166_s2 + $0x1e8] sm:$0xff]  }
 0x146   :  { %v10038_v6 = vcombine.low %v1915_v22, %v1925_v57  ;;  %10868 = vst [vmem:[#allocation2 + $0x188] sm:$0xff] %v10798_v27   ;;  %v4322_v47 = vsel %vm11908_vm5, %v4320_v20, %v4321_v5  ;;  %v3440_v49 = vrot.slane %v3438_v37, 5  ;;  %v3448_v50 = vshrl.u32 %v3045_v30, 16  ;;  %8249 = vmatpush1.bf16.msra.mxu0 %v11586_v7  ;;  %v3048_v27 = vld [vmem:[#allocation2 + $0xc4] sm:$0xf] }
 0x147   :  { %v3433_v53 = vsel %vm11892_vm3, %v3428_v21, %v3432_v4  ;;  %v10215_v54 = vcombine.low %v4319_v32, %v4322_v47  ;;  %v3446_v55 = vrot.slane %v3444_v10, 5  ;;  %v3454_v56 = vshll.u32 %v3046_v36, 16  ;;  %8250 = vmatprep.subr.bf16.mxu0 %v11645_v0  ;;  %v12856_v32 = vpop.f32.mrb[4].mxu1  ;;  %v4074_v57 = vld [vmem:[#allocation2 + $0xe4] sm:$0xe] }
 0x148   :  { %7619 = vmatprep.mubr.bf16.mxu1 %v10038_v6  ;;  %v10150_v16 = vcombine.low %v3423_v1, %v3433_v53  ;;  %v3441_v23 = vor.u32 %v3440_v49, %v3437_v40  ;;  %v3450_v46 = vrot.slane %v3448_v50, 4  ;;  %v235_v8 = vmax.f32 %v127_v38, 0.0 }
 0x149   :  { %7620 = vmatmul.mubr.bf16.gmra.mrb[116].mxu1 %v11566_v39  ;;  %v236_v12 = vmax.f32 %v128_v41, 0.0  ;;  %v185_v28 = vmax.f32 %v77_v35, 0.0  ;;  %v186_v60 = vmax.f32 %v78_v51, 0.0  ;;  %v3456_v34 = vrot.slane %v3454_v56, 5  ;;  %v7399_v39 = vpop.f32.mrb[5].mxu1 }
 0x14a   :  { %8070 = vmatmul.mubr.bf16.gmra.mrb[52].mxu0 %v10150_v16  ;;  %v3442_v61 = vrot.slane %v3441_v23, 4  ;;  %v3451_v24 = vor.u32 %v3450_v46, %v3446_v55  ;;  %v4325_v18 = vrot.slane %v12845_v59, 5  ;;  %v10184_v25 = vrot.slane %v4071_v52, 9 }
 0x14b   :  { %v1197_v2 = vld [vmem:[#allocation2 + $0x180] sm:$0xf]  ;;  %v1198_v44 = vld [vmem:[#allocation2 + $0x184] sm:$0xf]  ;;  %8077 = vmatprep.mubr.bf16.mxu0 %v10215_v54  ;;  %v10803_v22 = vpack.c.bf16 %v236_v12, %v235_v8  ;;  %v10678_v1 = vpack.c.bf16 %v186_v60, %v185_v28  ;;  %v3459_v41 = vshrl.u32 %v3047_v45, 16  ;;  %v3462_v47 = vshll.u32 %v3047_v45, 16 }
 0x14c   :  { %v1927_v62 = vshrl.u32 %v1197_v2, 16  ;;  %v1930_v63 = vshll.u32 %v1197_v2, 16  ;;  %v1936_v48 = vshll.u32 %v1198_v44, 16  ;;  %v1940_v9 = vshrl.u32 %v1198_v44, 16  ;;  %v11567_v50 = vld [vmem:[#allocation2 + $0x180] sm:$0xff]  }
 0x14d   :  { %v1199_v15 = vld [vmem:[#allocation2 + $0x188] sm:$0x1]  ;;  %v3447_v4 = vsel %vm11892_vm3, %v3442_v61, %v3446_v55  ;;  %v3452_v11 = vrot.slane %v3451_v24, 4  ;;  %10869 = vst [vmem:[#allocation2 + $0x190] sm:$0xff] %v10803_v22   ;;  %v1200_v31 = vld [vmem:[#allocation2 + $0x18c] sm:$0xf]  ;;  %v4326_v8 = vsel %vm11908_vm5, %v10184_v25, %v4325_v18 }
 0x14e   :  { %10844 = vst [vmem:[#allocation2 + $0xc8] sm:$0xff] %v10678_v1   ;;  %v1929_v26 = vrot.slane %v1927_v62, 4  ;;  %v1932_v17 = vrot.slane %v1930_v63, 5  ;;  %v1938_v29 = vrot.slane %v1936_v48, 5  ;;  %v1942_v30 = vrot.slane %v1940_v9, 4 }
 0x14f   :  { %v1946_v3 = vshll.u32 %v1199_v15, 16  ;;  %v3457_v14 = vsel %vm11892_vm3, %v3452_v11, %v3456_v34  ;;  %v1951_v5 = vshrl.u32 %v1200_v31, 16  ;;  %v1954_v19 = vshll.u32 %v1200_v31, 16  ;;  %v4075_v54 = vld [vmem:[#allocation2 + $0xe8] sm:$0xf] }
 0x150   :  { %v1933_v20 = vor.u32 %v1932_v17, %v1929_v26  ;;  %v1943_v36 = vor.u32 %v1942_v30, %v1938_v29  ;;  %v10151_v37 = vcombine.low %v3447_v4, %v3457_v14  ;;  %v4327_v38 = vrot.slane %v4325_v18, 4  ;;  %v4076_v44 = vld [vmem:[#allocation2 + $0xec] sm:$0x1]  ;;  %v2182_v15 = vld [vmem:[#allocation2 + $0xd8] sm:$0xe] }
 0x151   :  { %v1948_v21 = vrot.slane %v1946_v3, 5  ;;  %v1953_v40 = vrot.slane %v1951_v5, 4  ;;  %v1956_v10 = vrot.slane %v1954_v19, 5  ;;  %v3468_v49 = vshll.u32 %v3048_v27, 16  ;;  %v2183_v26 = vld [vmem:[#allocation2 + $0xdc] sm:$0xf] }
 0x152   :  { %v1934_v43 = vrot.slane %v1933_v20, 4  ;;  %v1944_v6 = vrot.slane %v1943_v36, 4  ;;  %8078 = vmatmul.mubr.bf16.gmra.mrb[56].mxu0 %v10151_v37  ;;  %v3461_v51 = vrot.slane %v3459_v41, 4  ;;  %v3472_v53 = vshrl.u32 %v3048_v27, 16  ;;  %v2184_v17 = vld [vmem:[#allocation2 + $0xe0] sm:$0x1] }
 0x153   :  { %v1957_v35 = vor.u32 %v1956_v10, %v1953_v40  ;;  %v10185_v55 = vrot.slane %v4074_v57, 9  ;;  %v3464_v7 = vrot.slane %v3462_v47, 5  ;;  %v3470_v2 = vrot.slane %v3468_v49, 5  ;;  %v3051_v19 = vld [vmem:[#allocation2 + $0xe8] sm:$0xf]  ;;  %v12870_v27 = vpop.f32.mrb[6].mxu1 }
 0x154   :  { %v1939_v56 = vsel %vm11892_vm3, %v1934_v43, %v1938_v29  ;;  %v1949_v59 = vsel %vm11892_vm3, %v1944_v6, %v1948_v21  ;;  %v1201_v16 = vld [vmem:[#allocation2 + $0x190] sm:$0xf]  ;;  %v1202_v23 = vld [vmem:[#allocation2 + $0x194] sm:$0x1]  ;;  %v3474_v62 = vrot.slane %v3472_v53, 4  ;;  %v4332_v45 = vrot.slane %v4075_v54, 5 }
 0x155   :  { %v4073_v46 = vld [vmem:[#allocation2 + $0xc8] sm:$0x1]  ;;  %v10039_v12 = vcombine.low %v1939_v56, %v1949_v59  ;;  %v1958_v28 = vrot.slane %v1957_v35, 4  ;;  %v1960_v60 = vshll.u32 %v1201_v16, 16  ;;  %v1964_v61 = vshrl.u32 %v1201_v16, 16  ;;  %v7402_v43 = vpop.f32.mrb[7].mxu1 }
 0x156   :  { %v1970_v24 = vshll.u32 %v1202_v23, 16  ;;  %v4328_v34 = vrot.slane %v4073_v46, 5  ;;  %v3049_v52 = vld [vmem:[#allocation2 + $0xc8] sm:$0x1]  ;;  %v3465_v9 = vor.u32 %v3464_v7, %v3461_v51  ;;  %v3475_v25 = vor.u32 %v3474_v62, %v3470_v2  ;;  %v3050_v29 = vld [vmem:[#allocation2 + $0xe4] sm:$0xf] }
 0x157   :  { %7627 = vmatprep.mubr.bf16.mxu1 %v10039_v12  ;;  %v1962_v22 = vrot.slane %v1960_v60, 5  ;;  %v1966_v1 = vrot.slane %v1964_v61, 4  ;;  %v3478_v63 = vshll.u32 %v3049_v52, 16  ;;  %v4333_v14 = vsel %vm11908_vm5, %v10185_v55, %v4332_v45  ;;  %v3052_v57 = vld [vmem:[#allocation2 + $0xec] sm:$0x1]  ;;  %v12880_v54 = vpop.f32.mrb[8].mxu1 }
 0x158   :  { %7628 = vmatmul.mubr.bf16.gmra.mrb[120].mxu1 %v11567_v50  ;;  %v1972_v48 = vrot.slane %v1970_v24, 5  ;;  %v4329_v18 = vsel %vm11908_vm5, %v4327_v38, %v4328_v34  ;;  %v3466_v30 = vrot.slane %v3465_v9, 4  ;;  %v4334_v5 = vrot.slane %v4332_v45, 4  ;;  %v4077_v41 = vld [vmem:[#allocation2 + $0xf0] sm:$0xe]  ;;  %v11570_v50 = vld [vmem:[#allocation2 + $0xe4] sm:$0xff]  }
 0x159   :  { %v1963_v4 = vsel %vm11892_vm3, %v1958_v28, %v1962_v22  ;;  %v1967_v11 = vor.u32 %v1966_v1, %v1962_v22  ;;  %v10216_v31 = vcombine.low %v4326_v8, %v4329_v18  ;;  %v3480_v3 = vrot.slane %v3478_v63, 5  ;;  %v11569_v47 = vld [vmem:[#allocation2 + $0x18c] sm:$0xff]   ;;  %v4078_v53 = vld [vmem:[#allocation2 + $0xf4] sm:$0xf]  ;;  %v4079_v23 = vld [vmem:[#allocation2 + $0xf8] sm:$0x1] }
 0x15a   :  { %v3476_v36 = vrot.slane %v3475_v25, 4  ;;  %v4335_v37 = vrot.slane %v4076_v44, 5  ;;  %v10057_v38 = vrot.slane %v2182_v15, 9  ;;  %v3471_v39 = vsel %vm11892_vm3, %v3466_v30, %v3470_v2  ;;  %v2185_v60 = vld [vmem:[#allocation2 + $0xe4] sm:$0xe] }
 0x15b   :  { %v1968_v20 = vrot.slane %v1967_v11, 4  ;;  %8085 = vmatprep.mubr.bf16.mxu0 %v10216_v31  ;;  %v2443_v21 = vrot.slane %v2183_v26, 5  ;;  %v2446_v40 = vrot.slane %v2184_v17, 5  ;;  %v3483_v10 = vshrl.u32 %v3050_v29, 16  ;;  %v2186_v7 = vld [vmem:[#allocation2 + $0xe8] sm:$0xf] }
 0x15c   :  { %v3481_v49 = vsel %vm11892_vm3, %v3476_v36, %v3480_v3  ;;  %v4336_v35 = vsel %vm11908_vm5, %v4334_v5, %v4335_v37  ;;  %v3486_v51 = vshll.u32 %v3050_v29, 16  ;;  %v3492_v28 = vshll.u32 %v3051_v19, 16  ;;  %v2187_v62 = vld [vmem:[#allocation2 + $0xec] sm:$0x1]  ;;  %v3053_v63 = vld [vmem:[#allocation2 + $0xf0] sm:$0xf] }
 0x15d   :  { %v1973_v6 = vsel %vm11892_vm3, %v1968_v20, %v1972_v48  ;;  %v10152_v56 = vcombine.low %v3471_v39, %v3481_v49  ;;  %v10217_v59 = vcombine.low %v4333_v14, %v4336_v35  ;;  %v12884_v16 = vsel %vm11908_vm5, %v10057_v38, %v2443_v21  ;;  %v3054_v45 = vld [vmem:[#allocation2 + $0xf4] sm:$0xf]  ;;  %v3055_v25 = vld [vmem:[#allocation2 + $0xf8] sm:$0x1]  ;;  %v4080_v3 = vld [vmem:[#allocation2 + $0xfc] sm:$0xe] }
 0x15e   :  { %v10040_v55 = vcombine.low %v1963_v4, %v1973_v6  ;;  %v2445_v46 = vrot.slane %v2443_v21, 4  ;;  %v3485_v8 = vrot.slane %v3483_v10, 4  ;;  %v3488_v12 = vrot.slane %v3486_v51, 5  ;;  %v7407_v14 = vpop.f32.mrb[9].mxu1  ;;  %v4081_v38 = vld [vmem:[#allocation2 + $0x100] sm:$0xf] }
 0x15f   :  { %8086 = vmatmul.mubr.bf16.gmra.mrb[60].mxu0 %v10152_v56  ;;  %v3496_v61 = vshrl.u32 %v3051_v19, 16  ;;  %v3502_v24 = vshll.u32 %v3052_v57, 16  ;;  %v10186_v34 = vrot.slane %v4077_v41, 9  ;;  %v4339_v52 = vrot.slane %v4078_v53, 5  ;;  %v11572_v19 = vld [vmem:[#allocation2 + $0xf0] sm:$0xff]   ;;  %v12901_v43 = vpop.f32.mrb[10].mxu1 }
 0x160   :  { %7635 = vmatprep.mubr.bf16.mxu1 %v10040_v55  ;;  %8093 = vmatprep.mubr.bf16.mxu0 %v10217_v59  ;;  %v2447_v2 = vsel %vm11908_vm5, %v2445_v46, %v2446_v40  ;;  %v3489_v44 = vor.u32 %v3488_v12, %v3485_v8  ;;  %v3494_v22 = vrot.slane %v3492_v28, 5  ;;  %v4342_v1 = vrot.slane %v4079_v23, 5  ;;  %v4082_v57 = vld [vmem:[#allocation2 + $0x104] sm:$0x1]  ;;  %v12899_v41 = vld [vmem:[#allocation2 + $0xf0] sm:$0xe] }
 0x161   :  { %7636 = vmatmul.mubr.bf16.gmra.mrb[124].mxu1 %v11569_v47  ;;  %v10089_v48 = vcombine.low %v12884_v16, %v2447_v2  ;;  %v3498_v18 = vrot.slane %v3496_v61, 4  ;;  %v3504_v9 = vrot.slane %v3502_v24, 5  ;;  %v4341_v4 = vrot.slane %v4339_v52, 4  ;;  %v7410_v35 = vpop.f32.mrb[11].mxu1  ;;  %v2189_v59 = vld [vmem:[#allocation2 + $0xf4] sm:$0xf] }
 0x162   :  { %7804 = vmatprep.mubr.bf16.mxu1 %v11570_v50  ;;  %v3490_v15 = vrot.slane %v3489_v44, 4  ;;  %v10058_v11 = vrot.slane %v2185_v60, 9  ;;  %v2450_v31 = vrot.slane %v2186_v7, 5  ;;  %v2453_v17 = vrot.slane %v2187_v62, 5  ;;  %v3056_v16 = vld [vmem:[#allocation2 + $0xfc] sm:$0xf] }
 0x163   :  { %v3499_v26 = vor.u32 %v3498_v18, %v3494_v22  ;;  %v3507_v29 = vshrl.u32 %v3053_v63, 16  ;;  %v3510_v30 = vshll.u32 %v3053_v63, 16  ;;  %v4340_v20 = vsel %vm11908_vm5, %v10186_v34, %v4339_v52  ;;  %v11589_v23 = vld [vmem:[%s15166_s2 + $0x1f0] sm:$0xff]   ;;  %v2190_v60 = vld [vmem:[#allocation2 + $0xf8] sm:$0x1]  ;;  %v11590_v61 = vld [vmem:[%s15166_s2 + $0x200] sm:$0xff]  }
 0x164   :  { %v3495_v5 = vsel %vm11892_vm3, %v3490_v15, %v3494_v22  ;;  %v4343_v36 = vsel %vm11908_vm5, %v4341_v4, %v4342_v1  ;;  %v2452_v37 = vrot.slane %v2450_v31, 4  ;;  %v12897_v21 = vsel %vm11908_vm5, %v10058_v11, %v2450_v31  ;;  %v3057_v2 = vld [vmem:[#allocation2 + $0x100] sm:$0xf]  ;;  %8251 = vmatpush1.bf16.msra.mxu0 %v11589_v23  ;;  %v3058_v62 = vld [vmem:[#allocation2 + $0x104] sm:$0x1]  ;;  %10953 = vmatprep.subr.bf16.mxu1 %v11590_v61  ;;  %v12925_v14 = vpop.f32.mrb[12].mxu1 }
 0x165   :  { %v3500_v39 = vrot.slane %v3499_v26, 4  ;;  %v3509_v40 = vrot.slane %v3507_v29, 4  ;;  %v3512_v10 = vrot.slane %v3510_v30, 5  ;;  %v3516_v47 = vshll.u32 %v3054_v45, 16  ;;  %v11573_v18 = vld [vmem:[#allocation2 + $0xfc] sm:$0xff]   ;;  %8252 = vmatprep.subr.bf16.mxu0 %v11645_v0 }
 0x166   :  { %v12905_v6 = vsel %vm11908_vm5, %v2452_v37, %v2453_v17  ;;  %v3520_v49 = vshrl.u32 %v3054_v45, 16  ;;  %v3526_v50 = vshll.u32 %v3055_v25, 16  ;;  %v10218_v53 = vcombine.low %v4340_v20, %v4343_v36  ;;  %v4083_v11 = vld [vmem:[#allocation2 + $0x108] sm:$0xe]  ;;  %v4084_v31 = vld [vmem:[#allocation2 + $0x10c] sm:$0xf] }
 0x167   :  { %v3505_v51 = vsel %vm11892_vm3, %v3500_v39, %v3504_v9  ;;  %v3513_v55 = vor.u32 %v3512_v10, %v3509_v40  ;;  %v10187_v56 = vrot.slane %v4080_v3, 9  ;;  %v10090_v8 = vcombine.low %v12897_v21, %v12905_v6  ;;  %v4085_v30 = vld [vmem:[#allocation2 + $0x110] sm:$0x1]  ;;  %v2191_v3 = vld [vmem:[#allocation2 + $0xfc] sm:$0xe] }
 0x168   :  { %v10153_v46 = vcombine.low %v3495_v5, %v3505_v51  ;;  %v3518_v12 = vrot.slane %v3516_v47, 5  ;;  %v3522_v28 = vrot.slane %v3520_v49, 4  ;;  %v3528_v34 = vrot.slane %v3526_v50, 5  ;;  %v2192_v37 = vld [vmem:[#allocation2 + $0x100] sm:$0xf] }
 0x169   :  { %7805 = vmatmul.mubr.bf16.vlgmr.msra.gmra.mrb[64].mxu1 %v10089_v48  ;;  %v3514_v24 = vrot.slane %v3513_v55, 4  ;;  %v4346_v52 = vrot.slane %v4081_v38, 5  ;;  %v4349_v7 = vrot.slane %v4082_v57, 5  ;;  %v10059_v22 = vrot.slane %v12899_v41, 9  ;;  %v11591_v48 = vld [vmem:[%s15166_s2 + $0x208] sm:$0xff]   ;;  %v7415_v38 = vpop.f32.mrb[13].mxu1 }
 0x16a   :  { %7812 = vmatprep.mubr.bf16.mxu1 %v11572_v19  ;;  %8094 = vmatmul.mubr.bf16.gmra.mrb[64].mxu0 %v10153_v46  ;;  %v3523_v44 = vor.u32 %v3522_v28, %v3518_v12  ;;  %v2457_v1 = vrot.slane %v2189_v59, 5  ;;  %v3531_v63 = vshrl.u32 %v3056_v16, 16  ;;  %v2460_v15 = vrot.slane %v2190_v60, 5  ;;  %v2193_v47 = vld [vmem:[#allocation2 + $0x104] sm:$0x1]  ;;  %v12936_v49 = vpop.f32.mrb[14].mxu1 }
 0x16b   :  { %8101 = vmatprep.mubr.bf16.mxu0 %v10218_v53  ;;  %v4347_v9 = vsel %vm11908_vm5, %v10187_v56, %v4346_v52  ;;  %v4348_v45 = vrot.slane %v4346_v52, 4  ;;  %v3534_v4 = vshll.u32 %v3056_v16, 16  ;;  %10954 = vmatpush3.bf16.msra.mxu1 %v11590_v61  ;;  %v3519_v25 = vsel %vm11892_vm3, %v3514_v24, %v3518_v12  ;;  %v3059_v55 = vld [vmem:[#allocation2 + $0x108] sm:$0xf]  ;;  %v3060_v46 = vld [vmem:[#allocation2 + $0x10c] sm:$0xf] }
 0x16c   :  { %v3524_v26 = vrot.slane %v3523_v44, 4  ;;  %v2459_v17 = vrot.slane %v2457_v1, 4  ;;  %v3533_v29 = vrot.slane %v3531_v63, 4  ;;  %10955 = vmatprep.subr.bf16.mxu1 %v11591_v48  ;;  %v3540_v20 = vshll.u32 %v3057_v2, 16  ;;  %v3061_v24 = vld [vmem:[#allocation2 + $0x110] sm:$0x1] }
 0x16d   :  { %v4350_v5 = vsel %vm11908_vm5, %v4348_v45, %v4349_v7  ;;  %v3536_v19 = vrot.slane %v3534_v4, 5  ;;  %v3544_v36 = vshrl.u32 %v3057_v2, 16  ;;  %v2458_v21 = vsel %vm11908_vm5, %v10059_v22, %v2457_v1  ;;  %v11575_v7 = vld [vmem:[#allocation2 + $0x108] sm:$0xff]   ;;  %v4087_v22 = vld [vmem:[#allocation2 + $0x118] sm:$0xf]  ;;  %v7418_v4 = vpop.f32.mrb[15].mxu1 }
 0x16e   :  { %v3529_v57 = vsel %vm11892_vm3, %v3524_v26, %v3528_v34  ;;  %v10219_v39 = vcombine.low %v4347_v9, %v4350_v5  ;;  %v3550_v40 = vshll.u32 %v3058_v62, 16  ;;  %v2461_v0 = vsel %vm11908_vm5, %v2459_v17, %v2460_v15  ;;  %v4088_v1 = vld [vmem:[#allocation2 + $0x11c] sm:$0x1]  ;;  %v12942_v62 = vld [vmem:[#allocation2 + $0x108] sm:$0xe]  ;;  %v11593_v38 = vld [vmem:[%s15166_s2 + $0x210] sm:$0xff]  }
 0x16f   :  { %v10154_v10 = vcombine.low %v3519_v25, %v3529_v57  ;;  %v3537_v41 = vor.u32 %v3536_v19, %v3533_v29  ;;  %v3542_v6 = vrot.slane %v3540_v20, 5  ;;  %10956 = vmatpush3.bf16.msra.mxu1 %v11591_v48  ;;  %v3546_v50 = vrot.slane %v3544_v36, 4  ;;  %v2195_v45 = vld [vmem:[#allocation2 + $0x10c] sm:$0xf]  ;;  %v12946_v15 = vld [vmem:[#allocation2 + $0x110] sm:$0x1] }
 0x170   :  { %v3552_v35 = vrot.slane %v3550_v40, 5  ;;  %v10188_v51 = vrot.slane %v4083_v11, 9  ;;  %v4353_v53 = vrot.slane %v4084_v31, 5  ;;  %v4356_v59 = vrot.slane %v4085_v30, 5  ;;  %10957 = vmatprep.subr.bf16.mxu1 %v11593_v38 }
 0x171   :  { %7813 = vmatmul.mubr.bf16.gmra.mrb[68].mxu1 %v10090_v8  ;;  %v3538_v56 = vrot.slane %v3537_v41, 4  ;;  %v10060_v16 = vrot.slane %v2191_v3, 9  ;;  %v2464_v23 = vrot.slane %v2192_v37, 5  ;;  %v3547_v12 = vor.u32 %v3546_v50, %v3542_v6  ;;  %v4086_v8 = vld [vmem:[#allocation2 + $0x114] sm:$0xe] }
 0x172   :  { %7820 = vmatprep.mubr.bf16.mxu1 %v11573_v18  ;;  %8102 = vmatmul.mubr.bf16.gmra.mrb[68].mxu0 %v10154_v10  ;;  %v4354_v28 = vsel %vm11908_vm5, %v10188_v51, %v4353_v53  ;;  %v4355_v60 = vrot.slane %v4353_v53, 4  ;;  %v2467_v61 = vrot.slane %v2193_v47, 5  ;;  %v10091_v34 = vcombine.low %v2458_v21, %v2461_v0  ;;  %v3062_v37 = vld [vmem:[#allocation2 + $0x114] sm:$0xf]  ;;  %v11594_v10 = vld [vmem:[%s15166_s2 + $0x218] sm:$0xff]  }
 0x173   :  { %8109 = vmatprep.mubr.bf16.mxu0 %v10219_v39  ;;  %v3543_v52 = vsel %vm11892_vm3, %v3538_v56, %v3542_v6  ;;  %v2466_v2 = vrot.slane %v2464_v23, 4  ;;  %v3555_v44 = vshrl.u32 %v3059_v55, 16  ;;  %v3548_v63 = vrot.slane %v3547_v12, 4  ;;  %v3063_v50 = vld [vmem:[#allocation2 + $0x118] sm:$0xf]  ;;  %10958 = vmatpush3.bf16.msra.mxu1 %v11593_v38 }
 0x174   :  { %v4357_v48 = vsel %vm11908_vm5, %v4355_v60, %v4356_v59  ;;  %v3558_v18 = vshll.u32 %v3059_v55, 16  ;;  %v3564_v9 = vshll.u32 %v3060_v46, 16  ;;  %v12950_v31 = vsel %vm11908_vm5, %v10060_v16, %v2464_v23  ;;  %v3064_v56 = vld [vmem:[#allocation2 + $0x11c] sm:$0x1]  ;;  %v4089_v16 = vld [vmem:[#allocation2 + $0x120] sm:$0xe]  ;;  %10959 = vmatprep.subr.bf16.mxu1 %v11594_v10 }
 0x175   :  { %v10220_v11 = vcombine.low %v4354_v28, %v4357_v48  ;;  %v3557_v25 = vrot.slane %v3555_v44, 4  ;;  %v3568_v26 = vshrl.u32 %v3060_v46, 16  ;;  %v3553_v17 = vsel %vm11892_vm3, %v3548_v63, %v3552_v35  ;;  %v12966_v35 = vpop.f32.mrb[16].mxu1  ;;  %v11576_v28 = vld [vmem:[#allocation2 + $0x114] sm:$0xff]  }
 0x176   :  { %v12956_v29 = vsel %vm11908_vm5, %v2466_v2, %v2467_v61  ;;  %v3560_v30 = vrot.slane %v3558_v18, 5  ;;  %v3566_v3 = vrot.slane %v3564_v9, 5  ;;  %v10155_v5 = vcombine.low %v3543_v52, %v3553_v17  ;;  %v7423_v23 = vpop.f32.mrb[17].mxu1  ;;  %v4091_v2 = vld [vmem:[#allocation2 + $0x128] sm:$0x1] }
 0x177   :  { %v3570_v19 = vrot.slane %v3568_v26, 4  ;;  %v3574_v20 = vshll.u32 %v3061_v24, 16  ;;  %v10189_v36 = vrot.slane %v4086_v8, 9  ;;  %v4360_v39 = vrot.slane %v4087_v22, 5  ;;  %v4090_v24 = vld [vmem:[#allocation2 + $0x124] sm:$0xf]  ;;  %10960 = vmatpush3.bf16.msra.mxu1 %v11594_v10 }
 0x178   :  { %v3561_v57 = vor.u32 %v3560_v30, %v3557_v25  ;;  %v4363_v21 = vrot.slane %v4088_v1, 5  ;;  %v10061_v40 = vrot.slane %v12942_v62, 9  ;;  %v2471_v6 = vrot.slane %v2195_v45, 5  ;;  %v2197_v44 = vld [vmem:[#allocation2 + $0x114] sm:$0xe]  ;;  %v12982_v9 = vpop.f32.mrb[18].mxu1 }
 0x179   :  { %7821 = vmatmul.mubr.bf16.gmra.mrb[72].mxu1 %v10091_v34  ;;  %v3571_v0 = vor.u32 %v3570_v19, %v3566_v3  ;;  %v3576_v41 = vrot.slane %v3574_v20, 5  ;;  %v2474_v47 = vrot.slane %v12946_v15, 5  ;;  %v4361_v53 = vsel %vm11908_vm5, %v10189_v36, %v4360_v39  ;;  %v2198_v48 = vld [vmem:[#allocation2 + $0x118] sm:$0xf]  ;;  %v2199_v18 = vld [vmem:[#allocation2 + $0x11c] sm:$0x1] }
 0x17a   :  { %7828 = vmatprep.mubr.bf16.mxu1 %v11575_v7  ;;  %8110 = vmatmul.mubr.bf16.gmra.mrb[72].mxu0 %v10155_v5  ;;  %v3562_v51 = vrot.slane %v3561_v57, 4  ;;  %v4362_v55 = vrot.slane %v4360_v39, 4  ;;  %v3579_v59 = vshrl.u32 %v3062_v37, 16  ;;  %v10092_v46 = vcombine.low %v12950_v31, %v12956_v29  ;;  %v3065_v29 = vld [vmem:[#allocation2 + $0x120] sm:$0xf]  ;;  %v7426_v30 = vpop.f32.mrb[19].mxu1 }
 0x17b   :  { %8117 = vmatprep.mubr.bf16.mxu0 %v10220_v11  ;;  %v3572_v12 = vrot.slane %v3571_v0, 4  ;;  %v2473_v60 = vrot.slane %v2471_v6, 4  ;;  %v3582_v61 = vshll.u32 %v3062_v37, 16  ;;  %v3588_v7 = vshll.u32 %v3063_v50, 16  ;;  %v3066_v36 = vld [vmem:[#allocation2 + $0x124] sm:$0xf] }
 0x17c   :  { %v3567_v8 = vsel %vm11892_vm3, %v3562_v51, %v3566_v3  ;;  %v4364_v34 = vsel %vm11908_vm5, %v4362_v55, %v4363_v21  ;;  %v3581_v52 = vrot.slane %v3579_v59, 4  ;;  %v12980_v62 = vsel %vm11908_vm5, %v10061_v40, %v2471_v6  ;;  %v3067_v21 = vld [vmem:[#allocation2 + $0x128] sm:$0x1]  ;;  %v11596_v40 = vld [vmem:[%s15166_s2 + $0x1f8] sm:$0xff]   ;;  %v4093_v59 = vld [vmem:[#allocation2 + $0x130] sm:$0xf] }
 0x17d   :  { %v3577_v22 = vsel %vm11892_vm3, %v3572_v12, %v3576_v41  ;;  %v10221_v1 = vcombine.low %v4361_v53, %v4364_v34  ;;  %v3584_v63 = vrot.slane %v3582_v61, 5  ;;  %v2475_v15 = vsel %vm11908_vm5, %v2473_v60, %v2474_v47  ;;  %v4092_v47 = vld [vmem:[#allocation2 + $0x12c] sm:$0xe]  ;;  %8253 = vmatpush1.bf16.msra.mxu0 %v11596_v40  ;;  %v2200_v60 = vld [vmem:[#allocation2 + $0x120] sm:$0xe] }
 0x17e   :  { %v10156_v45 = vcombine.low %v3567_v8, %v3577_v22  ;;  %v3590_v4 = vrot.slane %v3588_v7, 5  ;;  %v3592_v11 = vshrl.u32 %v3063_v50, 16  ;;  %v3598_v25 = vshll.u32 %v3064_v56, 16  ;;  %v11578_v50 = vld [vmem:[#allocation2 + $0x120] sm:$0xff]   ;;  %v2202_v7 = vld [vmem:[#allocation2 + $0x128] sm:$0x1] }
 0x17f   :  { %v3585_v31 = vor.u32 %v3584_v63, %v3581_v52  ;;  %v10190_v26 = vrot.slane %v4089_v16, 9  ;;  %v4367_v17 = vrot.slane %v4090_v24, 5  ;;  %v4370_v5 = vrot.slane %v4091_v2, 5  ;;  %v4094_v16 = vld [vmem:[#allocation2 + $0x134] sm:$0x1]  ;;  %v11579_v40 = vld [vmem:[#allocation2 + $0x12c] sm:$0xff]  }
 0x180   :  { %v3594_v3 = vrot.slane %v3592_v11, 4  ;;  %v10062_v19 = vrot.slane %v2197_v44, 9  ;;  %v2478_v20 = vrot.slane %v2198_v48, 5  ;;  %v10093_v37 = vcombine.low %v12980_v62, %v2475_v15  ;;  %v2201_v61 = vld [vmem:[#allocation2 + $0x124] sm:$0xf]  ;;  %v11598_v48 = vld [vmem:[%s15166_s2 + $0x228] sm:$0xff]  }
 0x181   :  { %7829 = vmatmul.mubr.bf16.gmra.mrb[76].mxu1 %v10092_v46  ;;  %v3586_v38 = vrot.slane %v3585_v31, 4  ;;  %v4368_v57 = vsel %vm11908_vm5, %v10190_v26, %v4367_v17  ;;  %v4369_v39 = vrot.slane %v4367_v17, 4  ;;  %v3600_v0 = vrot.slane %v3598_v25, 5  ;;  %v3068_v2 = vld [vmem:[#allocation2 + $0x12c] sm:$0xf]  ;;  %v11597_v44 = vld [vmem:[%s15166_s2 + $0x220] sm:$0xff]  }
 0x182   :  { %7836 = vmatprep.mubr.bf16.mxu1 %v11576_v28  ;;  %8118 = vmatmul.mubr.bf16.gmra.mrb[76].mxu0 %v10156_v45  ;;  %v3595_v10 = vor.u32 %v3594_v3, %v3590_v4  ;;  %v2480_v41 = vrot.slane %v2478_v20, 4  ;;  %v2481_v6 = vrot.slane %v2199_v18, 5  ;;  %v12996_v53 = vsel %vm11908_vm5, %v10062_v19, %v2478_v20  ;;  %v3069_v11 = vld [vmem:[#allocation2 + $0x130] sm:$0xf]  ;;  %v3070_v19 = vld [vmem:[#allocation2 + $0x134] sm:$0x1] }
 0x183   :  { %8125 = vmatprep.mubr.bf16.mxu0 %v10221_v1  ;;  %v4371_v51 = vsel %vm11908_vm5, %v4369_v39, %v4370_v5  ;;  %v3603_v55 = vshrl.u32 %v3065_v29, 16  ;;  %v3606_v56 = vshll.u32 %v3065_v29, 16  ;;  %v3591_v23 = vsel %vm11892_vm3, %v3586_v38, %v3590_v4  ;;  %10961 = vmatprep.subr.bf16.mxu1 %v11597_v44 }
 0x184   :  { %v3596_v46 = vrot.slane %v3595_v10, 4  ;;  %v10222_v12 = vcombine.low %v4368_v57, %v4371_v51  ;;  %v3612_v28 = vshll.u32 %v3066_v36, 16  ;;  %v13002_v24 = vsel %vm11908_vm5, %v2480_v41, %v2481_v6  ;;  %10962 = vmatpush3.bf16.msra.mxu1 %v11597_v44  ;;  %v13016_v57 = vpop.f32.mrb[20].mxu1  ;;  %v4095_v41 = vld [vmem:[#allocation2 + $0x138] sm:$0xe] }
 0x185   :  { %v3605_v8 = vrot.slane %v3603_v55, 4  ;;  %v3608_v34 = vrot.slane %v3606_v56, 5  ;;  %v3616_v52 = vshrl.u32 %v3066_v36, 16  ;;  %v3622_v62 = vshll.u32 %v3067_v21, 16  ;;  %10963 = vmatprep.subr.bf16.mxu1 %v11598_v48  ;;  %v4096_v6 = vld [vmem:[#allocation2 + $0x13c] sm:$0xf] }
 0x186   :  { %v3601_v22 = vsel %vm11892_vm3, %v3596_v46, %v3600_v0  ;;  %v3614_v1 = vrot.slane %v3612_v28, 5  ;;  %v10191_v63 = vrot.slane %v4092_v47, 9  ;;  %v4374_v4 = vrot.slane %v4093_v59, 5  ;;  %v4097_v55 = vld [vmem:[#allocation2 + $0x140] sm:$0x1] }
 0x187   :  { %v10157_v18 = vcombine.low %v3591_v23, %v3601_v22  ;;  %v3609_v45 = vor.u32 %v3608_v34, %v3605_v8  ;;  %v3618_v15 = vrot.slane %v3616_v52, 4  ;;  %v3624_v31 = vrot.slane %v3622_v62, 5  ;;  %v2203_v56 = vld [vmem:[#allocation2 + $0x12c] sm:$0xe]  ;;  %v2205_v28 = vld [vmem:[#allocation2 + $0x134] sm:$0x1] }
 0x188   :  { %v4377_v25 = vrot.slane %v4094_v16, 5  ;;  %v10063_v26 = vrot.slane %v2200_v60, 9  ;;  %v2485_v17 = vrot.slane %v2201_v61, 5  ;;  %v4375_v3 = vsel %vm11908_vm5, %v10191_v63, %v4374_v4  ;;  %10964 = vmatpush3.bf16.msra.mxu1 %v11598_v48  ;;  %v7431_v34 = vpop.f32.mrb[21].mxu1  ;;  %v3071_v22 = vld [vmem:[#allocation2 + $0x138] sm:$0xf] }
 0x189   :  { %7837 = vmatmul.mubr.bf16.gmra.mrb[80].mxu1 %v10093_v37  ;;  %v3610_v29 = vrot.slane %v3609_v45, 4  ;;  %v3619_v30 = vor.u32 %v3618_v15, %v3614_v1  ;;  %v4376_v5 = vrot.slane %v4374_v4, 4  ;;  %v10094_v20 = vcombine.low %v12996_v53, %v13002_v24  ;;  %v3072_v45 = vld [vmem:[#allocation2 + $0x13c] sm:$0xf] }
 0x18a   :  { %7844 = vmatprep.mubr.bf16.mxu1 %v11578_v50  ;;  %8126 = vmatmul.mubr.bf16.gmra.mrb[80].mxu0 %v10157_v18  ;;  %v2487_v36 = vrot.slane %v2485_v17, 4  ;;  %v2488_v38 = vrot.slane %v2202_v7, 5  ;;  %v3627_v37 = vshrl.u32 %v3068_v2, 16  ;;  %v3630_v0 = vshll.u32 %v3068_v2, 16 }
 0x18b   :  { %8133 = vmatprep.mubr.bf16.mxu0 %v10222_v12  ;;  %v3615_v39 = vsel %vm11892_vm3, %v3610_v29, %v3614_v1  ;;  %v3620_v21 = vrot.slane %v3619_v30, 4  ;;  %v4378_v10 = vsel %vm11908_vm5, %v4376_v5, %v4377_v25  ;;  %v13024_v50 = vsel %vm11908_vm5, %v10063_v26, %v2485_v17  ;;  %v2204_v12 = vld [vmem:[#allocation2 + $0x130] sm:$0xf]  ;;  %v4098_v25 = vld [vmem:[#allocation2 + $0x144] sm:$0xe] }
 0x18c   :  { %v10223_v47 = vcombine.low %v4375_v3, %v4378_v10  ;;  %v3629_v51 = vrot.slane %v3627_v37, 4  ;;  %v3636_v53 = vshll.u32 %v3069_v11, 16  ;;  %v2489_v16 = vsel %vm11908_vm5, %v2487_v36, %v2488_v38  ;;  %v4099_v3 = vld [vmem:[#allocation2 + $0x148] sm:$0xf]  ;;  %v4100_v5 = vld [vmem:[#allocation2 + $0x14c] sm:$0x1] }
 0x18d   :  { %v3625_v59 = vsel %vm11892_vm3, %v3620_v21, %v3624_v31  ;;  %v3632_v23 = vrot.slane %v3630_v0, 5  ;;  %v3640_v46 = vshrl.u32 %v3069_v11, 16  ;;  %v3646_v24 = vshll.u32 %v3070_v19, 16  ;;  %v3073_v31 = vld [vmem:[#allocation2 + $0x140] sm:$0x1]  ;;  %v11581_v36 = vld [vmem:[#allocation2 + $0x138] sm:$0xff]  }
 0x18e   :  { %v10158_v60 = vcombine.low %v3615_v39, %v3625_v59  ;;  %v3638_v61 = vrot.slane %v3636_v53, 5  ;;  %v10192_v8 = vrot.slane %v4095_v41, 9  ;;  %v4381_v2 = vrot.slane %v4096_v6, 5  ;;  %v2206_v0 = vld [vmem:[#allocation2 + $0x138] sm:$0xe] }
 0x18f   :  { %v3633_v52 = vor.u32 %v3632_v23, %v3629_v51  ;;  %v3642_v7 = vrot.slane %v3640_v46, 4  ;;  %v4384_v44 = vrot.slane %v4097_v55, 5  ;;  %v3648_v1 = vrot.slane %v3646_v24, 5  ;;  %v2207_v51 = vld [vmem:[#allocation2 + $0x13c] sm:$0xf] }
 0x190   :  { %v10064_v62 = vrot.slane %v2203_v56, 9  ;;  %v2492_v63 = vrot.slane %v2204_v12, 5  ;;  %v2495_v18 = vrot.slane %v2205_v28, 5  ;;  %v4382_v48 = vsel %vm11908_vm5, %v10192_v8, %v4381_v2  ;;  %v2208_v53 = vld [vmem:[#allocation2 + $0x140] sm:$0x1] }
 0x191   :  { %7845 = vmatmul.mubr.bf16.gmra.mrb[84].mxu1 %v10094_v20  ;;  %v3634_v15 = vrot.slane %v3633_v52, 4  ;;  %v3643_v4 = vor.u32 %v3642_v7, %v3638_v61  ;;  %v4383_v11 = vrot.slane %v4381_v2, 4  ;;  %v10095_v26 = vcombine.low %v13024_v50, %v2489_v16  ;;  %v3074_v23 = vld [vmem:[#allocation2 + $0x144] sm:$0xf]  ;;  %v3075_v52 = vld [vmem:[#allocation2 + $0x148] sm:$0xf] }
 0x192   :  { %7852 = vmatprep.mubr.bf16.mxu1 %v11579_v40  ;;  %8134 = vmatmul.mubr.bf16.gmra.mrb[84].mxu0 %v10158_v60  ;;  %v2494_v17 = vrot.slane %v2492_v63, 4  ;;  %v3651_v29 = vshrl.u32 %v3071_v22, 16  ;;  %v3654_v30 = vshll.u32 %v3071_v22, 16  ;;  %v3660_v37 = vshll.u32 %v3072_v45, 16  ;;  %v3076_v22 = vld [vmem:[#allocation2 + $0x14c] sm:$0x1] }
 0x193   :  { %8141 = vmatprep.mubr.bf16.mxu0 %v10223_v47  ;;  %v3639_v19 = vsel %vm11892_vm3, %v3634_v15, %v3638_v61  ;;  %v3644_v20 = vrot.slane %v3643_v4, 4  ;;  %v4385_v38 = vsel %vm11908_vm5, %v4383_v11, %v4384_v44  ;;  %v13039_v21 = vsel %vm11908_vm5, %v10064_v62, %v2492_v63  ;;  %v4101_v62 = vld [vmem:[#allocation2 + $0x150] sm:$0xe]  ;;  %v4102_v4 = vld [vmem:[#allocation2 + $0x154] sm:$0xf] }
 0x194   :  { %v10224_v39 = vcombine.low %v4382_v48, %v4385_v38  ;;  %v3653_v40 = vrot.slane %v3651_v29, 4  ;;  %v3656_v10 = vrot.slane %v3654_v30, 5  ;;  %v2496_v6 = vsel %vm11908_vm5, %v2494_v17, %v2495_v18  ;;  %v4103_v48 = vld [vmem:[#allocation2 + $0x158] sm:$0x1]  ;;  %v2209_v11 = vld [vmem:[#allocation2 + $0x144] sm:$0xe] }
 0x195   :  { %v3649_v41 = vsel %vm11892_vm3, %v3644_v20, %v3648_v1  ;;  %v3662_v47 = vrot.slane %v3660_v37, 5  ;;  %v3664_v50 = vshrl.u32 %v3072_v45, 16  ;;  %v3670_v59 = vshll.u32 %v3073_v31, 16  ;;  %v2210_v29 = vld [vmem:[#allocation2 + $0x148] sm:$0xf] }
 0x196   :  { %v10159_v55 = vcombine.low %v3639_v19, %v3649_v41  ;;  %v3657_v56 = vor.u32 %v3656_v10, %v3653_v40  ;;  %v10193_v16 = vrot.slane %v4098_v25, 9  ;;  %v4388_v12 = vrot.slane %v4099_v3, 5  ;;  %v2211_v30 = vld [vmem:[#allocation2 + $0x14c] sm:$0x1]  ;;  %v11582_v38 = vld [vmem:[#allocation2 + $0x144] sm:$0xff]   ;;  %v13062_v40 = vpop.f32.mrb[22].mxu1 }
 0x197   :  { %v3666_v46 = vrot.slane %v3664_v50, 4  ;;  %v4391_v28 = vrot.slane %v4100_v5, 5  ;;  %v10065_v60 = vrot.slane %v2206_v0, 9  ;;  %v3672_v24 = vrot.slane %v3670_v59, 5 }
 0x198   :  { %v3658_v61 = vrot.slane %v3657_v56, 4  ;;  %v2499_v8 = vrot.slane %v2207_v51, 5  ;;  %v2502_v34 = vrot.slane %v2208_v53, 5  ;;  %v4389_v2 = vsel %vm11908_vm5, %v10193_v16, %v4388_v12  ;;  %v3078_v56 = vld [vmem:[#allocation2 + $0x154] sm:$0xf] }
 0x199   :  { %7853 = vmatmul.mubr.bf16.gmra.mrb[88].mxu1 %v10095_v26  ;;  %v3667_v7 = vor.u32 %v3666_v46, %v3662_v47  ;;  %v4390_v44 = vrot.slane %v4388_v12, 4  ;;  %v3675_v1 = vshrl.u32 %v3074_v23, 16  ;;  %v10096_v63 = vcombine.low %v13039_v21, %v2496_v6  ;;  %v7434_v12 = vpop.f32.mrb[23].mxu1 }
 0x19a   :  { %7860 = vmatprep.mubr.bf16.mxu1 %v11581_v36  ;;  %8142 = vmatmul.mubr.bf16.gmra.mrb[88].mxu0 %v10159_v55  ;;  %v3663_v18 = vsel %vm11892_vm3, %v3658_v61, %v3662_v47  ;;  %v2501_v45 = vrot.slane %v2499_v8, 4  ;;  %v3678_v15 = vshll.u32 %v3074_v23, 16  ;;  %v3684_v17 = vshll.u32 %v3075_v52, 16  ;;  %v3077_v47 = vld [vmem:[#allocation2 + $0x150] sm:$0xf] }
 0x19b   :  { %8149 = vmatprep.mubr.bf16.mxu0 %v10224_v39  ;;  %v3668_v31 = vrot.slane %v3667_v7, 4  ;;  %v4392_v25 = vsel %vm11908_vm5, %v4390_v44, %v4391_v28  ;;  %v3677_v26 = vrot.slane %v3675_v1, 4  ;;  %v13054_v5 = vsel %vm11908_vm5, %v10065_v60, %v2499_v8  ;;  %v3079_v61 = vld [vmem:[#allocation2 + $0x158] sm:$0x1]  ;;  %v11600_v7 = vld [vmem:[%s15166_s2 + $0x230] sm:$0xff]  }
 0x19c   :  { %v10225_v3 = vcombine.low %v4389_v2, %v4392_v25  ;;  %v3680_v19 = vrot.slane %v3678_v15, 5  ;;  %v3688_v20 = vshrl.u32 %v3075_v52, 16  ;;  %v13060_v37 = vsel %vm11908_vm5, %v2501_v45, %v2502_v34  ;;  %v4104_v34 = vld [vmem:[#allocation2 + $0x15c] sm:$0xe]  ;;  %v4105_v52 = vld [vmem:[#allocation2 + $0x160] sm:$0xf]  ;;  %10965 = vmatprep.subr.bf16.mxu1 %v11600_v7 }
 0x19d   :  { %v3673_v36 = vsel %vm11892_vm3, %v3668_v31, %v3672_v24  ;;  %v3686_v39 = vrot.slane %v3684_v17, 5  ;;  %v3694_v21 = vshll.u32 %v3076_v22, 16  ;;  %v10194_v6 = vrot.slane %v4101_v62, 9  ;;  %v4106_v62 = vld [vmem:[#allocation2 + $0x164] sm:$0x1]  ;;  %10966 = vmatpush3.bf16.msra.mxu1 %v11600_v7 }
 0x19e   :  { %v10160_v10 = vcombine.low %v3663_v18, %v3673_v36  ;;  %v3681_v0 = vor.u32 %v3680_v19, %v3677_v26  ;;  %v3690_v41 = vrot.slane %v3688_v20, 4  ;;  %v4395_v51 = vrot.slane %v4102_v4, 5 }
 0x19f   :  { %v3696_v50 = vrot.slane %v3694_v21, 5  ;;  %v4398_v53 = vrot.slane %v4103_v48, 5  ;;  %v10066_v55 = vrot.slane %v2209_v11, 9  ;;  %v2506_v23 = vrot.slane %v2210_v29, 5  ;;  %v11601_v48 = vld [vmem:[%s15166_s2 + $0x238] sm:$0xff]   ;;  %v13080_v11 = vpop.f32.mrb[24].mxu1 }
 0x1a0   :  { %v3682_v59 = vrot.slane %v3681_v0, 4  ;;  %v3691_v16 = vor.u32 %v3690_v41, %v3686_v39  ;;  %v2509_v46 = vrot.slane %v2211_v30, 5  ;;  %v13066_v28 = vsel %vm11908_vm5, %v10194_v6, %v4395_v51  ;;  %v2212_v29 = vld [vmem:[#allocation2 + $0x150] sm:$0xe]  ;;  %v2213_v30 = vld [vmem:[#allocation2 + $0x154] sm:$0xf]  ;;  %10967 = vmatprep.subr.bf16.mxu1 %v11601_v48 }
 0x1a1   :  { %7861 = vmatmul.mubr.bf16.gmra.mrb[92].mxu1 %v10096_v63  ;;  %v4397_v60 = vrot.slane %v4395_v51, 4  ;;  %v3699_v24 = vshrl.u32 %v3077_v47, 16  ;;  %v3702_v8 = vshll.u32 %v3077_v47, 16  ;;  %v10097_v2 = vcombine.low %v13054_v5, %v13060_v37  ;;  %v11584_v63 = vld [vmem:[#allocation2 + $0x150] sm:$0xff]   ;;  %v3080_v51 = vld [vmem:[#allocation2 + $0x15c] sm:$0xf] }
 0x1a2   :  { %7868 = vmatprep.mubr.bf16.mxu1 %v11582_v38  ;;  %8150 = vmatmul.mubr.bf16.gmra.mrb[92].mxu0 %v10160_v10  ;;  %v3687_v44 = vsel %vm11892_vm3, %v3682_v59, %v3686_v39  ;;  %v3692_v22 = vrot.slane %v3691_v16, 4  ;;  %v2508_v1 = vrot.slane %v2506_v23, 4  ;;  %v3708_v4 = vshll.u32 %v3078_v56, 16  ;;  %v2214_v38 = vld [vmem:[#allocation2 + $0x158] sm:$0x1] }
 0x1a3   :  { %8157 = vmatprep.mubr.bf16.mxu0 %v10225_v3  ;;  %v4399_v18 = vsel %vm11908_vm5, %v4397_v60, %v4398_v53  ;;  %v3701_v45 = vrot.slane %v3699_v24, 4  ;;  %v3704_v15 = vrot.slane %v3702_v8, 5  ;;  %v13087_v26 = vsel %vm11908_vm5, %v10066_v55, %v2506_v23  ;;  %v7439_v3 = vpop.f32.mrb[25].mxu1  ;;  %v3081_v16 = vld [vmem:[#allocation2 + $0x160] sm:$0xf]  ;;  %10968 = vmatpush3.bf16.msra.mxu1 %v11601_v48 }
 0x1a4   :  { %v3697_v31 = vsel %vm11892_vm3, %v3692_v22, %v3696_v50  ;;  %v10226_v25 = vcombine.low %v13066_v28, %v4399_v18  ;;  %v3712_v17 = vshrl.u32 %v3078_v56, 16  ;;  %v13091_v19 = vsel %vm11908_vm5, %v2508_v1, %v2509_v46  ;;  %v13093_v37 = vpop.f32.mrb[26].mxu1  ;;  %v3082_v23 = vld [vmem:[#allocation2 + $0x164] sm:$0x1]  ;;  %v4108_v24 = vld [vmem:[#allocation2 + $0x16c] sm:$0xf] }
 0x1a5   :  { %v10161_v5 = vcombine.low %v3687_v44, %v3697_v31  ;;  %v3705_v20 = vor.u32 %v3704_v15, %v3701_v45  ;;  %v3710_v36 = vrot.slane %v3708_v4, 5  ;;  %v3718_v21 = vshll.u32 %v3079_v61, 16  ;;  %v4107_v61 = vld [vmem:[#allocation2 + $0x168] sm:$0xe]  ;;  %v13103_v8 = vld [vmem:[#allocation2 + $0x170] sm:$0x1] }
 0x1a6   :  { %v3714_v39 = vrot.slane %v3712_v17, 4  ;;  %v10195_v10 = vrot.slane %v4104_v34, 9  ;;  %v4402_v0 = vrot.slane %v4105_v52, 5  ;;  %v4405_v6 = vrot.slane %v4106_v62, 5  ;;  %v7442_v34 = vpop.f32.mrb[27].mxu1  ;;  %v11585_v62 = vld [vmem:[#allocation2 + $0x15c] sm:$0xff]  }
 0x1a7   :  { %v3706_v41 = vrot.slane %v3705_v20, 4  ;;  %v10067_v47 = vrot.slane %v2212_v29, 9  ;;  %v2513_v50 = vrot.slane %v2213_v30, 5  ;;  %v3720_v55 = vrot.slane %v3718_v21, 5  ;;  %v2215_v22 = vld [vmem:[#allocation2 + $0x15c] sm:$0xe] }
 0x1a8   :  { %v3715_v53 = vor.u32 %v3714_v39, %v3710_v36  ;;  %v13097_v56 = vsel %vm11908_vm5, %v10195_v10, %v4402_v0  ;;  %v4404_v59 = vrot.slane %v4402_v0, 4  ;;  %v10098_v46 = vcombine.low %v13087_v26, %v13091_v19  ;;  %v13107_v1 = vpop.f32.mrb[28].mxu1  ;;  %v2216_v4 = vld [vmem:[#allocation2 + $0x160] sm:$0xf]  ;;  %v2217_v29 = vld [vmem:[#allocation2 + $0x164] sm:$0x1] }
 0x1a9   :  { %7869 = vmatmul.mubr.bf16.gmra.mrb[96].mxu1 %v10097_v2  ;;  %v3711_v12 = vsel %vm11892_vm3, %v3706_v41, %v3710_v36  ;;  %v2515_v28 = vrot.slane %v2513_v50, 4  ;;  %v2516_v60 = vrot.slane %v2214_v38, 5  ;;  %v3723_v2 = vshrl.u32 %v3080_v51, 16  ;;  %v7447_v48 = vpop.f32.mrb[29].mxu1  ;;  %v3083_v30 = vld [vmem:[#allocation2 + $0x168] sm:$0xf] }
 0x1aa   :  { %7876 = vmatprep.mubr.bf16.mxu1 %v11584_v63  ;;  %8158 = vmatmul.mubr.bf16.gmra.mrb[96].mxu0 %v10161_v5  ;;  %v3716_v52 = vrot.slane %v3715_v53, 4  ;;  %v4406_v7 = vsel %vm11908_vm5, %v4404_v59, %v4405_v6  ;;  %v3726_v44 = vshll.u32 %v3080_v51, 16  ;;  %v13112_v18 = vsel %vm11908_vm5, %v10067_v47, %v2513_v50  ;;  %v3084_v36 = vld [vmem:[#allocation2 + $0x16c] sm:$0xf]  ;;  %v13120_v38 = vpop.f32.mrb[30].mxu1 }
 0x1ab   :  { %8165 = vmatprep.mubr.bf16.mxu0 %v10226_v25  ;;  %v10227_v63 = vcombine.low %v13097_v56, %v4406_v7  ;;  %v3732_v45 = vshll.u32 %v3081_v16, 16  ;;  %v3736_v15 = vshrl.u32 %v3081_v16, 16  ;;  %v13118_v26 = vsel %vm11908_vm5, %v2515_v28, %v2516_v60  ;;  %v7450_v41 = vpop.f32.mrb[31].mxu1  ;;  %v3085_v16 = vld [vmem:[#allocation2 + $0x170] sm:$0x1] }
 0x1ac   :  { %v3721_v31 = vsel %vm11892_vm3, %v3716_v52, %v3720_v55  ;;  %v3725_v17 = vrot.slane %v3723_v2, 4  ;;  %v3728_v25 = vrot.slane %v3726_v44, 5  ;;  %v3742_v20 = vshll.u32 %v3082_v23, 16  ;;  %v13123_v53 = vpop.f32.mrb[32].mxu1  ;;  %v4110_v23 = vld [vmem:[#allocation2 + $0x174] sm:$0xe] }
 0x1ad   :  { %v10162_v3 = vcombine.low %v3711_v12, %v3721_v31  ;;  %v3734_v5 = vrot.slane %v3732_v45, 5  ;;  %v3738_v19 = vrot.slane %v3736_v15, 4  ;;  %v10196_v21 = vrot.slane %v4107_v61, 9  ;;  %v4111_v12 = vld [vmem:[#allocation2 + $0x178] sm:$0xf]  ;;  %v7455_v28 = vpop.f32.mrb[33].mxu1 }
 0x1ae   :  { %v3729_v39 = vor.u32 %v3728_v25, %v3725_v17  ;;  %v4409_v10 = vrot.slane %v4108_v24, 5  ;;  %v4412_v0 = vrot.slane %v13103_v8, 5  ;;  %v3744_v47 = vrot.slane %v3742_v20, 5  ;;  %v4112_v34 = vld [vmem:[#allocation2 + $0x17c] sm:$0x1]  ;;  %v13127_v52 = vpop.f32.mrb[34].mxu1 }
 0x1af   :  { %v3739_v6 = vor.u32 %v3738_v19, %v3734_v5  ;;  %v10068_v50 = vrot.slane %v2215_v22, 9  ;;  %v2520_v51 = vrot.slane %v2216_v4, 5  ;;  %v2523_v59 = vrot.slane %v2217_v29, 5  ;;  %v2218_v22 = vld [vmem:[#allocation2 + $0x168] sm:$0xe]  ;;  %v7458_v48 = vpop.f32.mrb[35].mxu1 }
 0x1b0   :  { %v3730_v55 = vrot.slane %v3729_v39, 4  ;;  %v4411_v56 = vrot.slane %v4409_v10, 4  ;;  %v10099_v60 = vcombine.low %v13112_v18, %v13118_v26  ;;  %v3747_v8 = vshrl.u32 %v3083_v30, 16  ;;  %v2219_v4 = vld [vmem:[#allocation2 + $0x16c] sm:$0xf] }
 0x1b1   :  { %7877 = vmatmul.mubr.bf16.gmra.mrb[100].mxu1 %v10098_v46  ;;  %v3740_v61 = vrot.slane %v3739_v6, 4  ;;  %v2522_v24 = vrot.slane %v2520_v51, 4  ;;  %v4410_v7 = vsel %vm11908_vm5, %v10196_v21, %v4409_v10  ;;  %v3750_v2 = vshll.u32 %v3083_v30, 16  ;;  %v11587_v26 = vld [vmem:[#allocation2 + $0x168] sm:$0xff]   ;;  %v2220_v29 = vld [vmem:[#allocation2 + $0x170] sm:$0x1] }
 0x1b2   :  { %7884 = vmatprep.mubr.bf16.mxu1 %v11585_v62  ;;  %8166 = vmatmul.mubr.bf16.gmra.mrb[100].mxu0 %v10162_v3  ;;  %v3735_v46 = vsel %vm11892_vm3, %v3730_v55, %v3734_v5  ;;  %v3756_v44 = vshll.u32 %v3084_v36, 16  ;;  %v4413_v18 = vsel %vm11908_vm5, %v4411_v56, %v4412_v0  ;;  %v13139_v45 = vsel %vm11908_vm5, %v10068_v50, %v2520_v51  ;;  %v3086_v20 = vld [vmem:[#allocation2 + $0x174] sm:$0xf]  ;;  %v3087_v41 = vld [vmem:[#allocation2 + $0x178] sm:$0xf]  ;;  %v13145_v6 = vpop.f32.mrb[36].mxu1 }
 0x1b3   :  { %8173 = vmatprep.mubr.bf16.mxu0 %v10227_v63  ;;  %v3745_v62 = vsel %vm11892_vm3, %v3740_v61, %v3744_v47  ;;  %v3749_v15 = vrot.slane %v3747_v8, 4  ;;  %v13143_v17 = vsel %vm11908_vm5, %v2522_v24, %v2523_v59  ;;  %v3752_v63 = vrot.slane %v3750_v2, 5  ;;  %v3088_v56 = vld [vmem:[#allocation2 + $0x17c] sm:$0x1]  ;;  %v13149_v59 = vld [vmem:[#allocation2 + $0x180] sm:$0xe] }
 0x1b4   :  { %v10163_v31 = vcombine.low %v3735_v46, %v3745_v62  ;;  %v3758_v25 = vrot.slane %v3756_v44, 5  ;;  %v3760_v30 = vshrl.u32 %v3084_v36, 16  ;;  %v3766_v3 = vshll.u32 %v3085_v16, 16  ;;  %v7463_v36 = vpop.f32.mrb[37].mxu1  ;;  %v4114_v61 = vld [vmem:[#allocation2 + $0x184] sm:$0xf] }
 0x1b5   :  { %v10197_v5 = vrot.slane %v4110_v23, 9  ;;  %v4416_v19 = vrot.slane %v4111_v12, 5  ;;  %v3753_v39 = vor.u32 %v3752_v63, %v3749_v15  ;;  %v4419_v21 = vrot.slane %v4112_v34, 5  ;;  %v13151_v24 = vpop.f32.mrb[38].mxu1  ;;  %v4115_v2 = vld [vmem:[#allocation2 + $0x188] sm:$0x1] }
 0x1b6   :  { %v10069_v10 = vrot.slane %v2218_v22, 9  ;;  %v2527_v0 = vrot.slane %v2219_v4, 5  ;;  %v10228_v47 = vcombine.low %v4410_v7, %v4413_v18  ;;  %v10100_v50 = vcombine.low %v13139_v45, %v13143_v17  ;;  %v2221_v44 = vld [vmem:[#allocation2 + $0x174] sm:$0xe] }
 0x1b7   :  { %v3762_v51 = vrot.slane %v3760_v30, 4  ;;  %v4418_v55 = vrot.slane %v4416_v19, 4  ;;  %v3754_v16 = vrot.slane %v3753_v39, 4  ;;  %v3768_v23 = vrot.slane %v3766_v3, 5  ;;  %v13170_v30 = vld [vmem:[#allocation2 + $0x17c] sm:$0x1] }
 0x1b8   :  { %v2529_v12 = vrot.slane %v2527_v0, 4  ;;  %v2530_v28 = vrot.slane %v2220_v29, 5  ;;  %v13155_v34 = vsel %vm11908_vm5, %v10197_v5, %v4416_v19  ;;  %v3771_v46 = vshrl.u32 %v3086_v20, 16  ;;  %v11588_v19 = vld [vmem:[#allocation2 + $0x174] sm:$0xff]  }
 0x1b9   :  { %7885 = vmatmul.mubr.bf16.gmra.mrb[104].mxu1 %v10099_v60  ;;  %v3763_v8 = vor.u32 %v3762_v51, %v3758_v25  ;;  %v3774_v7 = vshll.u32 %v3086_v20, 16  ;;  %v3759_v60 = vsel %vm11892_vm3, %v3754_v16, %v3758_v25  ;;  %v4420_v22 = vsel %vm11908_vm5, %v4418_v55, %v4419_v21 }
 0x1ba   :  { %7892 = vmatprep.mubr.bf16.mxu1 %v11587_v26  ;;  %8174 = vmatmul.mubr.bf16.gmra.mrb[104].mxu0 %v10163_v31  ;;  %v13163_v62 = vsel %vm11908_vm5, %v10069_v10, %v2527_v0  ;;  %v3780_v18 = vshll.u32 %v3087_v41, 16  ;;  %v13167_v15 = vsel %vm11908_vm5, %v2529_v12, %v2530_v28  ;;  %v3773_v4 = vrot.slane %v3771_v46, 4  ;;  %v2222_v31 = vld [vmem:[#allocation2 + $0x178] sm:$0xf]  ;;  %v7466_v26 = vpop.f32.mrb[39].mxu1 }
 0x1bb   :  { %8181 = vmatprep.mubr.bf16.mxu0 %v10228_v47  ;;  %v3764_v45 = vrot.slane %v3763_v8, 4  ;;  %v3776_v48 = vrot.slane %v3774_v7, 5  ;;  %v3784_v63 = vshrl.u32 %v3087_v41, 16  ;;  %v3790_v25 = vshll.u32 %v3088_v56, 16  ;;  %v13172_v3 = vpop.f32.mrb[40].mxu1 }
 0x1bc   :  { %v3782_v17 = vrot.slane %v3780_v18, 5  ;;  %v10198_v29 = vrot.slane %v13149_v59, 9  ;;  %v4423_v39 = vrot.slane %v4114_v61, 5  ;;  %v4426_v21 = vrot.slane %v4115_v2, 5  ;;  %v3089_v10 = vld [vmem:[#allocation2 + $0x180] sm:$0xf] }
 0x1bd   :  { %v3769_v5 = vsel %vm11892_vm3, %v3764_v45, %v3768_v23  ;;  %v3777_v20 = vor.u32 %v3776_v48, %v3773_v4  ;;  %v7471_v0 = vpop.f32.mrb[41].mxu1  ;;  %v10229_v51 = vcombine.low %v13155_v34, %v4420_v22  ;;  %v3786_v41 = vrot.slane %v3784_v63, 4  ;;  %v3090_v56 = vld [vmem:[#allocation2 + $0x184] sm:$0xf]  ;;  %v3091_v59 = vld [vmem:[#allocation2 + $0x188] sm:$0x1] }
 0x1be   :  { %v10164_v47 = vcombine.low %v3759_v60, %v3769_v5  ;;  %v10070_v55 = vrot.slane %v2221_v44, 9  ;;  %v13177_v36 = vpop.f32.mrb[42].mxu1  ;;  %v10101_v16 = vcombine.low %v13163_v62, %v13167_v15  ;;  %v4425_v23 = vrot.slane %v4423_v39, 4  ;;  %v13181_v8 = vld [vmem:[#allocation2 + $0x18c] sm:$0xe] }
 0x1bf   :  { %v3778_v12 = vrot.slane %v3777_v20, 4  ;;  %v2534_v28 = vrot.slane %v2222_v31, 5  ;;  %v7474_v61 = vpop.f32.mrb[43].mxu1  ;;  %v3787_v46 = vor.u32 %v3786_v41, %v3782_v17  ;;  %v3792_v7 = vrot.slane %v3790_v25, 5  ;;  %v4117_v18 = vld [vmem:[#allocation2 + $0x190] sm:$0xf] }
 0x1c0   :  { %v3795_v2 = vshrl.u32 %v3089_v10, 16  ;;  %v3798_v34 = vshll.u32 %v3089_v10, 16  ;;  %v13183_v60 = vpop.f32.mrb[44].mxu1  ;;  %v13189_v22 = vsel %vm11908_vm5, %v10198_v29, %v4423_v39  ;;  %v13193_v62 = vsel %vm11908_vm5, %v4425_v23, %v4426_v21  ;;  %v4118_v45 = vld [vmem:[#allocation2 + $0x194] sm:$0x1] }
 0x1c1   :  { %7893 = vmatmul.mubr.bf16.gmra.mrb[108].mxu1 %v10100_v50  ;;  %v3783_v44 = vsel %vm11892_vm3, %v3778_v12, %v3782_v17  ;;  %v2537_v50 = vrot.slane %v13170_v30, 5  ;;  %v13196_v15 = vld [vmem:[#allocation2 + $0x180] sm:$0xe]  ;;  %v7479_v4 = vpop.f32.mrb[45].mxu1  ;;  %v3788_v48 = vrot.slane %v3787_v46, 4  ;;  %v13200_v31 = vsel %vm11908_vm5, %v10070_v55, %v2534_v28 }
 0x1c2   :  { %7900 = vmatprep.mubr.bf16.mxu1 %v11588_v19  ;;  %8182 = vmatmul.mubr.bf16.gmra.mrb[108].mxu0 %v10164_v47  ;;  %v3797_v26 = vrot.slane %v3795_v2, 4  ;;  %v3800_v17 = vrot.slane %v3798_v34, 5  ;;  %v2225_v63 = vld [vmem:[#allocation2 + $0x184] sm:$0xf]  ;;  %v13202_v25 = vpop.f32.mrb[46].mxu1  ;;  %v2536_v29 = vrot.slane %v2534_v28, 4  ;;  %v10230_v21 = vcombine.low %v13189_v22, %v13193_v62 }
 0x1c3   :  { %8189 = vmatprep.mubr.bf16.mxu0 %v10229_v51  ;;  %v3804_v5 = vshll.u32 %v3090_v56, 16  ;;  %v3808_v30 = vshrl.u32 %v3090_v56, 16  ;;  %v3814_v19 = vshll.u32 %v3091_v59, 16  ;;  %v7482_v20 = vpop.f32.mrb[47].mxu1  ;;  %v3793_v39 = vsel %vm11892_vm3, %v3788_v48, %v3792_v7  ;;  %v2226_v47 = vld [vmem:[#allocation2 + $0x188] sm:$0x1] }
 0x1c4   :  { %v3801_v10 = vor.u32 %v3800_v17, %v3797_v26  ;;  %v10199_v0 = vrot.slane %v13181_v8, 9  ;;  %v3092_v41 = vld [vmem:[#allocation2 + $0x18c] sm:$0xf]  ;;  %v13209_v55 = vpop.f32.mrb[48].mxu1  ;;  %v10165_v12 = vcombine.low %v3783_v44, %v3793_v39  ;;  %v11592_v51 = vld [vmem:[#allocation2 + $0x180] sm:$0xff]   ;;  %v4430_v46 = vrot.slane %v4117_v18, 5 }
 0x1c5   :  { %v3806_v23 = vrot.slane %v3804_v5, 5  ;;  %v3810_v28 = vrot.slane %v3808_v30, 4  ;;  %v3816_v56 = vrot.slane %v3814_v19, 5  ;;  %v7487_v59 = vpop.f32.mrb[49].mxu1  ;;  %v4433_v2 = vrot.slane %v4118_v45, 5  ;;  %v129_v45 = vld [vmem:[%s15167_s0 + $0x330] sm:$0xff] }
 0x1c6   :  { %v3802_v61 = vrot.slane %v3801_v10, 4  ;;  %v10071_v7 = vrot.slane %v13196_v15, 9  ;;  %v3093_v34 = vld [vmem:[#allocation2 + $0x190] sm:$0xf]  ;;  %v2541_v62 = vrot.slane %v2225_v63, 5  ;;  %v2544_v4 = vrot.slane %v2226_v47, 5 }
 0x1c7   :  { %v3811_v22 = vor.u32 %v3810_v28, %v3806_v23  ;;  %v3094_v8 = vld [vmem:[#allocation2 + $0x194] sm:$0x1]  ;;  %v3819_v48 = vshrl.u32 %v3092_v41, 16  ;;  %v13212_v26 = vpop.f32.mrb[50].mxu1  ;;  %v2538_v44 = vsel %vm11908_vm5, %v2536_v29, %v2537_v50  ;;  %v4432_v5 = vrot.slane %v4430_v46, 4  ;;  %v130_v50 = vld [vmem:[%s15167_s0 + $0x338] sm:$0xff] }
 0x1c8   :  { %15202 = vst [vmem:[#allocation4_spill] sm:$0xff] %v13212_v26  ;;  %v3807_v17 = vsel %vm11892_vm3, %v3802_v61, %v3806_v23  ;;  %v3822_v18 = vshll.u32 %v3092_v41, 16  ;;  %v13223_v63 = vsel %vm11908_vm5, %v10199_v0, %v4430_v46  ;;  %v2543_v30 = vrot.slane %v2541_v62, 4  ;;  %v131_v29 = vld [vmem:[%s15167_s0 + $0x340] sm:$0xff]  ;;  %v132_v19 = vld [vmem:[%s15167_s0 + $0x348] sm:$0xff]  ;;  %v7490_v41 = vpop.f32.mrb[51].mxu1 }
 0x1c9   :  { %7901 = vmatmul.mubr.bf16.gmra.mrb[112].mxu1 %v10101_v16  ;;  %v3812_v15 = vrot.slane %v3811_v22, 4  ;;  %v3821_v16 = vrot.slane %v3819_v48, 4  ;;  %v4434_v20 = vsel %vm11908_vm5, %v4432_v5, %v4433_v2  ;;  %v3828_v10 = vshll.u32 %v3093_v34, 16  ;;  %v2227_v47 = vld [vmem:[#allocation2 + $0x18c] sm:$0xe]  ;;  %v13243_v61 = vpop.f32.mrb[52].mxu1 }
 0x1ca   :  { %7908 = vmatprep.mubr.bf16.mxu1 %v11592_v51  ;;  %8190 = vmatmul.mubr.bf16.gmra.mrb[112].mxu0 %v10165_v12  ;;  %v3824_v39 = vrot.slane %v3822_v18, 5  ;;  %v3832_v0 = vshrl.u32 %v3093_v34, 16  ;;  %v10102_v51 = vcombine.low %v13200_v31, %v2538_v44  ;;  %v13241_v28 = vsel %vm11908_vm5, %v10071_v7, %v2541_v62  ;;  %v2228_v12 = vld [vmem:[#allocation2 + $0x190] sm:$0xf]  ;;  %15203 = vst [vmem:[#allocation5_spill] sm:$0xff] %v13243_v61  ;;  %v7495_v22 = vpop.f32.mrb[53].mxu1 }
 0x1cb   :  { %8197 = vmatprep.mubr.bf16.mxu0 %v10230_v21  ;;  %v3817_v23 = vsel %vm11892_vm3, %v3812_v15, %v3816_v56  ;;  %v3838_v59 = vshll.u32 %v3094_v8, 16  ;;  %v10231_v46 = vcombine.low %v13223_v63, %v4434_v20  ;;  %v13248_v2 = vsel %vm11908_vm5, %v2543_v30, %v2544_v4  ;;  %v2229_v31 = vld [vmem:[#allocation2 + $0x194] sm:$0x1]  ;;  %v11595_v56 = vld [vmem:[#allocation2 + $0x18c] sm:$0xff]   ;;  %v4891_v62 = vld [vmem:[#allocation2 + $0x18] sm:$0xf] }
 0x1cc   :  { %v3825_v21 = vor.u32 %v3824_v39, %v3821_v16  ;;  %v3830_v34 = vrot.slane %v3828_v10, 5  ;;  %v10166_v48 = vcombine.low %v3807_v17, %v3817_v23  ;;  %v3834_v44 = vrot.slane %v3832_v0, 4  ;;  %v4892_v61 = vld [vmem:[#allocation2 + $0x1c] sm:$0xf]  ;;  %v4893_v30 = vld [vmem:[#allocation2 + $0x20] sm:$0x1] }
 0x1cd   :  { %v237_v5 = vmax.f32 %v129_v45, 0.0  ;;  %v238_v7 = vmax.f32 %v130_v50, 0.0  ;;  %v3840_v18 = vrot.slane %v3838_v59, 5  ;;  %v239_v15 = vmax.f32 %v131_v29, 0.0  ;;  %v5915_v16 = vld [vmem:[#allocation2 + $0x18] sm:$0xe] }
 0x1ce   :  { %v3826_v8 = vrot.slane %v3825_v21, 4  ;;  %v240_v41 = vmax.f32 %v132_v19, 0.0  ;;  %v3835_v63 = vor.u32 %v3834_v44, %v3830_v34  ;;  %v10072_v26 = vrot.slane %v2227_v47, 9  ;;  %v5916_v0 = vld [vmem:[#allocation2 + $0x1c] sm:$0xf] }
 0x1cf   :  { %v10808_v20 = vpack.c.bf16 %v238_v7, %v237_v5  ;;  %v2548_v4 = vrot.slane %v2228_v12, 5  ;;  %v2551_v10 = vrot.slane %v2229_v31, 5  ;;  %v4988_v17 = vshrl.u32 %v4891_v62, 16  ;;  %v5917_v45 = vld [vmem:[#allocation2 + $0x20] sm:$0x1]  ;;  %v13254_v12 = vpop.f32.mrb[54].mxu1 }
 0x1d0   :  { %v10813_v39 = vpack.c.bf16 %v240_v41, %v239_v15  ;;  %v4991_v23 = vshll.u32 %v4891_v62, 16  ;;  %v3831_v50 = vsel %vm11892_vm3, %v3826_v8, %v3830_v34  ;;  %v3836_v29 = vrot.slane %v3835_v63, 4  ;;  %v5918_v21 = vld [vmem:[#allocation2 + $0x24] sm:$0xe]  ;;  %v13252_v47 = vld [vmem:[#allocation2 + $0x28] sm:$0xf] }
 0x1d1   :  { %7909 = vmatmul.mubr.bf16.gmra.mrb[116].mxu1 %v10102_v51  ;;  %10870 = vst [vmem:[#allocation2 + $0x198] sm:$0xff] %v10808_v20   ;;  %v2550_v19 = vrot.slane %v2548_v4, 4  ;;  %v4997_v59 = vshll.u32 %v4892_v61, 16  ;;  %15204 = vst [vmem:[#allocation6_spill] sm:$0xff] %v13254_v12  ;;  %v4990_v51 = vrot.slane %v4988_v17, 4  ;;  %v5001_v22 = vshrl.u32 %v4892_v61, 16 }
 0x1d2   :  { %7916 = vmatprep.mubr.bf16.mxu1 %v11595_v56  ;;  %8198 = vmatmul.mubr.bf16.gmra.mrb[116].mxu0 %v10166_v48  ;;  %10871 = vst [vmem:[#allocation2 + $0x1a0] sm:$0xff] %v10813_v39   ;;  %v4993_v31 = vrot.slane %v4991_v23, 5  ;;  %v5007_v44 = vshll.u32 %v4893_v30, 16  ;;  %v13256_v5 = vld [vmem:[#allocation2 + $0x2c] sm:$0x1]  ;;  %v10103_v34 = vcombine.low %v13241_v28, %v13248_v2  ;;  %v3841_v56 = vsel %vm11892_vm3, %v3836_v29, %v3840_v18  ;;  %v7498_v41 = vpop.f32.mrb[55].mxu1 }
 0x1d3   :  { %8205 = vmatprep.mubr.bf16.mxu0 %v10231_v46  ;;  %v13264_v7 = vsel %vm11908_vm5, %v10072_v26, %v2548_v4  ;;  %v13266_v62 = vrot.slane %v4997_v59, 5  ;;  %v13270_v48 = vsel %vm11908_vm5, %v2550_v19, %v2551_v10  ;;  %v5003_v8 = vrot.slane %v5001_v22, 4  ;;  %v13272_v46 = vld [vmem:[#allocation2 + $0x24] sm:$0xf]  ;;  %v13274_v20 = vpop.f32.mrb[56].mxu1 }
 0x1d4   :  { %v4994_v61 = vor.u32 %v4993_v31, %v4990_v51  ;;  %v10297_v15 = vrot.slane %v5915_v16, 9  ;;  %v10167_v28 = vcombine.low %v3831_v50, %v3841_v56  ;;  %v5009_v2 = vrot.slane %v5007_v44, 5  ;;  %15205 = vst [vmem:[#allocation7_spill] sm:$0xff] %v13274_v20  ;;  %v7503_v10 = vpop.f32.mrb[57].mxu1 }
 0x1d5   :  { %v6109_v63 = vrot.slane %v5916_v0, 5  ;;  %v6112_v18 = vrot.slane %v5917_v45, 5  ;;  %v5004_v4 = vor.u32 %v5003_v8, %v13266_v62  ;;  %v10298_v30 = vrot.slane %v5918_v21, 9  ;;  %v13281_v50 = vpop.f32.mrb[58].mxu1  ;;  %v4896_v10 = vld [vmem:[#allocation2 + $0x2c] sm:$0x1] }
 0x1d6   :  { %v4995_v26 = vrot.slane %v4994_v61, 4  ;;  %v6116_v39 = vrot.slane %v13252_v47, 5  ;;  %v6119_v23 = vrot.slane %v13256_v5, 5  ;;  %v5012_v16 = vshrl.u32 %v13272_v46, 16  ;;  %15206 = vst [vmem:[#allocation8_spill] sm:$0xff] %v13281_v50  ;;  %v7506_v8 = vpop.f32.mrb[59].mxu1 }
 0x1d7   :  { %v6111_v17 = vrot.slane %v6109_v63, 4  ;;  %v5015_v29 = vshll.u32 %v13272_v46, 16  ;;  %v5005_v45 = vrot.slane %v5004_v4, 4  ;;  %v6110_v19 = vsel %vm11908_vm5, %v10297_v15, %v6109_v63  ;;  %v4895_v63 = vld [vmem:[#allocation2 + $0x28] sm:$0xf] }
 0x1d8   :  { %v11599_v0 = vld [vmem:[#allocation2 + $0x198] sm:$0xff]   ;;  %v10104_v47 = vcombine.low %v13264_v7, %v13270_v48  ;;  %v5000_v31 = vsel %vm11892_vm3, %v4995_v26, %v13266_v62  ;;  %v13294_v61 = vsel %vm11908_vm5, %v10298_v30, %v6116_v39 }
 0x1d9   :  { %7917 = vmatmul.mubr.bf16.gmra.mrb[120].mxu1 %v10103_v34  ;;  %v4119_v59 = vld [vmem:[#allocation2 + $0x198] sm:$0xe]  ;;  %v4120_v21 = vld [vmem:[#allocation2 + $0x19c] sm:$0xf]  ;;  %v4121_v51 = vld [vmem:[#allocation2 + $0x1a0] sm:$0x1]  ;;  %v6113_v22 = vsel %vm11908_vm5, %v6111_v17, %v6112_v18  ;;  %v5010_v62 = vsel %vm11892_vm3, %v5005_v45, %v5009_v2 }
 0x1da   :  { %8206 = vmatmul.mubr.bf16.gmra.mrb[120].mxu0 %v10167_v28  ;;  %7924 = vmatprep.mubr.bf16.mxu1 %v11599_v0  ;;  %v10200_v44 = vrot.slane %v4119_v59, 9  ;;  %v4437_v5 = vrot.slane %v4120_v21, 5  ;;  %v4440_v34 = vrot.slane %v4121_v51, 5  ;;  %v3095_v56 = vld [vmem:[#allocation2 + $0x198] sm:$0xf]  ;;  %v10329_v41 = vcombine.low %v6110_v19, %v6113_v22  ;;  %v13300_v17 = vpop.f32.mrb[60].mxu1 }
 0x1db   :  { %v3096_v15 = vld [vmem:[#allocation2 + $0x19c] sm:$0xf]  ;;  %v3097_v7 = vld [vmem:[#allocation2 + $0x1a0] sm:$0x1]  ;;  %v3843_v48 = vshrl.u32 %v3095_v56, 16  ;;  %v3846_v46 = vshll.u32 %v3095_v56, 16  ;;  %v10265_v50 = vcombine.low %v5000_v31, %v5010_v62 }
 0x1dc   :  { %v4438_v28 = vsel %vm11908_vm5, %v10200_v44, %v4437_v5  ;;  %v4439_v18 = vrot.slane %v4437_v5, 4  ;;  %v3852_v26 = vshll.u32 %v3096_v15, 16  ;;  %v3856_v4 = vshrl.u32 %v3096_v15, 16  ;;  %15207 = vst [vmem:[#allocation9_spill] sm:$0xff] %v13300_v17  ;;  %v4897_v19 = vld [vmem:[#allocation2 + $0x30] sm:$0xf] }
 0x1dd   :  { %v3845_v30 = vrot.slane %v3843_v48, 4  ;;  %v3848_v0 = vrot.slane %v3846_v46, 5  ;;  %v3862_v59 = vshll.u32 %v3097_v7, 16  ;;  %v6118_v21 = vrot.slane %v6116_v39, 4  ;;  %v7511_v22 = vpop.f32.mrb[61].mxu1 }
 0x1de   :  { %v4441_v51 = vsel %vm11908_vm5, %v4439_v18, %v4440_v34  ;;  %v3854_v56 = vrot.slane %v3852_v26, 5  ;;  %v3858_v2 = vrot.slane %v3856_v4, 4  ;;  %v5014_v45 = vrot.slane %v5012_v16, 4  ;;  %v13304_v15 = vpop.f32.mrb[62].mxu1  ;;  %v4898_v46 = vld [vmem:[#allocation2 + $0x34] sm:$0xf] }
 0x1df   :  { %v10232_v8 = vcombine.low %v4438_v28, %v4441_v51  ;;  %v3849_v44 = vor.u32 %v3848_v0, %v3845_v30  ;;  %v3864_v5 = vrot.slane %v3862_v59, 5  ;;  %15208 = vst [vmem:[#allocation10_spill] sm:$0xff] %v13304_v15  ;;  %v6120_v7 = vsel %vm11908_vm5, %v6118_v21, %v6119_v23  ;;  %v5921_v28 = vld [vmem:[#allocation2 + $0x30] sm:$0xe]  ;;  %v5922_v0 = vld [vmem:[#allocation2 + $0x34] sm:$0xf] }
 0x1e0   :  { %v3859_v17 = vor.u32 %v3858_v2, %v3854_v56  ;;  %v5017_v39 = vrot.slane %v5015_v29, 5  ;;  %v5021_v48 = vshll.u32 %v4895_v63, 16  ;;  %v5025_v16 = vshrl.u32 %v4895_v63, 16  ;;  %v4899_v21 = vld [vmem:[#allocation2 + $0x38] sm:$0x1] }
 0x1e1   :  { %7925 = vmatmul.mubr.bf16.gmra.mrb[124].mxu1 %v10104_v47  ;;  %8213 = vmatprep.mubr.bf16.mxu0 %v10232_v8  ;;  %v3850_v34 = vrot.slane %v3849_v44, 4  ;;  %v5031_v18 = vshll.u32 %v4896_v10, 16  ;;  %v5036_v26 = vshrl.u32 %v4897_v19, 16  ;;  %v5039_v62 = vshll.u32 %v4897_v19, 16  ;;  %v7514_v47 = vpop.f32.mrb[63].mxu1 }
 0x1e2   :  { %10969 = vmatprep.mubr.bf16.mxu1 %v10329_v41  ;;  %v3860_v4 = vrot.slane %v3859_v17, 4  ;;  %v5018_v30 = vor.u32 %v5017_v39, %v5014_v45  ;;  %v5023_v31 = vrot.slane %v5021_v48, 5  ;;  %v10330_v23 = vcombine.low %v13294_v61, %v6120_v7  ;;  %v5923_v2 = vld [vmem:[#allocation2 + $0x38] sm:$0x1]  ;;  %v5924_v41 = vld [vmem:[#allocation2 + $0x3c] sm:$0xe] }
 0x1e3   :  { %v3855_v59 = vsel %vm11892_vm3, %v3850_v34, %v3854_v56  ;;  %v5027_v29 = vrot.slane %v5025_v16, 4  ;;  %v5038_v51 = vrot.slane %v5036_v26, 4  ;;  %v5041_v17 = vrot.slane %v5039_v62, 5  ;;  %v5925_v22 = vld [vmem:[#allocation2 + $0x40] sm:$0xf] }
 0x1e4   :  { %v3865_v63 = vsel %vm11892_vm3, %v3860_v4, %v3864_v5  ;;  %v5019_v10 = vrot.slane %v5018_v30, 4  ;;  %v5045_v45 = vshll.u32 %v4898_v46, 16  ;;  %v5033_v44 = vrot.slane %v5031_v18, 5  ;;  %v5926_v7 = vld [vmem:[#allocation2 + $0x44] sm:$0x1] }
 0x1e5   :  { %v10168_v19 = vcombine.low %v3855_v59, %v3865_v63  ;;  %v5028_v8 = vor.u32 %v5027_v29, %v5023_v31  ;;  %v5049_v39 = vshrl.u32 %v4898_v46, 16  ;;  %v5042_v48 = vor.u32 %v5041_v17, %v5038_v51  ;;  %v4900_v4 = vld [vmem:[#allocation2 + $0x3c] sm:$0xf]  ;;  %v4903_v17 = vld [vmem:[#allocation2 + $0x48] sm:$0xf] }
 0x1e6   :  { %v13313_v56 = vrot.slane %v5045_v45, 5  ;;  %v10299_v61 = vrot.slane %v5921_v28, 9  ;;  %v5024_v34 = vsel %vm11892_vm3, %v5019_v10, %v5023_v31  ;;  %v6123_v5 = vrot.slane %v5922_v0, 5  ;;  %v4901_v31 = vld [vmem:[#allocation2 + $0x40] sm:$0xf]  ;;  %v11602_v51 = vld [vmem:[#allocation2 + $0x18] sm:$0xff]  }
 0x1e7   :  { %8214 = vmatmul.mubr.bf16.gmra.mrb[124].mxu0 %v10168_v19  ;;  %v5029_v16 = vrot.slane %v5028_v8, 4  ;;  %v5051_v26 = vrot.slane %v5049_v39, 4  ;;  %v5055_v30 = vshll.u32 %v4899_v21, 16  ;;  %v6126_v62 = vrot.slane %v5923_v2, 5  ;;  %v4902_v2 = vld [vmem:[#allocation2 + $0x44] sm:$0x1] }
 0x1e8   :  { %8254 = vmatprep.mubr.bf16.mxu0 %v10265_v50  ;;  %v10300_v47 = vrot.slane %v5924_v41, 9  ;;  %v6130_v18 = vrot.slane %v5925_v22, 5  ;;  %v6124_v59 = vsel %vm11908_vm5, %v10299_v61, %v6123_v5  ;;  %v6125_v29 = vrot.slane %v6123_v5, 4  ;;  %v5944_v15 = vld [vmem:[#allocation2 + $0x8c] sm:$0x1] }
 0x1e9   :  { %10970 = vmatmul.mubr.bf16.vlgmr.msra.gmra.mrb[128].mxu1 %v10330_v23  ;;  %v5034_v46 = vsel %vm11892_vm3, %v5029_v16, %v5033_v44  ;;  %v5052_v28 = vor.u32 %v5051_v26, %v13313_v56  ;;  %v5043_v0 = vrot.slane %v5042_v48, 4  ;;  %v6133_v21 = vrot.slane %v5926_v7, 5  ;;  %v4904_v44 = vld [vmem:[#allocation2 + $0x4c] sm:$0xf]  ;;  %v5927_v16 = vld [vmem:[#allocation2 + $0x48] sm:$0xe] }
 0x1ea   :  { %v10266_v63 = vcombine.low %v5024_v34, %v5034_v46  ;;  %v6132_v10 = vrot.slane %v6130_v18, 4  ;;  %v6127_v50 = vsel %vm11908_vm5, %v6125_v29, %v6126_v62  ;;  %v6131_v23 = vsel %vm11908_vm5, %v10300_v47, %v6130_v18  ;;  %v5928_v47 = vld [vmem:[#allocation2 + $0x4c] sm:$0xf]  ;;  %v5929_v29 = vld [vmem:[#allocation2 + $0x50] sm:$0x1] }
 0x1eb   :  { %v5060_v41 = vshrl.u32 %v4900_v4, 16  ;;  %v10331_v45 = vcombine.low %v6124_v59, %v6127_v50  ;;  %v5063_v22 = vshll.u32 %v4900_v4, 16  ;;  %v5069_v19 = vshll.u32 %v4901_v31, 16 }
 0x1ec   :  { %v5073_v8 = vshrl.u32 %v4901_v31, 16  ;;  %v5053_v39 = vrot.slane %v5052_v28, 4  ;;  %v5057_v61 = vrot.slane %v5055_v30, 5  ;;  %v6134_v48 = vsel %vm11908_vm5, %v6132_v10, %v6133_v21  ;;  %v5930_v21 = vld [vmem:[#allocation2 + $0x54] sm:$0xe] }
 0x1ed   :  { %v5062_v34 = vrot.slane %v5060_v41, 4  ;;  %10973 = vmatprep.mubr.bf16.mxu1 %v10331_v45  ;;  %v10332_v26 = vcombine.low %v6131_v23, %v6134_v48  ;;  %v5065_v5 = vrot.slane %v5063_v22, 5  ;;  %v13328_v62 = vrot.slane %v5069_v19, 5  ;;  %v4905_v23 = vld [vmem:[#allocation2 + $0x50] sm:$0x1]  ;;  %v11603_v41 = vld [vmem:[#allocation2 + $0x24] sm:$0xff]  }
 0x1ee   :  { %v5079_v7 = vshll.u32 %v4902_v2, 16  ;;  %v5075_v18 = vrot.slane %v5073_v8, 4  ;;  %v5084_v4 = vshrl.u32 %v4903_v17, 16  ;;  %v5087_v46 = vshll.u32 %v4903_v17, 16  ;;  %v5931_v2 = vld [vmem:[#allocation2 + $0x58] sm:$0xf] }
 0x1ef   :  { %8255 = vmatmul.mubr.bf16.vlgmr.msra.gmra.mrb[0].mxu0 %v11602_v51  ;;  %v5048_v30 = vsel %vm11892_vm3, %v5043_v0, %v13313_v56  ;;  %v5093_v28 = vshll.u32 %v4904_v44, 16  ;;  %v5097_v59 = vshrl.u32 %v4904_v44, 16  ;;  %v5058_v31 = vsel %vm11892_vm3, %v5053_v39, %v5057_v61  ;;  %v5932_v22 = vld [vmem:[#allocation2 + $0x5c] sm:$0x1]  ;;  %v4906_v44 = vld [vmem:[#allocation2 + $0x54] sm:$0xf] }
 0x1f0   :  { %8262 = vmatprep.mubr.bf16.mxu0 %v10266_v63  ;;  %v5066_v10 = vor.u32 %v5065_v5, %v5062_v34  ;;  %v5076_v50 = vor.u32 %v5075_v18, %v13328_v62  ;;  %v10301_v51 = vrot.slane %v5927_v16, 9  ;;  %v5081_v63 = vrot.slane %v5079_v7, 5  ;;  %v4907_v18 = vld [vmem:[#allocation2 + $0x58] sm:$0xf] }
 0x1f1   :  { %10974 = vmatmul.mubr.bf16.gmra.mrb[132].mxu1 %v10332_v26  ;;  %v5086_v17 = vrot.slane %v5084_v4, 4  ;;  %v5089_v45 = vrot.slane %v5087_v46, 5  ;;  %v13336_v56 = vrot.slane %v5093_v28, 5  ;;  %v5099_v0 = vrot.slane %v5097_v59, 4 }
 0x1f2   :  { %v6137_v19 = vrot.slane %v5928_v47, 5  ;;  %v6140_v8 = vrot.slane %v5929_v29, 5  ;;  %v10267_v48 = vcombine.low %v5048_v30, %v5058_v31  ;;  %v10302_v39 = vrot.slane %v5930_v21, 9  ;;  %v4909_v21 = vld [vmem:[#allocation2 + $0x60] sm:$0xf] }
 0x1f3   :  { %v6144_v61 = vrot.slane %v5931_v2, 5  ;;  %v5067_v34 = vrot.slane %v5066_v10, 4  ;;  %v5077_v26 = vrot.slane %v5076_v50, 4  ;;  %v5090_v7 = vor.u32 %v5089_v45, %v5086_v17  ;;  %v4908_v10 = vld [vmem:[#allocation2 + $0x5c] sm:$0x1] }
 0x1f4   :  { %v6138_v16 = vsel %vm11908_vm5, %v10301_v51, %v6137_v19  ;;  %v6139_v5 = vrot.slane %v6137_v19, 4  ;;  %v5103_v4 = vshll.u32 %v4905_v23, 16  ;;  %v6147_v30 = vrot.slane %v5932_v22, 5  ;;  %v4910_v45 = vld [vmem:[#allocation2 + $0x64] sm:$0xf] }
 0x1f5   :  { %v6146_v46 = vrot.slane %v6144_v61, 4  ;;  %v6145_v47 = vsel %vm11908_vm5, %v10302_v39, %v6144_v61  ;;  %v5108_v59 = vshrl.u32 %v4906_v44, 16  ;;  %v5100_v29 = vor.u32 %v5099_v0, %v13336_v56 }
 0x1f6   :  { %v6141_v28 = vsel %vm11908_vm5, %v6139_v5, %v6140_v8  ;;  %v5111_v50 = vshll.u32 %v4906_v44, 16  ;;  %v5117_v51 = vshll.u32 %v4907_v18, 16  ;;  %v5072_v23 = vsel %vm11892_vm3, %v5067_v34, %v13328_v62  ;;  %v5933_v8 = vld [vmem:[#allocation2 + $0x60] sm:$0xe]  ;;  %v11604_v44 = vld [vmem:[#allocation2 + $0x30] sm:$0xff]  }
 0x1f7   :  { %8263 = vmatmul.mubr.bf16.gmra.mrb[4].mxu0 %v11603_v41  ;;  %v10333_v31 = vcombine.low %v6138_v16, %v6141_v28  ;;  %v5082_v2 = vsel %vm11892_vm3, %v5077_v26, %v5081_v63  ;;  %v6148_v41 = vsel %vm11908_vm5, %v6146_v46, %v6147_v30  ;;  %v5121_v17 = vshrl.u32 %v4907_v18, 16  ;;  %v5934_v16 = vld [vmem:[#allocation2 + $0x64] sm:$0xf]  ;;  %v5935_v26 = vld [vmem:[#allocation2 + $0x68] sm:$0x1] }
 0x1f8   :  { %8270 = vmatprep.mubr.bf16.mxu0 %v10267_v48  ;;  %v10334_v22 = vcombine.low %v6145_v47, %v6148_v41  ;;  %v5110_v0 = vrot.slane %v5108_v59, 4  ;;  %v5113_v19 = vrot.slane %v5111_v50, 5  ;;  %v5091_v48 = vrot.slane %v5090_v7, 4  ;;  %v5936_v28 = vld [vmem:[#allocation2 + $0x6c] sm:$0xe] }
 0x1f9   :  { %10977 = vmatprep.mubr.bf16.mxu1 %v10333_v31  ;;  %v13352_v39 = vrot.slane %v5117_v51, 5  ;;  %v5123_v61 = vrot.slane %v5121_v17, 4  ;;  %v10268_v62 = vcombine.low %v5072_v23, %v5082_v2  ;;  %v5101_v34 = vrot.slane %v5100_v29, 4  ;;  %v5937_v30 = vld [vmem:[#allocation2 + $0x70] sm:$0xf] }
 0x1fa   :  { %v5105_v5 = vrot.slane %v5103_v4, 5  ;;  %10978 = vmatmul.mubr.bf16.gmra.mrb[136].mxu1 %v10334_v22  ;;  %v5127_v63 = vshll.u32 %v4908_v10, 16  ;;  %v5132_v46 = vshrl.u32 %v4909_v21, 16  ;;  %v5135_v18 = vshll.u32 %v4909_v21, 16  ;;  %v4911_v29 = vld [vmem:[#allocation2 + $0x68] sm:$0x1] }
 0x1fb   :  { %v5114_v47 = vor.u32 %v5113_v19, %v5110_v0  ;;  %v5141_v59 = vshll.u32 %v4910_v45, 16  ;;  %v5145_v31 = vshrl.u32 %v4910_v45, 16  ;;  %v10303_v50 = vrot.slane %v5933_v8, 9  ;;  %v5938_v2 = vld [vmem:[#allocation2 + $0x74] sm:$0x1] }
 0x1fc   :  { %v5096_v7 = vsel %vm11892_vm3, %v5091_v48, %v13336_v56  ;;  %v5124_v51 = vor.u32 %v5123_v61, %v13352_v39  ;;  %v6151_v4 = vrot.slane %v5934_v16, 5  ;;  %v6154_v23 = vrot.slane %v5935_v26, 5  ;;  %v4912_v56 = vld [vmem:[#allocation2 + $0x6c] sm:$0xf]  ;;  %v11605_v16 = vld [vmem:[#allocation2 + $0x3c] sm:$0xff]  }
 0x1fd   :  { %v5106_v10 = vsel %vm11892_vm3, %v5101_v34, %v5105_v5  ;;  %v5129_v21 = vrot.slane %v5127_v63, 5  ;;  %v10304_v41 = vrot.slane %v5936_v28, 9  ;;  %v6158_v17 = vrot.slane %v5937_v30, 5  ;;  %v4913_v26 = vld [vmem:[#allocation2 + $0x70] sm:$0xf] }
 0x1fe   :  { %v5134_v45 = vrot.slane %v5132_v46, 4  ;;  %v5137_v22 = vrot.slane %v5135_v18, 5  ;;  %v6152_v0 = vsel %vm11908_vm5, %v10303_v50, %v6151_v4  ;;  %v6153_v19 = vrot.slane %v6151_v4, 4 }
 0x1ff   :  { %8271 = vmatmul.mubr.bf16.gmra.mrb[8].mxu0 %v11604_v44  ;;  %v5115_v8 = vrot.slane %v5114_v47, 4  ;;  %v13362_v44 = vrot.slane %v5141_v59, 5  ;;  %v5147_v48 = vrot.slane %v5145_v31, 4  ;;  %v6160_v61 = vrot.slane %v6158_v17, 4 }
 0x200   :  { %8278 = vmatprep.mubr.bf16.mxu0 %v10268_v62  ;;  %v5125_v62 = vrot.slane %v5124_v51, 4  ;;  %v6155_v34 = vsel %vm11908_vm5, %v6153_v19, %v6154_v23  ;;  %v6159_v5 = vsel %vm11908_vm5, %v10304_v41, %v6158_v17  ;;  %v6161_v63 = vrot.slane %v5938_v2, 5  ;;  %v4916_v2 = vld [vmem:[#allocation2 + $0x7c] sm:$0xf]  ;;  %v5939_v41 = vld [vmem:[#allocation2 + $0x78] sm:$0xe] }
 0x201   :  { %v10269_v46 = vcombine.low %v5096_v7, %v5106_v10  ;;  %v5151_v18 = vshll.u32 %v4911_v29, 16  ;;  %v10335_v28 = vcombine.low %v6152_v0, %v6155_v34  ;;  %v5138_v30 = vor.u32 %v5137_v22, %v5134_v45  ;;  %v4915_v10 = vld [vmem:[#allocation2 + $0x78] sm:$0xf]  ;;  %v5940_v17 = vld [vmem:[#allocation2 + $0x7c] sm:$0xf]  ;;  %v11606_v34 = vld [vmem:[#allocation2 + $0x48] sm:$0xff]  }
 0x202   :  { %v6162_v47 = vsel %vm11908_vm5, %v6160_v61, %v6161_v63  ;;  %v5156_v59 = vshrl.u32 %v4912_v56, 16  ;;  %v5159_v31 = vshll.u32 %v4912_v56, 16  ;;  %v5165_v51 = vshll.u32 %v4913_v26, 16  ;;  %v5941_v45 = vld [vmem:[#allocation2 + $0x80] sm:$0x1] }
 0x203   :  { %10981 = vmatprep.mubr.bf16.mxu1 %v10335_v28  ;;  %v10336_v50 = vcombine.low %v6159_v5, %v6162_v47  ;;  %v5169_v4 = vshrl.u32 %v4913_v26, 16  ;;  %v5120_v23 = vsel %vm11892_vm3, %v5115_v8, %v13352_v39  ;;  %v5130_v7 = vsel %vm11892_vm3, %v5125_v62, %v5129_v21  ;;  %v5942_v22 = vld [vmem:[#allocation2 + $0x84] sm:$0xe]  ;;  %v4914_v8 = vld [vmem:[#allocation2 + $0x74] sm:$0x1] }
 0x204   :  { %v5148_v29 = vor.u32 %v5147_v48, %v13362_v44  ;;  %v5139_v0 = vrot.slane %v5138_v30, 4  ;;  %v5153_v19 = vrot.slane %v5151_v18, 5  ;;  %v5158_v56 = vrot.slane %v5156_v59, 4  ;;  %v4917_v63 = vld [vmem:[#allocation2 + $0x80] sm:$0x1] }
 0x205   :  { %10982 = vmatmul.mubr.bf16.gmra.mrb[140].mxu1 %v10336_v50  ;;  %v5161_v61 = vrot.slane %v5159_v31, 5  ;;  %v10270_v39 = vcombine.low %v5120_v23, %v5130_v7  ;;  %v13376_v5 = vrot.slane %v5165_v51, 5  ;;  %v5171_v21 = vrot.slane %v5169_v4, 4 }
 0x206   :  { %v10305_v48 = vrot.slane %v5939_v41, 9  ;;  %v5149_v62 = vrot.slane %v5148_v29, 4  ;;  %v5180_v26 = vshrl.u32 %v4915_v10, 16  ;;  %v6168_v28 = vrot.slane %v5941_v45, 5 }
 0x207   :  { %8279 = vmatmul.mubr.bf16.gmra.mrb[12].mxu0 %v11605_v16  ;;  %v5943_v16 = vld [vmem:[#allocation2 + $0x88] sm:$0xf]  ;;  %v5183_v47 = vshll.u32 %v4915_v10, 16  ;;  %v5189_v50 = vshll.u32 %v4916_v2, 16  ;;  %v10306_v30 = vrot.slane %v5942_v22, 9  ;;  %v5162_v59 = vor.u32 %v5161_v61, %v5158_v56 }
 0x208   :  { %8286 = vmatprep.mubr.bf16.mxu0 %v10269_v46  ;;  %v6165_v46 = vrot.slane %v5940_v17, 5  ;;  %v6172_v18 = vrot.slane %v5943_v16, 5  ;;  %v5193_v31 = vshrl.u32 %v4916_v2, 16  ;;  %v5144_v51 = vsel %vm11892_vm3, %v5139_v0, %v13362_v44 }
 0x209   :  { %v5172_v4 = vor.u32 %v5171_v21, %v13376_v5  ;;  %v5175_v29 = vshll.u32 %v4914_v8, 16  ;;  %v5154_v10 = vsel %vm11892_vm3, %v5149_v62, %v5153_v19  ;;  %v6175_v45 = vrot.slane %v5944_v15, 5  ;;  %v11607_v62 = vld [vmem:[#allocation2 + $0x54] sm:$0xff]  }
 0x20a   :  { %v6166_v23 = vsel %vm11908_vm5, %v10305_v48, %v6165_v46  ;;  %v6167_v7 = vrot.slane %v6165_v46, 4  ;;  %v6174_v41 = vrot.slane %v6172_v18, 4  ;;  %v6173_v2 = vsel %vm11908_vm5, %v10306_v30, %v6172_v18  ;;  %v4918_v46 = vld [vmem:[#allocation2 + $0x84] sm:$0xf] }
 0x20b   :  { %v5182_v22 = vrot.slane %v5180_v26, 4  ;;  %v5185_v56 = vrot.slane %v5183_v47, 5  ;;  %v5199_v61 = vshll.u32 %v4917_v63, 16  ;;  %v5163_v0 = vrot.slane %v5162_v59, 4  ;;  %v5946_v26 = vld [vmem:[#allocation2 + $0x94] sm:$0xf] }
 0x20c   :  { %v6169_v17 = vsel %vm11908_vm5, %v6167_v7, %v6168_v28  ;;  %v13390_v16 = vrot.slane %v5189_v50, 5  ;;  %v5195_v8 = vrot.slane %v5193_v31, 4  ;;  %v5173_v19 = vrot.slane %v5172_v4, 4  ;;  %v5945_v28 = vld [vmem:[#allocation2 + $0x90] sm:$0xe] }
 0x20d   :  { %v10337_v44 = vcombine.low %v6166_v23, %v6169_v17  ;;  %v5177_v21 = vrot.slane %v5175_v29, 5  ;;  %v10271_v15 = vcombine.low %v5144_v51, %v5154_v10  ;;  %v5947_v63 = vld [vmem:[#allocation2 + $0x98] sm:$0x1]  ;;  %v5168_v47 = vsel %vm11892_vm3, %v5163_v0, %v13376_v5  ;;  %v5948_v59 = vld [vmem:[#allocation2 + $0x9c] sm:$0xe] }
 0x20e   :  { %v5186_v50 = vor.u32 %v5185_v56, %v5182_v22  ;;  %v5196_v30 = vor.u32 %v5195_v8, %v13390_v16  ;;  %v5201_v18 = vrot.slane %v5199_v61, 5  ;;  %v5949_v31 = vld [vmem:[#allocation2 + $0xa0] sm:$0xf]  ;;  %v5204_v7 = vshrl.u32 %v4918_v46, 16  ;;  %v4922_v0 = vld [vmem:[#allocation2 + $0x94] sm:$0xf] }
 0x20f   :  { %8287 = vmatmul.mubr.bf16.gmra.mrb[16].mxu0 %v11606_v34  ;;  %v6176_v34 = vsel %vm11908_vm5, %v6174_v41, %v6175_v45  ;;  %10985 = vmatprep.mubr.bf16.mxu1 %v10337_v44  ;;  %v5178_v23 = vsel %vm11892_vm3, %v5173_v19, %v5177_v21  ;;  %v5207_v4 = vshll.u32 %v4918_v46, 16  ;;  %v10307_v51 = vrot.slane %v5945_v28, 9  ;;  %v11608_v22 = vld [vmem:[#allocation2 + $0x60] sm:$0xff]   ;;  %v4921_v44 = vld [vmem:[#allocation2 + $0x90] sm:$0xf] }
 0x210   :  { %8294 = vmatprep.mubr.bf16.mxu0 %v10270_v39  ;;  %v10338_v48 = vcombine.low %v6173_v2, %v6176_v34  ;;  %v4919_v39 = vld [vmem:[#allocation2 + $0x88] sm:$0xf]  ;;  %v6179_v10 = vrot.slane %v5946_v26, 5  ;;  %v6182_v17 = vrot.slane %v5947_v63, 5  ;;  %v5950_v2 = vld [vmem:[#allocation2 + $0xa4] sm:$0x1]  ;;  %v10272_v56 = vcombine.low %v5168_v47, %v5178_v23 }
 0x211   :  { %v5213_v29 = vshll.u32 %v4919_v39, 16  ;;  %v5217_v41 = vshrl.u32 %v4919_v39, 16  ;;  %v10308_v5 = vrot.slane %v5948_v59, 9  ;;  %v6186_v45 = vrot.slane %v5949_v31, 5  ;;  %v4920_v46 = vld [vmem:[#allocation2 + $0x8c] sm:$0x1] }
 0x212   :  { %10986 = vmatmul.mubr.bf16.gmra.mrb[144].mxu1 %v10338_v48  ;;  %v5187_v61 = vrot.slane %v5186_v50, 4  ;;  %v6180_v8 = vsel %vm11908_vm5, %v10307_v51, %v6179_v10  ;;  %v6181_v34 = vrot.slane %v6179_v10, 4  ;;  %v5197_v19 = vrot.slane %v5196_v30, 4  ;;  %v4923_v10 = vld [vmem:[#allocation2 + $0x98] sm:$0x1] }
 0x213   :  { %v5206_v21 = vrot.slane %v5204_v7, 4  ;;  %v5209_v48 = vrot.slane %v5207_v4, 5  ;;  %v13402_v28 = vrot.slane %v5213_v29, 5  ;;  %v6187_v39 = vsel %vm11908_vm5, %v10308_v5, %v6186_v45 }
 0x214   :  { %v6189_v26 = vrot.slane %v5950_v2, 5  ;;  %v5219_v63 = vrot.slane %v5217_v41, 4  ;;  %v5228_v47 = vshrl.u32 %v4921_v44, 16  ;;  %v5231_v50 = vshll.u32 %v4921_v44, 16  ;;  %v4924_v44 = vld [vmem:[#allocation2 + $0x9c] sm:$0xf] }
 0x215   :  { %v5237_v31 = vshll.u32 %v4922_v0, 16  ;;  %v5241_v23 = vshrl.u32 %v4922_v0, 16  ;;  %v5223_v7 = vshll.u32 %v4920_v46, 16  ;;  %v5192_v51 = vsel %vm11892_vm3, %v5187_v61, %v13390_v16  ;;  %v5952_v0 = vld [vmem:[#allocation2 + $0xac] sm:$0xf] }
 0x216   :  { %v5202_v29 = vsel %vm11892_vm3, %v5197_v19, %v5201_v18  ;;  %v5210_v41 = vor.u32 %v5209_v48, %v5206_v21  ;;  %v5220_v2 = vor.u32 %v5219_v63, %v13402_v28  ;;  %v5230_v5 = vrot.slane %v5228_v47, 4  ;;  %v5954_v16 = vld [vmem:[#allocation2 + $0xb4] sm:$0xe]  ;;  %v5955_v61 = vld [vmem:[#allocation2 + $0xb8] sm:$0xf] }
 0x217   :  { %8295 = vmatmul.mubr.bf16.gmra.mrb[20].mxu0 %v11607_v62  ;;  %v6188_v62 = vrot.slane %v6186_v45, 4  ;;  %v5233_v45 = vrot.slane %v5231_v50, 5  ;;  %v10273_v46 = vcombine.low %v5192_v51, %v5202_v29  ;;  %v5225_v18 = vrot.slane %v5223_v7, 5  ;;  %v4925_v19 = vld [vmem:[#allocation2 + $0xa0] sm:$0xf] }
 0x218   :  { %8302 = vmatprep.mubr.bf16.mxu0 %v10271_v15  ;;  %v6183_v15 = vsel %vm11908_vm5, %v6181_v34, %v6182_v17  ;;  %v5951_v17 = vld [vmem:[#allocation2 + $0xa8] sm:$0xe]  ;;  %v13416_v34 = vrot.slane %v5237_v31, 5  ;;  %v5211_v48 = vrot.slane %v5210_v41, 4  ;;  %v5956_v47 = vld [vmem:[#allocation2 + $0xbc] sm:$0x1] }
 0x219   :  { %v10339_v59 = vcombine.low %v6180_v8, %v6183_v15  ;;  %v6190_v30 = vsel %vm11908_vm5, %v6188_v62, %v6189_v26  ;;  %v5953_v8 = vld [vmem:[#allocation2 + $0xb0] sm:$0x1]  ;;  %v5243_v62 = vrot.slane %v5241_v23, 4  ;;  %v10309_v21 = vrot.slane %v5951_v17, 9 }
 0x21a   :  { %v10340_v4 = vcombine.low %v6187_v39, %v6190_v30  ;;  %v6193_v15 = vrot.slane %v5952_v0, 5  ;;  %v6196_v39 = vrot.slane %v5953_v8, 5  ;;  %v5221_v26 = vrot.slane %v5220_v2, 4  ;;  %v4927_v0 = vld [vmem:[#allocation2 + $0xa8] sm:$0xf] }
 0x21b   :  { %10989 = vmatprep.mubr.bf16.mxu1 %v10339_v59  ;;  %v5234_v63 = vor.u32 %v5233_v45, %v5230_v5  ;;  %v10310_v50 = vrot.slane %v5954_v16, 9  ;;  %v6200_v59 = vrot.slane %v5955_v61, 5  ;;  %v5244_v30 = vor.u32 %v5243_v62, %v13416_v34  ;;  %v4928_v61 = vld [vmem:[#allocation2 + $0xac] sm:$0xf] }
 0x21c   :  { %10990 = vmatmul.mubr.bf16.gmra.mrb[148].mxu1 %v10340_v4  ;;  %v5252_v31 = vshrl.u32 %v4924_v44, 16  ;;  %v6194_v23 = vsel %vm11908_vm5, %v10309_v21, %v6193_v15  ;;  %v6195_v4 = vrot.slane %v6193_v15, 4  ;;  %v5255_v51 = vshll.u32 %v4924_v44, 16  ;;  %v11610_v21 = vld [vmem:[#allocation2 + $0x78] sm:$0xff]   ;;  %v4926_v15 = vld [vmem:[#allocation2 + $0xa4] sm:$0x1] }
 0x21d   :  { %v5261_v7 = vshll.u32 %v4925_v19, 16  ;;  %v5265_v29 = vshrl.u32 %v4925_v19, 16  ;;  %v6202_v17 = vrot.slane %v6200_v59, 4  ;;  %v6203_v2 = vrot.slane %v5956_v47, 5 }
 0x21e   :  { %v6197_v41 = vsel %vm11908_vm5, %v6195_v4, %v6196_v39  ;;  %v5216_v5 = vsel %vm11892_vm3, %v5211_v48, %v13402_v28  ;;  %v5226_v45 = vsel %vm11892_vm3, %v5221_v26, %v5225_v18  ;;  %v5235_v62 = vrot.slane %v5234_v63, 4  ;;  %v5958_v26 = vld [vmem:[#allocation2 + $0xc4] sm:$0xf] }
 0x21f   :  { %8303 = vmatmul.mubr.bf16.gmra.mrb[24].mxu0 %v11608_v22  ;;  %v11609_v22 = vld [vmem:[#allocation2 + $0x6c] sm:$0xff]   ;;  %v10341_v8 = vcombine.low %v6194_v23, %v6197_v41  ;;  %v5254_v16 = vrot.slane %v5252_v31, 4  ;;  %v6204_v19 = vsel %vm11908_vm5, %v6202_v17, %v6203_v2  ;;  %v13432_v39 = vrot.slane %v5261_v7, 5  ;;  %v79_v4 = vld [vmem:[%s15167_s0 + $0x1a0] sm:$0xff] }
 0x220   :  { %8310 = vmatprep.mubr.bf16.mxu0 %v10272_v56  ;;  %v5247_v56 = vshll.u32 %v4923_v10, 16  ;;  %v6201_v10 = vsel %vm11908_vm5, %v10310_v50, %v6200_v59  ;;  %v5267_v47 = vrot.slane %v5265_v29, 4  ;;  %v5276_v48 = vshrl.u32 %v4927_v0, 16 }
 0x221   :  { %10993 = vmatprep.mubr.bf16.mxu1 %v10341_v8  ;;  %v10342_v28 = vcombine.low %v6201_v10, %v6204_v19  ;;  %v5279_v18 = vshll.u32 %v4927_v0, 16  ;;  %v10274_v50 = vcombine.low %v5216_v5, %v5226_v45  ;;  %v5285_v63 = vshll.u32 %v4928_v61, 16  ;;  %v4929_v10 = vld [vmem:[#allocation2 + $0xb0] sm:$0x1] }
 0x222   :  { %v5249_v44 = vrot.slane %v5247_v56, 5  ;;  %v5957_v56 = vld [vmem:[#allocation2 + $0xc0] sm:$0xe]  ;;  %v5289_v59 = vshrl.u32 %v4928_v61, 16  ;;  %v5240_v31 = vsel %vm11892_vm3, %v5235_v62, %v13416_v34  ;;  %v5268_v29 = vor.u32 %v5267_v47, %v13432_v39 }
 0x223   :  { %v5271_v17 = vshll.u32 %v4926_v15, 16  ;;  %v10311_v41 = vrot.slane %v5957_v56, 9  ;;  %v5278_v2 = vrot.slane %v5276_v48, 4  ;;  %v5281_v34 = vrot.slane %v5279_v18, 5  ;;  %v4931_v18 = vld [vmem:[#allocation2 + $0xb8] sm:$0xf] }
 0x224   :  { %10994 = vmatmul.mubr.bf16.gmra.mrb[152].mxu1 %v10342_v28  ;;  %v6207_v5 = vrot.slane %v5958_v26, 5  ;;  %v5291_v0 = vrot.slane %v5289_v59, 4  ;;  %v187_v8 = vmax.f32 %v79_v4, 0.0  ;;  %v5269_v28 = vrot.slane %v5268_v29, 4 }
 0x225   :  { %v5273_v15 = vrot.slane %v5271_v17, 5  ;;  %v5295_v48 = vshll.u32 %v4929_v10, 16  ;;  %v5282_v26 = vor.u32 %v5281_v34, %v5278_v2  ;;  %v5963_v17 = vld [vmem:[#allocation2 + $0xf0] sm:$0xe]  ;;  %v4932_v10 = vld [vmem:[#allocation2 + $0xbc] sm:$0x1] }
 0x226   :  { %v6209_v61 = vrot.slane %v6207_v5, 4  ;;  %v5960_v2 = vld [vmem:[#allocation2 + $0xcc] sm:$0xe] }
 0x227   :  { %8311 = vmatmul.mubr.bf16.gmra.mrb[28].mxu0 %v11609_v22  ;;  %v5245_v22 = vrot.slane %v5244_v30, 4  ;;  %v5959_v30 = vld [vmem:[#allocation2 + $0xc8] sm:$0x1] }
 0x228   :  { %8318 = vmatprep.mubr.bf16.mxu0 %v10273_v46  ;;  %v5257_v46 = vrot.slane %v5255_v51, 5  ;;  %v80_v51 = vld [vmem:[%s15167_s0 + $0x1a8] sm:$0xff]  ;;  %v6210_v45 = vrot.slane %v5959_v30, 5  ;;  %v5964_v30 = vld [vmem:[#allocation2 + $0xf4] sm:$0xf] }
 0x229   :  { %v5250_v23 = vsel %vm11892_vm3, %v5245_v22, %v5249_v44  ;;  %v13446_v44 = vrot.slane %v5285_v63, 5  ;;  %v188_v62 = vmax.f32 %v80_v51, 0.0  ;;  %v4930_v22 = vld [vmem:[#allocation2 + $0xb4] sm:$0xf]  ;;  %v4933_v51 = vld [vmem:[#allocation2 + $0xc0] sm:$0xf] }
 0x22a   :  { %v5258_v7 = vor.u32 %v5257_v46, %v5254_v16  ;;  %v6208_v16 = vsel %vm11908_vm5, %v10311_v41, %v6207_v5  ;;  %v10275_v19 = vcombine.low %v5240_v31, %v5250_v23  ;;  %v6211_v56 = vsel %vm11908_vm5, %v6209_v61, %v6210_v45 }
 0x22b   :  { %v10683_v46 = vpack.c.bf16 %v188_v62, %v187_v8  ;;  %v5300_v63 = vshrl.u32 %v4930_v22, 16  ;;  %v10343_v59 = vcombine.low %v6208_v16, %v6211_v56  ;;  %v5303_v4 = vshll.u32 %v4930_v22, 16  ;;  %v4934_v62 = vld [vmem:[#allocation2 + $0xc4] sm:$0xf]  ;;  %v11612_v22 = vld [vmem:[#allocation2 + $0x90] sm:$0xff]  }
 0x22c   :  { %v5259_v47 = vrot.slane %v5258_v7, 4  ;;  %v5309_v31 = vshll.u32 %v4931_v18, 16  ;;  %v5313_v23 = vshrl.u32 %v4931_v18, 16  ;;  %v5965_v7 = vld [vmem:[#allocation2 + $0xf8] sm:$0x1]  ;;  %v13456_v41 = vrot.slane %v5295_v48, 5 }
 0x22d   :  { %10845 = vst [vmem:[#allocation2 + $0xd0] sm:$0xff] %v10683_v46   ;;  %10997 = vmatprep.mubr.bf16.mxu1 %v10343_v59  ;;  %v6221_v34 = vrot.slane %v5964_v30, 5  ;;  %v5274_v5 = vsel %vm11892_vm3, %v5269_v28, %v5273_v15  ;;  %v5283_v45 = vrot.slane %v5282_v26, 4  ;;  %v5302_v8 = vrot.slane %v5300_v63, 4  ;;  %v5967_v18 = vld [vmem:[#allocation2 + $0x100] sm:$0xf] }
 0x22e   :  { %v5264_v29 = vsel %vm11892_vm3, %v5259_v47, %v13432_v39  ;;  %v5305_v16 = vrot.slane %v5303_v4, 5  ;;  %v10313_v61 = vrot.slane %v5963_v17, 9  ;;  %v13460_v39 = vrot.slane %v5309_v31, 5  ;;  %v5966_v59 = vld [vmem:[#allocation2 + $0xfc] sm:$0xe] }
 0x22f   :  { %8319 = vmatmul.mubr.bf16.gmra.mrb[32].mxu0 %v11610_v21  ;;  %v11611_v21 = vld [vmem:[#allocation2 + $0x84] sm:$0xff]   ;;  %v6223_v46 = vrot.slane %v6221_v34, 4  ;;  %v5315_v47 = vrot.slane %v5313_v23, 4  ;;  %v5324_v48 = vshrl.u32 %v4933_v51, 16  ;;  %v10312_v56 = vrot.slane %v5960_v2, 9 }
 0x230   :  { %8326 = vmatprep.mubr.bf16.mxu0 %v10274_v50  ;;  %v5292_v50 = vor.u32 %v5291_v0, %v13446_v44  ;;  %v10276_v30 = vcombine.low %v5264_v29, %v5274_v5  ;;  %v5327_v15 = vshll.u32 %v4933_v51, 16  ;;  %v5319_v63 = vshll.u32 %v4932_v10, 16 }
 0x231   :  { %v6228_v17 = vrot.slane %v5967_v18, 5  ;;  %v5337_v31 = vshrl.u32 %v4934_v62, 16  ;;  %v6222_v23 = vsel %vm11908_vm5, %v10313_v61, %v6221_v34  ;;  %v5306_v51 = vor.u32 %v5305_v16, %v5302_v8  ;;  %v4935_v18 = vld [vmem:[#allocation2 + $0xc8] sm:$0x1] }
 0x232   :  { %v5293_v0 = vrot.slane %v5292_v50, 4  ;;  %v5316_v5 = vor.u32 %v5315_v47, %v13460_v39  ;;  %v5329_v34 = vrot.slane %v5327_v15, 5  ;;  %v10314_v61 = vrot.slane %v5966_v59, 9  ;;  %v11613_v59 = vld [vmem:[#allocation2 + $0x9c] sm:$0xff]  }
 0x233   :  { %v6230_v16 = vrot.slane %v6228_v17, 4  ;;  %v5339_v47 = vrot.slane %v5337_v31, 4  ;;  %v5343_v15 = vshll.u32 %v4935_v18, 16  ;;  %v5970_v31 = vld [vmem:[#allocation2 + $0x10c] sm:$0xf] }
 0x234   :  { %v5961_v28 = vld [vmem:[#allocation2 + $0xd0] sm:$0xf]  ;;  %v5962_v26 = vld [vmem:[#allocation2 + $0xd4] sm:$0x1] }
 0x235   :  { %v6214_v20 = vrot.slane %v5961_v28, 5  ;;  %v6217_v4 = vrot.slane %v5962_v26, 5  ;;  %v5326_v26 = vrot.slane %v5324_v48, 4  ;;  %v5321_v48 = vrot.slane %v5319_v63, 5  ;;  %v4940_v18 = vld [vmem:[#allocation2 + $0xf4] sm:$0xf] }
 0x237   :  { %8327 = vmatmul.mubr.bf16.gmra.mrb[36].mxu0 %v11611_v21  ;;  %v6224_v21 = vrot.slane %v5965_v7, 5  ;;  %v5333_v7 = vshll.u32 %v4934_v62, 16  ;;  %v6215_v10 = vsel %vm11908_vm5, %v10312_v56, %v6214_v20  ;;  %v6216_v28 = vrot.slane %v6214_v20, 4 }
 0x238   :  { %8334 = vmatprep.mubr.bf16.mxu0 %v10275_v19  ;;  %v5288_v62 = vsel %vm11892_vm3, %v5283_v45, %v13446_v44  ;;  %v5298_v20 = vsel %vm11892_vm3, %v5293_v0, %v13456_v41  ;;  %v5307_v44 = vrot.slane %v5306_v51, 4  ;;  %v5317_v45 = vrot.slane %v5316_v5, 4  ;;  %v4939_v51 = vld [vmem:[#allocation2 + $0xf0] sm:$0xf] }
 0x239   :  { %v6225_v2 = vsel %vm11908_vm5, %v6223_v46, %v6224_v21  ;;  %v6218_v46 = vsel %vm11908_vm5, %v6216_v28, %v6217_v4  ;;  %v4936_v4 = vld [vmem:[#allocation2 + $0xcc] sm:$0xf]  ;;  %v6229_v41 = vsel %vm11908_vm5, %v10314_v61, %v6228_v17  ;;  %v5971_v5 = vld [vmem:[#allocation2 + $0x110] sm:$0x1] }
 0x23a   :  { %v10345_v8 = vcombine.low %v6222_v23, %v6225_v2  ;;  %v10344_v56 = vcombine.low %v6215_v10, %v6218_v46  ;;  %v5312_v28 = vsel %vm11892_vm3, %v5307_v44, %v13460_v39  ;;  %v5322_v17 = vsel %vm11892_vm3, %v5317_v45, %v5321_v48  ;;  %v5974_v39 = vld [vmem:[#allocation2 + $0x11c] sm:$0x1] }
 0x23b   :  { %v5348_v61 = vshrl.u32 %v4936_v4, 16  ;;  %v10278_v44 = vcombine.low %v5312_v28, %v5322_v17 }
 0x23c   :  { %v13462_v19 = vpop.f32.mrb[64].mxu1  ;;  %10998 = vmatmul.mubr.bf16.gmra.mrb[156].mxu1 %v10344_v56  ;;  %v6238_v56 = vrot.slane %v5971_v5, 5 }
 0x23d   :  { %15209 = vst [vmem:[#allocation11_spill] sm:$0xff] %v13462_v19  ;;  %v7808_v50 = vpop.f32.mrb[65].mxu1  ;;  %v5968_v19 = vld [vmem:[#allocation2 + $0x104] sm:$0x1]  ;;  %11001 = vmatprep.mubr.bf16.mxu1 %v10345_v8  ;;  %v5350_v5 = vrot.slane %v5348_v61, 4 }
 0x23e   :  { %v13464_v12 = vpop.f32.mrb[66].mxu1  ;;  %v6231_v21 = vrot.slane %v5968_v19, 5  ;;  %v5330_v50 = vor.u32 %v5329_v34, %v5326_v26  ;;  %v10277_v19 = vcombine.low %v5288_v62, %v5298_v20  ;;  %v13497_v62 = vrot.slane %v5343_v15, 5  ;;  %v5972_v26 = vld [vmem:[#allocation2 + $0x114] sm:$0xe] }
 0x23f   :  { %v7811_v29 = vpop.f32.mrb[67].mxu1  ;;  %8335 = vmatmul.mubr.bf16.gmra.mrb[40].mxu0 %v11612_v22  ;;  %v13481_v22 = vrot.slane %v5333_v7, 5  ;;  %v5969_v7 = vld [vmem:[#allocation2 + $0x108] sm:$0xe]  ;;  %v10316_v48 = vrot.slane %v5972_v26, 9  ;;  %v5372_v15 = vshrl.u32 %v4939_v51, 16 }
 0x240   :  { %8342 = vmatprep.mubr.bf16.mxu0 %v10276_v30  ;;  %v6232_v0 = vsel %vm11908_vm5, %v6230_v16, %v6231_v21  ;;  %v4937_v29 = vld [vmem:[#allocation2 + $0xd0] sm:$0xf]  ;;  %v13499_v34 = vrot.slane %v5330_v50, 4  ;;  %v10315_v8 = vrot.slane %v5969_v7, 9  ;;  %v5973_v16 = vld [vmem:[#allocation2 + $0x118] sm:$0xf] }
 0x241   :  { %v5340_v63 = vor.u32 %v5339_v47, %v13481_v22  ;;  %v10346_v46 = vcombine.low %v6229_v41, %v6232_v0  ;;  %v5351_v21 = vshll.u32 %v4936_v4, 16  ;;  %v5357_v20 = vshll.u32 %v4937_v29, 16 }
 0x242   :  { %v6235_v47 = vrot.slane %v5970_v31, 5  ;;  %v5361_v45 = vshrl.u32 %v4937_v29, 16  ;;  %v5375_v0 = vshll.u32 %v4939_v51, 16  ;;  %v5385_v4 = vshrl.u32 %v4940_v18, 16  ;;  %v4941_v29 = vld [vmem:[#allocation2 + $0xf8] sm:$0x1] }
 0x243   :  { %v6245_v7 = vrot.slane %v5974_v39, 5  ;;  %v5353_v28 = vrot.slane %v5351_v21, 5  ;;  %v5374_v39 = vrot.slane %v5372_v15, 4 }
 0x244   :  { %v13483_v30 = vpop.f32.mrb[68].mxu1  ;;  %v6237_v50 = vrot.slane %v6235_v47, 4  ;;  %11002 = vmatmul.mubr.bf16.gmra.mrb[160].mxu1 %v10346_v46  ;;  %v4938_v46 = vld [vmem:[#allocation2 + $0xd4] sm:$0x1]  ;;  %v5377_v61 = vrot.slane %v5375_v0, 5 }
 0x245   :  { %15210 = vst [vmem:[#allocation12_spill] sm:$0xff] %v13483_v30  ;;  %v7816_v23 = vpop.f32.mrb[69].mxu1  ;;  %v4942_v0 = vld [vmem:[#allocation2 + $0xfc] sm:$0xf] }
 0x246   :  { %v13489_v2 = vpop.f32.mrb[70].mxu1  ;;  %v5341_v23 = vrot.slane %v5340_v63, 4  ;;  %v13505_v63 = vrot.slane %v5357_v20, 5  ;;  %v6239_v17 = vsel %vm11908_vm5, %v6237_v50, %v6238_v56  ;;  %v5387_v20 = vrot.slane %v5385_v4, 4  ;;  %v11615_v4 = vld [vmem:[#allocation2 + $0xb4] sm:$0xff]  }
 0x247   :  { %15211 = vst [vmem:[#allocation13_spill] sm:$0xff] %v13489_v2  ;;  %v7819_v10 = vpop.f32.mrb[71].mxu1  ;;  %8343 = vmatmul.mubr.bf16.gmra.mrb[44].mxu0 %v11613_v59  ;;  %v6236_v59 = vsel %vm11908_vm5, %v10315_v8, %v6235_v47  ;;  %v11614_v2 = vld [vmem:[#allocation2 + $0xa8] sm:$0xff]   ;;  %v5363_v8 = vrot.slane %v5361_v45, 4  ;;  %v5354_v50 = vor.u32 %v5353_v28, %v5350_v5  ;;  %v5391_v45 = vshll.u32 %v4941_v29, 16 }
 0x248   :  { %8350 = vmatprep.mubr.bf16.mxu0 %v10277_v19  ;;  %v6242_v10 = vrot.slane %v5973_v16, 5  ;;  %v5381_v19 = vshll.u32 %v4940_v18, 16  ;;  %v10347_v16 = vcombine.low %v6236_v59, %v6239_v17  ;;  %v5976_v17 = vld [vmem:[#allocation2 + $0x124] sm:$0xf]  ;;  %v5378_v5 = vor.u32 %v5377_v61, %v5374_v39  ;;  %v4943_v29 = vld [vmem:[#allocation2 + $0x100] sm:$0xf] }
 0x249   :  { %v5364_v15 = vor.u32 %v5363_v8, %v13505_v63  ;;  %v5980_v8 = vld [vmem:[#allocation2 + $0x134] sm:$0x1]  ;;  %v5399_v39 = vshll.u32 %v4942_v0, 16 }
 0x24a   :  { %v6243_v51 = vsel %vm11908_vm5, %v10316_v48, %v6242_v10  ;;  %v6244_v47 = vrot.slane %v6242_v10, 4  ;;  %v13513_v21 = vrot.slane %v5381_v19, 5  ;;  %11005 = vmatprep.mubr.bf16.mxu1 %v10347_v16  ;;  %v5336_v48 = vsel %vm11892_vm3, %v13499_v34, %v13481_v22  ;;  %v5977_v19 = vld [vmem:[#allocation2 + $0x128] sm:$0x1]  ;;  %v5979_v34 = vld [vmem:[#allocation2 + $0x130] sm:$0xf] }
 0x24b   :  { %v5367_v10 = vshll.u32 %v4938_v46, 16  ;;  %v6249_v22 = vrot.slane %v5976_v17, 5  ;;  %v5365_v46 = vrot.slane %v5364_v15, 4  ;;  %v5409_v15 = vshrl.u32 %v4943_v29, 16 }
 0x24c   :  { %v13503_v41 = vpop.f32.mrb[72].mxu1  ;;  %v6246_v56 = vsel %vm11908_vm5, %v6244_v47, %v6245_v7  ;;  %v5388_v28 = vor.u32 %v5387_v20, %v13513_v21  ;;  %v6252_v20 = vrot.slane %v5977_v19, 5  ;;  %v4944_v19 = vld [vmem:[#allocation2 + $0x104] sm:$0x1] }
 0x24d   :  { %15212 = vst [vmem:[#allocation14_spill] sm:$0xff] %v13503_v41  ;;  %v7824_v31 = vpop.f32.mrb[73].mxu1  ;;  %v10348_v59 = vcombine.low %v6243_v51, %v6246_v56  ;;  %v5369_v56 = vrot.slane %v5367_v10, 5  ;;  %v6251_v41 = vrot.slane %v6249_v22, 4 }
 0x24e   :  { %v13509_v26 = vpop.f32.mrb[74].mxu1  ;;  %v5975_v31 = vld [vmem:[#allocation2 + $0x120] sm:$0xe]  ;;  %v5389_v17 = vrot.slane %v5388_v28, 4  ;;  %v5401_v28 = vrot.slane %v5399_v39, 5 }
 0x24f   :  { %15213 = vst [vmem:[#allocation15_spill] sm:$0xff] %v13509_v26  ;;  %v7827_v18 = vpop.f32.mrb[75].mxu1  ;;  %8351 = vmatmul.mubr.bf16.gmra.mrb[48].mxu0 %v11614_v2  ;;  %v5346_v2 = vsel %vm11892_vm3, %v5341_v23, %v13497_v62  ;;  %11006 = vmatmul.mubr.bf16.gmra.mrb[164].mxu1 %v10348_v59  ;;  %v10317_v16 = vrot.slane %v5975_v31, 9  ;;  %v5355_v62 = vrot.slane %v5354_v50, 4  ;;  %v5393_v23 = vrot.slane %v5391_v45, 5 }
 0x250   :  { %8358 = vmatprep.mubr.bf16.mxu0 %v10278_v44  ;;  %v5978_v44 = vld [vmem:[#allocation2 + $0x12c] sm:$0xe]  ;;  %v10279_v47 = vcombine.low %v5336_v48, %v5346_v2  ;;  %v5396_v26 = vshrl.u32 %v4942_v0, 16  ;;  %v5379_v31 = vrot.slane %v5378_v5, 4  ;;  %v6256_v48 = vrot.slane %v5979_v34, 5 }
 0x251   :  { %v6250_v61 = vsel %vm11908_vm5, %v10317_v16, %v6249_v22  ;;  %v10318_v59 = vrot.slane %v5978_v44, 9  ;;  %v6259_v50 = vrot.slane %v5980_v8, 5  ;;  %v5360_v45 = vsel %vm11892_vm3, %v5355_v62, %v13505_v63  ;;  %v4945_v16 = vld [vmem:[#allocation2 + $0x108] sm:$0xf]  ;;  %v11616_v22 = vld [vmem:[#allocation2 + $0xc0] sm:$0xff]  }
 0x252   :  { %v5405_v2 = vshll.u32 %v4943_v29, 16  ;;  %v6253_v10 = vsel %vm11908_vm5, %v6251_v41, %v6252_v20  ;;  %v5370_v0 = vsel %vm11892_vm3, %v5365_v46, %v5369_v56  ;;  %v5398_v5 = vrot.slane %v5396_v26, 4  ;;  %v4946_v63 = vld [vmem:[#allocation2 + $0x10c] sm:$0xf]  ;;  %v5981_v46 = vld [vmem:[#allocation2 + $0x138] sm:$0xe] }
 0x253   :  { %v10349_v44 = vcombine.low %v6250_v61, %v6253_v10  ;;  %v5411_v62 = vrot.slane %v5409_v15, 4  ;;  %v5384_v26 = vsel %vm11892_vm3, %v5379_v31, %v13513_v21  ;;  %v5394_v39 = vsel %vm11892_vm3, %v5389_v17, %v5393_v23  ;;  %v5984_v15 = vld [vmem:[#allocation2 + $0x144] sm:$0xe]  ;;  %v5985_v23 = vld [vmem:[#allocation2 + $0x148] sm:$0xf] }
 0x254   :  { %v13525_v7 = vpop.f32.mrb[76].mxu1  ;;  %v5415_v61 = vshll.u32 %v4944_v19, 16  ;;  %v5420_v20 = vshrl.u32 %v4945_v16, 16  ;;  %v5429_v10 = vshll.u32 %v4946_v63, 16  ;;  %v5986_v17 = vld [vmem:[#allocation2 + $0x14c] sm:$0x1] }
 0x255   :  { %15214 = vst [vmem:[#allocation16_spill] sm:$0xff] %v13525_v7  ;;  %v7832_v51 = vpop.f32.mrb[77].mxu1  ;;  %11009 = vmatprep.mubr.bf16.mxu1 %v10349_v44  ;;  %v4948_v44 = vld [vmem:[#allocation2 + $0x114] sm:$0xf] }
 0x256   :  { %v13528_v18 = vpop.f32.mrb[78].mxu1  ;;  %v10280_v51 = vcombine.low %v5360_v45, %v5370_v0  ;;  %v5423_v45 = vshll.u32 %v4945_v16, 16  ;;  %v5433_v0 = vshrl.u32 %v4946_v63, 16  ;;  %v5417_v19 = vrot.slane %v5415_v61, 5 }
 0x257   :  { %15215 = vst [vmem:[#allocation17_spill] sm:$0xff] %v13528_v18  ;;  %v7835_v7 = vpop.f32.mrb[79].mxu1  ;;  %8359 = vmatmul.mubr.bf16.gmra.mrb[52].mxu0 %v11615_v4  ;;  %v6257_v4 = vsel %vm11908_vm5, %v10318_v59, %v6256_v48  ;;  %v5982_v59 = vld [vmem:[#allocation2 + $0x13c] sm:$0xf]  ;;  %v5992_v18 = vld [vmem:[#allocation2 + $0x164] sm:$0x1] }
 0x258   :  { %8366 = vmatprep.mubr.bf16.mxu0 %v10279_v47  ;;  %v6258_v7 = vrot.slane %v6256_v48, 4  ;;  %v13545_v47 = vrot.slane %v5405_v2, 5  ;;  %v5983_v2 = vld [vmem:[#allocation2 + $0x140] sm:$0x1]  ;;  %v6263_v31 = vrot.slane %v5982_v59, 5  ;;  %v6273_v59 = vrot.slane %v5986_v17, 5 }
 0x259   :  { %v4950_v17 = vld [vmem:[#allocation2 + $0x11c] sm:$0x1] }
 0x25a   :  { %v6260_v41 = vsel %vm11908_vm5, %v6258_v7, %v6259_v50  ;;  %v5402_v50 = vor.u32 %v5401_v28, %v5398_v5  ;;  %v10281_v7 = vcombine.low %v5384_v26, %v5394_v39  ;;  %v5412_v21 = vor.u32 %v5411_v62, %v13545_v47 }
 0x25b   :  { %v10350_v8 = vcombine.low %v6257_v4, %v6260_v41  ;;  %v10319_v4 = vrot.slane %v5981_v46, 9  ;;  %v4947_v41 = vld [vmem:[#allocation2 + $0x110] sm:$0x1]  ;;  %v6266_v5 = vrot.slane %v5983_v2, 5  ;;  %v10320_v28 = vrot.slane %v5984_v15, 9 }
 0x25c   :  { %v13541_v34 = vpop.f32.mrb[80].mxu1  ;;  %v5403_v16 = vrot.slane %v5402_v50, 4  ;;  %v6265_v63 = vrot.slane %v6263_v31, 4  ;;  %v11617_v46 = vld [vmem:[#allocation2 + $0xcc] sm:$0xff]   ;;  %v13559_v26 = vrot.slane %v5429_v10, 5  ;;  %v5435_v62 = vrot.slane %v5433_v0, 4 }
 0x25d   :  { %15216 = vst [vmem:[#allocation18_spill] sm:$0xff] %v13541_v34  ;;  %v7840_v29 = vpop.f32.mrb[81].mxu1  ;;  %11010 = vmatmul.mubr.bf16.gmra.mrb[168].mxu1 %v10350_v8  ;;  %v5425_v8 = vrot.slane %v5423_v45, 5  ;;  %v6270_v39 = vrot.slane %v5985_v23, 5  ;;  %v5447_v2 = vshll.u32 %v4948_v44, 16  ;;  %v5439_v34 = vshll.u32 %v4947_v41, 16 }
 0x25e   :  { %v13547_v56 = vpop.f32.mrb[82].mxu1  ;;  %v5422_v29 = vrot.slane %v5420_v20, 4  ;;  %v5444_v20 = vshrl.u32 %v4948_v44, 16  ;;  %v6267_v50 = vsel %vm11908_vm5, %v6265_v63, %v6266_v5  ;;  %v5408_v44 = vsel %vm11892_vm3, %v5403_v16, %v13545_v47  ;;  %v11618_v63 = vld [vmem:[#allocation2 + $0xf0] sm:$0xff]   ;;  %v5989_v47 = vld [vmem:[#allocation2 + $0x158] sm:$0x1] }
 0x25f   :  { %15217 = vst [vmem:[#allocation19_spill] sm:$0xff] %v13547_v56  ;;  %v7843_v48 = vpop.f32.mrb[83].mxu1  ;;  %8367 = vmatmul.mubr.bf16.gmra.mrb[56].mxu0 %v11616_v22  ;;  %v6264_v22 = vsel %vm11908_vm5, %v10319_v4, %v6263_v31  ;;  %v5413_v56 = vrot.slane %v5412_v21, 4  ;;  %v6271_v4 = vsel %vm11908_vm5, %v10320_v28, %v6270_v39  ;;  %v6272_v31 = vrot.slane %v6270_v39, 4 }
 0x260   :  { %8374 = vmatprep.mubr.bf16.mxu0 %v10280_v51  ;;  %v4949_v48 = vld [vmem:[#allocation2 + $0x118] sm:$0xf]  ;;  %v10351_v15 = vcombine.low %v6264_v22, %v6267_v50  ;;  %v5426_v10 = vor.u32 %v5425_v8, %v5422_v29  ;;  %v5436_v21 = vor.u32 %v5435_v62, %v13559_v26  ;;  %v5446_v29 = vrot.slane %v5444_v20, 4  ;;  %v4951_v8 = vld [vmem:[#allocation2 + $0x120] sm:$0xf] }
 0x261   :  { %v5453_v0 = vshll.u32 %v4949_v48, 16  ;;  %v5457_v23 = vshrl.u32 %v4949_v48, 16  ;;  %v6274_v5 = vsel %vm11908_vm5, %v6272_v31, %v6273_v59  ;;  %v5418_v28 = vsel %vm11892_vm3, %v5413_v56, %v5417_v19  ;;  %v5987_v22 = vld [vmem:[#allocation2 + $0x150] sm:$0xe]  ;;  %v5990_v59 = vld [vmem:[#allocation2 + $0x15c] sm:$0xe] }
 0x262   :  { %11013 = vmatprep.mubr.bf16.mxu1 %v10351_v15  ;;  %v5449_v41 = vrot.slane %v5447_v2, 5  ;;  %v10352_v48 = vcombine.low %v6271_v4, %v6274_v5  ;;  %v5427_v16 = vrot.slane %v5426_v10, 4  ;;  %v5441_v62 = vrot.slane %v5439_v34, 5  ;;  %v5991_v2 = vld [vmem:[#allocation2 + $0x160] sm:$0xf] }
 0x263   :  { %v13575_v39 = vrot.slane %v5453_v0, 5  ;;  %v10282_v50 = vcombine.low %v5408_v44, %v5418_v28  ;;  %v5437_v56 = vrot.slane %v5436_v21, 4  ;;  %v5463_v19 = vshll.u32 %v4950_v17, 16 }
 0x264   :  { %v13557_v51 = vpop.f32.mrb[84].mxu1  ;;  %v10321_v20 = vrot.slane %v5987_v22, 9  ;;  %v5450_v4 = vor.u32 %v5449_v41, %v5446_v29  ;;  %v5468_v31 = vshrl.u32 %v4951_v8, 16  ;;  %v5471_v5 = vshll.u32 %v4951_v8, 16 }
 0x265   :  { %15218 = vst [vmem:[#allocation20_spill] sm:$0xff] %v13557_v51  ;;  %v7848_v61 = vpop.f32.mrb[85].mxu1  ;;  %11014 = vmatmul.mubr.bf16.gmra.mrb[172].mxu1 %v10352_v48  ;;  %v10322_v48 = vrot.slane %v5990_v59, 9  ;;  %v6284_v17 = vrot.slane %v5991_v2, 5  ;;  %v5432_v28 = vsel %vm11892_vm3, %v5427_v16, %v13559_v26  ;;  %v6287_v29 = vrot.slane %v5992_v18, 5  ;;  %v11619_v16 = vld [vmem:[#allocation2 + $0xfc] sm:$0xff]  }
 0x266   :  { %v13563_v45 = vpop.f32.mrb[86].mxu1  ;;  %v5459_v61 = vrot.slane %v5457_v23, 4  ;;  %v6280_v23 = vrot.slane %v5989_v47, 5  ;;  %v5442_v41 = vsel %vm11892_vm3, %v5437_v56, %v5441_v62  ;;  %v5470_v8 = vrot.slane %v5468_v31, 4  ;;  %v4954_v62 = vld [vmem:[#allocation2 + $0x12c] sm:$0xf] }
 0x267   :  { %15219 = vst [vmem:[#allocation21_spill] sm:$0xff] %v13563_v45  ;;  %v7851_v51 = vpop.f32.mrb[87].mxu1  ;;  %8375 = vmatmul.mubr.bf16.gmra.mrb[60].mxu0 %v11617_v46  ;;  %v4952_v46 = vld [vmem:[#allocation2 + $0x124] sm:$0xf]  ;;  %v5473_v22 = vrot.slane %v5471_v5, 5  ;;  %v5465_v59 = vrot.slane %v5463_v19, 5 }
 0x268   :  { %8382 = vmatprep.mubr.bf16.mxu0 %v10281_v7  ;;  %v5988_v51 = vld [vmem:[#allocation2 + $0x154] sm:$0xf]  ;;  %v5477_v34 = vshll.u32 %v4952_v46, 16  ;;  %v5481_v0 = vshrl.u32 %v4952_v46, 16  ;;  %v5451_v46 = vrot.slane %v5450_v4, 4 }
 0x269   :  { %v6277_v45 = vrot.slane %v5988_v51, 5  ;;  %v4953_v51 = vld [vmem:[#allocation2 + $0x128] sm:$0x1]  ;;  %v4955_v56 = vld [vmem:[#allocation2 + $0x130] sm:$0xf]  ;;  %v5474_v4 = vor.u32 %v5473_v22, %v5470_v8 }
 0x26a   :  { %v13593_v26 = vrot.slane %v5477_v34, 5  ;;  %v5483_v18 = vrot.slane %v5481_v0, 4  ;;  %v5487_v31 = vshll.u32 %v4953_v51, 16  ;;  %v5456_v34 = vsel %vm11892_vm3, %v5451_v46, %v13575_v39 }
 0x26b   :  { %v6278_v44 = vsel %vm11908_vm5, %v10321_v20, %v6277_v45  ;;  %v6279_v21 = vrot.slane %v6277_v45, 4  ;;  %v6285_v45 = vsel %vm11908_vm5, %v10322_v48, %v6284_v17  ;;  %v5475_v51 = vrot.slane %v5474_v4, 4 }
 0x26c   :  { %v13577_v7 = vpop.f32.mrb[88].mxu1 }
 0x26d   :  { %15220 = vst [vmem:[#allocation22_spill] sm:$0xff] %v13577_v7  ;;  %v7856_v15 = vpop.f32.mrb[89].mxu1  ;;  %v5460_v7 = vor.u32 %v5459_v61, %v13575_v39  ;;  %v5997_v39 = vld [vmem:[#allocation2 + $0x178] sm:$0xf] }
 0x26e   :  { %v13579_v10 = vpop.f32.mrb[90].mxu1  ;;  %v10283_v15 = vcombine.low %v5432_v28, %v5442_v41  ;;  %v5995_v28 = vld [vmem:[#allocation2 + $0x170] sm:$0x1]  ;;  %v5505_v41 = vshrl.u32 %v4955_v56, 16 }
 0x26f   :  { %15221 = vst [vmem:[#allocation23_spill] sm:$0xff] %v13579_v10  ;;  %v7859_v30 = vpop.f32.mrb[91].mxu1  ;;  %8383 = vmatmul.mubr.bf16.gmra.mrb[64].mxu0 %v11618_v63  ;;  %v6286_v63 = vrot.slane %v6284_v17, 4  ;;  %v5461_v61 = vrot.slane %v5460_v7, 4  ;;  %v5994_v7 = vld [vmem:[#allocation2 + $0x16c] sm:$0xf] }
 0x270   :  { %8390 = vmatprep.mubr.bf16.mxu0 %v10282_v50  ;;  %v6281_v30 = vsel %vm11908_vm5, %v6279_v21, %v6280_v23  ;;  %v5993_v23 = vld [vmem:[#allocation2 + $0x168] sm:$0xe]  ;;  %v5492_v21 = vshrl.u32 %v4954_v62, 16  ;;  %v5495_v17 = vshll.u32 %v4954_v62, 16  ;;  %v6291_v22 = vrot.slane %v5994_v7, 5 }
 0x271   :  { %v10353_v47 = vcombine.low %v6278_v44, %v6281_v30  ;;  %v6288_v20 = vsel %vm11908_vm5, %v6286_v63, %v6287_v29  ;;  %v5466_v48 = vsel %vm11892_vm3, %v5461_v61, %v5465_v59  ;;  %v5484_v44 = vor.u32 %v5483_v18, %v13593_v26  ;;  %v5996_v30 = vld [vmem:[#allocation2 + $0x174] sm:$0xe]  ;;  %v5998_v18 = vld [vmem:[#allocation2 + $0x17c] sm:$0x1] }
 0x272   :  { %v10354_v5 = vcombine.low %v6285_v45, %v6288_v20  ;;  %v5501_v29 = vshll.u32 %v4955_v56, 16  ;;  %v10323_v8 = vrot.slane %v5993_v23, 9  ;;  %v10284_v46 = vcombine.low %v5456_v34, %v5466_v48  ;;  %v4957_v45 = vld [vmem:[#allocation2 + $0x138] sm:$0xf] }
 0x273   :  { %11017 = vmatprep.mubr.bf16.mxu1 %v10353_v47  ;;  %v5489_v47 = vrot.slane %v5487_v31, 5  ;;  %v6293_v61 = vrot.slane %v6291_v22, 4  ;;  %v6294_v59 = vrot.slane %v5995_v28, 5  ;;  %v5485_v62 = vrot.slane %v5484_v44, 4 }
 0x274   :  { %v13595_v50 = vpop.f32.mrb[92].mxu1  ;;  %11018 = vmatmul.mubr.bf16.gmra.mrb[176].mxu1 %v10354_v5  ;;  %v6292_v63 = vsel %vm11908_vm5, %v10323_v8, %v6291_v22  ;;  %v5494_v20 = vrot.slane %v5492_v21, 4  ;;  %v10324_v56 = vrot.slane %v5996_v30, 9  ;;  %v11620_v5 = vld [vmem:[#allocation2 + $0x108] sm:$0xff]   ;;  %v5507_v4 = vrot.slane %v5505_v41, 4 }
 0x275   :  { %15222 = vst [vmem:[#allocation24_spill] sm:$0xff] %v13595_v50  ;;  %v7864_v2 = vpop.f32.mrb[93].mxu1  ;;  %v6295_v31 = vsel %vm11908_vm5, %v6293_v61, %v6294_v59  ;;  %v6298_v7 = vrot.slane %v5997_v39, 5  ;;  %v5519_v48 = vshll.u32 %v4957_v45, 16  ;;  %v6301_v8 = vrot.slane %v5998_v18, 5 }
 0x276   :  { %v13599_v19 = vpop.f32.mrb[94].mxu1  ;;  %v4958_v2 = vld [vmem:[#allocation2 + $0x13c] sm:$0xf]  ;;  %v10355_v28 = vcombine.low %v6292_v63, %v6295_v31  ;;  %v4956_v21 = vld [vmem:[#allocation2 + $0x134] sm:$0x1]  ;;  %v5480_v41 = vsel %vm11892_vm3, %v5475_v51, %v13593_v26  ;;  %v5490_v39 = vsel %vm11892_vm3, %v5485_v62, %v5489_v47 }
 0x277   :  { %15223 = vst [vmem:[#allocation25_spill] sm:$0xff] %v13599_v19  ;;  %v7867_v0 = vpop.f32.mrb[95].mxu1  ;;  %8391 = vmatmul.mubr.bf16.gmra.mrb[68].mxu0 %v11619_v16  ;;  %v5497_v16 = vrot.slane %v5495_v17, 5  ;;  %v5525_v17 = vshll.u32 %v4958_v2, 16  ;;  %v5529_v22 = vshrl.u32 %v4958_v2, 16  ;;  %v6299_v30 = vsel %vm11908_vm5, %v10324_v56, %v6298_v7 }
 0x278   :  { %8398 = vmatprep.mubr.bf16.mxu0 %v10283_v15  ;;  %v13611_v15 = vrot.slane %v5501_v29, 5  ;;  %v5516_v0 = vshrl.u32 %v4957_v45, 16  ;;  %v6300_v29 = vrot.slane %v6298_v7, 4  ;;  %11021 = vmatprep.mubr.bf16.mxu1 %v10355_v28  ;;  %v5511_v59 = vshll.u32 %v4956_v21, 16  ;;  %v4959_v18 = vld [vmem:[#allocation2 + $0x140] sm:$0x1] }
 0x279   :  { %v5498_v63 = vor.u32 %v5497_v16, %v5494_v20  ;;  %v5999_v56 = vld [vmem:[#allocation2 + $0x180] sm:$0xe]  ;;  %v13627_v31 = vrot.slane %v5525_v17, 5  ;;  %v5531_v7 = vrot.slane %v5529_v22, 4  ;;  %v4960_v26 = vld [vmem:[#allocation2 + $0x144] sm:$0xf]  ;;  %v10285_v20 = vcombine.low %v5480_v41, %v5490_v39 }
 0x27a   :  { %v6302_v45 = vsel %vm11908_vm5, %v6300_v29, %v6301_v8  ;;  %v5508_v61 = vor.u32 %v5507_v4, %v13611_v15  ;;  %v6000_v51 = vld [vmem:[#allocation2 + $0x184] sm:$0xf]  ;;  %v6001_v47 = vld [vmem:[#allocation2 + $0x188] sm:$0x1]  ;;  %v6002_v62 = vld [vmem:[#allocation2 + $0x18c] sm:$0xe] }
 0x27b   :  { %v10356_v2 = vcombine.low %v6299_v30, %v6302_v45  ;;  %v11621_v28 = vld [vmem:[#allocation2 + $0x114] sm:$0xff]   ;;  %v5535_v16 = vshll.u32 %v4959_v18, 16  ;;  %v10325_v4 = vrot.slane %v5999_v56, 9  ;;  %v5499_v30 = vrot.slane %v5498_v63, 4 }
 0x27c   :  { %v13609_v23 = vpop.f32.mrb[96].mxu1  ;;  %v6004_v8 = vld [vmem:[#allocation2 + $0x194] sm:$0x1]  ;;  %v6305_v17 = vrot.slane %v6000_v51, 5  ;;  %v5532_v45 = vor.u32 %v5531_v7, %v13627_v31  ;;  %v10326_v19 = vrot.slane %v6002_v62, 9  ;;  %v5540_v10 = vshrl.u32 %v4960_v26, 16 }
 0x27d   :  { %15224 = vst [vmem:[#allocation26_spill] sm:$0xff] %v13609_v23  ;;  %v7872_v34 = vpop.f32.mrb[97].mxu1  ;;  %11022 = vmatmul.mubr.bf16.gmra.mrb[180].mxu1 %v10356_v2  ;;  %v4961_v2 = vld [vmem:[#allocation2 + $0x148] sm:$0xf]  ;;  %v5537_v63 = vrot.slane %v5535_v16, 5  ;;  %v5504_v18 = vsel %vm11892_vm3, %v5499_v30, %v13611_v15 }
 0x27e   :  { %v13615_v44 = vpop.f32.mrb[98].mxu1  ;;  %v6003_v34 = vld [vmem:[#allocation2 + $0x190] sm:$0xf]  ;;  %v6306_v41 = vsel %vm11908_vm5, %v10325_v4, %v6305_v17  ;;  %v6307_v39 = vrot.slane %v6305_v17, 4  ;;  %v5549_v56 = vshll.u32 %v4961_v2, 16  ;;  %v5533_v62 = vrot.slane %v5532_v45, 4 }
 0x27f   :  { %15225 = vst [vmem:[#allocation27_spill] sm:$0xff] %v13615_v44  ;;  %v7875_v23 = vpop.f32.mrb[99].mxu1  ;;  %8399 = vmatmul.mubr.bf16.gmra.mrb[72].mxu0 %v11620_v5  ;;  %v5521_v5 = vrot.slane %v5519_v48, 5  ;;  %v5513_v48 = vrot.slane %v5511_v59, 5  ;;  %v6308_v44 = vrot.slane %v6001_v47, 5  ;;  %v6315_v59 = vrot.slane %v6004_v8, 5 }
 0x280   :  { %8406 = vmatprep.mubr.bf16.mxu0 %v10284_v46  ;;  %v5518_v23 = vrot.slane %v5516_v0, 4  ;;  %v5509_v0 = vrot.slane %v5508_v61, 4  ;;  %v6312_v61 = vrot.slane %v6003_v34, 5  ;;  %v5542_v34 = vrot.slane %v5540_v10, 4  ;;  %v4963_v15 = vld [vmem:[#allocation2 + $0x150] sm:$0xf] }
 0x281   :  { %v4964_v4 = vld [vmem:[#allocation2 + $0x154] sm:$0xf]  ;;  %v13649_v30 = vrot.slane %v5549_v56, 5  ;;  %v4962_v10 = vld [vmem:[#allocation2 + $0x14c] sm:$0x1] }
 0x282   :  { %v5522_v22 = vor.u32 %v5521_v5, %v5518_v23  ;;  %v5553_v23 = vshrl.u32 %v4961_v2, 16  ;;  %v5514_v5 = vsel %vm11892_vm3, %v5509_v0, %v5513_v48  ;;  %v6314_v51 = vrot.slane %v6312_v61, 4  ;;  %v6005_v48 = vld [vmem:[#allocation2 + $0x198] sm:$0xe] }
 0x283   :  { %v5538_v2 = vsel %vm11892_vm3, %v5533_v62, %v5537_v63  ;;  %v5573_v56 = vshll.u32 %v4964_v4, 16 }
 0x284   :  { %v13629_v46 = vpop.f32.mrb[100].mxu1  ;;  %v5523_v47 = vrot.slane %v5522_v22, 4  ;;  %v5555_v0 = vrot.slane %v5553_v23, 4  ;;  %v5577_v23 = vshrl.u32 %v4964_v4, 16 }
 0x285   :  { %15226 = vst [vmem:[#allocation28_spill] sm:$0xff] %v13629_v46  ;;  %v7880_v21 = vpop.f32.mrb[101].mxu1  ;;  %v5543_v46 = vshll.u32 %v4960_v26, 16  ;;  %v6313_v26 = vsel %vm11908_vm5, %v10326_v19, %v6312_v61  ;;  %v6007_v61 = vld [vmem:[#allocation2 + $0x1a0] sm:$0x1] }
 0x286   :  { %v13631_v29 = vpop.f32.mrb[102].mxu1  ;;  %v10286_v21 = vcombine.low %v5504_v18, %v5514_v5  ;;  %v5528_v45 = vsel %vm11892_vm3, %v5523_v47, %v13627_v31  ;;  %v5567_v18 = vshll.u32 %v4963_v15, 16  ;;  %v134_v31 = vld [vmem:[%s15167_s0 + $0x358] sm:$0xff]  ;;  %v5556_v63 = vor.u32 %v5555_v0, %v13649_v30 }
 0x287   :  { %v7883_v50 = vpop.f32.mrb[103].mxu1  ;;  %8407 = vmatmul.mubr.bf16.gmra.mrb[76].mxu0 %v11621_v28  ;;  %v5545_v28 = vrot.slane %v5543_v46, 5  ;;  %v6006_v46 = vld [vmem:[#allocation2 + $0x19c] sm:$0xf]  ;;  %v5559_v5 = vshll.u32 %v4962_v10, 16 }
 0x288   :  { %8414 = vmatprep.mubr.bf16.mxu0 %v10285_v20  ;;  %v6309_v50 = vsel %vm11908_vm5, %v6307_v39, %v6308_v44  ;;  %v11622_v20 = vld [vmem:[#allocation2 + $0x120] sm:$0xff]   ;;  %v6316_v44 = vsel %vm11908_vm5, %v6314_v51, %v6315_v59  ;;  %v5564_v39 = vshrl.u32 %v4963_v15, 16  ;;  %v133_v59 = vld [vmem:[%s15167_s0 + $0x350] sm:$0xff]  ;;  %v6322_v51 = vrot.slane %v6007_v61, 5 }
 0x289   :  { %v10357_v7 = vcombine.low %v6306_v41, %v6309_v50  ;;  %v10358_v19 = vcombine.low %v6313_v26, %v6316_v44  ;;  %v5546_v41 = vor.u32 %v5545_v28, %v5542_v34  ;;  %v10327_v50 = vrot.slane %v6005_v48, 9  ;;  %v11623_v15 = vld [vmem:[#allocation2 + $0x12c] sm:$0xff]   ;;  %v4967_v61 = vld [vmem:[#allocation2 + $0x160] sm:$0xf] }
 0x28a   :  { %v10287_v26 = vcombine.low %v5528_v45, %v5538_v2  ;;  %v241_v47 = vmax.f32 %v133_v59, 0.0  ;;  %v5566_v44 = vrot.slane %v5564_v39, 4  ;;  %v5557_v48 = vrot.slane %v5556_v63, 4 }
 0x28b   :  { %11025 = vmatprep.mubr.bf16.mxu1 %v10357_v7  ;;  %v6319_v7 = vrot.slane %v6006_v46, 5  ;;  %v5547_v62 = vrot.slane %v5546_v41, 4  ;;  %v5561_v10 = vrot.slane %v5559_v5, 5  ;;  %v4965_v46 = vld [vmem:[#allocation2 + $0x158] sm:$0x1] }
 0x28c   :  { %v13645_v16 = vpop.f32.mrb[104].mxu1  ;;  %11026 = vmatmul.mubr.bf16.gmra.mrb[184].mxu1 %v10358_v19  ;;  %v13669_v19 = vrot.slane %v5573_v56, 5  ;;  %v4966_v41 = vld [vmem:[#allocation2 + $0x15c] sm:$0xf] }
 0x28d   :  { %v7888_v8 = vpop.f32.mrb[105].mxu1  ;;  %v6320_v34 = vsel %vm11908_vm5, %v10327_v50, %v6319_v7  ;;  %v6321_v28 = vrot.slane %v6319_v7, 4  ;;  %v5552_v39 = vsel %vm11892_vm3, %v5547_v62, %v13649_v30  ;;  %v5588_v63 = vshrl.u32 %v4966_v41, 16 }
 0x28e   :  { %v13651_v17 = vpop.f32.mrb[106].mxu1  ;;  %v5569_v8 = vrot.slane %v5567_v18, 5  ;;  %v5591_v5 = vshll.u32 %v4966_v41, 16  ;;  %v5597_v7 = vshll.u32 %v4967_v61, 16 }
 0x28f   :  { %v7891_v22 = vpop.f32.mrb[107].mxu1  ;;  %8415 = vmatmul.mubr.bf16.gmra.mrb[80].mxu0 %v11622_v20  ;;  %v242_v20 = vmax.f32 %v134_v31, 0.0  ;;  %v5562_v31 = vsel %vm11892_vm3, %v5557_v48, %v5561_v10 }
 0x290   :  { %8422 = vmatprep.mubr.bf16.mxu0 %v10286_v21  ;;  %v5579_v21 = vrot.slane %v5577_v23, 4  ;;  %v6323_v22 = vsel %vm11908_vm5, %v6321_v28, %v6322_v51  ;;  %v5570_v18 = vor.u32 %v5569_v8, %v5566_v44  ;;  %v5583_v23 = vshll.u32 %v4965_v46, 16  ;;  %v4969_v28 = vld [vmem:[#allocation2 + $0x168] sm:$0xf]  ;;  %v4970_v8 = vld [vmem:[#allocation2 + $0x16c] sm:$0xf] }
 0x291   :  { %v10818_v45 = vpack.c.bf16 %v242_v20, %v241_v47  ;;  %v10359_v59 = vcombine.low %v6320_v34, %v6323_v22  ;;  %v5601_v51 = vshrl.u32 %v4967_v61, 16  ;;  %v6008_v47 = vld [vmem:[#allocation2 + $0x1a4] sm:$0xe]  ;;  %v11624_v34 = vld [vmem:[#allocation2 + $0x138] sm:$0xff]   ;;  %v5593_v46 = vrot.slane %v5591_v5, 5 }
 0x292   :  { %v5580_v56 = vor.u32 %v5579_v21, %v13669_v19  ;;  %v5571_v30 = vrot.slane %v5570_v18, 4  ;;  %v5585_v44 = vrot.slane %v5583_v23, 5  ;;  %v5599_v22 = vrot.slane %v5597_v7, 5 }
 0x293   :  { %10872 = vst [vmem:[#allocation2 + $0x1a8] sm:$0xff] %v10818_v45   ;;  %11029 = vmatprep.mubr.bf16.mxu1 %v10359_v59  ;;  %v10328_v48 = vrot.slane %v6008_v47, 9  ;;  %v5603_v45 = vrot.slane %v5601_v51, 4  ;;  %v5621_v18 = vshll.u32 %v4970_v8, 16 }
 0x294   :  { %v13667_v4 = vpop.f32.mrb[108].mxu1  ;;  %v5581_v62 = vrot.slane %v5580_v56, 4  ;;  %v5625_v56 = vshrl.u32 %v4970_v8, 16  ;;  %v5576_v23 = vsel %vm11892_vm3, %v5571_v30, %v13669_v19 }
 0x295   :  { %15227 = vst [vmem:[#allocation29_spill] sm:$0xff] %v13667_v4  ;;  %v7896_v0 = vpop.f32.mrb[109].mxu1  ;;  %v5604_v51 = vor.u32 %v5603_v45, %v5599_v22 }
 0x296   :  { %v13673_v2 = vpop.f32.mrb[110].mxu1  ;;  %v4968_v0 = vld [vmem:[#allocation2 + $0x164] sm:$0x1]  ;;  %v5586_v5 = vsel %vm11892_vm3, %v5581_v62, %v5585_v44  ;;  %v5627_v19 = vrot.slane %v5625_v56, 4 }
 0x297   :  { %15228 = vst [vmem:[#allocation30_spill] sm:$0xff] %v13673_v2  ;;  %v7899_v50 = vpop.f32.mrb[111].mxu1  ;;  %8423 = vmatmul.mubr.bf16.gmra.mrb[84].mxu0 %v11623_v15  ;;  %v10288_v15 = vcombine.low %v5552_v39, %v5562_v31  ;;  %v5615_v2 = vshll.u32 %v4969_v28, 16  ;;  %v5607_v47 = vshll.u32 %v4968_v0, 16  ;;  %v5605_v44 = vrot.slane %v5604_v51, 4 }
 0x298   :  { %8430 = vmatprep.mubr.bf16.mxu0 %v10287_v26  ;;  %v5590_v26 = vrot.slane %v5588_v63, 4  ;;  %v5612_v50 = vshrl.u32 %v4969_v28, 16 }
 0x299   :  { %v5609_v0 = vrot.slane %v5607_v47, 5 }
 0x29a   :  { %v6009_v41 = vld [vmem:[#allocation2 + $0x1a8] sm:$0xf]  ;;  %v6010_v61 = vld [vmem:[#allocation2 + $0x1ac] sm:$0x1]  ;;  %v5594_v7 = vor.u32 %v5593_v46, %v5590_v26  ;;  %v5614_v28 = vrot.slane %v5612_v50, 4 }
 0x29b   :  { %v6329_v39 = vrot.slane %v6010_v61, 5  ;;  %v4973_v26 = vld [vmem:[#allocation2 + $0x178] sm:$0xf]  ;;  %v4985_v4 = vld [vmem:[#allocation2 + $0x1a8] sm:$0xf] }
 0x29c   :  { %v13681_v20 = vpop.f32.mrb[112].mxu1  ;;  %v5595_v62 = vrot.slane %v5594_v7, 4  ;;  %v5649_v56 = vshrl.u32 %v4973_v26, 16  ;;  %v11626_v7 = vld [vmem:[#allocation2 + $0x150] sm:$0xff]  }
 0x29d   :  { %15229 = vst [vmem:[#allocation31_spill] sm:$0xff] %v13681_v20  ;;  %v7904_v21 = vpop.f32.mrb[113].mxu1  ;;  %v6326_v20 = vrot.slane %v6009_v41, 5  ;;  %v5623_v41 = vrot.slane %v5621_v18, 5  ;;  %v5645_v18 = vshll.u32 %v4973_v26, 16 }
 0x29e   :  { %v13683_v10 = vpop.f32.mrb[114].mxu1  ;;  %v5617_v21 = vrot.slane %v5615_v2, 5 }
 0x29f   :  { %15230 = vst [vmem:[#allocation32_spill] sm:$0xff] %v13683_v10  ;;  %v7907_v59 = vpop.f32.mrb[115].mxu1  ;;  %8431 = vmatmul.mubr.bf16.gmra.mrb[88].mxu0 %v11624_v34  ;;  %v6327_v31 = vsel %vm11908_vm5, %v10328_v48, %v6326_v20  ;;  %v6328_v63 = vrot.slane %v6326_v20, 4  ;;  %v10289_v48 = vcombine.low %v5576_v23, %v5586_v5  ;;  %v4971_v20 = vld [vmem:[#allocation2 + $0x170] sm:$0x1]  ;;  %v5628_v46 = vor.u32 %v5627_v19, %v5623_v41 }
 0x2a0   :  { %8438 = vmatprep.mubr.bf16.mxu0 %v10288_v15  ;;  %v11625_v15 = vld [vmem:[#allocation2 + $0x144] sm:$0xff]   ;;  %v4972_v59 = vld [vmem:[#allocation2 + $0x174] sm:$0xf]  ;;  %v5618_v58 = vor.u32 %v5617_v21, %v5614_v28  ;;  %v5631_v45 = vshll.u32 %v4971_v20, 16  ;;  %v5600_v23 = vsel %vm11892_vm3, %v5595_v62, %v5599_v22  ;;  %v4974_v5 = vld [vmem:[#allocation2 + $0x17c] sm:$0x1] }
 0x2a1   :  { %v6330_v34 = vsel %vm11908_vm5, %v6328_v63, %v6329_v39  ;;  %v5636_v50 = vshrl.u32 %v4972_v59, 16  ;;  %v5639_v39 = vshll.u32 %v4972_v59, 16  ;;  %v5629_v47 = vrot.slane %v5628_v46, 4  ;;  %v4976_v22 = vld [vmem:[#allocation2 + $0x184] sm:$0xf] }
 0x2a2   :  { %v10360_v30 = vcombine.low %v6327_v31, %v6330_v34  ;;  %v5610_v31 = vsel %vm11892_vm3, %v5605_v44, %v5609_v0  ;;  %v5619_v63 = vrot.slane %v5618_v58, 4  ;;  %v5633_v28 = vrot.slane %v5631_v45, 5 }
 0x2a3   :  { %v5638_v21 = vrot.slane %v5636_v50, 4  ;;  %v5641_v34 = vrot.slane %v5639_v39, 5  ;;  %v10290_v19 = vcombine.low %v5600_v23, %v5610_v31  ;;  %v5655_v26 = vshll.u32 %v4974_v5, 16  ;;  %v11627_v39 = vld [vmem:[#allocation2 + $0x15c] sm:$0xff]  }
 0x2a4   :  { %v13694_v8 = vpop.f32.mrb[116].mxu1  ;;  %11030 = vmatmul.mubr.bf16.gmra.mrb[188].mxu1 %v10360_v30  ;;  %v5647_v30 = vrot.slane %v5645_v18, 5  ;;  %v5624_v62 = vsel %vm11892_vm3, %v5619_v63, %v5623_v41  ;;  %v5634_v44 = vsel %vm11892_vm3, %v5629_v47, %v5633_v28  ;;  %v5669_v45 = vshll.u32 %v4976_v22, 16 }
 0x2a5   :  { %15231 = vst [vmem:[#allocation33_spill] sm:$0xff] %v13694_v8  ;;  %v7912_v61 = vpop.f32.mrb[117].mxu1  ;;  %v5642_v0 = vor.u32 %v5641_v34, %v5638_v21  ;;  %v5673_v50 = vshrl.u32 %v4976_v22, 16  ;;  %v5657_v31 = vrot.slane %v5655_v26, 5  ;;  %v4978_v34 = vld [vmem:[#allocation2 + $0x18c] sm:$0xf] }
 0x2a6   :  { %v13696_v10 = vpop.f32.mrb[118].mxu1  ;;  %v5651_v61 = vrot.slane %v5649_v56, 4  ;;  %v10291_v56 = vcombine.low %v5624_v62, %v5634_v44  ;;  %v5671_v47 = vrot.slane %v5669_v45, 5  ;;  %v5687_v26 = vshll.u32 %v4978_v34, 16 }
 0x2a7   :  { %15232 = vst [vmem:[#allocation34_spill] sm:$0xff] %v13696_v10  ;;  %v7915_v2 = vpop.f32.mrb[119].mxu1  ;;  %8439 = vmatmul.mubr.bf16.gmra.mrb[92].mxu0 %v11625_v15  ;;  %v5643_v23 = vrot.slane %v5642_v0, 4  ;;  %v5675_v28 = vrot.slane %v5673_v50, 4  ;;  %v5684_v0 = vshrl.u32 %v4978_v34, 16 }
 0x2a8   :  { %8446 = vmatprep.mubr.bf16.mxu0 %v10289_v48  ;;  %v4975_v48 = vld [vmem:[#allocation2 + $0x180] sm:$0xf]  ;;  %v5652_v58 = vor.u32 %v5651_v61, %v5647_v30  ;;  %v4980_v50 = vld [vmem:[#allocation2 + $0x194] sm:$0x1] }
 0x2a9   :  { %v5660_v2 = vshrl.u32 %v4975_v48, 16  ;;  %v5663_v46 = vshll.u32 %v4975_v48, 16  ;;  %v5648_v48 = vsel %vm11892_vm3, %v5643_v23, %v5647_v30  ;;  %v5676_v44 = vor.u32 %v5675_v28, %v5671_v47  ;;  %v4982_v30 = vld [vmem:[#allocation2 + $0x19c] sm:$0xf] }
 0x2ab   :  { %v5662_v41 = vrot.slane %v5660_v2, 4 }
 0x2ac   :  { %v13702_v51 = vpop.f32.mrb[120].mxu1 }
 0x2ad   :  { %15233 = vst [vmem:[#allocation35_spill] sm:$0xff] %v13702_v51  ;;  %v7920_v15 = vpop.f32.mrb[121].mxu1  ;;  %v5721_v51 = vshrl.u32 %v4982_v30, 16 }
 0x2ae   :  { %v13704_v20 = vpop.f32.mrb[122].mxu1  ;;  %v4977_v15 = vld [vmem:[#allocation2 + $0x188] sm:$0x1] }
 0x2af   :  { %15234 = vst [vmem:[#allocation36_spill] sm:$0xff] %v13704_v20  ;;  %v7923_v59 = vpop.f32.mrb[123].mxu1  ;;  %8447 = vmatmul.mubr.bf16.gmra.mrb[96].mxu0 %v11626_v7  ;;  %v5653_v7 = vrot.slane %v5652_v58, 4  ;;  %v5679_v61 = vshll.u32 %v4977_v15, 16  ;;  %v5717_v20 = vshll.u32 %v4982_v30, 16 }
 0x2b0   :  { %8454 = vmatprep.mubr.bf16.mxu0 %v10290_v19  ;;  %v5665_v59 = vrot.slane %v5663_v46, 5  ;;  %v4979_v19 = vld [vmem:[#allocation2 + $0x190] sm:$0xf]  ;;  %v11628_v46 = vld [vmem:[#allocation2 + $0x168] sm:$0xff]  }
 0x2b1   :  { %v5658_v22 = vsel %vm11892_vm3, %v5653_v7, %v5657_v31  ;;  %v5693_v2 = vshll.u32 %v4979_v19, 16  ;;  %v5697_v58 = vshrl.u32 %v4979_v19, 16  ;;  %v5686_v31 = vrot.slane %v5684_v0, 4  ;;  %v11629_v0 = vld [vmem:[#allocation2 + $0x174] sm:$0xff]  }
 0x2b2   :  { %v5666_v62 = vor.u32 %v5665_v59, %v5662_v41  ;;  %v10292_v15 = vcombine.low %v5648_v48, %v5658_v22  ;;  %v5689_v41 = vrot.slane %v5687_v26, 5 }
 0x2b3   :  { %v5695_v7 = vrot.slane %v5693_v2, 5  ;;  %v5699_v59 = vrot.slane %v5697_v58, 4 }
 0x2b4   :  { %v13710_v18 = vpop.f32.mrb[124].mxu1  ;;  %v5690_v22 = vor.u32 %v5689_v41, %v5686_v31 }
 0x2b5   :  { %15235 = vst [vmem:[#allocation37_spill] sm:$0xff] %v13710_v18  ;;  %v7928_v63 = vpop.f32.mrb[125].mxu1  ;;  %v5703_v18 = vshll.u32 %v4980_v50, 16 }
 0x2b6   :  { %v13712_v5 = vpop.f32.mrb[126].mxu1  ;;  %v4981_v63 = vld [vmem:[#allocation2 + $0x198] sm:$0xf] }
 0x2b7   :  { %15236 = vst [vmem:[#allocation38_spill] sm:$0xff] %v13712_v5  ;;  %v7931_v21 = vpop.f32.mrb[127].mxu1  ;;  %8455 = vmatmul.mubr.bf16.gmra.mrb[100].mxu0 %v11627_v39  ;;  %v5681_v5 = vrot.slane %v5679_v61, 5  ;;  %v5708_v34 = vshrl.u32 %v4981_v63, 16  ;;  %v5711_v19 = vshll.u32 %v4981_v63, 16  ;;  %v5705_v8 = vrot.slane %v5703_v18, 5 }
 0x2b8   :  { %8462 = vmatprep.mubr.bf16.mxu0 %v10291_v56  ;;  %v5667_v56 = vrot.slane %v5666_v62, 4  ;;  %v5677_v21 = vrot.slane %v5676_v44, 4  ;;  %v5700_v62 = vor.u32 %v5699_v59, %v5695_v7 }
 0x2b9   :  { %v5710_v63 = vrot.slane %v5708_v34, 4  ;;  %v5713_v50 = vrot.slane %v5711_v19, 5 }
 0x2ba   :  { %v5672_v48 = vsel %vm11892_vm3, %v5667_v56, %v5671_v47  ;;  %v5682_v61 = vsel %vm11892_vm3, %v5677_v21, %v5681_v5  ;;  %v5719_v47 = vrot.slane %v5717_v20, 5  ;;  %v5723_v56 = vrot.slane %v5721_v51, 4 }
 0x2bb   :  { %v10293_v30 = vcombine.low %v5672_v48, %v5682_v61  ;;  %v5701_v59 = vrot.slane %v5700_v62, 4  ;;  %v5714_v19 = vor.u32 %v5713_v50, %v5710_v63  ;;  %v5741_v61 = vshll.u32 %v4985_v4, 16 }
 0x2bc   :  { %v13718_v45 = vpop.f32.mrb[128].mxu1  ;;  %v5724_v20 = vor.u32 %v5723_v56, %v5719_v47 }
 0x2bd   :  { %v8545_v39 = vpop.f32.mrb[129].mxu1 }
 0x2be   :  { %v13720_v23 = vpop.f32.mrb[130].mxu1 }
 0x2bf   :  { %v8548_v28 = vpop.f32.mrb[131].mxu1  ;;  %8463 = vmatmul.mubr.bf16.gmra.mrb[104].mxu0 %v11628_v46  ;;  %v4983_v46 = vld [vmem:[#allocation2 + $0x1a0] sm:$0x1] }
 0x2c0   :  { %8470 = vmatprep.mubr.bf16.mxu0 %v10292_v15  ;;  %v5727_v48 = vshll.u32 %v4983_v46, 16 }
 0x2c2   :  { %v8256_v44 = vpop.f32.mrb[0].mxu0  ;;  %v5729_v63 = vrot.slane %v5727_v48, 5 }
 0x2c3   :  { %v11145_v26 = vadd.f32 %v8256_v44, %v12799_v33  ;;  %v8258_v2 = vpop.f32.mrb[1].mxu0  ;;  %v5691_v33 = vrot.slane %v5690_v22, 4  ;;  %v4984_v44 = vld [vmem:[#allocation2 + $0x1a4] sm:$0xf]  ;;  %v5745_v22 = vshrl.u32 %v4985_v4, 16 }
 0x2c4   :  { %v13727_v58 = vpop.f32.mrb[132].mxu1  ;;  %v8259_v15 = vpop.f32.mrb[2].mxu0  ;;  %v5732_v51 = vshrl.u32 %v4984_v44, 16  ;;  %v5735_v18 = vshll.u32 %v4984_v44, 16 }
 0x2c5   :  { %v8561_v10 = vpop.f32.mrb[133].mxu1  ;;  %v11146_v5 = vadd.f32 %v8259_v15, %v12823_v13  ;;  %v13730_v21 = vadd.f32 %v11145_v26, %v8545_v39  ;;  %v8261_v31 = vpop.f32.mrb[3].mxu0  ;;  %v5696_v13 = vsel %vm11892_vm3, %v5691_v33, %v5695_v7  ;;  %v5706_v39 = vsel %vm11892_vm3, %v5701_v59, %v5705_v8  ;;  %v11630_v15 = vld [vmem:[#allocation2 + $0x180] sm:$0xff]   ;;  %v4986_v59 = vld [vmem:[#allocation2 + $0x1ac] sm:$0x1] }
 0x2c6   :  { %v13732_v41 = vpop.f32.mrb[134].mxu1  ;;  %v10294_v50 = vcombine.low %v5696_v13, %v5706_v39  ;;  %v5734_v56 = vrot.slane %v5732_v51, 4  ;;  %v5743_v33 = vrot.slane %v5741_v61, 5  ;;  %v5747_v4 = vrot.slane %v5745_v22, 4  ;;  %v11631_v22 = vld [vmem:[#allocation2 + $0x18c] sm:$0xff]  }
 0x2c7   :  { %v8564_v2 = vpop.f32.mrb[135].mxu1  ;;  %v13734_v34 = vadd.f32 %v11146_v5, %v8548_v28  ;;  %8471 = vmatmul.mubr.bf16.gmra.mrb[108].mxu0 %v11629_v0  ;;  %v5715_v0 = vrot.slane %v5714_v19, 4  ;;  %v5737_v5 = vrot.slane %v5735_v18, 5  ;;  %v5751_v18 = vshll.u32 %v4986_v59, 16 }
 0x2c8   :  { %8478 = vmatprep.mubr.bf16.mxu0 %v10293_v30  ;;  %v5725_v30 = vrot.slane %v5724_v20, 4 }
 0x2c9   :  { %v5738_v48 = vor.u32 %v5737_v5, %v5734_v56  ;;  %v5720_v20 = vsel %vm11892_vm3, %v5715_v0, %v5719_v47 }
 0x2ca   :  { %v8264_v62 = vpop.f32.mrb[4].mxu0 }
 0x2cb   :  { %v11147_v26 = vadd.f32 %v8264_v62, %v12856_v32  ;;  %v8266_v28 = vpop.f32.mrb[5].mxu0 }
 0x2cc   :  { %v8267_v46 = vpop.f32.mrb[6].mxu0  ;;  %v5739_v28 = vrot.slane %v5738_v48, 4 }
 0x2cd   :  { %v13742_v31 = vadd.f32 %v11147_v26, %v13718_v45  ;;  %v11148_v7 = vadd.f32 %v8267_v46, %v12870_v27  ;;  %v8269_v8 = vpop.f32.mrb[7].mxu0  ;;  %v10979_v44 = vpop.f32.mrb[136].mxu1  ;;  %v5730_v45 = vsel %vm11892_vm3, %v5725_v30, %v5729_v63  ;;  %v5748_v27 = vor.u32 %v5747_v4, %v5743_v33 }
 0x2ce   :  { %v8577_v19 = vpop.f32.mrb[137].mxu1  ;;  %v10295_v26 = vcombine.low %v5720_v20, %v5730_v45  ;;  %v5744_v30 = vsel %vm11892_vm3, %v5739_v28, %v5743_v33 }
 0x2cf   :  { %v13746_v32 = vadd.f32 %v11148_v7, %v13720_v23  ;;  %8479 = vmatmul.mubr.bf16.gmra.mrb[112].mxu0 %v11630_v15  ;;  %v10980_v51 = vpop.f32.mrb[138].mxu1  ;;  %v5749_v0 = vrot.slane %v5748_v27, 4 }
 0x2d0   :  { %8486 = vmatprep.mubr.bf16.mxu0 %v10294_v50  ;;  %v8580_v39 = vpop.f32.mrb[139].mxu1  ;;  %v5753_v50 = vrot.slane %v5751_v18, 5 }
 0x2d2   :  { %v8272_v13 = vpop.f32.mrb[8].mxu0 }
 0x2d3   :  { %v11149_v61 = vadd.f32 %v8272_v13, %v12880_v54  ;;  %v8274_v23 = vpop.f32.mrb[9].mxu0  ;;  %v5754_v54 = vsel %vm11892_vm3, %v5749_v0, %v5753_v50  ;;  %v11633_v13 = vld [vmem:[#allocation2 + $0x1a4] sm:$0xff]  }
 0x2d4   :  { %v8275_v62 = vpop.f32.mrb[10].mxu0  ;;  %v10296_v4 = vcombine.low %v5744_v30, %v5754_v54  ;;  %v11634_v54 = vld [vmem:[%s15168_s5] sm:$0xff]  }
 0x2d5   :  { %v11150_v15 = vadd.f32 %v8275_v62, %v12901_v43  ;;  %v13754_v46 = vadd.f32 %v11149_v61, %v8561_v10  ;;  %v8277_v47 = vpop.f32.mrb[11].mxu0  ;;  %v11632_v43 = vld [vmem:[#allocation2 + $0x198] sm:$0xff]   ;;  %11033 = vmatprep.subr.bf16.mxu1 %v11634_v54 }
 0x2d6   :  { %11034 = vmatpush3.bf16.msra.mxu1 %v11634_v54 }
 0x2d7   :  { %v13756_v63 = vadd.f32 %v11150_v15, %v8564_v2  ;;  %8487 = vmatmul.mubr.bf16.gmra.mrb[116].mxu0 %v11631_v22 }
 0x2d8   :  { %8494 = vmatprep.mubr.bf16.mxu0 %v10295_v26  ;;  %v10983_v10 = vpop.f32.mrb[140].mxu1 }
 0x2d9   :  { %v8593_v59 = vpop.f32.mrb[141].mxu1 }
 0x2da   :  { %v8280_v56 = vpop.f32.mrb[12].mxu0  ;;  %v10984_v45 = vpop.f32.mrb[142].mxu1 }
 0x2db   :  { %v11151_v5 = vadd.f32 %v8280_v56, %v12925_v14  ;;  %v8282_v7 = vpop.f32.mrb[13].mxu0  ;;  %v8596_v33 = vpop.f32.mrb[143].mxu1 }
 0x2dc   :  { %v8283_v8 = vpop.f32.mrb[14].mxu0 }
 0x2dd   :  { %v13764_v2 = vadd.f32 %v11151_v5, %v13727_v58  ;;  %v11152_v48 = vadd.f32 %v8283_v8, %v12936_v49  ;;  %v8285_v20 = vpop.f32.mrb[15].mxu0 }
 0x2df   :  { %v13768_v42 = vadd.f32 %v11152_v48, %v13732_v41  ;;  %8495 = vmatmul.mubr.bf16.gmra.mrb[120].mxu0 %v11632_v43 }
 0x2e0   :  { %8502 = vmatprep.mubr.bf16.mxu0 %v10296_v4 }
 0x2e2   :  { %v8288_v14 = vpop.f32.mrb[16].mxu0 }
 0x2e3   :  { %v11153_v27 = vadd.f32 %v8288_v14, %v12966_v35  ;;  %v8290_v18 = vpop.f32.mrb[17].mxu0 }
 0x2e4   :  { %v8291_v61 = vpop.f32.mrb[18].mxu0 }
 0x2e5   :  { %v11154_v23 = vadd.f32 %v8291_v61, %v12982_v9  ;;  %v13772_v58 = vadd.f32 %v11153_v27, %v8577_v19  ;;  %v8293_v22 = vpop.f32.mrb[19].mxu0  ;;  %v13776_v62 = vpop.f32.mrb[144].mxu1 }
 0x2e6   :  { %v8609_v41 = vpop.f32.mrb[145].mxu1 }
 0x2e7   :  { %v13774_v49 = vadd.f32 %v11154_v23, %v8580_v39  ;;  %8503 = vmatmul.mubr.bf16.gmra.mrb[124].mxu0 %v11633_v13  ;;  %v13778_v26 = vpop.f32.mrb[146].mxu1 }
 0x2e8   :  { %v8612_v15 = vpop.f32.mrb[147].mxu1 }
 0x2ea   :  { %v8296_v28 = vpop.f32.mrb[20].mxu0 }
 0x2eb   :  { %v11155_v35 = vadd.f32 %v8296_v28, %v13016_v57  ;;  %v8298_v47 = vpop.f32.mrb[21].mxu0 }
 0x2ec   :  { %v8299_v0 = vpop.f32.mrb[22].mxu0 }
 0x2ed   :  { %v13781_v50 = vadd.f32 %v11155_v35, %v10979_v44  ;;  %v11156_v9 = vadd.f32 %v8299_v0, %v13062_v40  ;;  %v8301_v19 = vpop.f32.mrb[23].mxu0 }
 0x2ee   :  { %v8870_v19 = vmul.f32 %v13730_v21, %v13730_v21 }
 0x2ef   :  { %v13784_v30 = vadd.f32 %v11156_v9, %v10980_v51  ;;  %v13790_v7 = vpop.f32.mrb[148].mxu1 }
 0x2f0   :  { %v13792_v43 = vpop.f32.mrb[149].mxu1 }
 0x2f1   :  { %v13797_v8 = vpop.f32.mrb[150].mxu1 }
 0x2f2   :  { %v8304_v39 = vpop.f32.mrb[24].mxu0  ;;  %v13799_v4 = vpop.f32.mrb[151].mxu1 }
 0x2f3   :  { %v11157_v56 = vadd.f32 %v8304_v39, %v13080_v11  ;;  %v8306_v5 = vpop.f32.mrb[25].mxu0  ;;  %v8800_v39 = vadd.f32 %v13734_v34, %v13730_v21 }
 0x2f4   :  { %v8307_v57 = vpop.f32.mrb[26].mxu0 }
 0x2f5   :  { %v11158_v44 = vadd.f32 %v8307_v57, %v13093_v37  ;;  %v13795_v40 = vadd.f32 %v11157_v56, %v8593_v59  ;;  %v8309_v51 = vpop.f32.mrb[27].mxu0  ;;  %v8801_v5 = vadd.f32 %v8800_v39, %v13742_v31 }
 0x2f7   :  { %v13801_v48 = vadd.f32 %v11158_v44, %v8596_v33  ;;  %v13809_v61 = vpop.f32.mrb[152].mxu1  ;;  %v11635_v33 = vld [vmem:[%s15168_s5 + $0x8] sm:$0xff]  }
 0x2f8   :  { %v13811_v23 = vpop.f32.mrb[153].mxu1  ;;  %11035 = vmatprep.subr.bf16.mxu1 %v11635_v33 }
 0x2f9   :  { %v13813_v22 = vpop.f32.mrb[154].mxu1  ;;  %11036 = vmatpush3.bf16.msra.mxu1 %v11635_v33 }
 0x2fa   :  { %v8312_v11 = vpop.f32.mrb[28].mxu0  ;;  %v13818_v28 = vpop.f32.mrb[155].mxu1 }
 0x2fb   :  { %v11159_v20 = vadd.f32 %v8312_v11, %v13107_v1  ;;  %v8314_v14 = vpop.f32.mrb[29].mxu0 }
 0x2fc   :  { %v8315_v27 = vpop.f32.mrb[30].mxu0  ;;  %v8874_v14 = vmul.f32 %v13754_v46, %v13754_v46 }
 0x2fd   :  { %v13804_v18 = vadd.f32 %v11159_v20, %v10983_v10  ;;  %v11160_v13 = vadd.f32 %v8315_v27, %v13120_v38  ;;  %v8317_v37 = vpop.f32.mrb[31].mxu0  ;;  %v8802_v20 = vadd.f32 %v8801_v5, %v13746_v32 }
 0x2ff   :  { %v13807_v59 = vadd.f32 %v11160_v13, %v10984_v45  ;;  %v8871_v45 = vmul.f32 %v13734_v34, %v13734_v34  ;;  %v8803_v33 = vadd.f32 %v8802_v20, %v13754_v46 }
 0x301   :  { %15237 = vst [vmem:[#allocation39_spill] sm:$0xff] %v13807_v59  ;;  %v8934_v56 = vadd.f32 %v8871_v45, %v8870_v19 }
 0x302   :  { %v8320_v1 = vpop.f32.mrb[32].mxu0 }
 0x303   :  { %v11161_v10 = vadd.f32 %v8320_v1, %v13123_v53  ;;  %v8322_v35 = vpop.f32.mrb[33].mxu0  ;;  %v8872_v53 = vmul.f32 %v13742_v31, %v13742_v31 }
 0x304   :  { %v8323_v38 = vpop.f32.mrb[34].mxu0  ;;  %v11636_v35 = vld [vmem:[%s15168_s5 + $0x10] sm:$0xff]  }
 0x305   :  { %v11162_v47 = vadd.f32 %v8323_v38, %v13127_v52  ;;  %v13824_v0 = vadd.f32 %v11161_v10, %v8609_v41  ;;  %v8325_v9 = vpop.f32.mrb[35].mxu0  ;;  %v8935_v44 = vadd.f32 %v8934_v56, %v8872_v53  ;;  %v8873_v52 = vmul.f32 %v13746_v32, %v13746_v32  ;;  %11037 = vmatprep.subr.bf16.mxu1 %v11636_v35 }
 0x306   :  { %v8875_v10 = vmul.f32 %v13756_v63, %v13756_v63  ;;  %11038 = vmatpush3.bf16.msra.mxu1 %v11636_v35 }
 0x307   :  { %v13832_v54 = vadd.f32 %v11162_v47, %v8612_v15  ;;  %v8936_v37 = vadd.f32 %v8935_v44, %v8873_v52  ;;  %v8877_v44 = vmul.f32 %v13768_v42, %v13768_v42 }
 0x309   :  { %15238 = vst [vmem:[#allocation40_spill] sm:$0xff] %v13832_v54 }
 0x30a   :  { %v8328_v57 = vpop.f32.mrb[36].mxu0 }
 0x30b   :  { %v11163_v41 = vadd.f32 %v8328_v57, %v13145_v6  ;;  %v8330_v51 = vpop.f32.mrb[37].mxu0  ;;  %v8937_v6 = vadd.f32 %v8936_v37, %v8874_v14 }
 0x30c   :  { %v8331_v11 = vpop.f32.mrb[38].mxu0 }
 0x30d   :  { %v13842_v15 = vadd.f32 %v11163_v41, %v13776_v62  ;;  %v11164_v27 = vadd.f32 %v8331_v11, %v13151_v24  ;;  %v8333_v13 = vpop.f32.mrb[39].mxu0  ;;  %v8804_v62 = vadd.f32 %v8803_v33, %v13756_v63  ;;  %v8876_v24 = vmul.f32 %v13764_v2, %v13764_v2 }
 0x30e   :  { %v8938_v9 = vadd.f32 %v8937_v6, %v8875_v10  ;;  %v8879_v33 = vmul.f32 %v13774_v49, %v13774_v49 }
 0x30f   :  { %15239 = vst [vmem:[#allocation41_spill] sm:$0xff] %v13842_v15  ;;  %v13847_v1 = vadd.f32 %v11164_v27, %v13778_v26  ;;  %v8805_v19 = vadd.f32 %v8804_v62, %v13764_v2  ;;  %v13863_v5 = vpop.f32.mrb[156].mxu1 }
 0x310   :  { %v8939_v57 = vadd.f32 %v8938_v9, %v8876_v24  ;;  %v13870_v52 = vpop.f32.mrb[157].mxu1  ;;  %v8880_v24 = vmul.f32 %v13781_v50, %v13781_v50 }
 0x311   :  { %15240 = vst [vmem:[#allocation42_spill] sm:$0xff] %v13847_v1  ;;  %v13872_v41 = vpop.f32.mrb[158].mxu1  ;;  %v8806_v51 = vadd.f32 %v8805_v19, %v13768_v42 }
 0x312   :  { %v8336_v38 = vpop.f32.mrb[40].mxu0  ;;  %v8940_v14 = vadd.f32 %v8939_v57, %v8877_v44 }
 0x313   :  { %v11165_v45 = vadd.f32 %v8336_v38, %v13172_v3  ;;  %v8338_v47 = vpop.f32.mrb[41].mxu0  ;;  %v8807_v20 = vadd.f32 %v8806_v51, %v13772_v58 }
 0x314   :  { %v8339_v26 = vpop.f32.mrb[42].mxu0 }
 0x315   :  { %v11166_v39 = vadd.f32 %v8339_v26, %v13177_v36  ;;  %v13861_v53 = vadd.f32 %v11165_v45, %v13792_v43  ;;  %v8341_v56 = vpop.f32.mrb[43].mxu0  ;;  %v8878_v36 = vmul.f32 %v13772_v58, %v13772_v58  ;;  %v13877_v43 = vpop.f32.mrb[159].mxu1  ;;  %v8808_v62 = vadd.f32 %v8807_v20, %v13774_v49 }
 0x316   :  { %v8881_v56 = vmul.f32 %v13784_v30, %v13784_v30 }
 0x317   :  { %15241 = vst [vmem:[#allocation43_spill] sm:$0xff] %v13861_v53  ;;  %v13868_v3 = vadd.f32 %v11166_v39, %v13799_v4  ;;  %v8941_v37 = vadd.f32 %v8940_v14, %v8878_v36  ;;  %v13887_v38 = vpop.f32.mrb[160].mxu1  ;;  %v8882_v36 = vmul.f32 %v13795_v40, %v13795_v40 }
 0x318   :  { %v13895_v45 = vpop.f32.mrb[161].mxu1 }
 0x319   :  { %15242 = vst [vmem:[#allocation44_spill] sm:$0xff] %v13868_v3  ;;  %v13897_v47 = vpop.f32.mrb[162].mxu1  ;;  %v8942_v26 = vadd.f32 %v8941_v37, %v8879_v33 }
 0x31a   :  { %v8344_v11 = vpop.f32.mrb[44].mxu0  ;;  %v13900_v9 = vpop.f32.mrb[163].mxu1 }
 0x31b   :  { %v11167_v27 = vadd.f32 %v8344_v11, %v13183_v60  ;;  %v8346_v13 = vpop.f32.mrb[45].mxu0  ;;  %v8943_v39 = vadd.f32 %v8942_v26, %v8880_v24  ;;  %v15245_v11 = vld [vmem:[#allocation4_spill] sm:$0xff] }
 0x31c   :  { %v8347_v4 = vpop.f32.mrb[46].mxu0 }
 0x31d   :  { %v13884_v6 = vadd.f32 %v11167_v27, %v13790_v7  ;;  %v11168_v10 = vadd.f32 %v8347_v4, %v13202_v25  ;;  %v8349_v35 = vpop.f32.mrb[47].mxu0  ;;  %v8809_v7 = vadd.f32 %v8808_v62, %v13781_v50  ;;  %v11637_v25 = vld [vmem:[%s15168_s5 + $0x18] sm:$0xff]   ;;  %v8883_v62 = vmul.f32 %v13801_v48, %v13801_v48 }
 0x31e   :  { %11039 = vmatprep.subr.bf16.mxu1 %v11637_v25 }
 0x31f   :  { %15243 = vst [vmem:[#allocation45_spill] sm:$0xff] %v13884_v6  ;;  %v13893_v60 = vadd.f32 %v11168_v10, %v13797_v8  ;;  %11040 = vmatpush3.bf16.msra.mxu1 %v11637_v25  ;;  %v8810_v51 = vadd.f32 %v8809_v7, %v13784_v30  ;;  %v8884_v7 = vmul.f32 %v13804_v18, %v13804_v18  ;;  %v15248_v25 = vld [vmem:[#allocation5_spill] sm:$0xff] }
 0x321   :  { %15244 = vst [vmem:[#allocation46_spill] sm:$0xff] %v13893_v60  ;;  %v8811_v4 = vadd.f32 %v8810_v51, %v13795_v40 }
 0x322   :  { %v8352_v19 = vpop.f32.mrb[48].mxu0  ;;  %v13915_v13 = vpop.f32.mrb[164].mxu1 }
 0x323   :  { %v11169_v8 = vadd.f32 %v8352_v19, %v13209_v55  ;;  %v8354_v57 = vpop.f32.mrb[49].mxu0  ;;  %v8944_v55 = vadd.f32 %v8943_v39, %v8881_v56  ;;  %v13921_v33 = vpop.f32.mrb[165].mxu1  ;;  %v8812_v26 = vadd.f32 %v8811_v4, %v13801_v48 }
 0x324   :  { %v8355_v44 = vpop.f32.mrb[50].mxu0  ;;  %v13923_v10 = vpop.f32.mrb[166].mxu1 }
 0x325   :  { %v11170_v20 = vadd.f32 %v8355_v44, %v15245_v11  ;;  %v13913_v14 = vadd.f32 %v11169_v8, %v13811_v23  ;;  %v8357_v27 = vpop.f32.mrb[51].mxu0  ;;  %v8945_v35 = vadd.f32 %v8944_v55, %v8882_v36  ;;  %v13927_v24 = vpop.f32.mrb[167].mxu1  ;;  %v8813_v8 = vadd.f32 %v8812_v26, %v13804_v18  ;;  %v15250_v44 = vld [vmem:[#allocation6_spill] sm:$0xff] }
 0x326   :  { %v8886_v55 = vmul.f32 %v13824_v0, %v13824_v0 }
 0x327   :  { %15246 = vst [vmem:[#allocation4_spill] sm:$0xff] %v13913_v14  ;;  %v13919_v37 = vadd.f32 %v11170_v20, %v13818_v28  ;;  %v8946_v56 = vadd.f32 %v8945_v35, %v8883_v62  ;;  %v8885_v20 = vmul.f32 %v13807_v59, %v13807_v59  ;;  %v8814_v4 = vadd.f32 %v8813_v8, %v13807_v59 }
 0x329   :  { %15247 = vst [vmem:[#allocation47_spill] sm:$0xff] %v13919_v37  ;;  %v8947_v11 = vadd.f32 %v8946_v56, %v8884_v7  ;;  %v8815_v26 = vadd.f32 %v8814_v4, %v13824_v0  ;;  %v8888_v4 = vmul.f32 %v13842_v15, %v13842_v15 }
 0x32a   :  { %v8360_v23 = vpop.f32.mrb[52].mxu0 }
 0x32b   :  { %v11171_v19 = vadd.f32 %v8360_v23, %v15248_v25  ;;  %v8362_v28 = vpop.f32.mrb[53].mxu0  ;;  %v8948_v7 = vadd.f32 %v8947_v11, %v8885_v20  ;;  %v15252_v25 = vld [vmem:[#allocation7_spill] sm:$0xff]  ;;  %v8816_v20 = vadd.f32 %v8815_v26, %v13832_v54 }
 0x32c   :  { %v8363_v39 = vpop.f32.mrb[54].mxu0 }
 0x32d   :  { %v13935_v57 = vadd.f32 %v11171_v19, %v13809_v61  ;;  %v11172_v51 = vadd.f32 %v8363_v39, %v15250_v44  ;;  %v8365_v36 = vpop.f32.mrb[55].mxu0  ;;  %v11638_v61 = vld [vmem:[%s15168_s5 + $0x20] sm:$0xff]   ;;  %v8949_v8 = vadd.f32 %v8948_v7, %v8886_v55  ;;  %v8887_v44 = vmul.f32 %v13832_v54, %v13832_v54 }
 0x32e   :  { %11041 = vmatprep.subr.bf16.mxu1 %v11638_v61  ;;  %v8817_v55 = vadd.f32 %v8816_v20, %v13842_v15 }
 0x32f   :  { %15249 = vst [vmem:[#allocation5_spill] sm:$0xff] %v13935_v57  ;;  %v13941_v27 = vadd.f32 %v11172_v51, %v13813_v22  ;;  %11042 = vmatpush3.bf16.msra.mxu1 %v11638_v61  ;;  %v15253_v51 = vld [vmem:[#allocation8_spill] sm:$0xff] }
 0x330   :  { %v13946_v35 = vpop.f32.mrb[168].mxu1  ;;  %v8818_v26 = vadd.f32 %v8817_v55, %v13847_v1 }
 0x331   :  { %15251 = vst [vmem:[#allocation6_spill] sm:$0xff] %v13941_v27  ;;  %v13951_v23 = vpop.f32.mrb[169].mxu1 }
 0x332   :  { %v8368_v62 = vpop.f32.mrb[56].mxu0  ;;  %v13955_v28 = vpop.f32.mrb[170].mxu1 }
 0x333   :  { %v11173_v22 = vadd.f32 %v8368_v62, %v15252_v25  ;;  %v8370_v19 = vpop.f32.mrb[57].mxu0  ;;  %v13957_v56 = vpop.f32.mrb[171].mxu1  ;;  %v8950_v25 = vadd.f32 %v8949_v8, %v8887_v44  ;;  %v15258_v8 = vld [vmem:[#allocation10_spill] sm:$0xff] }
 0x334   :  { %v8371_v39 = vpop.f32.mrb[58].mxu0  ;;  %v8889_v19 = vmul.f32 %v13847_v1, %v13847_v1 }
 0x335   :  { %v11174_v36 = vadd.f32 %v8371_v39, %v15253_v51  ;;  %v13963_v59 = vadd.f32 %v11173_v22, %v13870_v52  ;;  %v8373_v11 = vpop.f32.mrb[59].mxu0  ;;  %v8951_v7 = vadd.f32 %v8950_v25, %v8888_v4  ;;  %v15256_v39 = vld [vmem:[#allocation9_spill] sm:$0xff]  ;;  %v8819_v25 = vadd.f32 %v8818_v26, %v13861_v53 }
 0x336   :  { %v8890_v11 = vmul.f32 %v13861_v53, %v13861_v53 }
 0x337   :  { %15254 = vst [vmem:[#allocation7_spill] sm:$0xff] %v13963_v59  ;;  %v13969_v62 = vadd.f32 %v11174_v36, %v13877_v43 }
 0x338   :  { %v13982_v20 = vpop.f32.mrb[172].mxu1 }
 0x339   :  { %15255 = vst [vmem:[#allocation8_spill] sm:$0xff] %v13969_v62  ;;  %v13984_v4 = vpop.f32.mrb[173].mxu1 }
 0x33a   :  { %v8376_v61 = vpop.f32.mrb[60].mxu0  ;;  %v13990_v55 = vpop.f32.mrb[174].mxu1 }
 0x33b   :  { %v11175_v52 = vadd.f32 %v8376_v61, %v15256_v39  ;;  %v8378_v22 = vpop.f32.mrb[61].mxu0  ;;  %v8952_v61 = vadd.f32 %v8951_v7, %v8889_v19 }
 0x33c   :  { %v8379_v51 = vpop.f32.mrb[62].mxu0  ;;  %v13992_v22 = vpop.f32.mrb[175].mxu1 }
 0x33d   :  { %v13979_v43 = vadd.f32 %v11175_v52, %v13863_v5  ;;  %v11176_v44 = vadd.f32 %v8379_v51, %v15258_v8  ;;  %v8381_v36 = vpop.f32.mrb[63].mxu0  ;;  %v8953_v1 = vadd.f32 %v8952_v61, %v8890_v11  ;;  %v8891_v5 = vmul.f32 %v13868_v3, %v13868_v3 }
 0x33e   :  { %v8820_v51 = vadd.f32 %v8819_v25, %v13868_v3  ;;  %v8892_v8 = vmul.f32 %v13884_v6, %v13884_v6  ;;  %v15260_v36 = vld [vmem:[#allocation11_spill] sm:$0xff]  ;;  %v8893_v25 = vmul.f32 %v13893_v60, %v13893_v60 }
 0x33f   :  { %15257 = vst [vmem:[#allocation9_spill] sm:$0xff] %v13979_v43  ;;  %v13988_v39 = vadd.f32 %v11176_v44, %v13872_v41  ;;  %v8954_v41 = vadd.f32 %v8953_v1, %v8891_v5  ;;  %v8894_v1 = vmul.f32 %v13913_v14, %v13913_v14 }
 0x340   :  { %v8821_v44 = vadd.f32 %v8820_v51, %v13884_v6 }
 0x341   :  { %15259 = vst [vmem:[#allocation10_spill] sm:$0xff] %v13988_v39  ;;  %v8955_v15 = vadd.f32 %v8954_v41, %v8892_v8  ;;  %v15261_v8 = vld [vmem:[#allocation12_spill] sm:$0xff] }
 0x342   :  { %v8384_v52 = vpop.f32.mrb[64].mxu0 }
 0x343   :  { %v11177_v26 = vadd.f32 %v8384_v52, %v15260_v36  ;;  %v8386_v7 = vpop.f32.mrb[65].mxu0  ;;  %v8822_v52 = vadd.f32 %v8821_v44, %v13893_v60  ;;  %v8956_v36 = vadd.f32 %v8955_v15, %v8893_v25  ;;  %v8895_v44 = vmul.f32 %v13919_v37, %v13919_v37  ;;  %v15262_v60 = vld [vmem:[#allocation13_spill] sm:$0xff] }
 0x344   :  { %v8387_v19 = vpop.f32.mrb[66].mxu0  ;;  %v8896_v25 = vmul.f32 %v13935_v57, %v13935_v57 }
 0x345   :  { %v11178_v53 = vadd.f32 %v8387_v19, %v13464_v12  ;;  %v14003_v11 = vadd.f32 %v11177_v26, %v13895_v45  ;;  %v8389_v61 = vpop.f32.mrb[67].mxu0  ;;  %v8823_v45 = vadd.f32 %v8822_v52, %v13913_v14  ;;  %v8957_v41 = vadd.f32 %v8956_v36, %v8894_v1 }
 0x347   :  { %v14008_v3 = vadd.f32 %v11178_v53, %v13900_v9  ;;  %v14013_v5 = vpop.f32.mrb[176].mxu1  ;;  %v8824_v15 = vadd.f32 %v8823_v45, %v13919_v37  ;;  %v15265_v37 = vld [vmem:[#allocation15_spill] sm:$0xff] }
 0x348   :  { %v14015_v12 = vpop.f32.mrb[177].mxu1 }
 0x349   :  { %v14019_v19 = vpop.f32.mrb[178].mxu1  ;;  %v8825_v1 = vadd.f32 %v8824_v15, %v13935_v57 }
 0x34a   :  { %v8392_v51 = vpop.f32.mrb[68].mxu0  ;;  %v14021_v9 = vpop.f32.mrb[179].mxu1 }
 0x34b   :  { %v11179_v26 = vadd.f32 %v8392_v51, %v15261_v8  ;;  %v8394_v7 = vpop.f32.mrb[69].mxu0  ;;  %v8958_v51 = vadd.f32 %v8957_v41, %v8895_v44  ;;  %v8826_v45 = vadd.f32 %v8825_v1, %v13941_v27 }
 0x34c   :  { %v8395_v53 = vpop.f32.mrb[70].mxu0 }
 0x34d   :  { %v14026_v61 = vadd.f32 %v11179_v26, %v13887_v38  ;;  %v11180_v6 = vadd.f32 %v8395_v53, %v15262_v60  ;;  %v8397_v54 = vpop.f32.mrb[71].mxu0  ;;  %v8959_v8 = vadd.f32 %v8958_v51, %v8896_v25  ;;  %v8897_v38 = vmul.f32 %v13941_v27, %v13941_v27  ;;  %v15264_v26 = vld [vmem:[#allocation14_spill] sm:$0xff] }
 0x34e   :  { %v8898_v53 = vmul.f32 %v13963_v59, %v13963_v59  ;;  %v8827_v25 = vadd.f32 %v8826_v45, %v13963_v59 }
 0x34f   :  { %v14033_v52 = vadd.f32 %v11180_v6, %v13897_v47  ;;  %v8960_v51 = vadd.f32 %v8959_v8, %v8897_v38 }
 0x350   :  { %v14046_v44 = vpop.f32.mrb[180].mxu1 }
 0x351   :  { %15263 = vst [vmem:[#allocation11_spill] sm:$0xff] %v14033_v52  ;;  %v14048_v15 = vpop.f32.mrb[181].mxu1 }
 0x352   :  { %v8400_v36 = vpop.f32.mrb[72].mxu0  ;;  %v14054_v1 = vpop.f32.mrb[182].mxu1 }
 0x353   :  { %v11181_v7 = vadd.f32 %v8400_v36, %v15264_v26  ;;  %v8402_v60 = vpop.f32.mrb[73].mxu0  ;;  %v14056_v26 = vpop.f32.mrb[183].mxu1 }
 0x354   :  { %v8403_v54 = vpop.f32.mrb[74].mxu0  ;;  %v8961_v60 = vadd.f32 %v8960_v51, %v8898_v53  ;;  %v15270_v53 = vld [vmem:[#allocation17_spill] sm:$0xff] }
 0x355   :  { %v11182_v6 = vadd.f32 %v8403_v54, %v15265_v37  ;;  %v14044_v47 = vadd.f32 %v11181_v7, %v13921_v33  ;;  %v8405_v41 = vpop.f32.mrb[75].mxu0  ;;  %v8899_v37 = vmul.f32 %v13969_v62, %v13969_v62  ;;  %v8828_v7 = vadd.f32 %v8827_v25, %v13969_v62 }
 0x356   :  { %v8900_v54 = vmul.f32 %v13979_v43, %v13979_v43  ;;  %v15268_v41 = vld [vmem:[#allocation16_spill] sm:$0xff]  ;;  %v8901_v25 = vmul.f32 %v13988_v39, %v13988_v39 }
 0x357   :  { %15266 = vst [vmem:[#allocation12_spill] sm:$0xff] %v14044_v47  ;;  %v14052_v36 = vadd.f32 %v11182_v6, %v13927_v24  ;;  %v8962_v24 = vadd.f32 %v8961_v60, %v8899_v37  ;;  %v8829_v6 = vadd.f32 %v8828_v7, %v13979_v43  ;;  %v8902_v60 = vmul.f32 %v14003_v11, %v14003_v11 }
 0x359   :  { %15267 = vst [vmem:[#allocation13_spill] sm:$0xff] %v14052_v36  ;;  %v8963_v57 = vadd.f32 %v8962_v24, %v8900_v54  ;;  %v15272_v54 = vld [vmem:[#allocation18_spill] sm:$0xff] }
 0x35a   :  { %v8408_v33 = vpop.f32.mrb[76].mxu0 }
 0x35b   :  { %v11183_v45 = vadd.f32 %v8408_v33, %v15268_v41  ;;  %v8410_v8 = vpop.f32.mrb[77].mxu0  ;;  %v8830_v33 = vadd.f32 %v8829_v6, %v13988_v39 }
 0x35c   :  { %v8411_v38 = vpop.f32.mrb[78].mxu0 }
 0x35d   :  { %v14066_v59 = vadd.f32 %v11183_v45, %v13915_v13  ;;  %v11184_v51 = vadd.f32 %v8411_v38, %v15270_v53  ;;  %v8413_v27 = vpop.f32.mrb[79].mxu0  ;;  %v8831_v41 = vadd.f32 %v8830_v33, %v14003_v11  ;;  %v8903_v53 = vmul.f32 %v14008_v3, %v14008_v3 }
 0x35e   :  { %v8964_v27 = vadd.f32 %v8963_v57, %v8901_v25  ;;  %v8904_v25 = vmul.f32 %v14026_v61, %v14026_v61 }
 0x35f   :  { %15269 = vst [vmem:[#allocation14_spill] sm:$0xff] %v14066_v59  ;;  %v14072_v62 = vadd.f32 %v11184_v51, %v13923_v10  ;;  %v14077_v37 = vpop.f32.mrb[184].mxu1  ;;  %v15273_v51 = vld [vmem:[#allocation19_spill] sm:$0xff]  ;;  %v8832_v57 = vadd.f32 %v8831_v41, %v14008_v3 }
 0x360   :  { %v14079_v13 = vpop.f32.mrb[185].mxu1  ;;  %v8965_v6 = vadd.f32 %v8964_v27, %v8902_v60 }
 0x361   :  { %15271 = vst [vmem:[#allocation15_spill] sm:$0xff] %v14072_v62  ;;  %v14083_v38 = vpop.f32.mrb[186].mxu1  ;;  %v8833_v60 = vadd.f32 %v8832_v57, %v14026_v61 }
 0x362   :  { %v8416_v7 = vpop.f32.mrb[80].mxu0  ;;  %v14085_v24 = vpop.f32.mrb[187].mxu1 }
 0x363   :  { %v11185_v45 = vadd.f32 %v8416_v7, %v15272_v54  ;;  %v8418_v8 = vpop.f32.mrb[81].mxu0  ;;  %v8966_v7 = vadd.f32 %v8965_v6, %v8903_v53  ;;  %v8834_v41 = vadd.f32 %v8833_v60, %v14033_v52 }
 0x364   :  { %v8419_v10 = vpop.f32.mrb[82].mxu0  ;;  %v8905_v8 = vmul.f32 %v14033_v52, %v14033_v52 }
 0x365   :  { %v11186_v39 = vadd.f32 %v8419_v10, %v15273_v51  ;;  %v14091_v43 = vadd.f32 %v11185_v45, %v13951_v23  ;;  %v8421_v14 = vpop.f32.mrb[83].mxu0  ;;  %v8967_v54 = vadd.f32 %v8966_v7, %v8904_v25  ;;  %v15274_v10 = vld [vmem:[#allocation20_spill] sm:$0xff]  ;;  %v8906_v51 = vmul.f32 %v14044_v47, %v14044_v47 }
 0x366   :  { %v8835_v57 = vadd.f32 %v8834_v41, %v14044_v47 }
 0x367   :  { %v14097_v33 = vadd.f32 %v11186_v39, %v13957_v56  ;;  %v15275_v39 = vld [vmem:[#allocation21_spill] sm:$0xff]  ;;  %v8968_v25 = vadd.f32 %v8967_v54, %v8905_v8  ;;  %v11639_v54 = vld [vmem:[%s15168_s5 + $0x28] sm:$0xff]  }
 0x368   :  { %11043 = vmatprep.subr.bf16.mxu1 %v11639_v54 }
 0x369   :  { %11044 = vmatpush3.bf16.msra.mxu1 %v11639_v54 }
 0x36a   :  { %v8424_v27 = vpop.f32.mrb[84].mxu0 }
 0x36b   :  { %v11187_v23 = vadd.f32 %v8424_v27, %v15274_v10  ;;  %v8426_v45 = vpop.f32.mrb[85].mxu0  ;;  %v8969_v27 = vadd.f32 %v8968_v25, %v8906_v51  ;;  %v8907_v10 = vmul.f32 %v14052_v36, %v14052_v36  ;;  %v15277_v51 = vld [vmem:[#allocation23_spill] sm:$0xff]  ;;  %v8909_v25 = vmul.f32 %v14072_v62, %v14072_v62 }
 0x36c   :  { %v8427_v14 = vpop.f32.mrb[86].mxu0  ;;  %v8836_v45 = vadd.f32 %v8835_v57, %v14052_v36 }
 0x36d   :  { %v14107_v56 = vadd.f32 %v11187_v23, %v13946_v35  ;;  %v11188_v6 = vadd.f32 %v8427_v14, %v15275_v39  ;;  %v8429_v53 = vpop.f32.mrb[87].mxu0  ;;  %v8908_v35 = vmul.f32 %v14066_v59, %v14066_v59  ;;  %v15276_v23 = vld [vmem:[#allocation22_spill] sm:$0xff] }
 0x36e   :  { %v8837_v41 = vadd.f32 %v8836_v45, %v14066_v59  ;;  %v15279_v59 = vld [vmem:[#allocation25_spill] sm:$0xff] }
 0x36f   :  { %v14112_v7 = vadd.f32 %v11188_v6, %v13955_v28  ;;  %v8970_v28 = vadd.f32 %v8969_v27, %v8907_v10  ;;  %v11640_v27 = vld [vmem:[%s15168_s5 + $0x30] sm:$0xff]  }
 0x370   :  { %v8838_v45 = vadd.f32 %v8837_v41, %v14072_v62  ;;  %11045 = vmatprep.subr.bf16.mxu1 %v11640_v27  ;;  %v8911_v62 = vmul.f32 %v14097_v33, %v14097_v33 }
 0x371   :  { %v8971_v57 = vadd.f32 %v8970_v28, %v8908_v35  ;;  %11046 = vmatpush3.bf16.msra.mxu1 %v11640_v27 }
 0x372   :  { %v8432_v60 = vpop.f32.mrb[88].mxu0 }
 0x373   :  { %v11189_v52 = vadd.f32 %v8432_v60, %v15276_v23  ;;  %v8434_v14 = vpop.f32.mrb[89].mxu0  ;;  %v8972_v54 = vadd.f32 %v8971_v57, %v8909_v25  ;;  %v8912_v25 = vmul.f32 %v14107_v56, %v14107_v56 }
 0x374   :  { %v8435_v8 = vpop.f32.mrb[90].mxu0  ;;  %v8839_v14 = vadd.f32 %v8838_v45, %v14091_v43 }
 0x375   :  { %v11190_v39 = vadd.f32 %v8435_v8, %v15277_v51  ;;  %v14126_v6 = vadd.f32 %v11189_v52, %v13984_v4  ;;  %v8437_v53 = vpop.f32.mrb[91].mxu0  ;;  %v8910_v4 = vmul.f32 %v14091_v43, %v14091_v43  ;;  %v15278_v8 = vld [vmem:[#allocation24_spill] sm:$0xff] }
 0x376   :  { %v8840_v57 = vadd.f32 %v8839_v14, %v14097_v33 }
 0x377   :  { %v14131_v60 = vadd.f32 %v11190_v39, %v13992_v22  ;;  %v14136_v10 = vpop.f32.mrb[188].mxu1  ;;  %v11641_v22 = vld [vmem:[%s15168_s5 + $0x38] sm:$0xff]   ;;  %v8973_v53 = vadd.f32 %v8972_v54, %v8910_v4 }
 0x378   :  { %v14141_v52 = vpop.f32.mrb[189].mxu1  ;;  %11047 = vmatprep.subr.bf16.mxu1 %v11641_v22  ;;  %v8841_v4 = vadd.f32 %v8840_v57, %v14107_v56 }
 0x379   :  { %v14143_v23 = vpop.f32.mrb[190].mxu1  ;;  %11048 = vmatpush3.bf16.msra.mxu1 %v11641_v22 }
 0x37a   :  { %v8440_v35 = vpop.f32.mrb[92].mxu0  ;;  %v14150_v51 = vpop.f32.mrb[191].mxu1  ;;  %v8842_v14 = vadd.f32 %v8841_v4, %v14112_v7 }
 0x37b   :  { %v11191_v28 = vadd.f32 %v8440_v35, %v15278_v8  ;;  %v8442_v41 = vpop.f32.mrb[93].mxu0  ;;  %v8974_v35 = vadd.f32 %v8973_v53, %v8911_v62 }
 0x37c   :  { %v8443_v39 = vpop.f32.mrb[94].mxu0  ;;  %v8914_v41 = vmul.f32 %v14126_v6, %v14126_v6  ;;  %v8843_v53 = vadd.f32 %v8842_v14, %v14126_v6 }
 0x37d   :  { %v14155_v27 = vadd.f32 %v11191_v28, %v13982_v20  ;;  %v11192_v36 = vadd.f32 %v8443_v39, %v15279_v59  ;;  %v8445_v47 = vpop.f32.mrb[95].mxu0  ;;  %v8975_v8 = vadd.f32 %v8974_v35, %v8912_v25  ;;  %v8913_v20 = vmul.f32 %v14112_v7, %v14112_v7  ;;  %v15280_v28 = vld [vmem:[#allocation26_spill] sm:$0xff]  ;;  %v15281_v39 = vld [vmem:[#allocation27_spill] sm:$0xff] }
 0x37f   :  { %v14162_v45 = vadd.f32 %v11192_v36, %v13990_v55  ;;  %v8976_v57 = vadd.f32 %v8975_v8, %v8913_v20 }
 0x381   :  { %v8977_v35 = vadd.f32 %v8976_v57, %v8914_v41 }
 0x382   :  { %v8448_v54 = vpop.f32.mrb[96].mxu0 }
 0x383   :  { %v11193_v59 = vadd.f32 %v8448_v54, %v15280_v28  ;;  %v8450_v47 = vpop.f32.mrb[97].mxu0  ;;  %v8915_v54 = vmul.f32 %v14131_v60, %v14131_v60  ;;  %v8844_v28 = vadd.f32 %v8843_v53, %v14131_v60 }
 0x384   :  { %v8451_v22 = vpop.f32.mrb[98].mxu0  ;;  %v8916_v47 = vmul.f32 %v14155_v27, %v14155_v27 }
 0x385   :  { %v11194_v55 = vadd.f32 %v8451_v22, %v15281_v39  ;;  %v14173_v62 = vadd.f32 %v11193_v59, %v14015_v12  ;;  %v8453_v36 = vpop.f32.mrb[99].mxu0  ;;  %v15282_v22 = vld [vmem:[#allocation28_spill] sm:$0xff]  ;;  %v8845_v8 = vadd.f32 %v8844_v28, %v14155_v27 }
 0x386   :  { %v8978_v36 = vadd.f32 %v8977_v35, %v8915_v54 }
 0x387   :  { %v14177_v25 = vadd.f32 %v11194_v55, %v14021_v9  ;;  %v8917_v55 = vmul.f32 %v14162_v45, %v14162_v45  ;;  %v8846_v57 = vadd.f32 %v8845_v8, %v14162_v45  ;;  %v8918_v35 = vmul.f32 %v14173_v62, %v14173_v62 }
 0x388   :  { %v8979_v41 = vadd.f32 %v8978_v36, %v8916_v47 }
 0x38a   :  { %v8456_v4 = vpop.f32.mrb[100].mxu0 }
 0x38b   :  { %v11195_v12 = vadd.f32 %v8456_v4, %v15282_v22  ;;  %v8458_v59 = vpop.f32.mrb[101].mxu0  ;;  %v8847_v4 = vadd.f32 %v8846_v57, %v14173_v62  ;;  %v15283_v57 = vld [vmem:[#allocation29_spill] sm:$0xff] }
 0x38c   :  { %v8459_v39 = vpop.f32.mrb[102].mxu0 }
 0x38d   :  { %v14187_v9 = vadd.f32 %v11195_v12, %v14013_v5  ;;  %v11196_v20 = vadd.f32 %v8459_v39, %v13631_v29  ;;  %v8461_v14 = vpop.f32.mrb[103].mxu0  ;;  %v8980_v5 = vadd.f32 %v8979_v41, %v8917_v55  ;;  %v8919_v12 = vmul.f32 %v14177_v25, %v14177_v25 }
 0x38e   :  { %v8848_v36 = vadd.f32 %v8847_v4, %v14177_v25 }
 0x38f   :  { %v14193_v53 = vadd.f32 %v11196_v20, %v14019_v19  ;;  %v8981_v47 = vadd.f32 %v8980_v5, %v8918_v35  ;;  %v8920_v8 = vmul.f32 %v14187_v9, %v14187_v9 }
 0x390   :  { %v8849_v14 = vadd.f32 %v8848_v36, %v14187_v9 }
 0x392   :  { %v8464_v54 = vpop.f32.mrb[104].mxu0  ;;  %v8850_v4 = vadd.f32 %v8849_v14, %v14193_v53  ;;  %v15285_v14 = vld [vmem:[#allocation31_spill] sm:$0xff] }
 0x393   :  { %v11197_v28 = vadd.f32 %v8464_v54, %v13645_v16  ;;  %v8466_v29 = vpop.f32.mrb[105].mxu0  ;;  %v8982_v16 = vadd.f32 %v8981_v47, %v8919_v12 }
 0x394   :  { %v8467_v22 = vpop.f32.mrb[106].mxu0 }
 0x395   :  { %v11198_v19 = vadd.f32 %v8467_v22, %v13651_v17  ;;  %v14204_v59 = vadd.f32 %v11197_v28, %v14048_v15  ;;  %v8469_v39 = vpop.f32.mrb[107].mxu0  ;;  %v8983_v55 = vadd.f32 %v8982_v16, %v8920_v8  ;;  %v8921_v17 = vmul.f32 %v14193_v53, %v14193_v53  ;;  %v15284_v28 = vld [vmem:[#allocation30_spill] sm:$0xff] }
 0x397   :  { %v14210_v20 = vadd.f32 %v11198_v19, %v14056_v26  ;;  %v8922_v5 = vmul.f32 %v14204_v59, %v14204_v59  ;;  %v8851_v47 = vadd.f32 %v8850_v4, %v14204_v59  ;;  %v8984_v12 = vadd.f32 %v8983_v55, %v8921_v17  ;;  %v15286_v17 = vld [vmem:[#allocation32_spill] sm:$0xff] }
 0x399   :  { %v8985_v39 = vadd.f32 %v8984_v12, %v8922_v5  ;;  %v8923_v36 = vmul.f32 %v14210_v20, %v14210_v20  ;;  %v8852_v16 = vadd.f32 %v8851_v47, %v14210_v20 }
 0x39a   :  { %v8472_v41 = vpop.f32.mrb[108].mxu0 }
 0x39b   :  { %v11199_v15 = vadd.f32 %v8472_v41, %v15283_v57  ;;  %v8474_v35 = vpop.f32.mrb[109].mxu0 }
 0x39c   :  { %v8475_v54 = vpop.f32.mrb[110].mxu0  ;;  %v8986_v35 = vadd.f32 %v8985_v39, %v8923_v36 }
 0x39d   :  { %v14220_v26 = vadd.f32 %v11199_v15, %v14046_v44  ;;  %v11200_v29 = vadd.f32 %v8475_v54, %v15284_v28  ;;  %v8477_v22 = vpop.f32.mrb[111].mxu0 }
 0x39f   :  { %v14225_v19 = vadd.f32 %v11200_v29, %v14054_v1  ;;  %v8924_v44 = vmul.f32 %v14220_v26, %v14220_v26  ;;  %v8853_v55 = vadd.f32 %v8852_v16, %v14220_v26 }
 0x3a1   :  { %v8987_v5 = vadd.f32 %v8986_v35, %v8924_v44  ;;  %v8925_v28 = vmul.f32 %v14225_v19, %v14225_v19  ;;  %v8854_v22 = vadd.f32 %v8853_v55, %v14225_v19 }
 0x3a2   :  { %v8480_v8 = vpop.f32.mrb[112].mxu0 }
 0x3a3   :  { %v11201_v41 = vadd.f32 %v8480_v8, %v15285_v14  ;;  %v8482_v57 = vpop.f32.mrb[113].mxu0  ;;  %v8988_v36 = vadd.f32 %v8987_v5, %v8925_v28  ;;  %v15287_v8 = vld [vmem:[#allocation33_spill] sm:$0xff] }
 0x3a4   :  { %v8483_v15 = vpop.f32.mrb[114].mxu0  ;;  %v15288_v57 = vld [vmem:[#allocation34_spill] sm:$0xff] }
 0x3a5   :  { %v11202_v1 = vadd.f32 %v8483_v15, %v15286_v17  ;;  %v14236_v54 = vadd.f32 %v11201_v41, %v14079_v13  ;;  %v8485_v4 = vpop.f32.mrb[115].mxu0 }
 0x3a7   :  { %v14241_v29 = vadd.f32 %v11202_v1, %v14085_v24  ;;  %v8926_v47 = vmul.f32 %v14236_v54, %v14236_v54  ;;  %v8855_v39 = vadd.f32 %v8854_v22, %v14236_v54 }
 0x3a9   :  { %v8989_v44 = vadd.f32 %v8988_v36, %v8926_v47  ;;  %v8927_v41 = vmul.f32 %v14241_v29, %v14241_v29  ;;  %v8856_v55 = vadd.f32 %v8855_v39, %v14241_v29  ;;  %v15289_v47 = vld [vmem:[#allocation35_spill] sm:$0xff] }
 0x3aa   :  { %v8488_v12 = vpop.f32.mrb[116].mxu0 }
 0x3ab   :  { %v11203_v13 = vadd.f32 %v8488_v12, %v15287_v8  ;;  %v8490_v16 = vpop.f32.mrb[117].mxu0  ;;  %v8990_v4 = vadd.f32 %v8989_v44, %v8927_v41 }
 0x3ac   :  { %v8491_v14 = vpop.f32.mrb[118].mxu0 }
 0x3ad   :  { %v14251_v24 = vadd.f32 %v11203_v13, %v14077_v37  ;;  %v11204_v15 = vadd.f32 %v8491_v14, %v15288_v57  ;;  %v8493_v35 = vpop.f32.mrb[119].mxu0  ;;  %v15290_v13 = vld [vmem:[#allocation36_spill] sm:$0xff] }
 0x3af   :  { %v8928_v17 = vmul.f32 %v14251_v24, %v14251_v24  ;;  %v14258_v1 = vadd.f32 %v11204_v15, %v14083_v38  ;;  %v8857_v5 = vadd.f32 %v8856_v55, %v14251_v24 }
 0x3b1   :  { %v8991_v22 = vadd.f32 %v8990_v4, %v8928_v17  ;;  %v8929_v37 = vmul.f32 %v14258_v1, %v14258_v1  ;;  %v8858_v38 = vadd.f32 %v8857_v5, %v14258_v1 }
 0x3b2   :  { %v8496_v28 = vpop.f32.mrb[120].mxu0 }
 0x3b3   :  { %v11205_v12 = vadd.f32 %v8496_v28, %v15289_v47  ;;  %v8498_v36 = vpop.f32.mrb[121].mxu0  ;;  %v8992_v57 = vadd.f32 %v8991_v22, %v8929_v37  ;;  %v15293_v28 = vld [vmem:[#allocation37_spill] sm:$0xff] }
 0x3b4   :  { %v8499_v8 = vpop.f32.mrb[122].mxu0 }
 0x3b5   :  { %v11206_v39 = vadd.f32 %v8499_v8, %v15290_v13  ;;  %v14266_v16 = vadd.f32 %v11205_v12, %v14141_v52  ;;  %v8501_v14 = vpop.f32.mrb[123].mxu0  ;;  %v15295_v8 = vld [vmem:[#allocation38_spill] sm:$0xff] }
 0x3b7   :  { %15291 = vst [vmem:[#allocation16_spill] sm:$0xff] %v14266_v16  ;;  %v8859_v44 = vadd.f32 %v8858_v38, %v14266_v16  ;;  %v8930_v41 = vmul.f32 %v14266_v16, %v14266_v16  ;;  %v14273_v15 = vadd.f32 %v11206_v39, %v14150_v51 }
 0x3b9   :  { %15292 = vst [vmem:[#allocation17_spill] sm:$0xff] %v14273_v15  ;;  %v8993_v35 = vadd.f32 %v8992_v57, %v8930_v41  ;;  %v8860_v55 = vadd.f32 %v8859_v44, %v14273_v15  ;;  %v8931_v17 = vmul.f32 %v14273_v15, %v14273_v15 }
 0x3ba   :  { %v8504_v52 = vpop.f32.mrb[124].mxu0 }
 0x3bb   :  { %v8994_v4 = vadd.f32 %v8993_v35, %v8931_v17  ;;  %v11207_v5 = vadd.f32 %v8504_v52, %v15293_v28  ;;  %v8506_v47 = vpop.f32.mrb[125].mxu0 }
 0x3bc   :  { %v8507_v12 = vpop.f32.mrb[126].mxu0 }
 0x3bd   :  { %v14280_v36 = vadd.f32 %v11207_v5, %v14136_v10  ;;  %v11208_v22 = vadd.f32 %v8507_v12, %v15295_v8  ;;  %v8509_v37 = vpop.f32.mrb[127].mxu0 }
 0x3bf   :  { %15294 = vst [vmem:[#allocation18_spill] sm:$0xff] %v14280_v36  ;;  %v8861_v51 = vadd.f32 %v8860_v55, %v14280_v36  ;;  %v8932_v13 = vmul.f32 %v14280_v36, %v14280_v36  ;;  %v8797_v39 = vadd.f32 %v11208_v22, %v14143_v23  ;;  %v9014_v22 = vlaneseq }
 0x3c1   :  { %v8995_v38 = vadd.f32 %v8994_v4, %v8932_v13  ;;  %v8862_v14 = vadd.f32 %v8861_v51, %v8797_v39  ;;  %v8933_v44 = vmul.f32 %v8797_v39, %v8797_v39  ;;  %v9015_v51 = vshrl.u32 %v9014_v22, 7  ;;  %v9006_v13 = vld [vmem:[%s15169_s3] sm:$0x1] }
 0x3c3   :  { %v8863_v41 = vrot.slane %v8862_v14, 4  ;;  %v8996_v57 = vadd.f32 %v8995_v38, %v8933_v44  ;;  %v9016_v38 = vsub.s32 0, %v9015_v51  ;;  %v15304_v51 = vld [vmem:[#allocation46_spill] sm:$0xff] }
 0x3c5   :  { %v8864_v35 = vadd.f32 %v8863_v41, %v8862_v14  ;;  %v8997_v17 = vrot.slane %v8996_v57, 4  ;;  %v9010_v41 = vld [vmem:[%s15170_s4] sm:$0x1] }
 0x3c7   :  { %v8865_v52 = vrot.slane %v8864_v35, 2  ;;  %v8998_v10 = vadd.f32 %v8997_v17, %v8996_v57 }
 0x3c9   :  { %v8866_v28 = vadd.f32 %v8865_v52, %v8864_v35  ;;  %v8999_v5 = vrot.slane %v8998_v10, 2 }
 0x3cb   :  { %v8867_v47 = vrot.slane %v8866_v28, 1  ;;  %v9000_v12 = vadd.f32 %v8999_v5, %v8998_v10  ;;  %v15297_v5 = vld [vmem:[#allocation39_spill] sm:$0xff] }
 0x3cd   :  { %v8868_v8 = vadd.f32 %v8867_v47, %v8866_v28  ;;  %v9001_v55 = vrot.slane %v9000_v12, 1  ;;  %v15298_v47 = vld [vmem:[#allocation40_spill] sm:$0xff] }
 0x3cf   :  { %v8869_v37 = vmul.f32 0.001953125, %v8868_v8  ;;  %v9002_v15 = vadd.f32 %v9001_v55, %v9000_v12  ;;  %v15299_v12 = vld [vmem:[#allocation41_spill] sm:$0xff]  ;;  %v15300_v8 = vld [vmem:[#allocation42_spill] sm:$0xff]  ;;  %v15301_v55 = vld [vmem:[#allocation43_spill] sm:$0xff] }
 0x3d1   :  { %v9003_v36 = vmul.f32 0.001953125, %v9002_v15  ;;  %v9004_v16 = vmul.f32 %v8869_v37, %v8869_v37 }
 0x3d3   :  { %v9005_v23 = vsub.f32 %v9003_v36, %v9004_v16 }
 0x3d5   :  { %v9007_v4 = vadd.f32 1e-05, %v9005_v23  ;;  %v15302_v23 = vld [vmem:[#allocation44_spill] sm:$0xff] }
 0x3d7   :  { %11642 = vrsqrt.f32 %v9007_v4  ;;  %v15303_v4 = vld [vmem:[#allocation45_spill] sm:$0xff] }
 0x3e1   :  { %v11643_v14 = vpop.eup %11642 }
 0x3e2   :  { %v9009_v44 = vmul.f32 %v11643_v14, %v9006_v13 }
 0x3e4   :  { %v9011_v57 = vmul.f32 %v9009_v44, %v8869_v37  ;;  %v14293_v35 = vrot.slane %v9009_v44, %v9016_v38  ;;  %v15306_v44 = vld [vmem:[#allocation47_spill] sm:$0xff] }
 0x3e6   :  { %v9012_v15 = vsub.f32 %v9010_v41, %v9011_v57  ;;  %v14296_v16 = vmul.f32 %v14293_v35, %v8797_v39  ;;  %v14300_v36 = vmul.f32 %v14293_v35, %v13730_v21  ;;  %v14304_v17 = vmul.f32 %v14293_v35, %v13734_v34  ;;  %v15307_v57 = vld [vmem:[#allocation5_spill] sm:$0xff] }
 0x3e7   :  { %v9021_v52 = vmul.f32 %v14293_v35, %v13742_v31  ;;  %v9022_v10 = vmul.f32 %v14293_v35, %v13746_v32  ;;  %v14312_v28 = vmul.f32 %v14293_v35, %v13754_v46  ;;  %v14316_v39 = vmul.f32 %v14293_v35, %v13756_v63 }
 0x3e8   :  { %15296 = vst [vmem:[#allocation19_spill] sm:$0xff] %v14296_v16  ;;  %v14318_v21 = vrot.slane %v9012_v15, %v9016_v38  ;;  %v14322_v34 = vmul.f32 %v14293_v35, %v13764_v2  ;;  %v14326_v31 = vmul.f32 %v14293_v35, %v13768_v42  ;;  %v14330_v32 = vmul.f32 %v14293_v35, %v13772_v58  ;;  %v15305_v38 = vld [vmem:[#allocation4_spill] sm:$0xff] }
 0x3e9   :  { %v14334_v46 = vmul.f32 %v14293_v35, %v13774_v49  ;;  %v14338_v63 = vmul.f32 %v14293_v35, %v13781_v50  ;;  %v14342_v2 = vmul.f32 %v14293_v35, %v13784_v30  ;;  %v14346_v42 = vmul.f32 %v14293_v35, %v13795_v40  ;;  %v15317_v16 = vld [vmem:[#allocation12_spill] sm:$0xff] }
 0x3ea   :  { %v14350_v58 = vmul.f32 %v14293_v35, %v13801_v48  ;;  %v14354_v49 = vmul.f32 %v14293_v35, %v13804_v18  ;;  %v14358_v50 = vmul.f32 %v14293_v35, %v15297_v5  ;;  %v14362_v30 = vmul.f32 %v14293_v35, %v13824_v0  ;;  %v15308_v5 = vld [vmem:[#allocation6_spill] sm:$0xff] }
 0x3eb   :  { %v14366_v40 = vmul.f32 %v14293_v35, %v15298_v47  ;;  %v14370_v48 = vmul.f32 %v14293_v35, %v15299_v12  ;;  %v14374_v18 = vmul.f32 %v14293_v35, %v15300_v8  ;;  %v14378_v37 = vmul.f32 %v14293_v35, %v15301_v55  ;;  %v15309_v12 = vld [vmem:[#allocation7_spill] sm:$0xff]  ;;  %v15310_v55 = vld [vmem:[#allocation8_spill] sm:$0xff] }
 0x3ec   :  { %v14382_v0 = vmul.f32 %v14293_v35, %v15302_v23  ;;  %v14386_v22 = vmul.f32 %v14293_v35, %v15303_v4  ;;  %v14390_v13 = vmul.f32 %v14293_v35, %v15304_v51  ;;  %v14394_v14 = vmul.f32 %v14293_v35, %v15305_v38  ;;  %v15311_v4 = vld [vmem:[#allocation9_spill] sm:$0xff]  ;;  %v15312_v38 = vld [vmem:[#allocation10_spill] sm:$0xff] }
 0x3ed   :  { %v14398_v41 = vmul.f32 %v14293_v35, %v15306_v44  ;;  %v14402_v15 = vmul.f32 %v14293_v35, %v15307_v57  ;;  %v14406_v47 = vmul.f32 %v14293_v35, %v15308_v5  ;;  %v14410_v8 = vmul.f32 %v14293_v35, %v15309_v12 }
 0x3ee   :  { %v14414_v23 = vmul.f32 %v14293_v35, %v15310_v55  ;;  %v14418_v51 = vmul.f32 %v14293_v35, %v15311_v4  ;;  %v14422_v44 = vmul.f32 %v14293_v35, %v15312_v38  ;;  %v14426_v57 = vmul.f32 %v14293_v35, %v14003_v11  ;;  %v15316_v55 = vld [vmem:[#allocation11_spill] sm:$0xff] }
 0x3ef   :  { %v14430_v5 = vmul.f32 %v14293_v35, %v14008_v3  ;;  %v14434_v12 = vmul.f32 %v14293_v35, %v14026_v61  ;;  %v14438_v4 = vmul.f32 %v14293_v35, %v15316_v55  ;;  %v14442_v38 = vmul.f32 %v14293_v35, %v15317_v16 }
 0x3f0   :  { %15313 = vst [vmem:[#allocation20_spill] sm:$0xff] %v14422_v44  ;;  %15314 = vst [vmem:[#allocation21_spill] sm:$0xff] %v14426_v57  ;;  %v15318_v44 = vld [vmem:[#allocation13_spill] sm:$0xff]  ;;  %v15319_v57 = vld [vmem:[#allocation14_spill] sm:$0xff]  ;;  %v14458_v55 = vmul.f32 %v14293_v35, %v14091_v43  ;;  %v14462_v16 = vmul.f32 %v14293_v35, %v14097_v33  ;;  %v14478_v43 = vmul.f32 %v14293_v35, %v14131_v60 }
 0x3f1   :  { %15315 = vst [vmem:[#allocation22_spill] sm:$0xff] %v14430_v5  ;;  %v14446_v11 = vmul.f32 %v14293_v35, %v15318_v44  ;;  %v14450_v3 = vmul.f32 %v14293_v35, %v15319_v57  ;;  %v15320_v5 = vld [vmem:[#allocation15_spill] sm:$0xff]  ;;  %v14466_v44 = vmul.f32 %v14293_v35, %v14107_v56  ;;  %v14470_v57 = vmul.f32 %v14293_v35, %v14112_v7 }
 0x3f2   :  { %v14454_v61 = vmul.f32 %v14293_v35, %v15320_v5  ;;  %v14474_v5 = vmul.f32 %v14293_v35, %v14126_v6  ;;  %v14482_v33 = vmul.f32 %v14293_v35, %v14155_v27  ;;  %v14486_v56 = vmul.f32 %v14293_v35, %v14162_v45 }
 0x3f3   :  { %v14490_v7 = vmul.f32 %v14293_v35, %v14173_v62  ;;  %v14494_v6 = vmul.f32 %v14293_v35, %v14177_v25  ;;  %v14498_v60 = vmul.f32 %v14293_v35, %v14187_v9  ;;  %v14502_v27 = vmul.f32 %v14293_v35, %v14193_v53 }
 0x3f4   :  { %v14506_v45 = vmul.f32 %v14293_v35, %v14204_v59  ;;  %v14510_v62 = vmul.f32 %v14293_v35, %v14210_v20  ;;  %v14514_v25 = vmul.f32 %v14293_v35, %v14220_v26  ;;  %v14518_v9 = vmul.f32 %v14293_v35, %v14225_v19 }
 0x3f5   :  { %v14522_v53 = vmul.f32 %v14293_v35, %v14236_v54  ;;  %v14526_v59 = vmul.f32 %v14293_v35, %v14241_v29  ;;  %v14530_v20 = vmul.f32 %v14293_v35, %v14251_v24  ;;  %v14534_v26 = vmul.f32 %v14293_v35, %v14258_v1 }
 0x3f6   :  { %15321 = vst [vmem:[#allocation23_spill] sm:$0xff] %v14506_v45  ;;  %15322 = vst [vmem:[#allocation24_spill] sm:$0xff] %v14510_v62  ;;  %v9092_v24 = vadd.f32 %v14318_v21, %v9022_v10  ;;  %v9089_v1 = vadd.f32 %v14318_v21, %v14300_v36 }
 0x3f7   :  { %15323 = vst [vmem:[#allocation25_spill] sm:$0xff] %v14514_v25  ;;  %15324 = vst [vmem:[#allocation26_spill] sm:$0xff] %v14518_v9  ;;  %v15329_v25 = vld [vmem:[#allocation16_spill] sm:$0xff]  ;;  %v15331_v9 = vld [vmem:[#allocation17_spill] sm:$0xff] }
 0x3f8   :  { %15325 = vst [vmem:[#allocation27_spill] sm:$0xff] %v14522_v53  ;;  %15326 = vst [vmem:[#allocation28_spill] sm:$0xff] %v14526_v59  ;;  %v14538_v19 = vmul.f32 %v14293_v35, %v15329_v25  ;;  %v14542_v54 = vmul.f32 %v14293_v35, %v15331_v9  ;;  %v15333_v53 = vld [vmem:[#allocation18_spill] sm:$0xff]  ;;  %v9091_v59 = vadd.f32 %v14318_v21, %v9021_v52  ;;  %v9153_v10 = vmax.f32 %v9089_v1, 0.0 }
 0x3f9   :  { %15327 = vst [vmem:[#allocation29_spill] sm:$0xff] %v14530_v20  ;;  %15328 = vst [vmem:[#allocation30_spill] sm:$0xff] %v14534_v26  ;;  %v14546_v29 = vmul.f32 %v14293_v35, %v15333_v53  ;;  %v9090_v26 = vadd.f32 %v14318_v21, %v14304_v17  ;;  %v9093_v25 = vadd.f32 %v14318_v21, %v14312_v28 }
 0x3fa   :  { %15330 = vst [vmem:[#allocation31_spill] sm:$0xff] %v14538_v19  ;;  %15332 = vst [vmem:[#allocation32_spill] sm:$0xff] %v14542_v54  ;;  %v9094_v9 = vadd.f32 %v14318_v21, %v14316_v39  ;;  %v9155_v54 = vmax.f32 %v9091_v59, 0.0  ;;  %v9156_v19 = vmax.f32 %v9092_v24, 0.0  ;;  %v9095_v35 = vadd.f32 %v14318_v21, %v14322_v34 }
 0x3fb   :  { %15334 = vst [vmem:[#allocation33_spill] sm:$0xff] %v14546_v29  ;;  %v9096_v52 = vadd.f32 %v14318_v21, %v14326_v31  ;;  %v9154_v53 = vmax.f32 %v9090_v26, 0.0  ;;  %v9157_v36 = vmax.f32 %v9093_v25, 0.0  ;;  %v9097_v28 = vadd.f32 %v14318_v21, %v14330_v32 }
 0x3fc   :  { %v9158_v29 = vmax.f32 %v9094_v9, 0.0  ;;  %v9218_v20 = vpack.c.bf16 %v9156_v19, %v9155_v54  ;;  %v9159_v17 = vmax.f32 %v9095_v35, 0.0  ;;  %v9098_v59 = vadd.f32 %v14318_v21, %v14334_v46 }
 0x3fd   :  { %v9160_v62 = vmax.f32 %v9096_v52, 0.0  ;;  %v9217_v45 = vpack.c.bf16 %v9154_v53, %v9153_v10  ;;  %v9099_v34 = vadd.f32 %v14318_v21, %v14338_v63  ;;  %v9161_v31 = vmax.f32 %v9097_v28, 0.0 }
 0x3fe   :  { %v9219_v39 = vpack.c.bf16 %v9158_v29, %v9157_v36  ;;  %v9100_v26 = vadd.f32 %v14318_v21, %v14342_v2  ;;  %v9101_v19 = vadd.f32 %v14318_v21, %v14346_v42  ;;  %v9162_v54 = vmax.f32 %v9098_v59, 0.0 }
 0x3ff   :  { %v9220_v24 = vpack.c.bf16 %v9160_v62, %v9159_v17  ;;  %11049 = vmatprep.mubr.bf16.mxu1 %v9217_v45  ;;  %v9163_v1 = vmax.f32 %v9099_v34, 0.0  ;;  %v9102_v32 = vadd.f32 %v14318_v21, %v14350_v58  ;;  %v9103_v46 = vadd.f32 %v14318_v21, %v14354_v49 }
 0x400   :  { %11050 = vmatmul.mubr.bf16.vlgmr.msra.gmra.mrb[192].mxu1 %v9218_v20  ;;  %v9164_v29 = vmax.f32 %v9100_v26, 0.0  ;;  %v9165_v63 = vmax.f32 %v9101_v19, 0.0  ;;  %v9104_v62 = vadd.f32 %v14318_v21, %v14358_v50  ;;  %v9105_v2 = vadd.f32 %v14318_v21, %v14362_v30 }
 0x401   :  { %11053 = vmatprep.mubr.bf16.mxu1 %v9219_v39  ;;  %v9221_v42 = vpack.c.bf16 %v9162_v54, %v9161_v31  ;;  %v9166_v45 = vmax.f32 %v9102_v32, 0.0  ;;  %v9167_v25 = vmax.f32 %v9103_v46, 0.0  ;;  %v9106_v9 = vadd.f32 %v14318_v21, %v14366_v40 }
 0x402   :  { %v9222_v58 = vpack.c.bf16 %v9164_v29, %v9163_v1  ;;  %v9168_v35 = vmax.f32 %v9104_v62, 0.0  ;;  %v9169_v52 = vmax.f32 %v9105_v2, 0.0  ;;  %v9107_v49 = vadd.f32 %v14318_v21, %v14370_v48 }
 0x403   :  { %v9223_v20 = vpack.c.bf16 %v9166_v45, %v9165_v63  ;;  %v9170_v10 = vmax.f32 %v9106_v9, 0.0  ;;  %v9108_v50 = vadd.f32 %v14318_v21, %v14374_v18  ;;  %v9109_v30 = vadd.f32 %v14318_v21, %v14378_v37 }
 0x404   :  { %v14588_v53 = vpack.c.bf16 %v9168_v35, %v9167_v25  ;;  %v9171_v36 = vmax.f32 %v9107_v49, 0.0  ;;  %v9110_v40 = vadd.f32 %v14318_v21, %v14382_v0  ;;  %v9111_v17 = vadd.f32 %v14318_v21, %v14386_v22  ;;  %v15337_v25 = vld [vmem:[#allocation22_spill] sm:$0xff] }
 0x405   :  { %v14594_v28 = vpack.c.bf16 %v9170_v10, %v9169_v52  ;;  %v9172_v48 = vmax.f32 %v9108_v50, 0.0  ;;  %v9173_v39 = vmax.f32 %v9109_v30, 0.0  ;;  %v9112_v59 = vadd.f32 %v14318_v21, %v14390_v13 }
 0x406   :  { %v9174_v18 = vmax.f32 %v9110_v40, 0.0  ;;  %v9175_v34 = vmax.f32 %v9111_v17, 0.0  ;;  %v9113_v37 = vadd.f32 %v14318_v21, %v14394_v14  ;;  %v9114_v31 = vadd.f32 %v14318_v21, %v14398_v41 }
 0x407   :  { %v14602_v26 = vpack.c.bf16 %v9172_v48, %v9171_v36  ;;  %v9176_v0 = vmax.f32 %v9112_v59, 0.0  ;;  %v9115_v22 = vadd.f32 %v14318_v21, %v14402_v15  ;;  %v9116_v19 = vadd.f32 %v14318_v21, %v14406_v47 }
 0x408   :  { %11054 = vmatmul.mubr.bf16.gmra.mrb[196].mxu1 %v9220_v24  ;;  %v14608_v54 = vpack.c.bf16 %v9174_v18, %v9173_v39  ;;  %v9177_v13 = vmax.f32 %v9113_v37, 0.0  ;;  %v9178_v1 = vmax.f32 %v9114_v31, 0.0  ;;  %v9117_v14 = vadd.f32 %v14318_v21, %v14410_v8  ;;  %v15335_v24 = vld [vmem:[#allocation20_spill] sm:$0xff] }
 0x409   :  { %11057 = vmatprep.mubr.bf16.mxu1 %v9221_v42  ;;  %v14612_v32 = vpack.c.bf16 %v9176_v0, %v9175_v34  ;;  %v9179_v41 = vmax.f32 %v9115_v22, 0.0  ;;  %v9180_v46 = vmax.f32 %v9116_v19, 0.0  ;;  %v9118_v29 = vadd.f32 %v14318_v21, %v14414_v23  ;;  %v15336_v42 = vld [vmem:[#allocation21_spill] sm:$0xff] }
 0x40a   :  { %v14616_v15 = vpack.c.bf16 %v9178_v1, %v9177_v13  ;;  %v9181_v63 = vmax.f32 %v9117_v14, 0.0  ;;  %v9119_v47 = vadd.f32 %v14318_v21, %v14418_v51  ;;  %v9120_v62 = vadd.f32 %v14318_v21, %v15335_v24 }
 0x40b   :  { %v14622_v2 = vpack.c.bf16 %v9180_v46, %v9179_v41  ;;  %v9182_v8 = vmax.f32 %v9118_v29, 0.0  ;;  %v9121_v45 = vadd.f32 %v14318_v21, %v15336_v42  ;;  %v9122_v9 = vadd.f32 %v14318_v21, %v15337_v25 }
 0x40c   :  { %v9183_v35 = vmax.f32 %v9119_v47, 0.0  ;;  %v9184_v23 = vmax.f32 %v9120_v62, 0.0  ;;  %v9123_v52 = vadd.f32 %v14318_v21, %v14434_v12  ;;  %v9124_v51 = vadd.f32 %v14318_v21, %v14438_v4 }
 0x40d   :  { %v14632_v49 = vpack.c.bf16 %v9182_v8, %v9181_v63  ;;  %v9185_v10 = vmax.f32 %v9121_v45, 0.0  ;;  %v9186_v50 = vmax.f32 %v9122_v9, 0.0  ;;  %v9125_v30 = vadd.f32 %v14318_v21, %v14442_v38 }
 0x40e   :  { %v14636_v36 = vpack.c.bf16 %v9184_v23, %v9183_v35  ;;  %v9187_v40 = vmax.f32 %v9123_v52, 0.0  ;;  %v9188_v17 = vmax.f32 %v9124_v51, 0.0  ;;  %v9126_v48 = vadd.f32 %v14318_v21, %v14446_v11  ;;  %v15340_v23 = vld [vmem:[#allocation25_spill] sm:$0xff]  ;;  %v15341_v52 = vld [vmem:[#allocation26_spill] sm:$0xff] }
 0x40f   :  { %v14640_v39 = vpack.c.bf16 %v9186_v50, %v9185_v10  ;;  %v9189_v12 = vmax.f32 %v9125_v30, 0.0  ;;  %v9127_v4 = vadd.f32 %v14318_v21, %v14450_v3  ;;  %v9128_v59 = vadd.f32 %v14318_v21, %v14454_v61  ;;  %v15342_v30 = vld [vmem:[#allocation27_spill] sm:$0xff] }
 0x410   :  { %11058 = vmatmul.mubr.bf16.gmra.mrb[200].mxu1 %v9222_v58  ;;  %v14646_v18 = vpack.c.bf16 %v9188_v17, %v9187_v40  ;;  %v9190_v38 = vmax.f32 %v9126_v48, 0.0  ;;  %v9129_v34 = vadd.f32 %v14318_v21, %v14458_v55  ;;  %v9130_v37 = vadd.f32 %v14318_v21, %v14462_v16  ;;  %v15343_v40 = vld [vmem:[#allocation28_spill] sm:$0xff] }
 0x411   :  { %11061 = vmatprep.mubr.bf16.mxu1 %v9223_v20  ;;  %v9191_v11 = vmax.f32 %v9127_v4, 0.0  ;;  %v9192_v31 = vmax.f32 %v9128_v59, 0.0  ;;  %v9131_v0 = vadd.f32 %v14318_v21, %v14466_v44  ;;  %v9132_v3 = vadd.f32 %v14318_v21, %v14470_v57  ;;  %v15344_v4 = vld [vmem:[#allocation29_spill] sm:$0xff]  ;;  %v15345_v59 = vld [vmem:[#allocation30_spill] sm:$0xff] }
 0x412   :  { %v14656_v61 = vpack.c.bf16 %v9190_v38, %v9189_v12  ;;  %v9193_v58 = vmax.f32 %v9129_v34, 0.0  ;;  %v9194_v22 = vmax.f32 %v9130_v37, 0.0  ;;  %v9133_v19 = vadd.f32 %v14318_v21, %v14474_v5 }
 0x413   :  { %v14660_v55 = vpack.c.bf16 %v9192_v31, %v9191_v11  ;;  %v9195_v13 = vmax.f32 %v9131_v0, 0.0  ;;  %v9196_v16 = vmax.f32 %v9132_v3, 0.0  ;;  %v9134_v20 = vadd.f32 %v14318_v21, %v14478_v43  ;;  %v15346_v31 = vld [vmem:[#allocation31_spill] sm:$0xff] }
 0x414   :  { %v9237_v1 = vpack.c.bf16 %v9194_v22, %v9193_v58  ;;  %v9197_v14 = vmax.f32 %v9133_v19, 0.0  ;;  %v9135_v44 = vadd.f32 %v14318_v21, %v14482_v33  ;;  %v9136_v57 = vadd.f32 %v14318_v21, %v14486_v56  ;;  %v15338_v56 = vld [vmem:[#allocation23_spill] sm:$0xff]  ;;  %v15347_v19 = vld [vmem:[#allocation32_spill] sm:$0xff] }
 0x415   :  { %v9238_v41 = vpack.c.bf16 %v9196_v16, %v9195_v13  ;;  %v9198_v46 = vmax.f32 %v9134_v20, 0.0  ;;  %v9137_v5 = vadd.f32 %v14318_v21, %v14490_v7  ;;  %v9138_v29 = vadd.f32 %v14318_v21, %v14494_v6  ;;  %v15339_v6 = vld [vmem:[#allocation24_spill] sm:$0xff] }
 0x416   :  { %v9199_v63 = vmax.f32 %v9135_v44, 0.0  ;;  %v9200_v47 = vmax.f32 %v9136_v57, 0.0  ;;  %v9139_v43 = vadd.f32 %v14318_v21, %v14498_v60  ;;  %v9140_v24 = vadd.f32 %v14318_v21, %v14502_v27  ;;  %v15349_v57 = vld [vmem:[#allocation19_spill] sm:$0xff] }
 0x417   :  { %v9239_v33 = vpack.c.bf16 %v9198_v46, %v9197_v14  ;;  %v9201_v62 = vmax.f32 %v9137_v5, 0.0  ;;  %v9202_v8 = vmax.f32 %v9138_v29, 0.0  ;;  %v9141_v42 = vadd.f32 %v14318_v21, %v15338_v56  ;;  %v15348_v14 = vld [vmem:[#allocation33_spill] sm:$0xff]  ;;  %v9608_v56 = vld [vmem:[%s15171_s1 + $0x30] sm:$0xff] }
 0x418   :  { %11062 = vmatmul.mubr.bf16.gmra.mrb[204].mxu1 %v14588_v53  ;;  %v9240_v7 = vpack.c.bf16 %v9200_v47, %v9199_v63  ;;  %v9203_v45 = vmax.f32 %v9139_v43, 0.0  ;;  %v9204_v25 = vmax.f32 %v9140_v24, 0.0  ;;  %v9142_v9 = vadd.f32 %v14318_v21, %v15339_v6 }
 0x419   :  { %11065 = vmatprep.mubr.bf16.mxu1 %v14594_v28  ;;  %v9241_v60 = vpack.c.bf16 %v9202_v8, %v9201_v62  ;;  %v9205_v35 = vmax.f32 %v9141_v42, 0.0  ;;  %v9143_v27 = vadd.f32 %v14318_v21, %v15340_v23  ;;  %v9144_v51 = vadd.f32 %v14318_v21, %v15341_v52  ;;  %v9606_v42 = vld [vmem:[%s15171_s1 + $0x20] sm:$0xff] }
 0x41a   :  { %v9242_v10 = vpack.c.bf16 %v9204_v25, %v9203_v45  ;;  %v9206_v50 = vmax.f32 %v9142_v9, 0.0  ;;  %v9145_v53 = vadd.f32 %v14318_v21, %v15342_v30  ;;  %v9146_v17 = vadd.f32 %v14318_v21, %v15343_v40  ;;  %v9609_v45 = vld [vmem:[%s15171_s1 + $0x38] sm:$0xff]  ;;  %v9607_v9 = vld [vmem:[%s15171_s1 + $0x28] sm:$0xff]  ;;  %v9610_v40 = vld [vmem:[%s15171_s1 + $0x40] sm:$0xff] }
 0x41b   :  { %v9207_v48 = vmax.f32 %v9143_v27, 0.0  ;;  %v9208_v12 = vmax.f32 %v9144_v51, 0.0  ;;  %v9147_v28 = vadd.f32 %v14318_v21, %v15344_v4  ;;  %v9148_v38 = vadd.f32 %v14318_v21, %v15345_v59 }
 0x41c   :  { %v9243_v34 = vpack.c.bf16 %v9206_v50, %v9205_v35  ;;  %v9209_v37 = vmax.f32 %v9145_v53, 0.0  ;;  %v9210_v11 = vmax.f32 %v9146_v17, 0.0  ;;  %v9149_v0 = vadd.f32 %v14318_v21, %v15346_v31  ;;  %v9612_v53 = vld [vmem:[%s15171_s1 + $0x50] sm:$0xff] }
 0x41d   :  { %v9244_v3 = vpack.c.bf16 %v9208_v12, %v9207_v48  ;;  %v9211_v58 = vmax.f32 %v9147_v28, 0.0  ;;  %v9212_v22 = vmax.f32 %v9148_v38, 0.0  ;;  %v9150_v13 = vadd.f32 %v14318_v21, %v15347_v19  ;;  %v9613_v48 = vld [vmem:[%s15171_s1 + $0x58] sm:$0xff]  ;;  %v9611_v28 = vld [vmem:[%s15171_s1 + $0x48] sm:$0xff]  ;;  %v9614_v19 = vld [vmem:[%s15171_s1 + $0x60] sm:$0xff] }
 0x41e   :  { %v9245_v16 = vpack.c.bf16 %v9210_v11, %v9209_v37  ;;  %v9213_v20 = vmax.f32 %v9149_v0, 0.0  ;;  %v9151_v44 = vadd.f32 %v14318_v21, %v15348_v14  ;;  %v9152_v46 = vadd.f32 %v14318_v21, %v15349_v57  ;;  %v9604_v21 = vld [vmem:[%s15171_s1 + $0x10] sm:$0xff] }
 0x41f   :  { %v9246_v5 = vpack.c.bf16 %v9212_v22, %v9211_v58  ;;  %v9214_v29 = vmax.f32 %v9150_v13, 0.0  ;;  %v9616_v22 = vld [vmem:[%s15171_s1 + $0x70] sm:$0xff] }
 0x420   :  { %11066 = vmatmul.mubr.bf16.gmra.mrb[208].mxu1 %v14602_v26  ;;  %v9215_v63 = vmax.f32 %v9151_v44, 0.0  ;;  %v9216_v47 = vmax.f32 %v9152_v46, 0.0  ;;  %v9602_v26 = vld [vmem:[%s15171_s1] sm:$0xff]  ;;  %v9615_v44 = vld [vmem:[%s15171_s1 + $0x68] sm:$0xff] }
 0x421   :  { %11069 = vmatprep.mubr.bf16.mxu1 %v14608_v54  ;;  %v9247_v43 = vpack.c.bf16 %v9214_v29, %v9213_v20 }
 0x422   :  { %v9248_v24 = vpack.c.bf16 %v9216_v47, %v9215_v63 }
 0x428   :  { %11070 = vmatmul.mubr.bf16.gmra.mrb[212].mxu1 %v14612_v32  ;;  %v14722_v32 = vld [vmem:[%s15172_s6] ss:$0 sm:$0xff] }
 0x429   :  { %11073 = vmatprep.mubr.bf16.mxu1 %v14616_v15  ;;  %v9605_v15 = vld [vmem:[%s15171_s1 + $0x18] sm:$0xff] }
 0x430   :  { %11074 = vmatmul.mubr.bf16.gmra.mrb[216].mxu1 %v14622_v2 }
 0x431   :  { %11077 = vmatprep.mubr.bf16.mxu1 %v14632_v49 }
 0x438   :  { %11078 = vmatmul.mubr.bf16.gmra.mrb[220].mxu1 %v14636_v36  ;;  %v9603_v36 = vld [vmem:[%s15171_s1 + $0x8] sm:$0xff] }
 0x439   :  { %11081 = vmatprep.mubr.bf16.mxu1 %v14640_v39 }
 0x440   :  { %11082 = vmatmul.mubr.bf16.gmra.mrb[224].mxu1 %v14646_v18 }
 0x441   :  { %11085 = vmatprep.mubr.bf16.mxu1 %v14656_v61 }
 0x448   :  { %11086 = vmatmul.mubr.bf16.gmra.mrb[228].mxu1 %v14660_v55 }
 0x449   :  { %11089 = vmatprep.mubr.bf16.mxu1 %v9237_v1 }
 0x450   :  { %11090 = vmatmul.mubr.bf16.gmra.mrb[232].mxu1 %v9238_v41 }
 0x451   :  { %11093 = vmatprep.mubr.bf16.mxu1 %v9239_v33 }
 0x458   :  { %11094 = vmatmul.mubr.bf16.gmra.mrb[236].mxu1 %v9240_v7 }
 0x459   :  { %11097 = vmatprep.mubr.bf16.mxu1 %v9241_v60 }
 0x460   :  { %11098 = vmatmul.mubr.bf16.gmra.mrb[240].mxu1 %v9242_v10 }
 0x461   :  { %11101 = vmatprep.mubr.bf16.mxu1 %v9243_v34 }
 0x468   :  { %11102 = vmatmul.mubr.bf16.gmra.mrb[244].mxu1 %v9244_v3 }
 0x469   :  { %11105 = vmatprep.mubr.bf16.mxu1 %v9245_v16  ;;  %v9617_v16 = vld [vmem:[%s15171_s1 + $0x78] sm:$0xff] }
 0x470   :  { %11106 = vmatmul.mubr.bf16.gmra.mrb[248].mxu1 %v9246_v5 }
 0x471   :  { %11109 = vmatprep.mubr.bf16.mxu1 %v9247_v43 }
 0x478   :  { %11110 = vmatmul.mubr.bf16.gmra.mrb[252].mxu1 %v9248_v24 }
 0x4d3   :  { %v11051_v54 = vpop.f32.mrb[192].mxu1 }
 0x4d4   :  { %v9668_v2 = vadd.f32 %v11051_v54, %v9604_v21  ;;  %v9347_v49 = vpop.f32.mrb[193].mxu1  ;;  %v9618_v54 = vld [vmem:[%s15171_s1 + $0x80] sm:$0xff] }
 0x4d5   :  { %v9666_v39 = vadd.f32 %v9602_v26, %v9347_v49  ;;  %v11052_v18 = vpop.f32.mrb[194].mxu1  ;;  %v9620_v26 = vld [vmem:[%s15171_s1 + $0x90] sm:$0xff] }
 0x4d6   :  { %v9739_v61 = vadd.f32 %v14722_v32, %v9668_v2  ;;  %v9669_v55 = vadd.f32 %v11052_v18, %v9605_v15  ;;  %v9350_v1 = vpop.f32.mrb[195].mxu1  ;;  %v9621_v2 = vld [vmem:[%s15171_s1 + $0x98] sm:$0xff] }
 0x4d7   :  { %v9737_v41 = vadd.f32 %v14722_v32, %v9666_v39  ;;  %v9667_v33 = vadd.f32 %v9603_v36, %v9350_v1  ;;  %v9619_v39 = vld [vmem:[%s15171_s1 + $0x88] sm:$0xff] }
 0x4d8   :  { %9803 = vst [vmem:[%s15173_s7 + $0x10] sm:$0xff] %v9739_v61  ;;  %v9740_v62 = vadd.f32 %v14722_v32, %v9669_v55 }
 0x4d9   :  { %9801 = vst [vmem:[%s15173_s7] sm:$0xff] %v9737_v41  ;;  %v9738_v8 = vadd.f32 %v14722_v32, %v9667_v33 }
 0x4da   :  { %9804 = vst [vmem:[%s15173_s7 + $0x18] sm:$0xff] %v9740_v62 }
 0x4db   :  { %9802 = vst [vmem:[%s15173_s7 + $0x8] sm:$0xff] %v9738_v8  ;;  %v11055_v7 = vpop.f32.mrb[196].mxu1 }
 0x4dc   :  { %v9672_v25 = vadd.f32 %v11055_v7, %v9608_v56  ;;  %v9363_v6 = vpop.f32.mrb[197].mxu1  ;;  %v9622_v7 = vld [vmem:[%s15171_s1 + $0xa0] sm:$0xff] }
 0x4dd   :  { %v9670_v60 = vadd.f32 %v9606_v42, %v9363_v6  ;;  %v11056_v35 = vpop.f32.mrb[198].mxu1  ;;  %v9624_v42 = vld [vmem:[%s15171_s1 + $0xb0] sm:$0xff] }
 0x4de   :  { %v9743_v23 = vadd.f32 %v14722_v32, %v9672_v25  ;;  %v9673_v27 = vadd.f32 %v11056_v35, %v9609_v45  ;;  %v9366_v52 = vpop.f32.mrb[199].mxu1  ;;  %v9625_v25 = vld [vmem:[%s15171_s1 + $0xb8] sm:$0xff] }
 0x4df   :  { %v9741_v51 = vadd.f32 %v14722_v32, %v9670_v60  ;;  %v9671_v10 = vadd.f32 %v9607_v9, %v9366_v52  ;;  %v9623_v60 = vld [vmem:[%s15171_s1 + $0xa8] sm:$0xff] }
 0x4e0   :  { %9807 = vst [vmem:[%s15173_s7 + $0x30] sm:$0xff] %v9743_v23  ;;  %v9744_v50 = vadd.f32 %v14722_v32, %v9673_v27 }
 0x4e1   :  { %9805 = vst [vmem:[%s15173_s7 + $0x20] sm:$0xff] %v9741_v51  ;;  %v9742_v30 = vadd.f32 %v14722_v32, %v9671_v10 }
 0x4e2   :  { %9808 = vst [vmem:[%s15173_s7 + $0x38] sm:$0xff] %v9744_v50 }
 0x4e3   :  { %9806 = vst [vmem:[%s15173_s7 + $0x28] sm:$0xff] %v9742_v30  ;;  %v11059_v17 = vpop.f32.mrb[200].mxu1 }
 0x4e4   :  { %v9676_v12 = vadd.f32 %v11059_v17, %v9612_v53  ;;  %v9379_v4 = vpop.f32.mrb[201].mxu1  ;;  %v9626_v17 = vld [vmem:[%s15171_s1 + $0xc0] sm:$0xff] }
 0x4e5   :  { %v9674_v59 = vadd.f32 %v9610_v40, %v9379_v4  ;;  %v11060_v38 = vpop.f32.mrb[202].mxu1  ;;  %v9628_v40 = vld [vmem:[%s15171_s1 + $0xd0] sm:$0xff] }
 0x4e6   :  { %v9747_v34 = vadd.f32 %v14722_v32, %v9676_v12  ;;  %v9677_v37 = vadd.f32 %v11060_v38, %v9613_v48  ;;  %v9382_v11 = vpop.f32.mrb[203].mxu1  ;;  %v9629_v12 = vld [vmem:[%s15171_s1 + $0xd8] sm:$0xff] }
 0x4e7   :  { %v9745_v31 = vadd.f32 %v14722_v32, %v9674_v59  ;;  %v9675_v0 = vadd.f32 %v9611_v28, %v9382_v11  ;;  %v9627_v59 = vld [vmem:[%s15171_s1 + $0xc8] sm:$0xff] }
 0x4e8   :  { %9811 = vst [vmem:[%s15173_s7 + $0x50] sm:$0xff] %v9747_v34  ;;  %v9748_v3 = vadd.f32 %v14722_v32, %v9677_v37 }
 0x4e9   :  { %9809 = vst [vmem:[%s15173_s7 + $0x40] sm:$0xff] %v9745_v31  ;;  %v9746_v58 = vadd.f32 %v14722_v32, %v9675_v0 }
 0x4ea   :  { %9812 = vst [vmem:[%s15173_s7 + $0x58] sm:$0xff] %v9748_v3 }
 0x4eb   :  { %9810 = vst [vmem:[%s15173_s7 + $0x48] sm:$0xff] %v9746_v58  ;;  %v11063_v13 = vpop.f32.mrb[204].mxu1 }
 0x4ec   :  { %v9680_v20 = vadd.f32 %v11063_v13, %v9616_v22  ;;  %v9395_v14 = vpop.f32.mrb[205].mxu1  ;;  %v9630_v13 = vld [vmem:[%s15171_s1 + $0xe0] sm:$0xff] }
 0x4ed   :  { %v9678_v57 = vadd.f32 %v9614_v19, %v9395_v14  ;;  %v11064_v46 = vpop.f32.mrb[206].mxu1  ;;  %v9632_v19 = vld [vmem:[%s15171_s1 + $0xf0] sm:$0xff] }
 0x4ee   :  { %v9751_v5 = vadd.f32 %v14722_v32, %v9680_v20  ;;  %v9681_v29 = vadd.f32 %v11064_v46, %v9617_v16  ;;  %v9398_v63 = vpop.f32.mrb[207].mxu1  ;;  %v9633_v20 = vld [vmem:[%s15171_s1 + $0xf8] sm:$0xff] }
 0x4ef   :  { %v9749_v47 = vadd.f32 %v14722_v32, %v9678_v57  ;;  %v9679_v43 = vadd.f32 %v9615_v44, %v9398_v63  ;;  %v9631_v57 = vld [vmem:[%s15171_s1 + $0xe8] sm:$0xff] }
 0x4f0   :  { %9815 = vst [vmem:[%s15173_s7 + $0x70] sm:$0xff] %v9751_v5  ;;  %v9752_v24 = vadd.f32 %v14722_v32, %v9681_v29 }
 0x4f1   :  { %9813 = vst [vmem:[%s15173_s7 + $0x60] sm:$0xff] %v9749_v47  ;;  %v9750_v21 = vadd.f32 %v14722_v32, %v9679_v43 }
 0x4f2   :  { %9816 = vst [vmem:[%s15173_s7 + $0x78] sm:$0xff] %v9752_v24 }
 0x4f3   :  { %9814 = vst [vmem:[%s15173_s7 + $0x68] sm:$0xff] %v9750_v21  ;;  %v11067_v15 = vpop.f32.mrb[208].mxu1 }
 0x4f4   :  { %v9684_v49 = vadd.f32 %v11067_v15, %v9620_v26  ;;  %v9411_v36 = vpop.f32.mrb[209].mxu1  ;;  %v9634_v15 = vld [vmem:[%s15171_s1 + $0x100] sm:$0xff] }
 0x4f5   :  { %v9682_v18 = vadd.f32 %v9618_v54, %v9411_v36  ;;  %v11068_v61 = vpop.f32.mrb[210].mxu1  ;;  %v9636_v54 = vld [vmem:[%s15171_s1 + $0x110] sm:$0xff] }
 0x4f6   :  { %v9755_v55 = vadd.f32 %v14722_v32, %v9684_v49  ;;  %v9685_v1 = vadd.f32 %v11068_v61, %v9621_v2  ;;  %v9414_v41 = vpop.f32.mrb[211].mxu1  ;;  %v9637_v49 = vld [vmem:[%s15171_s1 + $0x118] sm:$0xff] }
 0x4f7   :  { %v9753_v33 = vadd.f32 %v14722_v32, %v9682_v18  ;;  %v9683_v62 = vadd.f32 %v9619_v39, %v9414_v41  ;;  %v9635_v18 = vld [vmem:[%s15171_s1 + $0x108] sm:$0xff] }
 0x4f8   :  { %9819 = vst [vmem:[%s15173_s7 + $0x90] sm:$0xff] %v9755_v55  ;;  %v9756_v8 = vadd.f32 %v14722_v32, %v9685_v1 }
 0x4f9   :  { %9817 = vst [vmem:[%s15173_s7 + $0x80] sm:$0xff] %v9753_v33  ;;  %v9754_v56 = vadd.f32 %v14722_v32, %v9683_v62 }
 0x4fa   :  { %9820 = vst [vmem:[%s15173_s7 + $0x98] sm:$0xff] %v9756_v8 }
 0x4fb   :  { %9818 = vst [vmem:[%s15173_s7 + $0x88] sm:$0xff] %v9754_v56  ;;  %v11071_v45 = vpop.f32.mrb[212].mxu1 }
 0x4fc   :  { %v9688_v6 = vadd.f32 %v11071_v45, %v9624_v42  ;;  %v9427_v9 = vpop.f32.mrb[213].mxu1  ;;  %v9638_v45 = vld [vmem:[%s15171_s1 + $0x120] sm:$0xff] }
 0x4fd   :  { %v9686_v35 = vadd.f32 %v9622_v7, %v9427_v9  ;;  %v11072_v23 = vpop.f32.mrb[214].mxu1  ;;  %v9640_v7 = vld [vmem:[%s15171_s1 + $0x130] sm:$0xff] }
 0x4fe   :  { %v9759_v27 = vadd.f32 %v14722_v32, %v9688_v6  ;;  %v9689_v52 = vadd.f32 %v11072_v23, %v9625_v25  ;;  %v9430_v51 = vpop.f32.mrb[215].mxu1  ;;  %v9641_v6 = vld [vmem:[%s15171_s1 + $0x138] sm:$0xff] }
 0x4ff   :  { %v9757_v10 = vadd.f32 %v14722_v32, %v9686_v35  ;;  %v9687_v50 = vadd.f32 %v9623_v60, %v9430_v51  ;;  %v9639_v35 = vld [vmem:[%s15171_s1 + $0x128] sm:$0xff] }
 0x500   :  { %9823 = vst [vmem:[%s15173_s7 + $0xb0] sm:$0xff] %v9759_v27  ;;  %v9760_v30 = vadd.f32 %v14722_v32, %v9689_v52 }
 0x501   :  { %9821 = vst [vmem:[%s15173_s7 + $0xa0] sm:$0xff] %v9757_v10  ;;  %v9758_v53 = vadd.f32 %v14722_v32, %v9687_v50 }
 0x502   :  { %9824 = vst [vmem:[%s15173_s7 + $0xb8] sm:$0xff] %v9760_v30 }
 0x503   :  { %9822 = vst [vmem:[%s15173_s7 + $0xa8] sm:$0xff] %v9758_v53  ;;  %v11075_v48 = vpop.f32.mrb[216].mxu1 }
 0x504   :  { %v9692_v4 = vadd.f32 %v11075_v48, %v9628_v40  ;;  %v9443_v28 = vpop.f32.mrb[217].mxu1  ;;  %v9642_v48 = vld [vmem:[%s15171_s1 + $0x140] sm:$0xff] }
 0x505   :  { %v9690_v38 = vadd.f32 %v9626_v17, %v9443_v28  ;;  %v11076_v34 = vpop.f32.mrb[218].mxu1  ;;  %v9644_v17 = vld [vmem:[%s15171_s1 + $0x150] sm:$0xff] }
 0x506   :  { %v9763_v37 = vadd.f32 %v14722_v32, %v9692_v4  ;;  %v9693_v11 = vadd.f32 %v11076_v34, %v9629_v12  ;;  %v9446_v31 = vpop.f32.mrb[219].mxu1  ;;  %v9645_v4 = vld [vmem:[%s15171_s1 + $0x158] sm:$0xff] }
 0x507   :  { %v9761_v0 = vadd.f32 %v14722_v32, %v9690_v38  ;;  %v9691_v3 = vadd.f32 %v9627_v59, %v9446_v31  ;;  %v9643_v38 = vld [vmem:[%s15171_s1 + $0x148] sm:$0xff] }
 0x508   :  { %9827 = vst [vmem:[%s15173_s7 + $0xd0] sm:$0xff] %v9763_v37  ;;  %v9764_v58 = vadd.f32 %v14722_v32, %v9693_v11 }
 0x509   :  { %9825 = vst [vmem:[%s15173_s7 + $0xc0] sm:$0xff] %v9761_v0  ;;  %v9762_v22 = vadd.f32 %v14722_v32, %v9691_v3 }
 0x50a   :  { %9828 = vst [vmem:[%s15173_s7 + $0xd8] sm:$0xff] %v9764_v58 }
 0x50b   :  { %9826 = vst [vmem:[%s15173_s7 + $0xc8] sm:$0xff] %v9762_v22  ;;  %v11079_v16 = vpop.f32.mrb[220].mxu1 }
 0x50c   :  { %v9696_v14 = vadd.f32 %v11079_v16, %v9632_v19  ;;  %v9459_v44 = vpop.f32.mrb[221].mxu1  ;;  %v9646_v16 = vld [vmem:[%s15171_s1 + $0x160] sm:$0xff] }
 0x50d   :  { %v9694_v46 = vadd.f32 %v9630_v13, %v9459_v44  ;;  %v11080_v5 = vpop.f32.mrb[222].mxu1  ;;  %v9648_v13 = vld [vmem:[%s15171_s1 + $0x170] sm:$0xff] }
 0x50e   :  { %v9767_v29 = vadd.f32 %v14722_v32, %v9696_v14  ;;  %v9697_v63 = vadd.f32 %v11080_v5, %v9633_v20  ;;  %v9462_v47 = vpop.f32.mrb[223].mxu1  ;;  %v9649_v14 = vld [vmem:[%s15171_s1 + $0x178] sm:$0xff] }
 0x50f   :  { %v9765_v43 = vadd.f32 %v14722_v32, %v9694_v46  ;;  %v9695_v24 = vadd.f32 %v9631_v57, %v9462_v47  ;;  %v9647_v46 = vld [vmem:[%s15171_s1 + $0x168] sm:$0xff] }
 0x510   :  { %9831 = vst [vmem:[%s15173_s7 + $0xf0] sm:$0xff] %v9767_v29  ;;  %v9768_v21 = vadd.f32 %v14722_v32, %v9697_v63 }
 0x511   :  { %9829 = vst [vmem:[%s15173_s7 + $0xe0] sm:$0xff] %v9765_v43  ;;  %v9766_v26 = vadd.f32 %v14722_v32, %v9695_v24 }
 0x512   :  { %9832 = vst [vmem:[%s15173_s7 + $0xf8] sm:$0xff] %v9768_v21 }
 0x513   :  { %9830 = vst [vmem:[%s15173_s7 + $0xe8] sm:$0xff] %v9766_v26  ;;  %v11083_v2 = vpop.f32.mrb[224].mxu1 }
 0x514   :  { %v9700_v36 = vadd.f32 %v11083_v2, %v9636_v54  ;;  %v9475_v39 = vpop.f32.mrb[225].mxu1  ;;  %v9650_v2 = vld [vmem:[%s15171_s1 + $0x180] sm:$0xff] }
 0x515   :  { %v9698_v61 = vadd.f32 %v9634_v15, %v9475_v39  ;;  %v11084_v55 = vpop.f32.mrb[226].mxu1  ;;  %v9652_v15 = vld [vmem:[%s15171_s1 + $0x190] sm:$0xff] }
 0x516   :  { %v9771_v1 = vadd.f32 %v14722_v32, %v9700_v36  ;;  %v9701_v41 = vadd.f32 %v11084_v55, %v9637_v49  ;;  %v9478_v33 = vpop.f32.mrb[227].mxu1  ;;  %v9653_v36 = vld [vmem:[%s15171_s1 + $0x198] sm:$0xff] }
 0x517   :  { %v9769_v62 = vadd.f32 %v14722_v32, %v9698_v61  ;;  %v9699_v8 = vadd.f32 %v9635_v18, %v9478_v33  ;;  %v9651_v61 = vld [vmem:[%s15171_s1 + $0x188] sm:$0xff] }
 0x518   :  { %9835 = vst [vmem:[%s15173_s7 + $0x110] sm:$0xff] %v9771_v1  ;;  %v9772_v56 = vadd.f32 %v14722_v32, %v9701_v41 }
 0x519   :  { %9833 = vst [vmem:[%s15173_s7 + $0x100] sm:$0xff] %v9769_v62  ;;  %v9770_v42 = vadd.f32 %v14722_v32, %v9699_v8 }
 0x51a   :  { %9836 = vst [vmem:[%s15173_s7 + $0x118] sm:$0xff] %v9772_v56 }
 0x51b   :  { %9834 = vst [vmem:[%s15173_s7 + $0x108] sm:$0xff] %v9770_v42  ;;  %v11087_v25 = vpop.f32.mrb[228].mxu1 }
 0x51c   :  { %v9704_v9 = vadd.f32 %v11087_v25, %v9640_v7  ;;  %v9491_v60 = vpop.f32.mrb[229].mxu1  ;;  %v9654_v25 = vld [vmem:[%s15171_s1 + $0x1a0] sm:$0xff] }
 0x51d   :  { %v9702_v23 = vadd.f32 %v9638_v45, %v9491_v60  ;;  %v11088_v27 = vpop.f32.mrb[230].mxu1  ;;  %v9656_v45 = vld [vmem:[%s15171_s1 + $0x1b0] sm:$0xff] }
 0x51e   :  { %v9775_v52 = vadd.f32 %v14722_v32, %v9704_v9  ;;  %v9705_v51 = vadd.f32 %v11088_v27, %v9641_v6  ;;  %v9494_v10 = vpop.f32.mrb[231].mxu1  ;;  %v9657_v9 = vld [vmem:[%s15171_s1 + $0x1b8] sm:$0xff] }
 0x51f   :  { %v9773_v50 = vadd.f32 %v14722_v32, %v9702_v23  ;;  %v9703_v30 = vadd.f32 %v9639_v35, %v9494_v10  ;;  %v9655_v23 = vld [vmem:[%s15171_s1 + $0x1a8] sm:$0xff] }
 0x520   :  { %9839 = vst [vmem:[%s15173_s7 + $0x130] sm:$0xff] %v9775_v52  ;;  %v9776_v53 = vadd.f32 %v14722_v32, %v9705_v51 }
 0x521   :  { %9837 = vst [vmem:[%s15173_s7 + $0x120] sm:$0xff] %v9773_v50  ;;  %v9774_v40 = vadd.f32 %v14722_v32, %v9703_v30 }
 0x522   :  { %9840 = vst [vmem:[%s15173_s7 + $0x138] sm:$0xff] %v9776_v53 }
 0x523   :  { %9838 = vst [vmem:[%s15173_s7 + $0x128] sm:$0xff] %v9774_v40  ;;  %v11091_v12 = vpop.f32.mrb[232].mxu1 }
 0x524   :  { %v9708_v28 = vadd.f32 %v11091_v12, %v9644_v17  ;;  %v9507_v59 = vpop.f32.mrb[233].mxu1  ;;  %v9658_v12 = vld [vmem:[%s15171_s1 + $0x1c0] sm:$0xff] }
 0x525   :  { %v9706_v34 = vadd.f32 %v9642_v48, %v9507_v59  ;;  %v11092_v37 = vpop.f32.mrb[234].mxu1  ;;  %v9660_v48 = vld [vmem:[%s15171_s1 + $0x1d0] sm:$0xff] }
 0x526   :  { %v9779_v11 = vadd.f32 %v14722_v32, %v9708_v28  ;;  %v9709_v31 = vadd.f32 %v11092_v37, %v9645_v4  ;;  %v9510_v0 = vpop.f32.mrb[235].mxu1  ;;  %v9661_v28 = vld [vmem:[%s15171_s1 + $0x1d8] sm:$0xff] }
 0x527   :  { %v9777_v3 = vadd.f32 %v14722_v32, %v9706_v34  ;;  %v9707_v58 = vadd.f32 %v9643_v38, %v9510_v0  ;;  %v9659_v34 = vld [vmem:[%s15171_s1 + $0x1c8] sm:$0xff] }
 0x528   :  { %9843 = vst [vmem:[%s15173_s7 + $0x150] sm:$0xff] %v9779_v11  ;;  %v9780_v22 = vadd.f32 %v14722_v32, %v9709_v31 }
 0x529   :  { %9841 = vst [vmem:[%s15173_s7 + $0x140] sm:$0xff] %v9777_v3  ;;  %v9778_v19 = vadd.f32 %v14722_v32, %v9707_v58 }
 0x52a   :  { %9844 = vst [vmem:[%s15173_s7 + $0x158] sm:$0xff] %v9780_v22 }
 0x52b   :  { %9842 = vst [vmem:[%s15173_s7 + $0x148] sm:$0xff] %v9778_v19  ;;  %v11095_v20 = vpop.f32.mrb[236].mxu1 }
 0x52c   :  { %v9712_v44 = vadd.f32 %v11095_v20, %v9648_v13  ;;  %v9523_v57 = vpop.f32.mrb[237].mxu1  ;;  %v9662_v20 = vld [vmem:[%s15171_s1 + $0x1e0] sm:$0xff] }
 0x52d   :  { %v9710_v5 = vadd.f32 %v9646_v16, %v9523_v57  ;;  %v11096_v29 = vpop.f32.mrb[238].mxu1  ;;  %v9664_v16 = vld [vmem:[%s15171_s1 + $0x1f0] sm:$0xff] }
 0x52e   :  { %v9783_v63 = vadd.f32 %v14722_v32, %v9712_v44  ;;  %v9713_v47 = vadd.f32 %v11096_v29, %v9649_v14  ;;  %v9526_v43 = vpop.f32.mrb[239].mxu1  ;;  %v9665_v44 = vld [vmem:[%s15171_s1 + $0x1f8] sm:$0xff] }
 0x52f   :  { %v9781_v24 = vadd.f32 %v14722_v32, %v9710_v5  ;;  %v9711_v21 = vadd.f32 %v9647_v46, %v9526_v43  ;;  %v9663_v5 = vld [vmem:[%s15171_s1 + $0x1e8] sm:$0xff] }
 0x530   :  { %9847 = vst [vmem:[%s15173_s7 + $0x170] sm:$0xff] %v9783_v63  ;;  %v9784_v26 = vadd.f32 %v14722_v32, %v9713_v47 }
 0x531   :  { %9845 = vst [vmem:[%s15173_s7 + $0x160] sm:$0xff] %v9781_v24  ;;  %v9782_v54 = vadd.f32 %v14722_v32, %v9711_v21 }
 0x532   :  { %9848 = vst [vmem:[%s15173_s7 + $0x178] sm:$0xff] %v9784_v26 }
 0x533   :  { %9846 = vst [vmem:[%s15173_s7 + $0x168] sm:$0xff] %v9782_v54  ;;  %v11099_v49 = vpop.f32.mrb[240].mxu1 }
 0x534   :  { %v9716_v39 = vadd.f32 %v11099_v49, %v9652_v15  ;;  %v9539_v18 = vpop.f32.mrb[241].mxu1 }
 0x535   :  { %v9714_v55 = vadd.f32 %v9650_v2, %v9539_v18  ;;  %v11100_v1 = vpop.f32.mrb[242].mxu1 }
 0x536   :  { %v9787_v41 = vadd.f32 %v14722_v32, %v9716_v39  ;;  %v9717_v33 = vadd.f32 %v11100_v1, %v9653_v36  ;;  %v9542_v62 = vpop.f32.mrb[243].mxu1 }
 0x537   :  { %v9785_v8 = vadd.f32 %v14722_v32, %v9714_v55  ;;  %v9715_v56 = vadd.f32 %v9651_v61, %v9542_v62 }
 0x538   :  { %9851 = vst [vmem:[%s15173_s7 + $0x190] sm:$0xff] %v9787_v41  ;;  %v9788_v42 = vadd.f32 %v14722_v32, %v9717_v33 }
 0x539   :  { %9849 = vst [vmem:[%s15173_s7 + $0x180] sm:$0xff] %v9785_v8  ;;  %v9786_v7 = vadd.f32 %v14722_v32, %v9715_v56 }
 0x53a   :  { %9852 = vst [vmem:[%s15173_s7 + $0x198] sm:$0xff] %v9788_v42 }
 0x53b   :  { %9850 = vst [vmem:[%s15173_s7 + $0x188] sm:$0xff] %v9786_v7  ;;  %v11103_v6 = vpop.f32.mrb[244].mxu1 }
 0x53c   :  { %v9720_v60 = vadd.f32 %v11103_v6, %v9656_v45  ;;  %v9555_v35 = vpop.f32.mrb[245].mxu1 }
 0x53d   :  { %v9718_v27 = vadd.f32 %v9654_v25, %v9555_v35  ;;  %v11104_v52 = vpop.f32.mrb[246].mxu1 }
 0x53e   :  { %v9791_v51 = vadd.f32 %v14722_v32, %v9720_v60  ;;  %v9721_v10 = vadd.f32 %v11104_v52, %v9657_v9  ;;  %v9558_v50 = vpop.f32.mrb[247].mxu1 }
 0x53f   :  { %v9789_v30 = vadd.f32 %v14722_v32, %v9718_v27  ;;  %v9719_v53 = vadd.f32 %v9655_v23, %v9558_v50 }
 0x540   :  { %9855 = vst [vmem:[%s15173_s7 + $0x1b0] sm:$0xff] %v9791_v51  ;;  %v9792_v40 = vadd.f32 %v14722_v32, %v9721_v10 }
 0x541   :  { %9853 = vst [vmem:[%s15173_s7 + $0x1a0] sm:$0xff] %v9789_v30  ;;  %v9790_v17 = vadd.f32 %v14722_v32, %v9719_v53 }
 0x542   :  { %9856 = vst [vmem:[%s15173_s7 + $0x1b8] sm:$0xff] %v9792_v40 }
 0x543   :  { %9854 = vst [vmem:[%s15173_s7 + $0x1a8] sm:$0xff] %v9790_v17  ;;  %v11107_v4 = vpop.f32.mrb[248].mxu1 }
 0x544   :  { %v9724_v59 = vadd.f32 %v11107_v4, %v9660_v48  ;;  %v9571_v38 = vpop.f32.mrb[249].mxu1 }
 0x545   :  { %v9722_v37 = vadd.f32 %v9658_v12, %v9571_v38  ;;  %v11108_v11 = vpop.f32.mrb[250].mxu1 }
 0x546   :  { %v9795_v31 = vadd.f32 %v14722_v32, %v9724_v59  ;;  %v9725_v0 = vadd.f32 %v11108_v11, %v9661_v28  ;;  %v9574_v3 = vpop.f32.mrb[251].mxu1 }
 0x547   :  { %v9793_v58 = vadd.f32 %v14722_v32, %v9722_v37  ;;  %v9723_v22 = vadd.f32 %v9659_v34, %v9574_v3 }
 0x548   :  { %9859 = vst [vmem:[%s15173_s7 + $0x1d0] sm:$0xff] %v9795_v31  ;;  %v9796_v19 = vadd.f32 %v14722_v32, %v9725_v0 }
 0x549   :  { %9857 = vst [vmem:[%s15173_s7 + $0x1c0] sm:$0xff] %v9793_v58  ;;  %v9794_v13 = vadd.f32 %v14722_v32, %v9723_v22 }
 0x54a   :  { %9860 = vst [vmem:[%s15173_s7 + $0x1d8] sm:$0xff] %v9796_v19 }
 0x54b   :  { %9858 = vst [vmem:[%s15173_s7 + $0x1c8] sm:$0xff] %v9794_v13  ;;  %v11111_v14 = vpop.f32.mrb[252].mxu1 }
 0x54c   :  { %v9728_v57 = vadd.f32 %v11111_v14, %v9664_v16  ;;  %v9587_v46 = vpop.f32.mrb[253].mxu1 }
 0x54d   :  { %v9726_v29 = vadd.f32 %v9662_v20, %v9587_v46  ;;  %v11112_v63 = vpop.f32.mrb[254].mxu1 }
 0x54e   :  { %v9799_v47 = vadd.f32 %v14722_v32, %v9728_v57  ;;  %v9729_v43 = vadd.f32 %v11112_v63, %v9665_v44  ;;  %v9590_v24 = vpop.f32.mrb[255].mxu1 }
 0x54f   :  { %v9797_v21 = vadd.f32 %v14722_v32, %v9726_v29  ;;  %v9727_v26 = vadd.f32 %v9663_v5, %v9590_v24 }
 0x550   :  { %9863 = vst [vmem:[%s15173_s7 + $0x1f0] sm:$0xff] %v9799_v47  ;;  %v9800_v54 = vadd.f32 %v14722_v32, %v9729_v43 }
 0x551   :  { %9861 = vst [vmem:[%s15173_s7 + $0x1e0] sm:$0xff] %v9797_v21  ;;  %v9798_v15 = vadd.f32 %v14722_v32, %v9727_v26 }
 0x552   :  { %9864 = vst [vmem:[%s15173_s7 + $0x1f8] sm:$0xff] %v9800_v54 }
 0x553   :  { %9862 = vst [vmem:[%s15173_s7 + $0x1e8] sm:$0xff] %v9798_v15 }

</bundles_post_ra>
